<compile_context>
chip_gen: v6e
topology: v6e:2x2x1
jax: 0.10.0
libtpu: 0.0.40
codegen_flags: <defaults>
</compile_context>

<pallas_src>
import functools

import jax
import jax.numpy as jnp
from jax.experimental import pallas as pl
from jax.experimental.pallas import tpu as pltpu

EPS = 1e-3

BLOCK_M = 256            # GEMM rows per tile (N*Ho*Wo axis)
BLOCK_N = 128            # GEMM cols per tile (Cout axis) -- keeps >=2 parallel N blocks
MAX_BLOCK_K = 2048       # collapse the reduction axis to a single step for these layers
VMEM_LIMIT = 32 * 1024 * 1024


def _round_up(x, m):
    return (x + m - 1) // m * m


# ----------------------------------------------------------------------------
# Pallas kernels
# ----------------------------------------------------------------------------
def _gemm_stats_kernel(x_ref, w_ref, y_ref, s_ref, ss_ref, acc_ref):
    """Tiled im2col-GEMM conv + per-M-block channel sum / sum-of-squares.

    x_ref:   (bm, bk)     bf16 patches tile
    w_ref:   (bk, bn)     bf16 weight tile
    y_ref:   (bm, bn)     bf16 conv output tile
    s_ref:   (1, 1, bn)   f32 channel sum over this M block
    ss_ref:  (1, 1, bn)   f32 channel sum-of-squares over this M block
    acc_ref: (bm, bn)     f32 VMEM accumulator
    """
    k = pl.program_id(2)

    @pl.when(k == 0)
    def _():
        acc_ref[...] = jnp.zeros_like(acc_ref)

    acc_ref[...] += jnp.dot(x_ref[...], w_ref[...],
                            preferred_element_type=jnp.float32)

    @pl.when(k == pl.num_programs(2) - 1)
    def _():
        acc = acc_ref[...]
        y_ref[...] = acc.astype(y_ref.dtype)
        s_ref[...] = jnp.sum(acc, axis=0, keepdims=True).reshape(s_ref.shape)
        ss_ref[...] = jnp.sum(acc * acc, axis=0, keepdims=True).reshape(ss_ref.shape)


def _bn_scale_shift_kernel(s_ref, ss_ref, gamma_ref, beta_ref,
                           scale_ref, shift_ref, *, m_true):
    """Fold per-M-block partial stats once into per-channel scale/shift.

    s_ref/ss_ref: (Mb, 1, bn)  partial sums / sums-of-squares
    gamma/beta:   (1, bn)
    scale/shift:  (1, bn)      y_norm = y * scale + shift
    """
    inv_m = 1.0 / m_true                                  # true M (excludes padded rows)
    mean = jnp.sum(s_ref[...], axis=0) * inv_m            # (1, bn)
    ex2 = jnp.sum(ss_ref[...], axis=0) * inv_m            # (1, bn)
    var = jnp.maximum(ex2 - mean * mean, 0.0)
    scale = jax.lax.rsqrt(var + EPS) * gamma_ref[...]
    scale_ref[...] = scale
    shift_ref[...] = beta_ref[...] - mean * scale


def _bn_relu_kernel(y_ref, scale_ref, shift_ref, o_ref):
    """Apply precomputed BN scale/shift + ReLU (pure VPU elementwise)."""
    y = y_ref[...].astype(jnp.float32)
    o_ref[...] = jnp.maximum(y * scale_ref[...] + shift_ref[...],
                             0.0).astype(o_ref.dtype)


def _maxpool_kernel(a_ref, b_ref, c_ref, d_ref, o_ref):
    """3x3 stride-2 max pool from even/odd phase planes (unit-stride taps only).

    a: phase(0,0) (1, Ho+1, Wo+1, bc)   b: phase(0,1) (1, Ho+1, Wo, bc)
    c: phase(1,0) (1, Ho,   Wo+1, bc)   d: phase(1,1) (1, Ho,   Wo, bc)
    o: (1, Ho, Wo, bc)
    """
    Ho = o_ref.shape[1]
    Wo = o_ref.shape[2]
    a = a_ref[...]
    b = b_ref[...]
    c = c_ref[...]
    d = d_ref[...]
    r = a[:, :Ho, :Wo, :]
    r = jnp.maximum(r, a[:, :Ho, 1:Wo + 1, :])
    r = jnp.maximum(r, a[:, 1:Ho + 1, :Wo, :])
    r = jnp.maximum(r, a[:, 1:Ho + 1, 1:Wo + 1, :])
    r = jnp.maximum(r, b[:, :Ho, :, :])
    r = jnp.maximum(r, b[:, 1:Ho + 1, :, :])
    r = jnp.maximum(r, c[:, :, :Wo, :])
    r = jnp.maximum(r, c[:, :, 1:Wo + 1, :])
    r = jnp.maximum(r, d)
    o_ref[...] = r


# ----------------------------------------------------------------------------
# JAX glue: im2col patch extraction (pure layout plumbing, no compute)
# ----------------------------------------------------------------------------
def _extract_patches(x_nhwc, kh, kw, stride, pad_h, pad_w):
    N, H, W, C = x_nhwc.shape
    xp = jnp.pad(x_nhwc, ((0, 0), (pad_h, pad_h), (pad_w, pad_w), (0, 0)))
    Ho = (H + 2 * pad_h - kh) // stride + 1
    Wo = (W + 2 * pad_w - kw) // stride + 1
    cols = []
    for i in range(kh):
        for j in range(kw):
            cols.append(
                jax.lax.slice(
                    xp,
                    (0, i, j, 0),
                    (N, i + (Ho - 1) * stride + 1, j + (Wo - 1) * stride + 1, C),
                    (1, stride, stride, 1),
                )
            )
    patches = jnp.concatenate(cols, axis=-1)  # (N, Ho, Wo, kh*kw*C)
    return patches, Ho, Wo


# ----------------------------------------------------------------------------
# Layer wrappers calling pallas_call
# ----------------------------------------------------------------------------
def conv_bn_relu(x_nhwc, w_oihw, gamma, beta, *, stride=1, padding=(0, 0)):
    """Conv (no bias) + train-mode BatchNorm(eps=1e-3) + ReLU.

    `x_nhwc` may carry zero-padded trailing channels (>= the weight's Cin).
    Returns a bf16 NHWC activation whose Cout is zero-padded up to a multiple
    of BLOCK_N, so the next layer consumes it with no extra slice/pad/cast pass.
    """
    N, H, W, Cx = x_nhwc.shape
    Cout, Cin, kh, kw = w_oihw.shape
    assert Cx >= Cin, (Cx, Cin)

    if kh == 1 and kw == 1 and stride == 1 and padding == (0, 0):
        # 1x1 conv: no im2col, the activation IS the GEMM lhs.  Carry padded
        # channels and zero-pad the weight's Cin to match (zeros contribute 0).
        Ho, Wo = H, W
        patches = x_nhwc
        w_t = jnp.transpose(w_oihw, (2, 3, 1, 0))                 # (1,1,Cin,Cout)
        w_t = jnp.pad(w_t, ((0, 0), (0, 0), (0, Cx - Cin), (0, 0)))
        K = Cx
    else:
        # im2col path: drop padded channels while the patch matrix is built
        # (the slice fuses into the materialization -> no extra HBM pass).
        x_in = x_nhwc[..., :Cin] if Cx > Cin else x_nhwc
        patches, Ho, Wo = _extract_patches(x_in, kh, kw, stride,
                                           padding[0], padding[1])
        w_t = jnp.transpose(w_oihw, (2, 3, 1, 0))                 # (kh,kw,Cin,Cout)
        K = kh * kw * Cin

    M = N * Ho * Wo

    # bf16 operands, f32 MXU accumulation (layer outputs are already bf16).
    x2d = patches.reshape(M, K).astype(jnp.bfloat16)
    w2d = w_t.reshape(K, Cout).astype(jnp.bfloat16)

    bn = BLOCK_N
    bm = min(BLOCK_M, _round_up(M, 16))
    bk = K if K <= MAX_BLOCK_K else MAX_BLOCK_K
    Mp = _round_up(M, bm)
    Np = _round_up(Cout, bn)
    Kp = _round_up(K, bk)
    Mb, Nb, Kb = Mp // bm, Np // bn, Kp // bk

    # Zero-padding: pad K / pad M rows contribute nothing to GEMM or stats.
    if Mp != M or Kp != K:
        x2d = jnp.pad(x2d, ((0, Mp - M), (0, Kp - K)))
    w2d = jnp.pad(w2d, ((0, Kp - K), (0, Np - Cout)))
    g2d = jnp.pad(gamma.astype(jnp.float32).reshape(1, Cout),
                  ((0, 0), (0, Np - Cout)))
    b2d = jnp.pad(beta.astype(jnp.float32).reshape(1, Cout),
                  ((0, 0), (0, Np - Cout)))

    y_pad, psum, psumsq = pl.pallas_call(
        _gemm_stats_kernel,
        out_shape=(jax.ShapeDtypeStruct((Mp, Np), jnp.bfloat16),
                   jax.ShapeDtypeStruct((Mb, 1, Np), jnp.float32),
                   jax.ShapeDtypeStruct((Mb, 1, Np), jnp.float32)),
        grid=(Mb, Nb, Kb),
        in_specs=[
            pl.BlockSpec((bm, bk), lambda m, n, k: (m, k)),
            pl.BlockSpec((bk, bn), lambda m, n, k: (k, n)),
        ],
        out_specs=(
            pl.BlockSpec((bm, bn), lambda m, n, k: (m, n)),
            pl.BlockSpec((1, 1, bn), lambda m, n, k: (m, 0, n)),
            pl.BlockSpec((1, 1, bn), lambda m, n, k: (m, 0, n)),
        ),
        scratch_shapes=[pltpu.VMEM((bm, bn), jnp.float32)],
        compiler_params=pltpu.CompilerParams(
            dimension_semantics=("parallel", "parallel", "arbitrary"),
            vmem_limit_bytes=VMEM_LIMIT),
    )(x2d, w2d)

    # Fold partial stats ONCE into per-channel scale/shift (tiny kernel).
    scale, shift = pl.pallas_call(
        functools.partial(_bn_scale_shift_kernel, m_true=float(M)),
        out_shape=(jax.ShapeDtypeStruct((1, Np), jnp.float32),
                   jax.ShapeDtypeStruct((1, Np), jnp.float32)),
        grid=(Nb,),
        in_specs=[
            pl.BlockSpec((Mb, 1, bn), lambda n: (0, 0, n)),
            pl.BlockSpec((Mb, 1, bn), lambda n: (0, 0, n)),
            pl.BlockSpec((1, bn), lambda n: (0, n)),
            pl.BlockSpec((1, bn), lambda n: (0, n)),
        ],
        out_specs=(
            pl.BlockSpec((1, bn), lambda n: (0, n)),
            pl.BlockSpec((1, bn), lambda n: (0, n)),
        ),
        compiler_params=pltpu.CompilerParams(
            dimension_semantics=("parallel",)),
    )(psum, psumsq, g2d, b2d)

    # Elementwise BN + ReLU at HBM roofline.
    out_pad = pl.pallas_call(
        _bn_relu_kernel,
        out_shape=jax.ShapeDtypeStruct((Mp, Np), jnp.bfloat16),
        grid=(Mb, Nb),
        in_specs=[
            pl.BlockSpec((bm, bn), lambda m, n: (m, n)),
            pl.BlockSpec((1, bn), lambda m, n: (0, n)),
            pl.BlockSpec((1, bn), lambda m, n: (0, n)),
        ],
        out_specs=pl.BlockSpec((bm, bn), lambda m, n: (m, n)),
        compiler_params=pltpu.CompilerParams(
            dimension_semantics=("parallel", "parallel"),
            vmem_limit_bytes=VMEM_LIMIT),
    )(y_pad, scale, shift)

    # Keep channels padded (Np); only the padded M rows are dropped here so the
    # result can be reshaped back to NHWC.  Channel slicing happens once, fused
    # into the final concat.  Padded channels are exactly zero (zero weights,
    # zero gamma/beta -> relu(0) = 0), so they are safe to carry forward.
    return out_pad[:M, :].reshape(N, Ho, Wo, Np)


def max_pool_3x3_s2(x_nhwc):
    N, H, W, C = x_nhwc.shape
    Ho = (H - 3) // 2 + 1
    Wo = (W - 3) // 2 + 1
    # Even/odd phase repack (same total bytes as x; no 9x tap stack in HBM).
    a = x_nhwc[:, 0::2, 0::2, :][:, :Ho + 1, :Wo + 1, :]
    b = x_nhwc[:, 0::2, 1::2, :][:, :Ho + 1, :Wo, :]
    c = x_nhwc[:, 1::2, 0::2, :][:, :Ho, :Wo + 1, :]
    d = x_nhwc[:, 1::2, 1::2, :][:, :Ho, :Wo, :]

    # Block the channel dim: >=2 parallel grid units for v7x even at small N,
    # and small double-bufferable tiles on 64 MiB VMEM.
    bc = 128 if (C % 128 == 0) else C
    Cb = C // bc

    out = pl.pallas_call(
        _maxpool_kernel,
        out_shape=jax.ShapeDtypeStruct((N, Ho, Wo, C), x_nhwc.dtype),
        grid=(N, Cb),
        in_specs=[
            pl.BlockSpec((1, Ho + 1, Wo + 1, bc), lambda n, cb: (n, 0, 0, cb)),
            pl.BlockSpec((1, Ho + 1, Wo, bc), lambda n, cb: (n, 0, 0, cb)),
            pl.BlockSpec((1, Ho, Wo + 1, bc), lambda n, cb: (n, 0, 0, cb)),
            pl.BlockSpec((1, Ho, Wo, bc), lambda n, cb: (n, 0, 0, cb)),
        ],
        out_specs=pl.BlockSpec((1, Ho, Wo, bc), lambda n, cb: (n, 0, 0, cb)),
        compiler_params=pltpu.CompilerParams(
            dimension_semantics=("parallel", "parallel")),
    )(a, b, c, d)
    return out


# ----------------------------------------------------------------------------
# InceptionD module
# ----------------------------------------------------------------------------
def make_basic_conv_params(key, in_c, out_c, kh, kw):
    k1, k2, k3 = jax.random.split(key, 3)
    w = jax.random.normal(k1, (out_c, in_c, kh, kw), jnp.float32) * 0.05
    gamma = 1.0 + 0.1 * jax.random.normal(k2, (out_c,), jnp.float32)
    beta = 0.1 * jax.random.normal(k3, (out_c,), jnp.float32)
    return (w, gamma, beta)


def make_inception_d_params(key, in_channels):
    ks = jax.random.split(key, 6)
    return {
        "branch3x3_1": make_basic_conv_params(ks[0], in_channels, 192, 1, 1),
        "branch3x3_2": make_basic_conv_params(ks[1], 192, 320, 3, 3),
        "branch7x7x3_1": make_basic_conv_params(ks[2], in_channels, 192, 1, 1),
        "branch7x7x3_2": make_basic_conv_params(ks[3], 192, 192, 1, 7),
        "branch7x7x3_3": make_basic_conv_params(ks[4], 192, 192, 7, 1),
        "branch7x7x3_4": make_basic_conv_params(ks[5], 192, 192, 3, 3),
    }


@jax.jit
def inception_d_forward(x_nchw, params):
    x = jnp.transpose(x_nchw, (0, 2, 3, 1))  # NCHW -> NHWC for the kernels

    c3 = params["branch3x3_2"][0].shape[0]    # 320
    c7 = params["branch7x7x3_4"][0].shape[0]  # 192

    b3 = conv_bn_relu(x, *params["branch3x3_1"], stride=1, padding=(0, 0))
    b3 = conv_bn_relu(b3, *params["branch3x3_2"], stride=2, padding=(0, 0))

    b7 = conv_bn_relu(x, *params["branch7x7x3_1"], stride=1, padding=(0, 0))
    b7 = conv_bn_relu(b7, *params["branch7x7x3_2"], stride=1, padding=(0, 3))
    b7 = conv_bn_relu(b7, *params["branch7x7x3_3"], stride=1, padding=(3, 0))
    b7 = conv_bn_relu(b7, *params["branch7x7x3_4"], stride=2, padding=(0, 0))

    bp = max_pool_3x3_s2(x)

    # Padded channels are dropped exactly once; the slice/cast fuses into concat.
    out = jnp.concatenate(
        [b3[..., :c3].astype(jnp.float32),
         b7[..., :c7].astype(jnp.float32),
         bp.astype(jnp.float32)],
        axis=-1)                               # channel concat (NHWC)
    return jnp.transpose(out, (0, 3, 1, 2))    # back to NCHW


if __name__ == "__main__":
    key = jax.random.PRNGKey(0)
    k_x, k_p = jax.random.split(key)

    N, Cin, H, W = 2, 4, 16, 16
    x = jax.random.normal(k_x, (N, Cin, H, W), jnp.float32)
    params = make_inception_d_params(k_p, Cin)

    out = inception_d_forward(x, params)
    out = jax.block_until_ready(out)

    # expected: 320 + 192 + Cin channels; spatial (16-3)//2+1 = 7
    expected = (N, 320 + 192 + Cin, 7, 7)
    assert out.shape == expected, (out.shape, expected)
    assert bool(jnp.all(jnp.isfinite(out)))
    print("KERNEL_OK")
</pallas_src>

<mosaic_0001>
module attributes {stable_mosaic.version = 11 : i64} {
  func.func @_maxpool_kernel(%arg0: i32, %arg1: i32, %arg2: memref<1x8x8x4xf32, #tpu.memory_space<vmem>>, %arg3: memref<1x8x7x4xf32, #tpu.memory_space<vmem>>, %arg4: memref<1x7x8x4xf32, #tpu.memory_space<vmem>>, %arg5: memref<1x7x7x4xf32, #tpu.memory_space<vmem>>, %arg6: memref<1x7x7x4xf32, #tpu.memory_space<vmem>>) attributes {dimension_semantics = [#tpu.dimension_semantics<parallel>, #tpu.dimension_semantics<parallel>], iteration_bounds = array<i64: 2, 1>, scalar_prefetch = 0 : i64, scratch_operands = 0 : i64, tpu.core_type = #tpu.core_type<tc>, window_params = [{transform_indices = @transform_0, window_bounds = array<i64: 1, 8, 8, 4>}, {transform_indices = @transform_1, window_bounds = array<i64: 1, 8, 7, 4>}, {transform_indices = @transform_2, window_bounds = array<i64: 1, 7, 8, 4>}, {transform_indices = @transform_3, window_bounds = array<i64: 1, 7, 7, 4>}, {transform_indices = @transform_4, window_bounds = array<i64: 1, 7, 7, 4>}]} {
    %c0 = arith.constant 0 : index
    %c0_0 = arith.constant 0 : index
    %c0_1 = arith.constant 0 : index
    %c0_2 = arith.constant 0 : index
    %0 = vector.load %arg2[%c0, %c0_0, %c0_1, %c0_2] : memref<1x8x8x4xf32, #tpu.memory_space<vmem>>, vector<1x8x8x4xf32>
    %c0_3 = arith.constant 0 : index
    %c0_4 = arith.constant 0 : index
    %c0_5 = arith.constant 0 : index
    %c0_6 = arith.constant 0 : index
    %1 = vector.load %arg3[%c0_3, %c0_4, %c0_5, %c0_6] : memref<1x8x7x4xf32, #tpu.memory_space<vmem>>, vector<1x8x7x4xf32>
    %c0_7 = arith.constant 0 : index
    %c0_8 = arith.constant 0 : index
    %c0_9 = arith.constant 0 : index
    %c0_10 = arith.constant 0 : index
    %2 = vector.load %arg4[%c0_7, %c0_8, %c0_9, %c0_10] : memref<1x7x8x4xf32, #tpu.memory_space<vmem>>, vector<1x7x8x4xf32>
    %c0_11 = arith.constant 0 : index
    %c0_12 = arith.constant 0 : index
    %c0_13 = arith.constant 0 : index
    %c0_14 = arith.constant 0 : index
    %3 = vector.load %arg5[%c0_11, %c0_12, %c0_13, %c0_14] : memref<1x7x7x4xf32, #tpu.memory_space<vmem>>, vector<1x7x7x4xf32>
    %4 = vector.extract_strided_slice %0 {offsets = [0, 0, 0, 0], sizes = [1, 7, 7, 4], strides = [1, 1, 1, 1]} : vector<1x8x8x4xf32> to vector<1x7x7x4xf32>
    %5 = vector.extract_strided_slice %0 {offsets = [0, 0, 1, 0], sizes = [1, 7, 7, 4], strides = [1, 1, 1, 1]} : vector<1x8x8x4xf32> to vector<1x7x7x4xf32>
    %6 = arith.maximumf %4, %5 : vector<1x7x7x4xf32>
    %7 = vector.extract_strided_slice %0 {offsets = [0, 1, 0, 0], sizes = [1, 7, 7, 4], strides = [1, 1, 1, 1]} : vector<1x8x8x4xf32> to vector<1x7x7x4xf32>
    %8 = arith.maximumf %6, %7 : vector<1x7x7x4xf32>
    %9 = vector.extract_strided_slice %0 {offsets = [0, 1, 1, 0], sizes = [1, 7, 7, 4], strides = [1, 1, 1, 1]} : vector<1x8x8x4xf32> to vector<1x7x7x4xf32>
    %10 = arith.maximumf %8, %9 : vector<1x7x7x4xf32>
    %11 = vector.extract_strided_slice %1 {offsets = [0, 0, 0, 0], sizes = [1, 7, 7, 4], strides = [1, 1, 1, 1]} : vector<1x8x7x4xf32> to vector<1x7x7x4xf32>
    %12 = arith.maximumf %10, %11 : vector<1x7x7x4xf32>
    %13 = vector.extract_strided_slice %1 {offsets = [0, 1, 0, 0], sizes = [1, 7, 7, 4], strides = [1, 1, 1, 1]} : vector<1x8x7x4xf32> to vector<1x7x7x4xf32>
    %14 = arith.maximumf %12, %13 : vector<1x7x7x4xf32>
    %15 = vector.extract_strided_slice %2 {offsets = [0, 0, 0, 0], sizes = [1, 7, 7, 4], strides = [1, 1, 1, 1]} : vector<1x7x8x4xf32> to vector<1x7x7x4xf32>
    %16 = arith.maximumf %14, %15 : vector<1x7x7x4xf32>
    %17 = vector.extract_strided_slice %2 {offsets = [0, 0, 1, 0], sizes = [1, 7, 7, 4], strides = [1, 1, 1, 1]} : vector<1x7x8x4xf32> to vector<1x7x7x4xf32>
    %18 = arith.maximumf %16, %17 : vector<1x7x7x4xf32>
    %19 = arith.maximumf %18, %3 : vector<1x7x7x4xf32>
    %c0_15 = arith.constant 0 : index
    %c0_16 = arith.constant 0 : index
    %c0_17 = arith.constant 0 : index
    %c0_18 = arith.constant 0 : index
    %20 = vector.load %arg6[%c0_15, %c0_16, %c0_17, %c0_18] : memref<1x7x7x4xf32, #tpu.memory_space<vmem>>, vector<1x7x7x4xf32>
    tpu.vector_store %arg6[%c0_15, %c0_16, %c0_17, %c0_18], %19 {strides = array<i32>} : memref<1x7x7x4xf32, #tpu.memory_space<vmem>>, vector<1x7x7x4xf32>,
    return
  }
  func.func @transform_0(%arg0: i32, %arg1: i32) -> (i32, i32, i32, i32) {
    %c0_i32 = arith.constant 0 : i32
    %c0_i32_0 = arith.constant 0 : i32
    %c0_i32_1 = arith.constant 0 : i32
    return %arg0, %c0_i32, %c0_i32_0, %arg1 : i32, i32, i32, i32
  }
  func.func @transform_1(%arg0: i32, %arg1: i32) -> (i32, i32, i32, i32) {
    %c0_i32 = arith.constant 0 : i32
    %c0_i32_0 = arith.constant 0 : i32
    %c0_i32_1 = arith.constant 0 : i32
    return %arg0, %c0_i32, %c0_i32_0, %arg1 : i32, i32, i32, i32
  }
  func.func @transform_2(%arg0: i32, %arg1: i32) -> (i32, i32, i32, i32) {
    %c0_i32 = arith.constant 0 : i32
    %c0_i32_0 = arith.constant 0 : i32
    %c0_i32_1 = arith.constant 0 : i32
    return %arg0, %c0_i32, %c0_i32_0, %arg1 : i32, i32, i32, i32
  }
  func.func @transform_3(%arg0: i32, %arg1: i32) -> (i32, i32, i32, i32) {
    %c0_i32 = arith.constant 0 : i32
    %c0_i32_0 = arith.constant 0 : i32
    %c0_i32_1 = arith.constant 0 : i32
    return %arg0, %c0_i32, %c0_i32_0, %arg1 : i32, i32, i32, i32
  }
  func.func @transform_4(%arg0: i32, %arg1: i32) -> (i32, i32, i32, i32) {
    %c0_i32 = arith.constant 0 : i32
    %c0_i32_0 = arith.constant 0 : i32
    %c0_i32_1 = arith.constant 0 : i32
    return %arg0, %c0_i32, %c0_i32_0, %arg1 : i32, i32, i32, i32
  }
}

module attributes {stable_mosaic.version = 11 : i64} {
  func.func @_bn_scale_shift_kernel(%arg0: i32, %arg1: memref<2x1x128xf32, #tpu.memory_space<vmem>>, %arg2: memref<2x1x128xf32, #tpu.memory_space<vmem>>, %arg3: memref<1x128xf32, #tpu.memory_space<vmem>>, %arg4: memref<1x128xf32, #tpu.memory_space<vmem>>, %arg5: memref<1x128xf32, #tpu.memory_space<vmem>>, %arg6: memref<1x128xf32, #tpu.memory_space<vmem>>) attributes {dimension_semantics = [#tpu.dimension_semantics<parallel>], iteration_bounds = array<i64: 2>, scalar_prefetch = 0 : i64, scratch_operands = 0 : i64, tpu.core_type = #tpu.core_type<tc>, window_params = [{transform_indices = @transform_0, window_bounds = array<i64: 2, 1, 128>}, {transform_indices = @transform_1, window_bounds = array<i64: 2, 1, 128>}, {transform_indices = @transform_2, window_bounds = array<i64: 1, 128>}, {transform_indices = @transform_3, window_bounds = array<i64: 1, 128>}, {transform_indices = @transform_4, window_bounds = array<i64: 1, 128>}, {transform_indices = @transform_5, window_bounds = array<i64: 1, 128>}]} {
    %c0 = arith.constant 0 : index
    %c0_0 = arith.constant 0 : index
    %c0_1 = arith.constant 0 : index
    %0 = vector.load %arg1[%c0, %c0_0, %c0_1] : memref<2x1x128xf32, #tpu.memory_space<vmem>>, vector<2x1x128xf32>
    %cst = arith.constant dense<0.000000e+00> : vector<1x128xf32>
    %1 = vector.multi_reduction <add>, %0, %cst [0] : vector<2x1x128xf32> to vector<1x128xf32>
    %cst_2 = arith.constant 0.001953125 : f32
    %2 = vector.broadcast %cst_2 : f32 to vector<1x128xf32>
    %3 = arith.mulf %1, %2 : vector<1x128xf32>
    %c0_3 = arith.constant 0 : index
    %c0_4 = arith.constant 0 : index
    %c0_5 = arith.constant 0 : index
    %4 = vector.load %arg2[%c0_3, %c0_4, %c0_5] : memref<2x1x128xf32, #tpu.memory_space<vmem>>, vector<2x1x128xf32>
    %cst_6 = arith.constant dense<0.000000e+00> : vector<1x128xf32>
    %5 = vector.multi_reduction <add>, %4, %cst_6 [0] : vector<2x1x128xf32> to vector<1x128xf32>
    %cst_7 = arith.constant 0.001953125 : f32
    %6 = vector.broadcast %cst_7 : f32 to vector<1x128xf32>
    %7 = arith.mulf %5, %6 : vector<1x128xf32>
    %8 = arith.mulf %3, %3 : vector<1x128xf32>
    %9 = arith.subf %7, %8 : vector<1x128xf32>
    %cst_8 = arith.constant 0.000000e+00 : f32
    %10 = vector.broadcast %cst_8 : f32 to vector<1x128xf32>
    %11 = arith.maximumf %9, %10 : vector<1x128xf32>
    %cst_9 = arith.constant 1.000000e-03 : f32
    %12 = vector.broadcast %cst_9 : f32 to vector<1x128xf32>
    %13 = arith.addf %11, %12 : vector<1x128xf32>
    %14 = math.rsqrt %13 : vector<1x128xf32>
    %c0_10 = arith.constant 0 : index
    %c0_11 = arith.constant 0 : index
    %15 = vector.load %arg3[%c0_10, %c0_11] : memref<1x128xf32, #tpu.memory_space<vmem>>, vector<1x128xf32>
    %16 = arith.mulf %14, %15 : vector<1x128xf32>
    %c0_12 = arith.constant 0 : index
    %c0_13 = arith.constant 0 : index
    %17 = vector.load %arg5[%c0_12, %c0_13] : memref<1x128xf32, #tpu.memory_space<vmem>>, vector<1x128xf32>
    tpu.vector_store %arg5[%c0_12, %c0_13], %16 {strides = array<i32>} : memref<1x128xf32, #tpu.memory_space<vmem>>, vector<1x128xf32>,
    %c0_14 = arith.constant 0 : index
    %c0_15 = arith.constant 0 : index
    %18 = vector.load %arg4[%c0_14, %c0_15] : memref<1x128xf32, #tpu.memory_space<vmem>>, vector<1x128xf32>
    %19 = arith.mulf %3, %16 : vector<1x128xf32>
    %20 = arith.subf %18, %19 : vector<1x128xf32>
    %c0_16 = arith.constant 0 : index
    %c0_17 = arith.constant 0 : index
    %21 = vector.load %arg6[%c0_16, %c0_17] : memref<1x128xf32, #tpu.memory_space<vmem>>, vector<1x128xf32>
    tpu.vector_store %arg6[%c0_16, %c0_17], %20 {strides = array<i32>} : memref<1x128xf32, #tpu.memory_space<vmem>>, vector<1x128xf32>,
    return
  }
  func.func @transform_0(%arg0: i32) -> (i32, i32, i32) {
    %c0_i32 = arith.constant 0 : i32
    %c0_i32_0 = arith.constant 0 : i32
    %c0_i32_1 = arith.constant 0 : i32
    return %c0_i32, %c0_i32_0, %arg0 : i32, i32, i32
  }
  func.func @transform_1(%arg0: i32) -> (i32, i32, i32) {
    %c0_i32 = arith.constant 0 : i32
    %c0_i32_0 = arith.constant 0 : i32
    %c0_i32_1 = arith.constant 0 : i32
    return %c0_i32, %c0_i32_0, %arg0 : i32, i32, i32
  }
  func.func @transform_2(%arg0: i32) -> (i32, i32) {
    %c0_i32 = arith.constant 0 : i32
    %c0_i32_0 = arith.constant 0 : i32
    return %c0_i32, %arg0 : i32, i32
  }
  func.func @transform_3(%arg0: i32) -> (i32, i32) {
    %c0_i32 = arith.constant 0 : i32
    %c0_i32_0 = arith.constant 0 : i32
    return %c0_i32, %arg0 : i32, i32
  }
  func.func @transform_4(%arg0: i32) -> (i32, i32) {
    %c0_i32 = arith.constant 0 : i32
    %c0_i32_0 = arith.constant 0 : i32
    return %c0_i32, %arg0 : i32, i32
  }
  func.func @transform_5(%arg0: i32) -> (i32, i32) {
    %c0_i32 = arith.constant 0 : i32
    %c0_i32_0 = arith.constant 0 : i32
    return %c0_i32, %arg0 : i32, i32
  }
}

module attributes {stable_mosaic.version = 11 : i64} {
  func.func @_gemm_stats_kernel(%arg0: i32, %arg1: i32, %arg2: i32, %arg3: memref<256x4xbf16, #tpu.memory_space<vmem>>, %arg4: memref<4x128xbf16, #tpu.memory_space<vmem>>, %arg5: memref<256x128xbf16, #tpu.memory_space<vmem>>, %arg6: memref<1x1x128xf32, #tpu.memory_space<vmem>>, %arg7: memref<1x1x128xf32, #tpu.memory_space<vmem>>, %arg8: memref<256x128xf32, #tpu.memory_space<vmem>>) attributes {dimension_semantics = [#tpu.dimension_semantics<parallel>, #tpu.dimension_semantics<parallel>, #tpu.dimension_semantics<arbitrary>], iteration_bounds = array<i64: 2, 2, 1>, scalar_prefetch = 0 : i64, scratch_operands = 1 : i64, tpu.core_type = #tpu.core_type<tc>, window_params = [{transform_indices = @transform_0, window_bounds = array<i64: 256, 4>}, {transform_indices = @transform_1, window_bounds = array<i64: 4, 128>}, {transform_indices = @transform_2, window_bounds = array<i64: 256, 128>}, {transform_indices = @transform_3, window_bounds = array<i64: 1, 1, 128>}, {transform_indices = @transform_4, window_bounds = array<i64: 1, 1, 128>}]} {
    %c0_i32 = arith.constant 0 : i32
    %0 = arith.cmpi eq, %arg2, %c0_i32 : i32
    %1 = arith.extui %0 : i1 to i32
    %c0_i32_0 = arith.constant 0 : i32
    %2 = arith.cmpi ne, %1, %c0_i32_0 : i32
    scf.if %2 {
      %cst_10 = arith.constant 0.000000e+00 : f32
      %12 = vector.broadcast %cst_10 : f32 to vector<256x128xf32>
      %c0_11 = arith.constant 0 : index
      %c0_12 = arith.constant 0 : index
      %13 = vector.load %arg8[%c0_11, %c0_12] : memref<256x128xf32, #tpu.memory_space<vmem>>, vector<256x128xf32>
      tpu.vector_store %arg8[%c0_11, %c0_12], %12 {strides = array<i32>} : memref<256x128xf32, #tpu.memory_space<vmem>>, vector<256x128xf32>,
    } else {
    }
    %c0 = arith.constant 0 : index
    %c0_1 = arith.constant 0 : index
    %3 = vector.load %arg8[%c0, %c0_1] : memref<256x128xf32, #tpu.memory_space<vmem>>, vector<256x128xf32>
    %c0_2 = arith.constant 0 : index
    %c0_3 = arith.constant 0 : index
    %4 = vector.load %arg3[%c0_2, %c0_3] : memref<256x4xbf16, #tpu.memory_space<vmem>>, vector<256x4xbf16>
    %c0_4 = arith.constant 0 : index
    %c0_5 = arith.constant 0 : index
    %5 = vector.load %arg4[%c0_4, %c0_5] : memref<4x128xbf16, #tpu.memory_space<vmem>>, vector<4x128xbf16>
    %cst = arith.constant dense<0.000000e+00> : vector<256x128xf32>
    %6 = tpu.matmul %4, %5, %cst {dimension_numbers = #tpu.dot_dimension_numbers<[1], [0], [0], [1], [0, 0, 1, 1], [], []>} : vector<256x4xbf16>, vector<4x128xbf16>, vector<256x128xf32> -> vector<256x128xf32>
    %7 = arith.addf %3, %6 : vector<256x128xf32>
    %c0_6 = arith.constant 0 : index
    %c0_7 = arith.constant 0 : index
    %8 = vector.load %arg8[%c0_6, %c0_7] : memref<256x128xf32, #tpu.memory_space<vmem>>, vector<256x128xf32>
    tpu.vector_store %arg8[%c0_6, %c0_7], %7 {strides = array<i32>} : memref<256x128xf32, #tpu.memory_space<vmem>>, vector<256x128xf32>,
    %c0_i32_8 = arith.constant 0 : i32
    %9 = arith.cmpi eq, %arg2, %c0_i32_8 : i32
    %10 = arith.extui %9 : i1 to i32
    %c0_i32_9 = arith.constant 0 : i32
    %11 = arith.cmpi ne, %10, %c0_i32_9 : i32
    scf.if %11 {
      %c0_10 = arith.constant 0 : index
      %c0_11 = arith.constant 0 : index
      %12 = vector.load %arg8[%c0_10, %c0_11] : memref<256x128xf32, #tpu.memory_space<vmem>>, vector<256x128xf32>
      %13 = arith.truncf %12 : vector<256x128xf32> to vector<256x128xbf16>
      %c0_12 = arith.constant 0 : index
      %c0_13 = arith.constant 0 : index
      %14 = vector.load %arg5[%c0_12, %c0_13] : memref<256x128xbf16, #tpu.memory_space<vmem>>, vector<256x128xbf16>
      tpu.vector_store %arg5[%c0_12, %c0_13], %13 {strides = array<i32>} : memref<256x128xbf16, #tpu.memory_space<vmem>>, vector<256x128xbf16>,
      %cst_14 = arith.constant dense<0.000000e+00> : vector<128xf32>
      %15 = vector.multi_reduction <add>, %12, %cst_14 [0] : vector<256x128xf32> to vector<128xf32>
      %16 = vector.shape_cast %15 : vector<128xf32> to vector<1x128xf32>
      %17 = vector.shape_cast %16 : vector<1x128xf32> to vector<1x1x128xf32>
      %c0_15 = arith.constant 0 : index
      %c0_16 = arith.constant 0 : index
      %c0_17 = arith.constant 0 : index
      %18 = vector.load %arg6[%c0_15, %c0_16, %c0_17] : memref<1x1x128xf32, #tpu.memory_space<vmem>>, vector<1x1x128xf32>
      tpu.vector_store %arg6[%c0_15, %c0_16, %c0_17], %17 {strides = array<i32>} : memref<1x1x128xf32, #tpu.memory_space<vmem>>, vector<1x1x128xf32>,
      %19 = arith.mulf %12, %12 : vector<256x128xf32>
      %cst_18 = arith.constant dense<0.000000e+00> : vector<128xf32>
      %20 = vector.multi_reduction <add>, %19, %cst_18 [0] : vector<256x128xf32> to vector<128xf32>
      %21 = vector.shape_cast %20 : vector<128xf32> to vector<1x128xf32>
      %22 = vector.shape_cast %21 : vector<1x128xf32> to vector<1x1x128xf32>
      %c0_19 = arith.constant 0 : index
      %c0_20 = arith.constant 0 : index
      %c0_21 = arith.constant 0 : index
      %23 = vector.load %arg7[%c0_19, %c0_20, %c0_21] : memref<1x1x128xf32, #tpu.memory_space<vmem>>, vector<1x1x128xf32>
      tpu.vector_store %arg7[%c0_19, %c0_20, %c0_21], %22 {strides = array<i32>} : memref<1x1x128xf32, #tpu.memory_space<vmem>>, vector<1x1x128xf32>,
    } else {
    }
    return
  }
  func.func @transform_0(%arg0: i32, %arg1: i32, %arg2: i32) -> (i32, i32) {
    %c0_i32 = arith.constant 0 : i32
    return %arg0, %arg2 : i32, i32
  }
  func.func @transform_1(%arg0: i32, %arg1: i32, %arg2: i32) -> (i32, i32) {
    %c0_i32 = arith.constant 0 : i32
    return %arg2, %arg1 : i32, i32
  }
  func.func @transform_2(%arg0: i32, %arg1: i32, %arg2: i32) -> (i32, i32) {
    %c0_i32 = arith.constant 0 : i32
    return %arg0, %arg1 : i32, i32
  }
  func.func @transform_3(%arg0: i32, %arg1: i32, %arg2: i32) -> (i32, i32, i32) {
    %c0_i32 = arith.constant 0 : i32
    %c0_i32_0 = arith.constant 0 : i32
    return %arg0, %c0_i32, %arg1 : i32, i32, i32
  }
  func.func @transform_4(%arg0: i32, %arg1: i32, %arg2: i32) -> (i32, i32, i32) {
    %c0_i32 = arith.constant 0 : i32
    %c0_i32_0 = arith.constant 0 : i32
    return %arg0, %c0_i32, %arg1 : i32, i32, i32
  }
}

module attributes {stable_mosaic.version = 11 : i64} {
  func.func @_bn_relu_kernel(%arg0: i32, %arg1: i32, %arg2: memref<256x128xbf16, #tpu.memory_space<vmem>>, %arg3: memref<1x128xf32, #tpu.memory_space<vmem>>, %arg4: memref<1x128xf32, #tpu.memory_space<vmem>>, %arg5: memref<256x128xbf16, #tpu.memory_space<vmem>>) attributes {dimension_semantics = [#tpu.dimension_semantics<parallel>, #tpu.dimension_semantics<parallel>], iteration_bounds = array<i64: 2, 2>, scalar_prefetch = 0 : i64, scratch_operands = 0 : i64, tpu.core_type = #tpu.core_type<tc>, window_params = [{transform_indices = @transform_0, window_bounds = array<i64: 256, 128>}, {transform_indices = @transform_1, window_bounds = array<i64: 1, 128>}, {transform_indices = @transform_2, window_bounds = array<i64: 1, 128>}, {transform_indices = @transform_3, window_bounds = array<i64: 256, 128>}]} {
    %c0 = arith.constant 0 : index
    %c0_0 = arith.constant 0 : index
    %0 = vector.load %arg2[%c0, %c0_0] : memref<256x128xbf16, #tpu.memory_space<vmem>>, vector<256x128xbf16>
    %1 = arith.extf %0 : vector<256x128xbf16> to vector<256x128xf32>
    %c0_1 = arith.constant 0 : index
    %c0_2 = arith.constant 0 : index
    %2 = vector.load %arg3[%c0_1, %c0_2] : memref<1x128xf32, #tpu.memory_space<vmem>>, vector<1x128xf32>
    %3 = vector.broadcast %2 : vector<1x128xf32> to vector<256x128xf32>
    %4 = arith.mulf %1, %3 : vector<256x128xf32>
    %c0_3 = arith.constant 0 : index
    %c0_4 = arith.constant 0 : index
    %5 = vector.load %arg4[%c0_3, %c0_4] : memref<1x128xf32, #tpu.memory_space<vmem>>, vector<1x128xf32>
    %6 = vector.broadcast %5 : vector<1x128xf32> to vector<256x128xf32>
    %7 = arith.addf %4, %6 : vector<256x128xf32>
    %cst = arith.constant 0.000000e+00 : f32
    %8 = vector.broadcast %cst : f32 to vector<256x128xf32>
    %9 = arith.maximumf %7, %8 : vector<256x128xf32>
    %10 = arith.truncf %9 : vector<256x128xf32> to vector<256x128xbf16>
    %c0_5 = arith.constant 0 : index
    %c0_6 = arith.constant 0 : index
    %11 = vector.load %arg5[%c0_5, %c0_6] : memref<256x128xbf16, #tpu.memory_space<vmem>>, vector<256x128xbf16>
    tpu.vector_store %arg5[%c0_5, %c0_6], %10 {strides = array<i32>} : memref<256x128xbf16, #tpu.memory_space<vmem>>, vector<256x128xbf16>,
    return
  }
  func.func @transform_0(%arg0: i32, %arg1: i32) -> (i32, i32) {
    %c0_i32 = arith.constant 0 : i32
    return %arg0, %arg1 : i32, i32
  }
  func.func @transform_1(%arg0: i32, %arg1: i32) -> (i32, i32) {
    %c0_i32 = arith.constant 0 : i32
    %c0_i32_0 = arith.constant 0 : i32
    return %c0_i32, %arg1 : i32, i32
  }
  func.func @transform_2(%arg0: i32, %arg1: i32) -> (i32, i32) {
    %c0_i32 = arith.constant 0 : i32
    %c0_i32_0 = arith.constant 0 : i32
    return %c0_i32, %arg1 : i32, i32
  }
  func.func @transform_3(%arg0: i32, %arg1: i32) -> (i32, i32) {
    %c0_i32 = arith.constant 0 : i32
    return %arg0, %arg1 : i32, i32
  }
}

module attributes {stable_mosaic.version = 11 : i64} {
  func.func @_gemm_stats_kernel(%arg0: i32, %arg1: i32, %arg2: i32, %arg3: memref<256x1344xbf16, #tpu.memory_space<vmem>>, %arg4: memref<1344x128xbf16, #tpu.memory_space<vmem>>, %arg5: memref<256x128xbf16, #tpu.memory_space<vmem>>, %arg6: memref<1x1x128xf32, #tpu.memory_space<vmem>>, %arg7: memref<1x1x128xf32, #tpu.memory_space<vmem>>, %arg8: memref<256x128xf32, #tpu.memory_space<vmem>>) attributes {dimension_semantics = [#tpu.dimension_semantics<parallel>, #tpu.dimension_semantics<parallel>, #tpu.dimension_semantics<arbitrary>], iteration_bounds = array<i64: 2, 2, 1>, scalar_prefetch = 0 : i64, scratch_operands = 1 : i64, tpu.core_type = #tpu.core_type<tc>, window_params = [{transform_indices = @transform_0, window_bounds = array<i64: 256, 1344>}, {transform_indices = @transform_1, window_bounds = array<i64: 1344, 128>}, {transform_indices = @transform_2, window_bounds = array<i64: 256, 128>}, {transform_indices = @transform_3, window_bounds = array<i64: 1, 1, 128>}, {transform_indices = @transform_4, window_bounds = array<i64: 1, 1, 128>}]} {
    %c0_i32 = arith.constant 0 : i32
    %0 = arith.cmpi eq, %arg2, %c0_i32 : i32
    %1 = arith.extui %0 : i1 to i32
    %c0_i32_0 = arith.constant 0 : i32
    %2 = arith.cmpi ne, %1, %c0_i32_0 : i32
    scf.if %2 {
      %cst_10 = arith.constant 0.000000e+00 : f32
      %12 = vector.broadcast %cst_10 : f32 to vector<256x128xf32>
      %c0_11 = arith.constant 0 : index
      %c0_12 = arith.constant 0 : index
      %13 = vector.load %arg8[%c0_11, %c0_12] : memref<256x128xf32, #tpu.memory_space<vmem>>, vector<256x128xf32>
      tpu.vector_store %arg8[%c0_11, %c0_12], %12 {strides = array<i32>} : memref<256x128xf32, #tpu.memory_space<vmem>>, vector<256x128xf32>,
    } else {
    }
    %c0 = arith.constant 0 : index
    %c0_1 = arith.constant 0 : index
    %3 = vector.load %arg8[%c0, %c0_1] : memref<256x128xf32, #tpu.memory_space<vmem>>, vector<256x128xf32>
    %c0_2 = arith.constant 0 : index
    %c0_3 = arith.constant 0 : index
    %4 = vector.load %arg3[%c0_2, %c0_3] : memref<256x1344xbf16, #tpu.memory_space<vmem>>, vector<256x1344xbf16>
    %c0_4 = arith.constant 0 : index
    %c0_5 = arith.constant 0 : index
    %5 = vector.load %arg4[%c0_4, %c0_5] : memref<1344x128xbf16, #tpu.memory_space<vmem>>, vector<1344x128xbf16>
    %cst = arith.constant dense<0.000000e+00> : vector<256x128xf32>
    %6 = tpu.matmul %4, %5, %cst {dimension_numbers = #tpu.dot_dimension_numbers<[1], [0], [0], [1], [0, 0, 1, 1], [], []>} : vector<256x1344xbf16>, vector<1344x128xbf16>, vector<256x128xf32> -> vector<256x128xf32>
    %7 = arith.addf %3, %6 : vector<256x128xf32>
    %c0_6 = arith.constant 0 : index
    %c0_7 = arith.constant 0 : index
    %8 = vector.load %arg8[%c0_6, %c0_7] : memref<256x128xf32, #tpu.memory_space<vmem>>, vector<256x128xf32>
    tpu.vector_store %arg8[%c0_6, %c0_7], %7 {strides = array<i32>} : memref<256x128xf32, #tpu.memory_space<vmem>>, vector<256x128xf32>,
    %c0_i32_8 = arith.constant 0 : i32
    %9 = arith.cmpi eq, %arg2, %c0_i32_8 : i32
    %10 = arith.extui %9 : i1 to i32
    %c0_i32_9 = arith.constant 0 : i32
    %11 = arith.cmpi ne, %10, %c0_i32_9 : i32
    scf.if %11 {
      %c0_10 = arith.constant 0 : index
      %c0_11 = arith.constant 0 : index
      %12 = vector.load %arg8[%c0_10, %c0_11] : memref<256x128xf32, #tpu.memory_space<vmem>>, vector<256x128xf32>
      %13 = arith.truncf %12 : vector<256x128xf32> to vector<256x128xbf16>
      %c0_12 = arith.constant 0 : index
      %c0_13 = arith.constant 0 : index
      %14 = vector.load %arg5[%c0_12, %c0_13] : memref<256x128xbf16, #tpu.memory_space<vmem>>, vector<256x128xbf16>
      tpu.vector_store %arg5[%c0_12, %c0_13], %13 {strides = array<i32>} : memref<256x128xbf16, #tpu.memory_space<vmem>>, vector<256x128xbf16>,
      %cst_14 = arith.constant dense<0.000000e+00> : vector<128xf32>
      %15 = vector.multi_reduction <add>, %12, %cst_14 [0] : vector<256x128xf32> to vector<128xf32>
      %16 = vector.shape_cast %15 : vector<128xf32> to vector<1x128xf32>
      %17 = vector.shape_cast %16 : vector<1x128xf32> to vector<1x1x128xf32>
      %c0_15 = arith.constant 0 : index
      %c0_16 = arith.constant 0 : index
      %c0_17 = arith.constant 0 : index
      %18 = vector.load %arg6[%c0_15, %c0_16, %c0_17] : memref<1x1x128xf32, #tpu.memory_space<vmem>>, vector<1x1x128xf32>
      tpu.vector_store %arg6[%c0_15, %c0_16, %c0_17], %17 {strides = array<i32>} : memref<1x1x128xf32, #tpu.memory_space<vmem>>, vector<1x1x128xf32>,
      %19 = arith.mulf %12, %12 : vector<256x128xf32>
      %cst_18 = arith.constant dense<0.000000e+00> : vector<128xf32>
      %20 = vector.multi_reduction <add>, %19, %cst_18 [0] : vector<256x128xf32> to vector<128xf32>
      %21 = vector.shape_cast %20 : vector<128xf32> to vector<1x128xf32>
      %22 = vector.shape_cast %21 : vector<1x128xf32> to vector<1x1x128xf32>
      %c0_19 = arith.constant 0 : index
      %c0_20 = arith.constant 0 : index
      %c0_21 = arith.constant 0 : index
      %23 = vector.load %arg7[%c0_19, %c0_20, %c0_21] : memref<1x1x128xf32, #tpu.memory_space<vmem>>, vector<1x1x128xf32>
      tpu.vector_store %arg7[%c0_19, %c0_20, %c0_21], %22 {strides = array<i32>} : memref<1x1x128xf32, #tpu.memory_space<vmem>>, vector<1x1x128xf32>,
    } else {
    }
    return
  }
  func.func @transform_0(%arg0: i32, %arg1: i32, %arg2: i32) -> (i32, i32) {
    %c0_i32 = arith.constant 0 : i32
    return %arg0, %arg2 : i32, i32
  }
  func.func @transform_1(%arg0: i32, %arg1: i32, %arg2: i32) -> (i32, i32) {
    %c0_i32 = arith.constant 0 : i32
    return %arg2, %arg1 : i32, i32
  }
  func.func @transform_2(%arg0: i32, %arg1: i32, %arg2: i32) -> (i32, i32) {
    %c0_i32 = arith.constant 0 : i32
    return %arg0, %arg1 : i32, i32
  }
  func.func @transform_3(%arg0: i32, %arg1: i32, %arg2: i32) -> (i32, i32, i32) {
    %c0_i32 = arith.constant 0 : i32
    %c0_i32_0 = arith.constant 0 : i32
    return %arg0, %c0_i32, %arg1 : i32, i32, i32
  }
  func.func @transform_4(%arg0: i32, %arg1: i32, %arg2: i32) -> (i32, i32, i32) {
    %c0_i32 = arith.constant 0 : i32
    %c0_i32_0 = arith.constant 0 : i32
    return %arg0, %c0_i32, %arg1 : i32, i32, i32
  }
}

module attributes {stable_mosaic.version = 11 : i64} {
  func.func @_gemm_stats_kernel(%arg0: i32, %arg1: i32, %arg2: i32, %arg3: memref<112x1728xbf16, #tpu.memory_space<vmem>>, %arg4: memref<1728x128xbf16, #tpu.memory_space<vmem>>, %arg5: memref<112x128xbf16, #tpu.memory_space<vmem>>, %arg6: memref<1x1x128xf32, #tpu.memory_space<vmem>>, %arg7: memref<1x1x128xf32, #tpu.memory_space<vmem>>, %arg8: memref<112x128xf32, #tpu.memory_space<vmem>>) attributes {dimension_semantics = [#tpu.dimension_semantics<parallel>, #tpu.dimension_semantics<parallel>, #tpu.dimension_semantics<arbitrary>], iteration_bounds = array<i64: 1, 2, 1>, scalar_prefetch = 0 : i64, scratch_operands = 1 : i64, tpu.core_type = #tpu.core_type<tc>, window_params = [{transform_indices = @transform_0, window_bounds = array<i64: 112, 1728>}, {transform_indices = @transform_1, window_bounds = array<i64: 1728, 128>}, {transform_indices = @transform_2, window_bounds = array<i64: 112, 128>}, {transform_indices = @transform_3, window_bounds = array<i64: 1, 1, 128>}, {transform_indices = @transform_4, window_bounds = array<i64: 1, 1, 128>}]} {
    %c0_i32 = arith.constant 0 : i32
    %0 = arith.cmpi eq, %arg2, %c0_i32 : i32
    %1 = arith.extui %0 : i1 to i32
    %c0_i32_0 = arith.constant 0 : i32
    %2 = arith.cmpi ne, %1, %c0_i32_0 : i32
    scf.if %2 {
      %cst_10 = arith.constant 0.000000e+00 : f32
      %12 = vector.broadcast %cst_10 : f32 to vector<112x128xf32>
      %c0_11 = arith.constant 0 : index
      %c0_12 = arith.constant 0 : index
      %13 = vector.load %arg8[%c0_11, %c0_12] : memref<112x128xf32, #tpu.memory_space<vmem>>, vector<112x128xf32>
      tpu.vector_store %arg8[%c0_11, %c0_12], %12 {strides = array<i32>} : memref<112x128xf32, #tpu.memory_space<vmem>>, vector<112x128xf32>,
    } else {
    }
    %c0 = arith.constant 0 : index
    %c0_1 = arith.constant 0 : index
    %3 = vector.load %arg8[%c0, %c0_1] : memref<112x128xf32, #tpu.memory_space<vmem>>, vector<112x128xf32>
    %c0_2 = arith.constant 0 : index
    %c0_3 = arith.constant 0 : index
    %4 = vector.load %arg3[%c0_2, %c0_3] : memref<112x1728xbf16, #tpu.memory_space<vmem>>, vector<112x1728xbf16>
    %c0_4 = arith.constant 0 : index
    %c0_5 = arith.constant 0 : index
    %5 = vector.load %arg4[%c0_4, %c0_5] : memref<1728x128xbf16, #tpu.memory_space<vmem>>, vector<1728x128xbf16>
    %cst = arith.constant dense<0.000000e+00> : vector<112x128xf32>
    %6 = tpu.matmul %4, %5, %cst {dimension_numbers = #tpu.dot_dimension_numbers<[1], [0], [0], [1], [0, 0, 1, 1], [], []>} : vector<112x1728xbf16>, vector<1728x128xbf16>, vector<112x128xf32> -> vector<112x128xf32>
    %7 = arith.addf %3, %6 : vector<112x128xf32>
    %c0_6 = arith.constant 0 : index
    %c0_7 = arith.constant 0 : index
    %8 = vector.load %arg8[%c0_6, %c0_7] : memref<112x128xf32, #tpu.memory_space<vmem>>, vector<112x128xf32>
    tpu.vector_store %arg8[%c0_6, %c0_7], %7 {strides = array<i32>} : memref<112x128xf32, #tpu.memory_space<vmem>>, vector<112x128xf32>,
    %c0_i32_8 = arith.constant 0 : i32
    %9 = arith.cmpi eq, %arg2, %c0_i32_8 : i32
    %10 = arith.extui %9 : i1 to i32
    %c0_i32_9 = arith.constant 0 : i32
    %11 = arith.cmpi ne, %10, %c0_i32_9 : i32
    scf.if %11 {
      %c0_10 = arith.constant 0 : index
      %c0_11 = arith.constant 0 : index
      %12 = vector.load %arg8[%c0_10, %c0_11] : memref<112x128xf32, #tpu.memory_space<vmem>>, vector<112x128xf32>
      %13 = arith.truncf %12 : vector<112x128xf32> to vector<112x128xbf16>
      %c0_12 = arith.constant 0 : index
      %c0_13 = arith.constant 0 : index
      %14 = vector.load %arg5[%c0_12, %c0_13] : memref<112x128xbf16, #tpu.memory_space<vmem>>, vector<112x128xbf16>
      tpu.vector_store %arg5[%c0_12, %c0_13], %13 {strides = array<i32>} : memref<112x128xbf16, #tpu.memory_space<vmem>>, vector<112x128xbf16>,
      %cst_14 = arith.constant dense<0.000000e+00> : vector<128xf32>
      %15 = vector.multi_reduction <add>, %12, %cst_14 [0] : vector<112x128xf32> to vector<128xf32>
      %16 = vector.shape_cast %15 : vector<128xf32> to vector<1x128xf32>
      %17 = vector.shape_cast %16 : vector<1x128xf32> to vector<1x1x128xf32>
      %c0_15 = arith.constant 0 : index
      %c0_16 = arith.constant 0 : index
      %c0_17 = arith.constant 0 : index
      %18 = vector.load %arg6[%c0_15, %c0_16, %c0_17] : memref<1x1x128xf32, #tpu.memory_space<vmem>>, vector<1x1x128xf32>
      tpu.vector_store %arg6[%c0_15, %c0_16, %c0_17], %17 {strides = array<i32>} : memref<1x1x128xf32, #tpu.memory_space<vmem>>, vector<1x1x128xf32>,
      %19 = arith.mulf %12, %12 : vector<112x128xf32>
      %cst_18 = arith.constant dense<0.000000e+00> : vector<128xf32>
      %20 = vector.multi_reduction <add>, %19, %cst_18 [0] : vector<112x128xf32> to vector<128xf32>
      %21 = vector.shape_cast %20 : vector<128xf32> to vector<1x128xf32>
      %22 = vector.shape_cast %21 : vector<1x128xf32> to vector<1x1x128xf32>
      %c0_19 = arith.constant 0 : index
      %c0_20 = arith.constant 0 : index
      %c0_21 = arith.constant 0 : index
      %23 = vector.load %arg7[%c0_19, %c0_20, %c0_21] : memref<1x1x128xf32, #tpu.memory_space<vmem>>, vector<1x1x128xf32>
      tpu.vector_store %arg7[%c0_19, %c0_20, %c0_21], %22 {strides = array<i32>} : memref<1x1x128xf32, #tpu.memory_space<vmem>>, vector<1x1x128xf32>,
    } else {
    }
    return
  }
  func.func @transform_0(%arg0: i32, %arg1: i32, %arg2: i32) -> (i32, i32) {
    %c0_i32 = arith.constant 0 : i32
    return %arg0, %arg2 : i32, i32
  }
  func.func @transform_1(%arg0: i32, %arg1: i32, %arg2: i32) -> (i32, i32) {
    %c0_i32 = arith.constant 0 : i32
    return %arg2, %arg1 : i32, i32
  }
  func.func @transform_2(%arg0: i32, %arg1: i32, %arg2: i32) -> (i32, i32) {
    %c0_i32 = arith.constant 0 : i32
    return %arg0, %arg1 : i32, i32
  }
  func.func @transform_3(%arg0: i32, %arg1: i32, %arg2: i32) -> (i32, i32, i32) {
    %c0_i32 = arith.constant 0 : i32
    %c0_i32_0 = arith.constant 0 : i32
    return %arg0, %c0_i32, %arg1 : i32, i32, i32
  }
  func.func @transform_4(%arg0: i32, %arg1: i32, %arg2: i32) -> (i32, i32, i32) {
    %c0_i32 = arith.constant 0 : i32
    %c0_i32_0 = arith.constant 0 : i32
    return %arg0, %c0_i32, %arg1 : i32, i32, i32
  }
}

module attributes {stable_mosaic.version = 11 : i64} {
  func.func @_bn_scale_shift_kernel(%arg0: i32, %arg1: memref<1x1x128xf32, #tpu.memory_space<vmem>>, %arg2: memref<1x1x128xf32, #tpu.memory_space<vmem>>, %arg3: memref<1x128xf32, #tpu.memory_space<vmem>>, %arg4: memref<1x128xf32, #tpu.memory_space<vmem>>, %arg5: memref<1x128xf32, #tpu.memory_space<vmem>>, %arg6: memref<1x128xf32, #tpu.memory_space<vmem>>) attributes {dimension_semantics = [#tpu.dimension_semantics<parallel>], iteration_bounds = array<i64: 2>, scalar_prefetch = 0 : i64, scratch_operands = 0 : i64, tpu.core_type = #tpu.core_type<tc>, window_params = [{transform_indices = @transform_0, window_bounds = array<i64: 1, 1, 128>}, {transform_indices = @transform_1, window_bounds = array<i64: 1, 1, 128>}, {transform_indices = @transform_2, window_bounds = array<i64: 1, 128>}, {transform_indices = @transform_3, window_bounds = array<i64: 1, 128>}, {transform_indices = @transform_4, window_bounds = array<i64: 1, 128>}, {transform_indices = @transform_5, window_bounds = array<i64: 1, 128>}]} {
    %c0 = arith.constant 0 : index
    %c0_0 = arith.constant 0 : index
    %c0_1 = arith.constant 0 : index
    %0 = vector.load %arg1[%c0, %c0_0, %c0_1] : memref<1x1x128xf32, #tpu.memory_space<vmem>>, vector<1x1x128xf32>
    %cst = arith.constant dense<0.000000e+00> : vector<1x128xf32>
    %1 = vector.multi_reduction <add>, %0, %cst [0] : vector<1x1x128xf32> to vector<1x128xf32>
    %cst_2 = arith.constant 0.0102040814 : f32
    %2 = vector.broadcast %cst_2 : f32 to vector<1x128xf32>
    %3 = arith.mulf %1, %2 : vector<1x128xf32>
    %c0_3 = arith.constant 0 : index
    %c0_4 = arith.constant 0 : index
    %c0_5 = arith.constant 0 : index
    %4 = vector.load %arg2[%c0_3, %c0_4, %c0_5] : memref<1x1x128xf32, #tpu.memory_space<vmem>>, vector<1x1x128xf32>
    %cst_6 = arith.constant dense<0.000000e+00> : vector<1x128xf32>
    %5 = vector.multi_reduction <add>, %4, %cst_6 [0] : vector<1x1x128xf32> to vector<1x128xf32>
    %cst_7 = arith.constant 0.0102040814 : f32
    %6 = vector.broadcast %cst_7 : f32 to vector<1x128xf32>
    %7 = arith.mulf %5, %6 : vector<1x128xf32>
    %8 = arith.mulf %3, %3 : vector<1x128xf32>
    %9 = arith.subf %7, %8 : vector<1x128xf32>
    %cst_8 = arith.constant 0.000000e+00 : f32
    %10 = vector.broadcast %cst_8 : f32 to vector<1x128xf32>
    %11 = arith.maximumf %9, %10 : vector<1x128xf32>
    %cst_9 = arith.constant 1.000000e-03 : f32
    %12 = vector.broadcast %cst_9 : f32 to vector<1x128xf32>
    %13 = arith.addf %11, %12 : vector<1x128xf32>
    %14 = math.rsqrt %13 : vector<1x128xf32>
    %c0_10 = arith.constant 0 : index
    %c0_11 = arith.constant 0 : index
    %15 = vector.load %arg3[%c0_10, %c0_11] : memref<1x128xf32, #tpu.memory_space<vmem>>, vector<1x128xf32>
    %16 = arith.mulf %14, %15 : vector<1x128xf32>
    %c0_12 = arith.constant 0 : index
    %c0_13 = arith.constant 0 : index
    %17 = vector.load %arg5[%c0_12, %c0_13] : memref<1x128xf32, #tpu.memory_space<vmem>>, vector<1x128xf32>
    tpu.vector_store %arg5[%c0_12, %c0_13], %16 {strides = array<i32>} : memref<1x128xf32, #tpu.memory_space<vmem>>, vector<1x128xf32>,
    %c0_14 = arith.constant 0 : index
    %c0_15 = arith.constant 0 : index
    %18 = vector.load %arg4[%c0_14, %c0_15] : memref<1x128xf32, #tpu.memory_space<vmem>>, vector<1x128xf32>
    %19 = arith.mulf %3, %16 : vector<1x128xf32>
    %20 = arith.subf %18, %19 : vector<1x128xf32>
    %c0_16 = arith.constant 0 : index
    %c0_17 = arith.constant 0 : index
    %21 = vector.load %arg6[%c0_16, %c0_17] : memref<1x128xf32, #tpu.memory_space<vmem>>, vector<1x128xf32>
    tpu.vector_store %arg6[%c0_16, %c0_17], %20 {strides = array<i32>} : memref<1x128xf32, #tpu.memory_space<vmem>>, vector<1x128xf32>,
    return
  }
  func.func @transform_0(%arg0: i32) -> (i32, i32, i32) {
    %c0_i32 = arith.constant 0 : i32
    %c0_i32_0 = arith.constant 0 : i32
    %c0_i32_1 = arith.constant 0 : i32
    return %c0_i32, %c0_i32_0, %arg0 : i32, i32, i32
  }
  func.func @transform_1(%arg0: i32) -> (i32, i32, i32) {
    %c0_i32 = arith.constant 0 : i32
    %c0_i32_0 = arith.constant 0 : i32
    %c0_i32_1 = arith.constant 0 : i32
    return %c0_i32, %c0_i32_0, %arg0 : i32, i32, i32
  }
  func.func @transform_2(%arg0: i32) -> (i32, i32) {
    %c0_i32 = arith.constant 0 : i32
    %c0_i32_0 = arith.constant 0 : i32
    return %c0_i32, %arg0 : i32, i32
  }
  func.func @transform_3(%arg0: i32) -> (i32, i32) {
    %c0_i32 = arith.constant 0 : i32
    %c0_i32_0 = arith.constant 0 : i32
    return %c0_i32, %arg0 : i32, i32
  }
  func.func @transform_4(%arg0: i32) -> (i32, i32) {
    %c0_i32 = arith.constant 0 : i32
    %c0_i32_0 = arith.constant 0 : i32
    return %c0_i32, %arg0 : i32, i32
  }
  func.func @transform_5(%arg0: i32) -> (i32, i32) {
    %c0_i32 = arith.constant 0 : i32
    %c0_i32_0 = arith.constant 0 : i32
    return %c0_i32, %arg0 : i32, i32
  }
}

module attributes {stable_mosaic.version = 11 : i64} {
  func.func @_bn_relu_kernel(%arg0: i32, %arg1: i32, %arg2: memref<112x128xbf16, #tpu.memory_space<vmem>>, %arg3: memref<1x128xf32, #tpu.memory_space<vmem>>, %arg4: memref<1x128xf32, #tpu.memory_space<vmem>>, %arg5: memref<112x128xbf16, #tpu.memory_space<vmem>>) attributes {dimension_semantics = [#tpu.dimension_semantics<parallel>, #tpu.dimension_semantics<parallel>], iteration_bounds = array<i64: 1, 2>, scalar_prefetch = 0 : i64, scratch_operands = 0 : i64, tpu.core_type = #tpu.core_type<tc>, window_params = [{transform_indices = @transform_0, window_bounds = array<i64: 112, 128>}, {transform_indices = @transform_1, window_bounds = array<i64: 1, 128>}, {transform_indices = @transform_2, window_bounds = array<i64: 1, 128>}, {transform_indices = @transform_3, window_bounds = array<i64: 112, 128>}]} {
    %c0 = arith.constant 0 : index
    %c0_0 = arith.constant 0 : index
    %0 = vector.load %arg2[%c0, %c0_0] : memref<112x128xbf16, #tpu.memory_space<vmem>>, vector<112x128xbf16>
    %1 = arith.extf %0 : vector<112x128xbf16> to vector<112x128xf32>
    %c0_1 = arith.constant 0 : index
    %c0_2 = arith.constant 0 : index
    %2 = vector.load %arg3[%c0_1, %c0_2] : memref<1x128xf32, #tpu.memory_space<vmem>>, vector<1x128xf32>
    %3 = vector.broadcast %2 : vector<1x128xf32> to vector<112x128xf32>
    %4 = arith.mulf %1, %3 : vector<112x128xf32>
    %c0_3 = arith.constant 0 : index
    %c0_4 = arith.constant 0 : index
    %5 = vector.load %arg4[%c0_3, %c0_4] : memref<1x128xf32, #tpu.memory_space<vmem>>, vector<1x128xf32>
    %6 = vector.broadcast %5 : vector<1x128xf32> to vector<112x128xf32>
    %7 = arith.addf %4, %6 : vector<112x128xf32>
    %cst = arith.constant 0.000000e+00 : f32
    %8 = vector.broadcast %cst : f32 to vector<112x128xf32>
    %9 = arith.maximumf %7, %8 : vector<112x128xf32>
    %10 = arith.truncf %9 : vector<112x128xf32> to vector<112x128xbf16>
    %c0_5 = arith.constant 0 : index
    %c0_6 = arith.constant 0 : index
    %11 = vector.load %arg5[%c0_5, %c0_6] : memref<112x128xbf16, #tpu.memory_space<vmem>>, vector<112x128xbf16>
    tpu.vector_store %arg5[%c0_5, %c0_6], %10 {strides = array<i32>} : memref<112x128xbf16, #tpu.memory_space<vmem>>, vector<112x128xbf16>,
    return
  }
  func.func @transform_0(%arg0: i32, %arg1: i32) -> (i32, i32) {
    %c0_i32 = arith.constant 0 : i32
    return %arg0, %arg1 : i32, i32
  }
  func.func @transform_1(%arg0: i32, %arg1: i32) -> (i32, i32) {
    %c0_i32 = arith.constant 0 : i32
    %c0_i32_0 = arith.constant 0 : i32
    return %c0_i32, %arg1 : i32, i32
  }
  func.func @transform_2(%arg0: i32, %arg1: i32) -> (i32, i32) {
    %c0_i32 = arith.constant 0 : i32
    %c0_i32_0 = arith.constant 0 : i32
    return %c0_i32, %arg1 : i32, i32
  }
  func.func @transform_3(%arg0: i32, %arg1: i32) -> (i32, i32) {
    %c0_i32 = arith.constant 0 : i32
    return %arg0, %arg1 : i32, i32
  }
}

module attributes {stable_mosaic.version = 11 : i64} {
  func.func @_gemm_stats_kernel(%arg0: i32, %arg1: i32, %arg2: i32, %arg3: memref<112x1728xbf16, #tpu.memory_space<vmem>>, %arg4: memref<1728x128xbf16, #tpu.memory_space<vmem>>, %arg5: memref<112x128xbf16, #tpu.memory_space<vmem>>, %arg6: memref<1x1x128xf32, #tpu.memory_space<vmem>>, %arg7: memref<1x1x128xf32, #tpu.memory_space<vmem>>, %arg8: memref<112x128xf32, #tpu.memory_space<vmem>>) attributes {dimension_semantics = [#tpu.dimension_semantics<parallel>, #tpu.dimension_semantics<parallel>, #tpu.dimension_semantics<arbitrary>], iteration_bounds = array<i64: 1, 3, 1>, scalar_prefetch = 0 : i64, scratch_operands = 1 : i64, tpu.core_type = #tpu.core_type<tc>, window_params = [{transform_indices = @transform_0, window_bounds = array<i64: 112, 1728>}, {transform_indices = @transform_1, window_bounds = array<i64: 1728, 128>}, {transform_indices = @transform_2, window_bounds = array<i64: 112, 128>}, {transform_indices = @transform_3, window_bounds = array<i64: 1, 1, 128>}, {transform_indices = @transform_4, window_bounds = array<i64: 1, 1, 128>}]} {
    %c0_i32 = arith.constant 0 : i32
    %0 = arith.cmpi eq, %arg2, %c0_i32 : i32
    %1 = arith.extui %0 : i1 to i32
    %c0_i32_0 = arith.constant 0 : i32
    %2 = arith.cmpi ne, %1, %c0_i32_0 : i32
    scf.if %2 {
      %cst_10 = arith.constant 0.000000e+00 : f32
      %12 = vector.broadcast %cst_10 : f32 to vector<112x128xf32>
      %c0_11 = arith.constant 0 : index
      %c0_12 = arith.constant 0 : index
      %13 = vector.load %arg8[%c0_11, %c0_12] : memref<112x128xf32, #tpu.memory_space<vmem>>, vector<112x128xf32>
      tpu.vector_store %arg8[%c0_11, %c0_12], %12 {strides = array<i32>} : memref<112x128xf32, #tpu.memory_space<vmem>>, vector<112x128xf32>,
    } else {
    }
    %c0 = arith.constant 0 : index
    %c0_1 = arith.constant 0 : index
    %3 = vector.load %arg8[%c0, %c0_1] : memref<112x128xf32, #tpu.memory_space<vmem>>, vector<112x128xf32>
    %c0_2 = arith.constant 0 : index
    %c0_3 = arith.constant 0 : index
    %4 = vector.load %arg3[%c0_2, %c0_3] : memref<112x1728xbf16, #tpu.memory_space<vmem>>, vector<112x1728xbf16>
    %c0_4 = arith.constant 0 : index
    %c0_5 = arith.constant 0 : index
    %5 = vector.load %arg4[%c0_4, %c0_5] : memref<1728x128xbf16, #tpu.memory_space<vmem>>, vector<1728x128xbf16>
    %cst = arith.constant dense<0.000000e+00> : vector<112x128xf32>
    %6 = tpu.matmul %4, %5, %cst {dimension_numbers = #tpu.dot_dimension_numbers<[1], [0], [0], [1], [0, 0, 1, 1], [], []>} : vector<112x1728xbf16>, vector<1728x128xbf16>, vector<112x128xf32> -> vector<112x128xf32>
    %7 = arith.addf %3, %6 : vector<112x128xf32>
    %c0_6 = arith.constant 0 : index
    %c0_7 = arith.constant 0 : index
    %8 = vector.load %arg8[%c0_6, %c0_7] : memref<112x128xf32, #tpu.memory_space<vmem>>, vector<112x128xf32>
    tpu.vector_store %arg8[%c0_6, %c0_7], %7 {strides = array<i32>} : memref<112x128xf32, #tpu.memory_space<vmem>>, vector<112x128xf32>,
    %c0_i32_8 = arith.constant 0 : i32
    %9 = arith.cmpi eq, %arg2, %c0_i32_8 : i32
    %10 = arith.extui %9 : i1 to i32
    %c0_i32_9 = arith.constant 0 : i32
    %11 = arith.cmpi ne, %10, %c0_i32_9 : i32
    scf.if %11 {
      %c0_10 = arith.constant 0 : index
      %c0_11 = arith.constant 0 : index
      %12 = vector.load %arg8[%c0_10, %c0_11] : memref<112x128xf32, #tpu.memory_space<vmem>>, vector<112x128xf32>
      %13 = arith.truncf %12 : vector<112x128xf32> to vector<112x128xbf16>
      %c0_12 = arith.constant 0 : index
      %c0_13 = arith.constant 0 : index
      %14 = vector.load %arg5[%c0_12, %c0_13] : memref<112x128xbf16, #tpu.memory_space<vmem>>, vector<112x128xbf16>
      tpu.vector_store %arg5[%c0_12, %c0_13], %13 {strides = array<i32>} : memref<112x128xbf16, #tpu.memory_space<vmem>>, vector<112x128xbf16>,
      %cst_14 = arith.constant dense<0.000000e+00> : vector<128xf32>
      %15 = vector.multi_reduction <add>, %12, %cst_14 [0] : vector<112x128xf32> to vector<128xf32>
      %16 = vector.shape_cast %15 : vector<128xf32> to vector<1x128xf32>
      %17 = vector.shape_cast %16 : vector<1x128xf32> to vector<1x1x128xf32>
      %c0_15 = arith.constant 0 : index
      %c0_16 = arith.constant 0 : index
      %c0_17 = arith.constant 0 : index
      %18 = vector.load %arg6[%c0_15, %c0_16, %c0_17] : memref<1x1x128xf32, #tpu.memory_space<vmem>>, vector<1x1x128xf32>
      tpu.vector_store %arg6[%c0_15, %c0_16, %c0_17], %17 {strides = array<i32>} : memref<1x1x128xf32, #tpu.memory_space<vmem>>, vector<1x1x128xf32>,
      %19 = arith.mulf %12, %12 : vector<112x128xf32>
      %cst_18 = arith.constant dense<0.000000e+00> : vector<128xf32>
      %20 = vector.multi_reduction <add>, %19, %cst_18 [0] : vector<112x128xf32> to vector<128xf32>
      %21 = vector.shape_cast %20 : vector<128xf32> to vector<1x128xf32>
      %22 = vector.shape_cast %21 : vector<1x128xf32> to vector<1x1x128xf32>
      %c0_19 = arith.constant 0 : index
      %c0_20 = arith.constant 0 : index
      %c0_21 = arith.constant 0 : index
      %23 = vector.load %arg7[%c0_19, %c0_20, %c0_21] : memref<1x1x128xf32, #tpu.memory_space<vmem>>, vector<1x1x128xf32>
      tpu.vector_store %arg7[%c0_19, %c0_20, %c0_21], %22 {strides = array<i32>} : memref<1x1x128xf32, #tpu.memory_space<vmem>>, vector<1x1x128xf32>,
    } else {
    }
    return
  }
  func.func @transform_0(%arg0: i32, %arg1: i32, %arg2: i32) -> (i32, i32) {
    %c0_i32 = arith.constant 0 : i32
    return %arg0, %arg2 : i32, i32
  }
  func.func @transform_1(%arg0: i32, %arg1: i32, %arg2: i32) -> (i32, i32) {
    %c0_i32 = arith.constant 0 : i32
    return %arg2, %arg1 : i32, i32
  }
  func.func @transform_2(%arg0: i32, %arg1: i32, %arg2: i32) -> (i32, i32) {
    %c0_i32 = arith.constant 0 : i32
    return %arg0, %arg1 : i32, i32
  }
  func.func @transform_3(%arg0: i32, %arg1: i32, %arg2: i32) -> (i32, i32, i32) {
    %c0_i32 = arith.constant 0 : i32
    %c0_i32_0 = arith.constant 0 : i32
    return %arg0, %c0_i32, %arg1 : i32, i32, i32
  }
  func.func @transform_4(%arg0: i32, %arg1: i32, %arg2: i32) -> (i32, i32, i32) {
    %c0_i32 = arith.constant 0 : i32
    %c0_i32_0 = arith.constant 0 : i32
    return %arg0, %c0_i32, %arg1 : i32, i32, i32
  }
}

module attributes {stable_mosaic.version = 11 : i64} {
  func.func @_bn_scale_shift_kernel(%arg0: i32, %arg1: memref<1x1x128xf32, #tpu.memory_space<vmem>>, %arg2: memref<1x1x128xf32, #tpu.memory_space<vmem>>, %arg3: memref<1x128xf32, #tpu.memory_space<vmem>>, %arg4: memref<1x128xf32, #tpu.memory_space<vmem>>, %arg5: memref<1x128xf32, #tpu.memory_space<vmem>>, %arg6: memref<1x128xf32, #tpu.memory_space<vmem>>) attributes {dimension_semantics = [#tpu.dimension_semantics<parallel>], iteration_bounds = array<i64: 3>, scalar_prefetch = 0 : i64, scratch_operands = 0 : i64, tpu.core_type = #tpu.core_type<tc>, window_params = [{transform_indices = @transform_0, window_bounds = array<i64: 1, 1, 128>}, {transform_indices = @transform_1, window_bounds = array<i64: 1, 1, 128>}, {transform_indices = @transform_2, window_bounds = array<i64: 1, 128>}, {transform_indices = @transform_3, window_bounds = array<i64: 1, 128>}, {transform_indices = @transform_4, window_bounds = array<i64: 1, 128>}, {transform_indices = @transform_5, window_bounds = array<i64: 1, 128>}]} {
    %c0 = arith.constant 0 : index
    %c0_0 = arith.constant 0 : index
    %c0_1 = arith.constant 0 : index
    %0 = vector.load %arg1[%c0, %c0_0, %c0_1] : memref<1x1x128xf32, #tpu.memory_space<vmem>>, vector<1x1x128xf32>
    %cst = arith.constant dense<0.000000e+00> : vector<1x128xf32>
    %1 = vector.multi_reduction <add>, %0, %cst [0] : vector<1x1x128xf32> to vector<1x128xf32>
    %cst_2 = arith.constant 0.0102040814 : f32
    %2 = vector.broadcast %cst_2 : f32 to vector<1x128xf32>
    %3 = arith.mulf %1, %2 : vector<1x128xf32>
    %c0_3 = arith.constant 0 : index
    %c0_4 = arith.constant 0 : index
    %c0_5 = arith.constant 0 : index
    %4 = vector.load %arg2[%c0_3, %c0_4, %c0_5] : memref<1x1x128xf32, #tpu.memory_space<vmem>>, vector<1x1x128xf32>
    %cst_6 = arith.constant dense<0.000000e+00> : vector<1x128xf32>
    %5 = vector.multi_reduction <add>, %4, %cst_6 [0] : vector<1x1x128xf32> to vector<1x128xf32>
    %cst_7 = arith.constant 0.0102040814 : f32
    %6 = vector.broadcast %cst_7 : f32 to vector<1x128xf32>
    %7 = arith.mulf %5, %6 : vector<1x128xf32>
    %8 = arith.mulf %3, %3 : vector<1x128xf32>
    %9 = arith.subf %7, %8 : vector<1x128xf32>
    %cst_8 = arith.constant 0.000000e+00 : f32
    %10 = vector.broadcast %cst_8 : f32 to vector<1x128xf32>
    %11 = arith.maximumf %9, %10 : vector<1x128xf32>
    %cst_9 = arith.constant 1.000000e-03 : f32
    %12 = vector.broadcast %cst_9 : f32 to vector<1x128xf32>
    %13 = arith.addf %11, %12 : vector<1x128xf32>
    %14 = math.rsqrt %13 : vector<1x128xf32>
    %c0_10 = arith.constant 0 : index
    %c0_11 = arith.constant 0 : index
    %15 = vector.load %arg3[%c0_10, %c0_11] : memref<1x128xf32, #tpu.memory_space<vmem>>, vector<1x128xf32>
    %16 = arith.mulf %14, %15 : vector<1x128xf32>
    %c0_12 = arith.constant 0 : index
    %c0_13 = arith.constant 0 : index
    %17 = vector.load %arg5[%c0_12, %c0_13] : memref<1x128xf32, #tpu.memory_space<vmem>>, vector<1x128xf32>
    tpu.vector_store %arg5[%c0_12, %c0_13], %16 {strides = array<i32>} : memref<1x128xf32, #tpu.memory_space<vmem>>, vector<1x128xf32>,
    %c0_14 = arith.constant 0 : index
    %c0_15 = arith.constant 0 : index
    %18 = vector.load %arg4[%c0_14, %c0_15] : memref<1x128xf32, #tpu.memory_space<vmem>>, vector<1x128xf32>
    %19 = arith.mulf %3, %16 : vector<1x128xf32>
    %20 = arith.subf %18, %19 : vector<1x128xf32>
    %c0_16 = arith.constant 0 : index
    %c0_17 = arith.constant 0 : index
    %21 = vector.load %arg6[%c0_16, %c0_17] : memref<1x128xf32, #tpu.memory_space<vmem>>, vector<1x128xf32>
    tpu.vector_store %arg6[%c0_16, %c0_17], %20 {strides = array<i32>} : memref<1x128xf32, #tpu.memory_space<vmem>>, vector<1x128xf32>,
    return
  }
  func.func @transform_0(%arg0: i32) -> (i32, i32, i32) {
    %c0_i32 = arith.constant 0 : i32
    %c0_i32_0 = arith.constant 0 : i32
    %c0_i32_1 = arith.constant 0 : i32
    return %c0_i32, %c0_i32_0, %arg0 : i32, i32, i32
  }
  func.func @transform_1(%arg0: i32) -> (i32, i32, i32) {
    %c0_i32 = arith.constant 0 : i32
    %c0_i32_0 = arith.constant 0 : i32
    %c0_i32_1 = arith.constant 0 : i32
    return %c0_i32, %c0_i32_0, %arg0 : i32, i32, i32
  }
  func.func @transform_2(%arg0: i32) -> (i32, i32) {
    %c0_i32 = arith.constant 0 : i32
    %c0_i32_0 = arith.constant 0 : i32
    return %c0_i32, %arg0 : i32, i32
  }
  func.func @transform_3(%arg0: i32) -> (i32, i32) {
    %c0_i32 = arith.constant 0 : i32
    %c0_i32_0 = arith.constant 0 : i32
    return %c0_i32, %arg0 : i32, i32
  }
  func.func @transform_4(%arg0: i32) -> (i32, i32) {
    %c0_i32 = arith.constant 0 : i32
    %c0_i32_0 = arith.constant 0 : i32
    return %c0_i32, %arg0 : i32, i32
  }
  func.func @transform_5(%arg0: i32) -> (i32, i32) {
    %c0_i32 = arith.constant 0 : i32
    %c0_i32_0 = arith.constant 0 : i32
    return %c0_i32, %arg0 : i32, i32
  }
}

module attributes {stable_mosaic.version = 11 : i64} {
  func.func @_bn_relu_kernel(%arg0: i32, %arg1: i32, %arg2: memref<112x128xbf16, #tpu.memory_space<vmem>>, %arg3: memref<1x128xf32, #tpu.memory_space<vmem>>, %arg4: memref<1x128xf32, #tpu.memory_space<vmem>>, %arg5: memref<112x128xbf16, #tpu.memory_space<vmem>>) attributes {dimension_semantics = [#tpu.dimension_semantics<parallel>, #tpu.dimension_semantics<parallel>], iteration_bounds = array<i64: 1, 3>, scalar_prefetch = 0 : i64, scratch_operands = 0 : i64, tpu.core_type = #tpu.core_type<tc>, window_params = [{transform_indices = @transform_0, window_bounds = array<i64: 112, 128>}, {transform_indices = @transform_1, window_bounds = array<i64: 1, 128>}, {transform_indices = @transform_2, window_bounds = array<i64: 1, 128>}, {transform_indices = @transform_3, window_bounds = array<i64: 112, 128>}]} {
    %c0 = arith.constant 0 : index
    %c0_0 = arith.constant 0 : index
    %0 = vector.load %arg2[%c0, %c0_0] : memref<112x128xbf16, #tpu.memory_space<vmem>>, vector<112x128xbf16>
    %1 = arith.extf %0 : vector<112x128xbf16> to vector<112x128xf32>
    %c0_1 = arith.constant 0 : index
    %c0_2 = arith.constant 0 : index
    %2 = vector.load %arg3[%c0_1, %c0_2] : memref<1x128xf32, #tpu.memory_space<vmem>>, vector<1x128xf32>
    %3 = vector.broadcast %2 : vector<1x128xf32> to vector<112x128xf32>
    %4 = arith.mulf %1, %3 : vector<112x128xf32>
    %c0_3 = arith.constant 0 : index
    %c0_4 = arith.constant 0 : index
    %5 = vector.load %arg4[%c0_3, %c0_4] : memref<1x128xf32, #tpu.memory_space<vmem>>, vector<1x128xf32>
    %6 = vector.broadcast %5 : vector<1x128xf32> to vector<112x128xf32>
    %7 = arith.addf %4, %6 : vector<112x128xf32>
    %cst = arith.constant 0.000000e+00 : f32
    %8 = vector.broadcast %cst : f32 to vector<112x128xf32>
    %9 = arith.maximumf %7, %8 : vector<112x128xf32>
    %10 = arith.truncf %9 : vector<112x128xf32> to vector<112x128xbf16>
    %c0_5 = arith.constant 0 : index
    %c0_6 = arith.constant 0 : index
    %11 = vector.load %arg5[%c0_5, %c0_6] : memref<112x128xbf16, #tpu.memory_space<vmem>>, vector<112x128xbf16>
    tpu.vector_store %arg5[%c0_5, %c0_6], %10 {strides = array<i32>} : memref<112x128xbf16, #tpu.memory_space<vmem>>, vector<112x128xbf16>,
    return
  }
  func.func @transform_0(%arg0: i32, %arg1: i32) -> (i32, i32) {
    %c0_i32 = arith.constant 0 : i32
    return %arg0, %arg1 : i32, i32
  }
  func.func @transform_1(%arg0: i32, %arg1: i32) -> (i32, i32) {
    %c0_i32 = arith.constant 0 : i32
    %c0_i32_0 = arith.constant 0 : i32
    return %c0_i32, %arg1 : i32, i32
  }
  func.func @transform_2(%arg0: i32, %arg1: i32) -> (i32, i32) {
    %c0_i32 = arith.constant 0 : i32
    %c0_i32_0 = arith.constant 0 : i32
    return %c0_i32, %arg1 : i32, i32
  }
  func.func @transform_3(%arg0: i32, %arg1: i32) -> (i32, i32) {
    %c0_i32 = arith.constant 0 : i32
    return %arg0, %arg1 : i32, i32
  }
}

</mosaic_0001>

<bundles_post_ra>
// kernel: inception_d_forward.26
= control target key start
LH: loop header
LB: loop body
LE: loop exit
PB: predicated region body
PF: predicated region fallthrough
CT: control target
= control target key end

     0   :  { %s582_s18 = smov 0   ;;  %s584_s19 = smov 0   ;;  %s650_s0 = inlined_call_operand.vmem [shape: f32[2,1,256], index: 0, kind: input, shape index: {}]   ;;  %s651_s1 = inlined_call_operand.vmem [shape: f32[2,1,256], index: 1, kind: input, shape index: {}]   ;;  %s652_s2 = inlined_call_operand.vmem [shape: f32[1,256], index: 2, kind: input, shape index: {}]   ;;  %s653_s3 = inlined_call_operand.vmem [shape: f32[1,256], index: 3, kind: input, shape index: {}]   ;;  %s654_s4 = inlined_call_operand.vmem [shape: f32[1,256], index: 4, kind: output, shape index: {0}]   ;;  %s655_s5 = inlined_call_operand.vmem [shape: f32[1,256], index: 5, kind: output, shape index: {1}]  }
   0x1   :  { %s586_s20 = smov 0  }
   0x2 LB: > { %s491_s21 = sadd.s32 4294967295, %s550_s20   ;;  %s599_s22 = sadd.s32 1, %s550_s20   ;;  %s550_s20 = sphi %s586_s20, %s658_s20   ;;  %s546_s19 = sphi %s584_s19, %s657_s19   ;;  %s542_s18 = sphi %s582_s18, %s656_s18  }
   0x3   : > { %s20_s23 = ssub.s32 %s550_s20, %s599_s22  ;;  %s23_s24 = sadd.s32 1, %s546_s19 }
   0x4   : > { %p21_p0 = scmp.eq.s32.totalorder %s20_s23, 0  ;;  %p30_p1 = scmp.ne.s32.totalorder %s546_s19, %s542_s18 }
   0x5   : > { %p31_p2 = scmp.eq.s32.totalorder %s550_s20, 0  ;;  %p494_p4 = scmp.ge.s32.totalorder %s550_s20, 2 }
   0x6   : > { %s608_s25 = scalar_select %p21_p0, %s546_s19, %s23_s24  }
   0x7   : > { %p32_p3 = por %p31_p2, %p30_p1  ;;  %186 = sbr.rel (%p494_p4) target bundleno = 22 (0x16), region = 16 }
   0xc   : > { %189 = sbr.rel (!%p32_p3) target bundleno = 17 (0x11), region = 20  ;;  %s191_s26 = sand.u32 (%p32_p3), 1, %s546_s19  }
   0xd   : > { %s194_s29 = scalar_lea.vmem (%p32_p3), %s650_s0, %s550_s20  ;;  %s495_s30 = sshll.u32 (%p32_p3), %s191_s26, 1 }
   0xe   : > { %v211_v0 = vld [vmem:[%s194_s29] sm:$0x1] (%p32_p3)  ;;  %v213_v1 = vld [vmem:[%s194_s29 + $0x2] sm:$0x1] (%p32_p3)  ;;  %s193_s6 = scalar_lea.vmem (%p32_p3), [#allocation2], %s495_s30 }
   0xf   : > { %212 = vst [vmem:[%s193_s6] sm:$0x1] (%p32_p3), %v211_v0  ;;  %214 = vst [vmem:[%s193_s6 + $0x1] sm:$0x1] (%p32_p3), %v213_v1 }
  0x11 PF: > { %234 = sbr.rel (!%p32_p3) target bundleno = 22 (0x16), region = 54  ;;  %s236_s7 = sand.u32 (%p32_p3), 1, %s546_s19  }
  0x12   : > { %s239_s10 = scalar_lea.vmem (%p32_p3), %s651_s1, %s550_s20  ;;  %s496_s11 = sshll.u32 (%p32_p3), %s236_s7, 1 }
  0x13   : > { %v256_v2 = vld [vmem:[%s239_s10] sm:$0x1] (%p32_p3)  ;;  %v258_v3 = vld [vmem:[%s239_s10 + $0x2] sm:$0x1] (%p32_p3)  ;;  %s238_s12 = scalar_lea.vmem (%p32_p3), [#allocation3], %s496_s11 }
  0x14   : > { %257 = vst [vmem:[%s238_s12] sm:$0x1] (%p32_p3), %v256_v2  ;;  %259 = vst [vmem:[%s238_s12 + $0x1] sm:$0x1] (%p32_p3), %v258_v3 }
  0x16 PF: > { %p497_p5 = scmp.ge.s32.totalorder %s550_s20, 1  ;;  %p290_p6 = scmp.lt.s32.totalorder %s550_s20, 3 }
  0x18   : > { %p291_p7 = pnand %p497_p5, %p290_p6 }
  0x19   : > { %s297_s13 = sand.u32 (!%p291_p7), 1, %s542_s18   ;;  %p342_p8 = scmp.lt.s32.totalorder (!%p291_p7), %s491_s21, 1 }
  0x1a   : > { %294 = sbr.rel (%p291_p7) target bundleno = 66 (0x42), region = 96  ;;  %s498_s14 = sshll.u32 (!%p291_p7), %s297_s13, 1 }
  0x1b   : > { %s299_s15 = scalar_lea.vmem (!%p291_p7), [#allocation2], %s498_s14  ;;  %s306_s16 = scalar_lea.vmem (!%p291_p7), [#allocation3], %s498_s14 }
  0x1f   : > { %vm356_vm0 = vcmask 1040384   ;;  %v354_v4 = vld [vmem:[%s299_s15] sm:$0x1]  ;;  %v355_v5 = vld [vmem:[%s299_s15 + $0x1] sm:$0x1]  ;;  %s660_s21 = smov (!%p342_p8, %s491_s21), 1 }
  0x20   : > { %v357_v6 = vsel %vm356_vm0, %v354_v4, 0.0  ;;  %v358_v7 = vsel %vm356_vm0, %v355_v5, 0.0  ;;  %v361_v8 = vld [vmem:[%s306_s16] sm:$0x1]  ;;  %v362_v9 = vld [vmem:[%s306_s16 + $0x1] sm:$0x1]  ;;  %s344_s23 = scalar_lea.vmem %s652_s2, %s660_s21  ;;  %s347_s27 = scalar_lea.vmem %s653_s3, %s660_s21 }
  0x21   : > { %v359_v10 = vadd.f32 %v358_v7, %v357_v6  ;;  %v363_v11 = vsel %vm356_vm0, %v361_v8, 0.0  ;;  %v364_v12 = vsel %vm356_vm0, %v362_v9, 0.0  ;;  %v372_v20 = vld [vmem:[%s344_s23] sm:$0x1]  ;;  %s350_s30 = scalar_lea.vmem %s654_s4, %s660_s21  ;;  %s353_s7 = scalar_lea.vmem %s655_s5, %s660_s21 }
  0x22   : > { %v365_v13 = vadd.f32 %v364_v12, %v363_v11  ;;  %v375_v23 = vld [vmem:[%s347_s27] sm:$0x1] }
  0x23   : > { %v360_v14 = vmul.f32 0.001953125, %v359_v10 }
  0x24   : > { %v366_v15 = vmul.f32 0.001953125, %v365_v13 }
  0x25   : > { %v367_v16 = vmul.f32 %v360_v14, %v360_v14 }
  0x27   : > { %v368_v17 = vsub.f32 %v366_v15, %v367_v16 }
  0x29   : > { %v369_v18 = vmax.f32 %v368_v17, 0.0 }
  0x2b   : > { %v370_v19 = vadd.f32 0.001, %v369_v18 }
  0x2d   : > { %526 = vrsqrt.f32 %v370_v19 }
  0x3a   : > { %v527_v21 = vpop.eup %526 }
  0x3b   : > { %v373_v22 = vmul.f32 %v527_v21, %v372_v20 }
  0x3d   : > { %374 = vst [vmem:[%s350_s30] sm:$0x1] %v373_v22  ;;  %v376_v24 = vmul.f32 %v373_v22, %v360_v14 }
  0x3f   : > { %v377_v25 = vsub.f32 %v375_v23, %v376_v24 }
  0x41   : > { %378 = vst [vmem:[%s353_s7] sm:$0x1] %v377_v25 }
  0x42 PF: > { %p13_p9 = scmp.ge.s32.totalorder %s599_s22, 4   ;;  %s656_s18 = smov %s546_s19 }
  0x43   : > { %s657_s19 = smov %s608_s25  ;;  %s658_s20 = smov %s599_s22 }
  0x44   :  { %15 = sbr.rel (!%p13_p9) target bundleno = 2 (0x2), region = 165 }

// kernel: inception_d_forward.37
= control target key start
LH: loop header
LB: loop body
LE: loop exit
PB: predicated region body
PF: predicated region fallthrough
CT: control target
= control target key end

     0   :  { %s688_s15 = smov 0   ;;  %s690_s16 = smov 0   ;;  %s801_s0 = inlined_call_operand.vmem [shape: f32[2,8,8,4], index: 0, kind: input, shape index: {}]   ;;  %s802_s1 = inlined_call_operand.vmem [shape: f32[2,8,7,4], index: 1, kind: input, shape index: {}]   ;;  %s803_s2 = inlined_call_operand.vmem [shape: f32[2,7,8,4], index: 2, kind: input, shape index: {}]   ;;  %s804_s3 = inlined_call_operand.vmem [shape: f32[2,7,7,4], index: 3, kind: input, shape index: {}]   ;;  %s805_s4 = inlined_call_operand.vmem [shape: f32[2,7,7,4], index: 4, kind: output, shape index: {}]  }
   0x1   :  { %s692_s17 = smov 0  }
   0x2 LB: > { %s26_s18 = sadd.s32 1, %s657_s16  ;;  %p602_p0 = scmp.ge.s32.totalorder %s661_s17, 1  ;;  %s661_s17 = sphi %s692_s17, %s14_s17   ;;  %s657_s16 = sphi %s690_s16, %s807_s16   ;;  %s653_s15 = sphi %s688_s15, %s806_s15  }
   0x3   : > { %p28_p1 = scmp.ge.s32.totalorder %s26_s18, 2  ;;  %p226_p2 = scmp.lt.s32.totalorder %s661_s17, 3 }
   0x5   : > { %s809_s18 = smov (%p28_p1, %s26_s18), 0  ;;  %p227_p3 = pnand %p602_p0, %p226_p2 }
   0x6   : > { %p282_p4 = scmp.lt.s32.totalorder (!%p227_p3), %s653_s15, 1 }
   0x7   : > { %230 = sbr.rel (%p227_p3) target bundleno = 40 (0x28), region = 36 }
   0xc   : > { %s811_s15 = smov (!%p282_p4, %s653_s15), 1  ;;  %vm453_vm0 = vcmask 30720  }
   0xd   : > { %s612_s19 = sshll.u32 %s811_s15, 6  ;;  %s706_s20 = smul.u32 56, %s811_s15 }
   0xe   : > { %s711_s23 = scalar_lea.vmem %s801_s0, %s612_s19  ;;  %s725_s29 = scalar_lea.vmem %s802_s1, %s612_s19 }
   0xf   : > { %s717_s26 = scalar_lea.vmem %s803_s2, %s706_s20  ;;  %v322_v0 = vld [vmem:[%s711_s23] sm:$0xff]  ;;  %v323_v1 = vld [vmem:[%s711_s23 + $0x8] sm:$0xff]  ;;  %v324_v4 = vld [vmem:[%s711_s23 + $0x10] sm:$0xff]  ;;  %s753_s6 = scalar_lea.vmem %s804_s3, %s706_s20 }
  0x10   : > { %v359_v2 = vrot.slane %v322_v0, 1  ;;  %v360_v3 = vrot.slane %v323_v1, 1  ;;  %v728_v5 = vld [vmem:[%s717_s26] sm:$0xff]  ;;  %v361_v7 = vrot.slane %v324_v4, 1  ;;  %v325_v8 = vld [vmem:[%s711_s23 + $0x18] sm:$0xff]  ;;  %v732_v9 = vld [vmem:[%s717_s26 + $0x8] sm:$0xff]  ;;  %s769_s9 = scalar_lea.vmem %s805_s4, %s706_s20 }
  0x11   : > { %v362_v11 = vrot.slane %v325_v8, 1  ;;  %v735_v13 = vld [vmem:[%s717_s26 + $0x10] sm:$0xff]  ;;  %v326_v15 = vld [vmem:[%s711_s23 + $0x20] sm:$0xff]  ;;  %v425_v17 = vrot.slane %v728_v5, 1  ;;  %v327_v21 = vld [vmem:[%s711_s23 + $0x28] sm:$0xff]  ;;  %v426_v24 = vrot.slane %v732_v9, 1 }
  0x12   : > { %v373_v6 = vmax.f32 %v322_v0, %v359_v2  ;;  %v374_v10 = vmax.f32 %v323_v1, %v360_v3  ;;  %v375_v14 = vmax.f32 %v324_v4, %v361_v7  ;;  %v330_v16 = vld [vmem:[%s725_s29] sm:$0x7f]  ;;  %v363_v19 = vrot.slane %v326_v15, 1  ;;  %v331_v22 = vld [vmem:[%s725_s29 + $0x8] sm:$0x7f]  ;;  %v341_v26 = vld [vmem:[%s717_s26 + $0x18] sm:$0xff] }
  0x13   : > { %v376_v20 = vmax.f32 %v325_v8, %v362_v11  ;;  %v364_v27 = vrot.slane %v327_v21, 1  ;;  %v332_v28 = vld [vmem:[%s725_s29 + $0x10] sm:$0x7f]  ;;  %v427_v30 = vrot.slane %v735_v13, 1  ;;  %v333_v35 = vld [vmem:[%s725_s29 + $0x18] sm:$0x7f] }
  0x14   : > { %v380_v12 = vmax.f32 %v373_v6, %v323_v1  ;;  %v381_v18 = vmax.f32 %v374_v10, %v324_v4  ;;  %v382_v25 = vmax.f32 %v375_v14, %v325_v8  ;;  %v377_v32 = vmax.f32 %v326_v15, %v363_v19  ;;  %v328_v33 = vld [vmem:[%s711_s23 + $0x30] sm:$0xff]  ;;  %v329_v39 = vld [vmem:[%s711_s23 + $0x38] sm:$0xff]  ;;  %v334_v46 = vld [vmem:[%s725_s29 + $0x20] sm:$0x7f] }
  0x15   : > { %v383_v31 = vmax.f32 %v376_v20, %v326_v15  ;;  %v365_v37 = vrot.slane %v328_v33, 1  ;;  %v378_v38 = vmax.f32 %v327_v21, %v364_v27  ;;  %v428_v42 = vrot.slane %v341_v26, 1  ;;  %v342_v47 = vld [vmem:[%s717_s26 + $0x20] sm:$0xff]  ;;  %v335_v52 = vld [vmem:[%s725_s29 + $0x28] sm:$0x7f]  ;;  %v344_v14 = vld [vmem:[%s717_s26 + $0x30] sm:$0xff] }
  0x16   : > { %v390_v23 = vmax.f32 %v380_v12, %v360_v3  ;;  %v391_v29 = vmax.f32 %v381_v18, %v361_v7  ;;  %v392_v36 = vmax.f32 %v382_v25, %v362_v11  ;;  %v384_v43 = vmax.f32 %v377_v32, %v327_v21  ;;  %v343_v57 = vld [vmem:[%s717_s26 + $0x28] sm:$0xff]  ;;  %v345_v60 = vld [vmem:[%s753_s6] sm:$0x7f]  ;;  %v336_v1 = vld [vmem:[%s725_s29 + $0x30] sm:$0x7f] }
  0x17   : > { %v393_v41 = vmax.f32 %v383_v31, %v363_v19  ;;  %v385_v48 = vmax.f32 %v378_v38, %v328_v33  ;;  %v379_v49 = vmax.f32 %v328_v33, %v365_v37  ;;  %v388_v54 = vrot.slane %v329_v39, 1  ;;  %v346_v3 = vld [vmem:[%s753_s6 + $0x8] sm:$0x7f]  ;;  %v347_v8 = vld [vmem:[%s753_s6 + $0x10] sm:$0x7f] }
  0x18   : > { %v397_v34 = vmax.f32 %v390_v23, %v330_v16  ;;  %v398_v40 = vmax.f32 %v391_v29, %v331_v22  ;;  %v399_v45 = vmax.f32 %v392_v36, %v332_v28  ;;  %v394_v53 = vmax.f32 %v384_v43, %v364_v27  ;;  %v337_v12 = vld [vmem:[%s725_s29 + $0x38] sm:$0x7f]  ;;  %v349_v23 = vld [vmem:[%s753_s6 + $0x20] sm:$0x7f]  ;;  %v350_v29 = vld [vmem:[%s753_s6 + $0x28] sm:$0x7f] }
  0x19   : > { %v400_v51 = vmax.f32 %v393_v41, %v333_v35  ;;  %v395_v58 = vmax.f32 %v385_v48, %v365_v37  ;;  %v386_v59 = vmax.f32 %v379_v49, %v329_v39  ;;  %v429_v0 = vrot.slane %v342_v47, 1  ;;  %v351_v33 = vld [vmem:[%s753_s6 + $0x30] sm:$0x7f] }
  0x1a   : > { %v404_v44 = vmax.f32 %v397_v34, %v331_v22  ;;  %v405_v50 = vmax.f32 %v398_v40, %v332_v28  ;;  %v406_v56 = vmax.f32 %v399_v45, %v333_v35  ;;  %v401_v63 = vmax.f32 %v394_v53, %v334_v46 }
  0x1b   : > { %v407_v62 = vmax.f32 %v400_v51, %v334_v46  ;;  %v396_v6 = vmax.f32 %v386_v59, %v388_v54  ;;  %v430_v11 = vrot.slane %v343_v57, 1 }
  0x1c   : > { %v411_v55 = vmax.f32 %v404_v44, %v728_v5  ;;  %v412_v61 = vmax.f32 %v405_v50, %v732_v9  ;;  %v413_v4 = vmax.f32 %v406_v56, %v735_v13  ;;  %v402_v5 = vmax.f32 %v395_v58, %v335_v52  ;;  %v348_v13 = vld [vmem:[%s753_s6 + $0x18] sm:$0x7f] }
  0x1d   : > { %v414_v9 = vmax.f32 %v407_v62, %v341_v26  ;;  %v408_v10 = vmax.f32 %v401_v63, %v335_v52  ;;  %v403_v18 = vmax.f32 %v396_v6, %v336_v1  ;;  %v431_v26 = vrot.slane %v344_v14, 1 }
  0x1e   : > { %v439_v2 = vmax.f32 %v411_v55, %v425_v17  ;;  %v440_v7 = vmax.f32 %v412_v61, %v426_v24  ;;  %v441_v16 = vmax.f32 %v413_v4, %v427_v30  ;;  %v409_v17 = vmax.f32 %v402_v5, %v336_v1 }
  0x1f   : > { %v442_v20 = vmax.f32 %v414_v9, %v428_v42  ;;  %v415_v21 = vmax.f32 %v408_v10, %v342_v47  ;;  %v410_v25 = vmax.f32 %v403_v18, %v337_v12 }
  0x20   : > { %v446_v15 = vmax.f32 %v439_v2, %v345_v60  ;;  %v447_v19 = vmax.f32 %v440_v7, %v346_v3  ;;  %v448_v22 = vmax.f32 %v441_v16, %v347_v8  ;;  %v416_v24 = vmax.f32 %v409_v17, %v343_v57 }
  0x21   : > { %v449_v27 = vmax.f32 %v442_v20, %v348_v13  ;;  %v443_v28 = vmax.f32 %v415_v21, %v429_v0  ;;  %v417_v31 = vmax.f32 %v410_v25, %v344_v14 }
  0x22   : > { %454 = vst.msk [vmem:[%s769_s9] sm:$0x7f] %vm453_vm0, %v446_v15  ;;  %455 = vst.msk [vmem:[%s769_s9 + $0x8] sm:$0x7f] %vm453_vm0, %v447_v19  ;;  %v444_v30 = vmax.f32 %v416_v24, %v430_v11 }
  0x23   : > { %456 = vst.msk [vmem:[%s769_s9 + $0x10] sm:$0x7f] %vm453_vm0, %v448_v22  ;;  %457 = vst.msk [vmem:[%s769_s9 + $0x18] sm:$0x7f] %vm453_vm0, %v449_v27  ;;  %v450_v32 = vmax.f32 %v443_v28, %v349_v23  ;;  %v445_v35 = vmax.f32 %v417_v31, %v431_v26 }
  0x24   : > { %v451_v34 = vmax.f32 %v444_v30, %v350_v29 }
  0x25   : > { %458 = vst.msk [vmem:[%s769_s9 + $0x20] sm:$0x7f] %vm453_vm0, %v450_v32  ;;  %v452_v36 = vmax.f32 %v445_v35, %v351_v33 }
  0x26   : > { %459 = vst.msk [vmem:[%s769_s9 + $0x28] sm:$0x7f] %vm453_vm0, %v451_v34 }
  0x27   : > { %460 = vst.msk [vmem:[%s769_s9 + $0x30] sm:$0x7f] %vm453_vm0, %v452_v36 }
  0x28 PF: > { %s14_s17 = sadd.s32 1, %s661_s17   ;;  %s806_s15 = smov %s657_s16 }
  0x29   : > { %p11_p5 = scmp.ge.s32.totalorder %s14_s17, 4   ;;  %s807_s16 = smov %s809_s18 }
  0x2b   :  { %13 = sbr.rel (!%p11_p5) target bundleno = 2 (0x2), region = 75 }

// kernel: inception_d_forward.27
= control target key start
LH: loop header
LB: loop body
LE: loop exit
PB: predicated region body
PF: predicated region fallthrough
CT: control target
= control target key end

     0   :  { %s1373_s12 = smov 0   ;;  %s1375_s13 = smov 0   ;;  %s1719_s0 = inlined_call_operand.vmem [shape: bf16[512,256], index: 0, kind: input, shape index: {}]   ;;  %s1720_s1 = inlined_call_operand.vmem [shape: f32[1,256], index: 1, kind: input, shape index: {}]   ;;  %s1721_s2 = inlined_call_operand.vmem [shape: f32[1,256], index: 2, kind: input, shape index: {}]   ;;  %s1722_s3 = inlined_call_operand.vmem [shape: bf16[512,256], index: 3, kind: output, shape index: {}]  }
   0x1   :  { %s1377_s14 = smov 0   ;;  %s1379_s15 = smov 0  }
   0x2   :  { %s1381_s16 = smov 0   ;;  %s1383_s17 = smov 0  }
   0x3   :  { %s1385_s18 = smov 0  }
   0x4 LB: > { %s22_s19 = sadd.s32 1, %s1343_s16  ;;  %s25_s20 = sadd.s32 1, %s1347_s17  ;;  %s1351_s18 = sphi %s1385_s18, %s13_s18   ;;  %s1347_s17 = sphi %s1383_s17, %s1729_s17   ;;  %s1343_s16 = sphi %s1381_s16, %s1728_s16   ;;  %s1339_s15 = sphi %s1379_s15, %s1727_s15   ;;  %s1335_s14 = sphi %s1377_s14, %s1726_s14   ;;  %s1331_s13 = sphi %s1375_s13, %s1725_s13   ;;  %s1327_s12 = sphi %s1373_s12, %s1724_s12  }
   0x5   : > { %p23_p0 = scmp.ge.s32.totalorder %s22_s19, 2  ;;  %s982_s21 = sadd.s32 4294967295, %s1351_s18  }
   0x6   : > { %p41_p1 = scmp.ne.s32.totalorder %s1331_s13, %s1327_s12  ;;  %p42_p2 = scmp.eq.s32.totalorder %s1351_s18, 0 }
   0x7   : > { %s1731_s19 = smov (%p23_p0, %s22_s19), 0  ;;  %s1733_s20 = smov (!%p23_p0, %s25_s20), %s1347_s17 }
   0x8   : > { %p27_p3 = scmp.ge.s32.totalorder %s1733_s20, 2  ;;  %p125_p4 = scmp.eq.s32.totalorder %s982_s21, 3 }
   0x9   : > { %s30_s22 = ssub.s32 %s1343_s16, %s1731_s19  ;;  %p43_p5 = por %p42_p2, %p41_p1 }
   0xa   : > { %s1735_s20 = smov (%p27_p3, %s1733_s20), 0  ;;  %p1421_p6 = por %p125_p4, %p41_p1 }
   0xb   : > { %s29_s24 = ssub.s32 %s1347_s17, %s1735_s20  ;;  %s34_s26 = sadd.s32 1, %s1331_s13 }
   0xc   : > { %s31_s25 = sor.u32 %s30_s22, %s29_s24  ;;  %p985_p8 = scmp.ge.s32.totalorder %s1351_s18, 4 }
   0xd   : > { %p32_p7 = scmp.eq.s32.totalorder %s31_s25, 0 }
   0xe   : > { %147 = sbr.rel (%p985_p8) target bundleno = 46 (0x2e), region = 16 }
   0xf   : > { %s1429_s27 = scalar_select %p32_p7, %s1331_s13, %s34_s26  }
  0x13   : > { %150 = sbr.rel (!%p43_p5) target bundleno = 46 (0x2e), region = 20  ;;  %s152_s28 = sand.u32 (%p43_p5), 1, %s1331_s13  }
  0x14   : > { %s1033_s29 = sshll.u32 (%p43_p5), %s1347_s17, 6  ;;  %s986_s30 = sshll.u32 (%p43_p5), %s152_s28, 7 }
  0x15   : > { %s157_s4 = sadd.s32 (%p43_p5), %s1343_s16, %s1033_s29  ;;  %s1443_s9 = scalar_lea.vmem (%p43_p5), [#allocation2], %s986_s30 }
  0x16   : > { %s989_s5 = sshll.u32 (%p43_p5), %s157_s4, 2 }
  0x17   : > { %s1438_s8 = scalar_lea.vmem (%p43_p5), %s1719_s0, %s989_s5 }
  0x18   : > { %v176_v0 = vld [vmem:[%s1438_s8] sm:$0xf]  ;;  %v178_v1 = vld [vmem:[%s1438_s8 + $0x8] sm:$0xf]  ;;  %v180_v2 = vld [vmem:[%s1438_s8 + $0x10] sm:$0xf] }
  0x19   : > { %177 = vst [vmem:[%s1443_s9] sm:$0xf] %v176_v0  ;;  %179 = vst [vmem:[%s1443_s9 + $0x4] sm:$0xf] %v178_v1  ;;  %v182_v3 = vld [vmem:[%s1438_s8 + $0x18] sm:$0xf] }
  0x1a   : > { %181 = vst [vmem:[%s1443_s9 + $0x8] sm:$0xf] %v180_v2  ;;  %v184_v4 = vld [vmem:[%s1438_s8 + $0x20] sm:$0xf]  ;;  %v186_v5 = vld [vmem:[%s1438_s8 + $0x28] sm:$0xf] }
  0x1b   : > { %183 = vst [vmem:[%s1443_s9 + $0xc] sm:$0xf] %v182_v3  ;;  %185 = vst [vmem:[%s1443_s9 + $0x10] sm:$0xf] %v184_v4  ;;  %v188_v6 = vld [vmem:[%s1438_s8 + $0x30] sm:$0xf] }
  0x1c   : > { %187 = vst [vmem:[%s1443_s9 + $0x14] sm:$0xf] %v186_v5  ;;  %v190_v7 = vld [vmem:[%s1438_s8 + $0x38] sm:$0xf]  ;;  %v192_v8 = vld [vmem:[%s1438_s8 + $0x40] sm:$0xf] }
  0x1d   : > { %189 = vst [vmem:[%s1443_s9 + $0x18] sm:$0xf] %v188_v6  ;;  %191 = vst [vmem:[%s1443_s9 + $0x1c] sm:$0xf] %v190_v7  ;;  %v194_v9 = vld [vmem:[%s1438_s8 + $0x48] sm:$0xf] }
  0x1e   : > { %193 = vst [vmem:[%s1443_s9 + $0x20] sm:$0xf] %v192_v8  ;;  %v196_v10 = vld [vmem:[%s1438_s8 + $0x50] sm:$0xf]  ;;  %v198_v11 = vld [vmem:[%s1438_s8 + $0x58] sm:$0xf] }
  0x1f   : > { %195 = vst [vmem:[%s1443_s9 + $0x24] sm:$0xf] %v194_v9  ;;  %197 = vst [vmem:[%s1443_s9 + $0x28] sm:$0xf] %v196_v10  ;;  %v200_v12 = vld [vmem:[%s1438_s8 + $0x60] sm:$0xf] }
  0x20   : > { %199 = vst [vmem:[%s1443_s9 + $0x2c] sm:$0xf] %v198_v11  ;;  %v202_v13 = vld [vmem:[%s1438_s8 + $0x68] sm:$0xf]  ;;  %v204_v14 = vld [vmem:[%s1438_s8 + $0x70] sm:$0xf] }
  0x21   : > { %201 = vst [vmem:[%s1443_s9 + $0x30] sm:$0xf] %v200_v12  ;;  %203 = vst [vmem:[%s1443_s9 + $0x34] sm:$0xf] %v202_v13  ;;  %v206_v15 = vld [vmem:[%s1438_s8 + $0x78] sm:$0xf] }
  0x22   : > { %205 = vst [vmem:[%s1443_s9 + $0x38] sm:$0xf] %v204_v14  ;;  %v208_v16 = vld [vmem:[%s1438_s8 + $0x80] sm:$0xf]  ;;  %v210_v17 = vld [vmem:[%s1438_s8 + $0x88] sm:$0xf] }
  0x23   : > { %207 = vst [vmem:[%s1443_s9 + $0x3c] sm:$0xf] %v206_v15  ;;  %209 = vst [vmem:[%s1443_s9 + $0x40] sm:$0xf] %v208_v16  ;;  %v212_v18 = vld [vmem:[%s1438_s8 + $0x90] sm:$0xf] }
  0x24   : > { %211 = vst [vmem:[%s1443_s9 + $0x44] sm:$0xf] %v210_v17  ;;  %v214_v19 = vld [vmem:[%s1438_s8 + $0x98] sm:$0xf]  ;;  %v216_v20 = vld [vmem:[%s1438_s8 + $0xa0] sm:$0xf] }
  0x25   : > { %213 = vst [vmem:[%s1443_s9 + $0x48] sm:$0xf] %v212_v18  ;;  %215 = vst [vmem:[%s1443_s9 + $0x4c] sm:$0xf] %v214_v19  ;;  %v218_v21 = vld [vmem:[%s1438_s8 + $0xa8] sm:$0xf] }
  0x26   : > { %217 = vst [vmem:[%s1443_s9 + $0x50] sm:$0xf] %v216_v20  ;;  %v220_v22 = vld [vmem:[%s1438_s8 + $0xb0] sm:$0xf]  ;;  %v222_v23 = vld [vmem:[%s1438_s8 + $0xb8] sm:$0xf] }
  0x27   : > { %219 = vst [vmem:[%s1443_s9 + $0x54] sm:$0xf] %v218_v21  ;;  %221 = vst [vmem:[%s1443_s9 + $0x58] sm:$0xf] %v220_v22  ;;  %v224_v24 = vld [vmem:[%s1438_s8 + $0xc0] sm:$0xf] }
  0x28   : > { %223 = vst [vmem:[%s1443_s9 + $0x5c] sm:$0xf] %v222_v23  ;;  %v226_v25 = vld [vmem:[%s1438_s8 + $0xc8] sm:$0xf]  ;;  %v228_v26 = vld [vmem:[%s1438_s8 + $0xd0] sm:$0xf] }
  0x29   : > { %225 = vst [vmem:[%s1443_s9 + $0x60] sm:$0xf] %v224_v24  ;;  %227 = vst [vmem:[%s1443_s9 + $0x64] sm:$0xf] %v226_v25  ;;  %v230_v27 = vld [vmem:[%s1438_s8 + $0xd8] sm:$0xf] }
  0x2a   : > { %229 = vst [vmem:[%s1443_s9 + $0x68] sm:$0xf] %v228_v26  ;;  %v232_v28 = vld [vmem:[%s1438_s8 + $0xe0] sm:$0xf]  ;;  %v234_v29 = vld [vmem:[%s1438_s8 + $0xe8] sm:$0xf] }
  0x2b   : > { %231 = vst [vmem:[%s1443_s9 + $0x6c] sm:$0xf] %v230_v27  ;;  %233 = vst [vmem:[%s1443_s9 + $0x70] sm:$0xf] %v232_v28  ;;  %v236_v30 = vld [vmem:[%s1438_s8 + $0xf0] sm:$0xf] }
  0x2c   : > { %235 = vst [vmem:[%s1443_s9 + $0x74] sm:$0xf] %v234_v29  ;;  %v238_v31 = vld [vmem:[%s1438_s8 + $0xf8] sm:$0xf]  ;;  %237 = vst [vmem:[%s1443_s9 + $0x78] sm:$0xf] %v236_v30 }
  0x2d   : > { %239 = vst [vmem:[%s1443_s9 + $0x7c] sm:$0xf] %v238_v31 }
  0x2e PF: > { %p990_p9 = scmp.ge.s32.totalorder %s1351_s18, 1  ;;  %p338_p10 = scmp.lt.s32.totalorder %s1351_s18, 5 }
  0x30   : > { %p339_p11 = pnand %p990_p9, %p338_p10 }
  0x31   : > { %s345_s10 = sand.u32 (!%p339_p11), 1, %s1327_s12   ;;  %p374_p12 = scmp.lt.s32.totalorder (!%p339_p11), %s1335_s14, 1 }
  0x32   : > { %342 = sbr.rel (%p339_p11) target bundleno = 107 (0x6b), region = 69  ;;  %s1510_s11 = sshll.u32 (!%p339_p11), %s345_s10, 7 }
  0x33   : > { %s1514_s22 = scalar_lea.vmem (!%p339_p11), [#allocation2], %s1510_s11  ;;  %s1555_s30 = scalar_lea.vmem (!%p339_p11), [#allocation3], %s1510_s11 }
  0x37   : > { %s375_s21 = scalar_select %p374_p12, %s1335_s14, 1  ;;  %v1068_v32 = vld [vmem:[%s1514_s22] sm:$0xff]   ;;  %v1211_v33 = vld [vmem:[%s1514_s22 + $0x8] sm:$0xff]   ;;  %v1212_v34 = vld [vmem:[%s1514_s22 + $0x10] sm:$0xff]  }
  0x38   : > { %v1069_v35 = vunpack.c.l.bf16 %v1068_v32  ;;  %v1070_v36 = vunpack.c.h.bf16 %v1068_v32  ;;  %v1073_v37 = vunpack.c.l.bf16 %v1211_v33  ;;  %v1074_v38 = vunpack.c.h.bf16 %v1211_v33  ;;  %v1213_v39 = vld [vmem:[%s1514_s22 + $0x18] sm:$0xff]   ;;  %v1214_v40 = vld [vmem:[%s1514_s22 + $0x20] sm:$0xff]   ;;  %v1215_v41 = vld [vmem:[%s1514_s22 + $0x28] sm:$0xff]   ;;  %s1066_s4 = sshll.u32 (%p1421_p6), %s1339_s15, 6 }
  0x39   : > { %s376_s25 = scalar_lea.vmem %s1720_s1, %s375_s21  ;;  %s379_s29 = scalar_lea.vmem %s1721_s2, %s375_s21  ;;  %v1077_v42 = vunpack.c.l.bf16 %v1212_v34  ;;  %v1078_v43 = vunpack.c.h.bf16 %v1212_v34  ;;  %v1081_v44 = vunpack.c.l.bf16 %v1213_v39  ;;  %v1082_v45 = vunpack.c.h.bf16 %v1213_v39  ;;  %v1216_v12 = vld [vmem:[%s1514_s22 + $0x30] sm:$0xff]   ;;  %v1217_v17 = vld [vmem:[%s1514_s22 + $0x38] sm:$0xff]   ;;  %v1218_v30 = vld [vmem:[%s1514_s22 + $0x40] sm:$0xff]  }
  0x3a   : > { %v1528_v46 = vld [vmem:[%s376_s25] ss:$0 sm:$0xff]  ;;  %v1085_v48 = vunpack.c.l.bf16 %v1214_v40  ;;  %v1086_v49 = vunpack.c.h.bf16 %v1214_v40  ;;  %v1089_v50 = vunpack.c.l.bf16 %v1215_v41  ;;  %v1090_v51 = vunpack.c.h.bf16 %v1215_v41  ;;  %v1219_v39 = vld [vmem:[%s1514_s22 + $0x48] sm:$0xff]   ;;  %s724_s5 = sadd.s32 (%p1421_p6), %s1335_s14, %s1066_s4 }
  0x3b   : > { %v1530_v47 = vld [vmem:[%s379_s29] ss:$0 sm:$0xff]  ;;  %v452_v52 = vmul.f32 %v1069_v35, %v1528_v46  ;;  %v453_v53 = vmul.f32 %v1070_v36, %v1528_v46  ;;  %v454_v54 = vmul.f32 %v1073_v37, %v1528_v46  ;;  %v455_v55 = vmul.f32 %v1074_v38, %v1528_v46  ;;  %s1030_s23 = sshll.u32 (%p1421_p6), %s724_s5, 2 }
  0x3c   : > { %v456_v56 = vmul.f32 %v1077_v42, %v1528_v46  ;;  %v457_v57 = vmul.f32 %v1078_v43, %v1528_v46  ;;  %v458_v58 = vmul.f32 %v1081_v44, %v1528_v46  ;;  %v459_v59 = vmul.f32 %v1082_v45, %v1528_v46  ;;  %s1639_s8 = scalar_lea.vmem (%p1421_p6), %s1722_s3, %s1030_s23 }
  0x3d   : > { %v491_v60 = vadd.f32 %v1530_v47, %v452_v52  ;;  %v492_v61 = vadd.f32 %v1530_v47, %v453_v53  ;;  %v493_v62 = vadd.f32 %v1530_v47, %v454_v54  ;;  %v494_v63 = vadd.f32 %v1530_v47, %v455_v55 }
  0x3e   : > { %v495_v0 = vadd.f32 %v1530_v47, %v456_v56  ;;  %v496_v1 = vadd.f32 %v1530_v47, %v457_v57  ;;  %v497_v2 = vadd.f32 %v1530_v47, %v458_v58  ;;  %v498_v3 = vadd.f32 %v1530_v47, %v459_v59  ;;  %v1221_v59 = vld [vmem:[%s1514_s22 + $0x58] sm:$0xff]  }
  0x3f   : > { %v523_v4 = vmax.f32 %v491_v60, 0.0  ;;  %v524_v5 = vmax.f32 %v492_v61, 0.0  ;;  %v525_v6 = vmax.f32 %v493_v62, 0.0  ;;  %v526_v7 = vmax.f32 %v494_v63, 0.0 }
  0x40   : > { %v527_v8 = vmax.f32 %v495_v0, 0.0  ;;  %v528_v9 = vmax.f32 %v496_v1, 0.0  ;;  %v529_v10 = vmax.f32 %v497_v2, 0.0  ;;  %v530_v11 = vmax.f32 %v498_v3, 0.0 }
  0x41   : > { %v1134_v13 = vpack.c.bf16 %v524_v5, %v523_v4  ;;  %v1139_v14 = vpack.c.bf16 %v526_v7, %v525_v6  ;;  %v460_v15 = vmul.f32 %v1085_v48, %v1528_v46  ;;  %v461_v16 = vmul.f32 %v1086_v49, %v1528_v46  ;;  %v1222_v4 = vld [vmem:[%s1514_s22 + $0x60] sm:$0xff]  }
  0x42   : > { %v1144_v18 = vpack.c.bf16 %v528_v9, %v527_v8  ;;  %v1149_v19 = vpack.c.bf16 %v530_v11, %v529_v10  ;;  %v462_v20 = vmul.f32 %v1089_v50, %v1528_v46  ;;  %v463_v21 = vmul.f32 %v1090_v51, %v1528_v46  ;;  %v1220_v50 = vld [vmem:[%s1514_s22 + $0x50] sm:$0xff]  }
  0x43   : > { %1135 = vst [vmem:[%s1555_s30] sm:$0xff] %v1134_v13   ;;  %1226 = vst [vmem:[%s1555_s30 + $0x8] sm:$0xff] %v1139_v14   ;;  %v499_v22 = vadd.f32 %v1530_v47, %v460_v15  ;;  %v500_v23 = vadd.f32 %v1530_v47, %v461_v16  ;;  %v1093_v24 = vunpack.c.l.bf16 %v1216_v12  ;;  %v1094_v25 = vunpack.c.h.bf16 %v1216_v12 }
  0x44   : > { %1227 = vst [vmem:[%s1555_s30 + $0x10] sm:$0xff] %v1144_v18   ;;  %1228 = vst [vmem:[%s1555_s30 + $0x18] sm:$0xff] %v1149_v19   ;;  %v501_v26 = vadd.f32 %v1530_v47, %v462_v20  ;;  %v502_v27 = vadd.f32 %v1530_v47, %v463_v21  ;;  %v1097_v28 = vunpack.c.l.bf16 %v1217_v17  ;;  %v1098_v29 = vunpack.c.h.bf16 %v1217_v17  ;;  %v1223_v17 = vld [vmem:[%s1514_s22 + $0x68] sm:$0xff]  }
  0x45   : > { %v531_v31 = vmax.f32 %v499_v22, 0.0  ;;  %v532_v32 = vmax.f32 %v500_v23, 0.0  ;;  %v464_v33 = vmul.f32 %v1093_v24, %v1528_v46  ;;  %v465_v34 = vmul.f32 %v1094_v25, %v1528_v46 }
  0x46   : > { %v533_v35 = vmax.f32 %v501_v26, 0.0  ;;  %v534_v36 = vmax.f32 %v502_v27, 0.0  ;;  %v466_v37 = vmul.f32 %v1097_v28, %v1528_v46  ;;  %v467_v38 = vmul.f32 %v1098_v29, %v1528_v46  ;;  %v1224_v26 = vld [vmem:[%s1514_s22 + $0x70] sm:$0xff]  }
  0x47   : > { %v1154_v40 = vpack.c.bf16 %v532_v32, %v531_v31  ;;  %v503_v41 = vadd.f32 %v1530_v47, %v464_v33  ;;  %v504_v42 = vadd.f32 %v1530_v47, %v465_v34  ;;  %v1101_v43 = vunpack.c.l.bf16 %v1218_v30 }
  0x48   : > { %v1159_v44 = vpack.c.bf16 %v534_v36, %v533_v35  ;;  %v505_v45 = vadd.f32 %v1530_v47, %v466_v37  ;;  %v506_v48 = vadd.f32 %v1530_v47, %v467_v38  ;;  %v1102_v49 = vunpack.c.h.bf16 %v1218_v30  ;;  %v1225_v35 = vld [vmem:[%s1514_s22 + $0x78] sm:$0xff]  }
  0x49   : > { %1229 = vst [vmem:[%s1555_s30 + $0x20] sm:$0xff] %v1154_v40   ;;  %v535_v51 = vmax.f32 %v503_v41, 0.0  ;;  %v536_v52 = vmax.f32 %v504_v42, 0.0  ;;  %v468_v53 = vmul.f32 %v1101_v43, %v1528_v46  ;;  %v1105_v54 = vunpack.c.l.bf16 %v1219_v39 }
  0x4a   : > { %1230 = vst [vmem:[%s1555_s30 + $0x28] sm:$0xff] %v1159_v44   ;;  %v537_v55 = vmax.f32 %v505_v45, 0.0  ;;  %v538_v56 = vmax.f32 %v506_v48, 0.0  ;;  %v469_v57 = vmul.f32 %v1102_v49, %v1528_v46  ;;  %v1106_v58 = vunpack.c.h.bf16 %v1219_v39 }
  0x4b   : > { %v1164_v60 = vpack.c.bf16 %v536_v52, %v535_v51  ;;  %v507_v61 = vadd.f32 %v1530_v47, %v468_v53  ;;  %v470_v62 = vmul.f32 %v1105_v54, %v1528_v46  ;;  %v1109_v63 = vunpack.c.l.bf16 %v1220_v50 }
  0x4c   : > { %v1169_v0 = vpack.c.bf16 %v538_v56, %v537_v55  ;;  %v508_v1 = vadd.f32 %v1530_v47, %v469_v57  ;;  %v471_v2 = vmul.f32 %v1106_v58, %v1528_v46  ;;  %v1110_v3 = vunpack.c.h.bf16 %v1220_v50 }
  0x4d   : > { %1231 = vst [vmem:[%s1555_s30 + $0x30] sm:$0xff] %v1164_v60   ;;  %v539_v5 = vmax.f32 %v507_v61, 0.0  ;;  %v509_v6 = vadd.f32 %v1530_v47, %v470_v62  ;;  %v472_v7 = vmul.f32 %v1109_v63, %v1528_v46  ;;  %v1113_v8 = vunpack.c.l.bf16 %v1221_v59 }
  0x4e   : > { %1232 = vst [vmem:[%s1555_s30 + $0x38] sm:$0xff] %v1169_v0   ;;  %v540_v9 = vmax.f32 %v508_v1, 0.0  ;;  %v510_v10 = vadd.f32 %v1530_v47, %v471_v2  ;;  %v473_v11 = vmul.f32 %v1110_v3, %v1528_v46  ;;  %v1114_v12 = vunpack.c.h.bf16 %v1221_v59 }
  0x4f   : > { %v541_v13 = vmax.f32 %v509_v6, 0.0  ;;  %v511_v14 = vadd.f32 %v1530_v47, %v472_v7  ;;  %v474_v15 = vmul.f32 %v1113_v8, %v1528_v46  ;;  %v1117_v16 = vunpack.c.l.bf16 %v1222_v4  ;;  %v747_v6 = vld [vmem:[%s1555_s30 + $0x8] sm:$0xf] (%p1421_p6)  ;;  %v749_v7 = vld [vmem:[%s1555_s30 + $0xc] sm:$0xf] (%p1421_p6) }
  0x50   : > { %v1174_v18 = vpack.c.bf16 %v540_v9, %v539_v5  ;;  %v542_v19 = vmax.f32 %v510_v10, 0.0  ;;  %v512_v20 = vadd.f32 %v1530_v47, %v473_v11  ;;  %v475_v21 = vmul.f32 %v1114_v12, %v1528_v46  ;;  %v751_v8 = vld [vmem:[%s1555_s30 + $0x10] sm:$0xf] (%p1421_p6)  ;;  %v753_v9 = vld [vmem:[%s1555_s30 + $0x14] sm:$0xf] (%p1421_p6) }
  0x51   : > { %v543_v22 = vmax.f32 %v511_v14, 0.0  ;;  %v513_v23 = vadd.f32 %v1530_v47, %v474_v15  ;;  %v1118_v24 = vunpack.c.h.bf16 %v1222_v4  ;;  %v476_v25 = vmul.f32 %v1117_v16, %v1528_v46  ;;  %v755_v10 = vld [vmem:[%s1555_s30 + $0x18] sm:$0xf] (%p1421_p6)  ;;  %v757_v11 = vld [vmem:[%s1555_s30 + $0x1c] sm:$0xf] (%p1421_p6) }
  0x52   : > { %1233 = vst [vmem:[%s1555_s30 + $0x40] sm:$0xff] %v1174_v18   ;;  %v1179_v27 = vpack.c.bf16 %v542_v19, %v541_v13  ;;  %v544_v28 = vmax.f32 %v512_v20, 0.0  ;;  %v514_v29 = vadd.f32 %v1530_v47, %v475_v21  ;;  %v1121_v30 = vunpack.c.l.bf16 %v1223_v17  ;;  %v759_v12 = vld [vmem:[%s1555_s30 + $0x20] sm:$0xf] (%p1421_p6)  ;;  %v761_v13 = vld [vmem:[%s1555_s30 + $0x24] sm:$0xf] (%p1421_p6) }
  0x53   : > { %v545_v31 = vmax.f32 %v513_v23, 0.0  ;;  %v477_v32 = vmul.f32 %v1118_v24, %v1528_v46  ;;  %v515_v33 = vadd.f32 %v1530_v47, %v476_v25  ;;  %v1122_v34 = vunpack.c.h.bf16 %v1223_v17  ;;  %748 = vst [vmem:[%s1639_s8 + $0x10] sm:$0xf] (%p1421_p6), %v747_v6  ;;  %750 = vst [vmem:[%s1639_s8 + $0x18] sm:$0xf] (%p1421_p6), %v749_v7 }
  0x54   : > { %1234 = vst [vmem:[%s1555_s30 + $0x48] sm:$0xff] %v1179_v27   ;;  %v1184_v36 = vpack.c.bf16 %v544_v28, %v543_v22  ;;  %v546_v37 = vmax.f32 %v514_v29, 0.0  ;;  %v478_v38 = vmul.f32 %v1121_v30, %v1528_v46  ;;  %v1125_v39 = vunpack.c.l.bf16 %v1224_v26  ;;  %752 = vst [vmem:[%s1639_s8 + $0x20] sm:$0xf] (%p1421_p6), %v751_v8  ;;  %v763_v14 = vld [vmem:[%s1555_s30 + $0x28] sm:$0xf] (%p1421_p6) }
  0x55   : > { %v516_v40 = vadd.f32 %v1530_v47, %v477_v32  ;;  %v547_v41 = vmax.f32 %v515_v33, 0.0  ;;  %v479_v42 = vmul.f32 %v1122_v34, %v1528_v46  ;;  %v1126_v43 = vunpack.c.h.bf16 %v1224_v26  ;;  %754 = vst [vmem:[%s1639_s8 + $0x28] sm:$0xf] (%p1421_p6), %v753_v9  ;;  %756 = vst [vmem:[%s1639_s8 + $0x30] sm:$0xf] (%p1421_p6), %v755_v10 }
  0x56   : > { %1235 = vst [vmem:[%s1555_s30 + $0x50] sm:$0xff] %v1184_v36   ;;  %v1189_v44 = vpack.c.bf16 %v546_v37, %v545_v31  ;;  %v517_v45 = vadd.f32 %v1530_v47, %v478_v38  ;;  %v480_v48 = vmul.f32 %v1125_v39, %v1528_v46  ;;  %v1129_v49 = vunpack.c.l.bf16 %v1225_v35  ;;  %758 = vst [vmem:[%s1639_s8 + $0x38] sm:$0xf] (%p1421_p6), %v757_v11  ;;  %v765_v15 = vld [vmem:[%s1555_s30 + $0x2c] sm:$0xf] (%p1421_p6) }
  0x57   : > { %v548_v50 = vmax.f32 %v516_v40, 0.0  ;;  %v518_v51 = vadd.f32 %v1530_v47, %v479_v42  ;;  %v481_v52 = vmul.f32 %v1126_v43, %v1528_v46  ;;  %v1130_v53 = vunpack.c.h.bf16 %v1225_v35  ;;  %760 = vst [vmem:[%s1639_s8 + $0x40] sm:$0xf] (%p1421_p6), %v759_v12  ;;  %762 = vst [vmem:[%s1639_s8 + $0x48] sm:$0xf] (%p1421_p6), %v761_v13 }
  0x58   : > { %1236 = vst [vmem:[%s1555_s30 + $0x58] sm:$0xff] %v1189_v44   ;;  %v549_v54 = vmax.f32 %v517_v45, 0.0  ;;  %v519_v55 = vadd.f32 %v1530_v47, %v480_v48  ;;  %v482_v56 = vmul.f32 %v1129_v49, %v1528_v46  ;;  %v767_v16 = vld [vmem:[%s1555_s30 + $0x30] sm:$0xf] (%p1421_p6)  ;;  %764 = vst [vmem:[%s1639_s8 + $0x50] sm:$0xf] (%p1421_p6), %v763_v14 }
  0x59   : > { %v1194_v57 = vpack.c.bf16 %v548_v50, %v547_v41  ;;  %v550_v58 = vmax.f32 %v518_v51, 0.0  ;;  %v520_v59 = vadd.f32 %v1530_v47, %v481_v52  ;;  %v483_v60 = vmul.f32 %v1130_v53, %v1528_v46  ;;  %v743_v46 = vld [vmem:[%s1555_s30] sm:$0xf] (%p1421_p6)  ;;  %766 = vst [vmem:[%s1639_s8 + $0x58] sm:$0xf] (%p1421_p6), %v765_v15 }
  0x5a   : > { %v551_v61 = vmax.f32 %v519_v55, 0.0  ;;  %v521_v62 = vadd.f32 %v1530_v47, %v482_v56  ;;  %744 = vst [vmem:[%s1639_s8] sm:$0xf] (%p1421_p6), %v743_v46  ;;  %768 = vst [vmem:[%s1639_s8 + $0x60] sm:$0xf] (%p1421_p6), %v767_v16  ;;  %v769_v17 = vld [vmem:[%s1555_s30 + $0x34] sm:$0xf] (%p1421_p6) }
  0x5b   : > { %1237 = vst [vmem:[%s1555_s30 + $0x60] sm:$0xff] %v1194_v57   ;;  %v1199_v63 = vpack.c.bf16 %v550_v58, %v549_v54  ;;  %v552_v0 = vmax.f32 %v520_v59, 0.0  ;;  %v522_v1 = vadd.f32 %v1530_v47, %v483_v60  ;;  %v745_v47 = vld [vmem:[%s1555_s30 + $0x4] sm:$0xf] (%p1421_p6)  ;;  %v771_v18 = vld [vmem:[%s1555_s30 + $0x38] sm:$0xf] (%p1421_p6) }
  0x5c   : > { %v553_v2 = vmax.f32 %v521_v62, 0.0  ;;  %746 = vst [vmem:[%s1639_s8 + $0x8] sm:$0xf] (%p1421_p6), %v745_v47  ;;  %v773_v19 = vld [vmem:[%s1555_s30 + $0x3c] sm:$0xf] (%p1421_p6) }
  0x5d   : > { %1238 = vst [vmem:[%s1555_s30 + $0x68] sm:$0xff] %v1199_v63   ;;  %v1204_v3 = vpack.c.bf16 %v552_v0, %v551_v61  ;;  %v554_v4 = vmax.f32 %v522_v1, 0.0  ;;  %721 = sbr.rel (!%p1421_p6) target bundleno = 107 (0x6b), region = 77  ;;  %770 = vst [vmem:[%s1639_s8 + $0x68] sm:$0xf] (%p1421_p6), %v769_v17 }
  0x5e   : > { %772 = vst [vmem:[%s1639_s8 + $0x70] sm:$0xf] (%p1421_p6), %v771_v18  ;;  %774 = vst [vmem:[%s1639_s8 + $0x78] sm:$0xf] (%p1421_p6), %v773_v19  ;;  %v775_v20 = vld [vmem:[%s1555_s30 + $0x40] sm:$0xf] (%p1421_p6) }
  0x5f   : > { %1239 = vst [vmem:[%s1555_s30 + $0x70] sm:$0xff] %v1204_v3   ;;  %v1209_v5 = vpack.c.bf16 %v554_v4, %v553_v2  ;;  %v777_v21 = vld [vmem:[%s1555_s30 + $0x44] sm:$0xf] (%p1421_p6)  ;;  %v779_v22 = vld [vmem:[%s1555_s30 + $0x48] sm:$0xf] (%p1421_p6) }
  0x60   : > { %776 = vst [vmem:[%s1639_s8 + $0x80] sm:$0xf] (%p1421_p6), %v775_v20  ;;  %778 = vst [vmem:[%s1639_s8 + $0x88] sm:$0xf] (%p1421_p6), %v777_v21  ;;  %v781_v23 = vld [vmem:[%s1555_s30 + $0x4c] sm:$0xf] (%p1421_p6) }
  0x61   : > { %1240 = vst [vmem:[%s1555_s30 + $0x78] sm:$0xff] %v1209_v5   ;;  %780 = vst [vmem:[%s1639_s8 + $0x90] sm:$0xf] (%p1421_p6), %v779_v22  ;;  %v783_v24 = vld [vmem:[%s1555_s30 + $0x50] sm:$0xf] (%p1421_p6) }
  0x62   : > { %v785_v25 = vld [vmem:[%s1555_s30 + $0x54] sm:$0xf]  ;;  %782 = vst [vmem:[%s1639_s8 + $0x98] sm:$0xf] %v781_v23  ;;  %784 = vst [vmem:[%s1639_s8 + $0xa0] sm:$0xf] %v783_v24 }
  0x63   : > { %786 = vst [vmem:[%s1639_s8 + $0xa8] sm:$0xf] %v785_v25  ;;  %v787_v26 = vld [vmem:[%s1555_s30 + $0x58] sm:$0xf]  ;;  %v789_v27 = vld [vmem:[%s1555_s30 + $0x5c] sm:$0xf] }
  0x64   : > { %v791_v28 = vld [vmem:[%s1555_s30 + $0x60] sm:$0xf]  ;;  %788 = vst [vmem:[%s1639_s8 + $0xb0] sm:$0xf] %v787_v26  ;;  %790 = vst [vmem:[%s1639_s8 + $0xb8] sm:$0xf] %v789_v27 }
  0x65   : > { %792 = vst [vmem:[%s1639_s8 + $0xc0] sm:$0xf] %v791_v28  ;;  %v793_v29 = vld [vmem:[%s1555_s30 + $0x64] sm:$0xf]  ;;  %v795_v30 = vld [vmem:[%s1555_s30 + $0x68] sm:$0xf] }
  0x66   : > { %v797_v31 = vld [vmem:[%s1555_s30 + $0x6c] sm:$0xf]  ;;  %794 = vst [vmem:[%s1639_s8 + $0xc8] sm:$0xf] %v793_v29  ;;  %796 = vst [vmem:[%s1639_s8 + $0xd0] sm:$0xf] %v795_v30 }
  0x67   : > { %798 = vst [vmem:[%s1639_s8 + $0xd8] sm:$0xf] %v797_v31  ;;  %v799_v32 = vld [vmem:[%s1555_s30 + $0x70] sm:$0xf]  ;;  %v801_v33 = vld [vmem:[%s1555_s30 + $0x74] sm:$0xf] }
  0x68   : > { %v803_v34 = vld [vmem:[%s1555_s30 + $0x78] sm:$0xf]  ;;  %800 = vst [vmem:[%s1639_s8 + $0xe0] sm:$0xf] %v799_v32  ;;  %802 = vst [vmem:[%s1639_s8 + $0xe8] sm:$0xf] %v801_v33 }
  0x69   : > { %804 = vst [vmem:[%s1639_s8 + $0xf0] sm:$0xf] %v803_v34  ;;  %v805_v35 = vld [vmem:[%s1555_s30 + $0x7c] sm:$0xf] }
  0x6a   : > { %806 = vst [vmem:[%s1639_s8 + $0xf8] sm:$0xf] %v805_v35 }
  0x6b PF: > { %s13_s18 = sadd.s32 1, %s1351_s18   ;;  %s1724_s12 = smov %s1331_s13 }
  0x6c   : > { %p10_p13 = scmp.ge.s32.totalorder %s13_s18, 6   ;;  %s1725_s13 = smov %s1429_s27 }
  0x6d   : > { %s1726_s14 = smov %s1343_s16  ;;  %s1727_s15 = smov %s1347_s17 }
  0x6e   : > { %s1728_s16 = smov %s1731_s19  ;;  %s1729_s17 = smov %s1735_s20 }
  0x6f   :  { %12 = sbr.rel (!%p10_p13) target bundleno = 4 (0x4), region = 155 }

// kernel: inception_d_forward.25
= control target key start
LH: loop header
LB: loop body
LE: loop exit
PB: predicated region body
PF: predicated region fallthrough
CT: control target
= control target key end

     0   :  { %s1822_s15 = smov 0   ;;  %s1824_s16 = smov 0   ;;  %s2109_s0 = inlined_call_operand.vmem [shape: bf16[512,4], index: 0, kind: input, shape index: {}]   ;;  %s2110_s1 = inlined_call_operand.vmem [shape: bf16[4,256], index: 1, kind: input, shape index: {}]   ;;  %s2111_s2 = inlined_call_operand.vmem [shape: bf16[512,256], index: 2, kind: output, shape index: {0}]   ;;  %s2112_s3 = inlined_call_operand.vmem [shape: f32[2,1,256], index: 3, kind: output, shape index: {1}]   ;;  %s2113_s4 = inlined_call_operand.vmem [shape: f32[2,1,256], index: 4, kind: output, shape index: {2}]  }
   0x1   :  { %s1826_s17 = smov 0   ;;  %s1828_s18 = smov 0  }
   0x2   :  { %s1830_s19 = smov 0   ;;  %s1832_s20 = smov 0  }
   0x3   :  { %s1834_s21 = smov 0  }
   0x4 LB: > { %s30_s22 = sadd.s32 1, %s1787_s19  ;;  %s34_s23 = sadd.s32 1, %s1791_s20  ;;  %s1795_s21 = sphi %s1834_s21, %s15_s21   ;;  %s1791_s20 = sphi %s1832_s20, %s2120_s20   ;;  %s1787_s19 = sphi %s1830_s19, %s2119_s19   ;;  %s1783_s18 = sphi %s1828_s18, %s2118_s18   ;;  %s1779_s17 = sphi %s1826_s17, %s2117_s17   ;;  %s1775_s16 = sphi %s1824_s16, %s2116_s16   ;;  %s1771_s15 = sphi %s1822_s15, %s2115_s15  }
   0x5   : > { %p32_p0 = scmp.ge.s32.totalorder %s30_s22, 2  ;;  %s1405_s24 = sadd.s32 4294967295, %s1795_s21  }
   0x6   : > { %p109_p1 = scmp.ne.s32.totalorder %s1775_s16, %s1771_s15  ;;  %p110_p2 = scmp.eq.s32.totalorder %s1405_s24, 3 }
   0x7   : > { %s2122_s22 = smov (%p32_p0, %s30_s22), 0  ;;  %s2124_s23 = smov (!%p32_p0, %s34_s23), %s1791_s20 }
   0x8   : > { %s95_s25 = ssub.s32 %s1787_s19, %s2122_s22  ;;  %p36_p3 = scmp.ge.s32.totalorder %s2124_s23, 2 }
   0x9   : > { %p1409_p4 = scmp.ge.s32.totalorder %s1795_s21, 1  ;;  %p1868_p5 = por %p110_p2, %p109_p1 }
   0xa   : > { %p213_p6 = scmp.lt.s32.totalorder %s1795_s21, 5  ;;  %s2126_s23 = smov (%p36_p3, %s2124_s23), 0 }
   0xb   : > { %s94_s27 = ssub.s32 %s1791_s20, %s2126_s23  ;;  %s99_s29 = sadd.s32 1, %s1775_s16 }
   0xc   : > { %p214_p7 = pnand %p1409_p4, %p213_p6  ;;  %s96_s28 = sor.u32 %s95_s25, %s94_s27 }
   0xd   : > { %p97_p8 = scmp.eq.s32.totalorder %s96_s28, 0  ;;  %p274_p9 = scmp.lt.s32.totalorder (!%p214_p7), %s1779_s17, 1 }
   0xe   : > { %217 = sbr.rel (%p214_p7) target bundleno = 304 (0x130), region = 28  ;;  %s1411_s5 = sshll.u32 (!%p214_p7), %s1783_s18, 5 }
   0xf   : > { %s1879_s30 = scalar_select %p97_p8, %s1775_s16, %s99_s29  }
  0x10   : > { %p264_p10 = scmp.lt.s32.totalorder (!%p214_p7), %s1411_s5, 63  ;;  %s242_s24 = sand.u32 (!%p214_p7), 1, %s1771_s15  }
  0x11   : > { %s1410_s25 = sshll.u32 (!%p214_p7), %s242_s24, 7  ;;  %p281_p11 = scmp.lt.s32.totalorder (!%p214_p7), %s1783_s18, 1 }
  0x12   : > { %s1928_s27 = scalar_lea.vmem (!%p214_p7), [#allocation3], %s1410_s25 }
  0x13   : > { %s1884_s6 = scalar_select %p274_p9, %s1779_s17, 1  ;;  %vm526_vm0 = vcmask 1041408   ;;  %vm477_vm1 = vcmask 31744  }
  0x14   : > { %s2128_s5 = smov (!%p264_p10, %s1411_s5), 63 }
  0x15   : > { %s1413_s7 = sshll.u32 %s1884_s6, 1  ;;  %s1412_s11 = sshll.u32 %s2128_s5, 2 }
  0x16   : > { %s279_s10 = scalar_lea.vmem %s2110_s1, %s1413_s7  ;;  %s1893_s14 = scalar_lea.vmem %s2109_s0, %s1412_s11 }
  0x17   : > { %v396_v0 = vld [vmem:[%s279_s10] sm:$0x3]  ;;  %v1726_v3 = vld [vmem:[%s1893_s14 + $0x8] sm:$0xff]   ;;  %v1727_v4 = vld [vmem:[%s1893_s14 + $0x10] sm:$0xff]   ;;  %s282_s15 = scalar_select %p281_p11, %s1783_s18, 1 }
  0x18   : > { %1667 = vmatprep.subr.msk.bf16.mxu0 %vm526_vm0, %v396_v0  ;;  %v528_v1 = vsel %vm526_vm0, %v396_v0, 0  ;;  %1668 = vmatprep.subr.msk.bf16.mxu1 %vm526_vm0, %v396_v0  ;;  %v1725_v2 = vld [vmem:[%s1893_s14] sm:$0xff]   ;;  %v1728_v5 = vld [vmem:[%s1893_s14 + $0x18] sm:$0xff]   ;;  %v1734_v8 = vld [vmem:[%s1893_s14 + $0x48] sm:$0xff]  }
  0x19   : > { %1632 = vmatpush3.bf16.msra.mxu0 %v528_v1  ;;  %1666 = vmatpush3.bf16.msra.mxu1 %v528_v1  ;;  %v1729_v6 = vld [vmem:[%s1893_s14 + $0x20] sm:$0xff]   ;;  %v1735_v9 = vld [vmem:[%s1893_s14 + $0x50] sm:$0xff]   ;;  %v1730_v10 = vld [vmem:[%s1893_s14 + $0x28] sm:$0xff]   ;;  %s1414_s28 = sshll.u32 %s282_s15, 1 }
  0x1a   : > { %1633 = vmatprep.mubr.msk.bf16.mxu0 %vm477_vm1, %v1725_v2  ;;  %v1733_v7 = vld [vmem:[%s1893_s14 + $0x40] sm:$0xff]   ;;  %v1736_v11 = vld [vmem:[%s1893_s14 + $0x58] sm:$0xff]   ;;  %v1731_v12 = vld [vmem:[%s1893_s14 + $0x30] sm:$0xff]   ;;  %s286_s29 = sadd.s32 %s1414_s28, %s1884_s6  ;;  %s1518_s6 = sshll.u32 (%p1868_p5), %s1783_s18, 6 }
  0x1b   : > { %1649 = vmatprep.mubr.msk.bf16.mxu1 %vm477_vm1, %v1733_v7  ;;  %v1737_v13 = vld [vmem:[%s1893_s14 + $0x60] sm:$0xff]   ;;  %v1732_v14 = vld [vmem:[%s1893_s14 + $0x38] sm:$0xff]   ;;  %v1738_v15 = vld [vmem:[%s1893_s14 + $0x68] sm:$0xff]   ;;  %s287_s8 = scalar_lea.vmem %s2112_s3, %s286_s29  ;;  %s294_s11 = scalar_lea.vmem %s2113_s4, %s286_s29 }
  0x1c   : > { %1634 = vmatmul.mubr.msk.bf16.vlgmr.msra.gmra.mxu0 %vm477_vm1, %v1726_v3  ;;  %1650 = vmatmul.mubr.msk.bf16.vlgmr.msra.gmra.mxu1 %vm477_vm1, %v1734_v8  ;;  %v1739_v16 = vld [vmem:[%s1893_s14 + $0x70] sm:$0xff]   ;;  %v1740_v17 = vld [vmem:[%s1893_s14 + $0x78] sm:$0xff]   ;;  %s1081_s12 = sadd.s32 (%p1868_p5), %s1779_s17, %s1518_s6 }
  0x1d   : > { %1637 = vmatprep.mubr.msk.bf16.mxu0 %vm477_vm1, %v1727_v4  ;;  %1653 = vmatprep.mubr.msk.bf16.mxu1 %vm477_vm1, %v1735_v9  ;;  %s1483_s26 = sshll.u32 (%p1868_p5), %s1081_s12, 2 }
  0x1e   : > { %s2029_s24 = scalar_lea.vmem (%p1868_p5), %s2111_s2, %s1483_s26 }
  0x24   : > { %1638 = vmatmul.mubr.msk.bf16.gmra.mxu0 %vm477_vm1, %v1728_v5  ;;  %1654 = vmatmul.mubr.msk.bf16.gmra.mxu1 %vm477_vm1, %v1736_v11 }
  0x25   : > { %1641 = vmatprep.mubr.msk.bf16.mxu0 %vm477_vm1, %v1729_v6  ;;  %1657 = vmatprep.mubr.msk.bf16.mxu1 %vm477_vm1, %v1737_v13 }
  0x2c   : > { %1642 = vmatmul.mubr.msk.bf16.gmra.mxu0 %vm477_vm1, %v1730_v10  ;;  %1658 = vmatmul.mubr.msk.bf16.gmra.mxu1 %vm477_vm1, %v1738_v15 }
  0x2d   : > { %1645 = vmatprep.mubr.msk.bf16.mxu0 %vm477_vm1, %v1731_v12  ;;  %1661 = vmatprep.mubr.msk.bf16.mxu1 %vm477_vm1, %v1739_v16 }
  0x34   : > { %1646 = vmatmul.mubr.msk.bf16.gmra.mxu0 %vm477_vm1, %v1732_v14  ;;  %1662 = vmatmul.mubr.msk.bf16.gmra.mxu1 %vm477_vm1, %v1740_v17 }
  0xdc   : > { %v1635_v18 = vpop.f32.mrf.mxu0  ;;  %v1931_v28 = vpop.f32.mrf.mxu1 }
  0xdd   : > { %v990_v29 = vmul.f32 %v1635_v18, %v1635_v18 }
  0xde   : > { %v564_v19 = vpop.f32.mrf.mxu0  ;;  %v1934_v33 = vpop.f32.mrf.mxu1 }
  0xdf   : > { %v988_v23 = vmul.f32 %v564_v19, %v564_v19 }
  0xe0   : > { %v1636_v20 = vpop.f32.mrf.mxu0  ;;  %v1936_v38 = vpop.f32.mrf.mxu1 }
  0xe1   : > { %v1527_v21 = vpack.c.bf16 %v1636_v20, %v1635_v18  ;;  %v991_v34 = vmul.f32 %v1636_v20, %v1636_v20  ;;  %v1567_v44 = vpack.c.bf16 %v1936_v38, %v1931_v28 }
  0xe2   : > { %v567_v22 = vpop.f32.mrf.mxu0  ;;  %v1940_v45 = vpop.f32.mrf.mxu1 }
  0xe3   : > { %1599 = vst [vmem:[%s1928_s27 + $0x8] sm:$0xff] %v1527_v21   ;;  %v1522_v24 = vpack.c.bf16 %v567_v22, %v564_v19  ;;  %v950_v25 = vadd.f32 %v567_v22, %v564_v19  ;;  %v989_v26 = vmul.f32 %v567_v22, %v567_v22  ;;  %1607 = vst [vmem:[%s1928_s27 + $0x48] sm:$0xff] %v1567_v44  }
  0xe4   : > { %v1639_v27 = vpop.f32.mrf.mxu0  ;;  %v1562_v51 = vpack.c.bf16 %v1940_v45, %v1934_v33  ;;  %v1946_v52 = vpop.f32.mrf.mxu1 }
  0xe5   : > { %1523 = vst [vmem:[%s1928_s27] sm:$0xff] %v1522_v24   ;;  %v951_v30 = vadd.f32 %v1635_v18, %v950_v25  ;;  %v1020_v31 = vadd.f32 %v989_v26, %v988_v23  ;;  %v994_v53 = vmul.f32 %v1639_v27, %v1639_v27 }
  0xe6   : > { %v580_v32 = vpop.f32.mrf.mxu0  ;;  %1606 = vst [vmem:[%s1928_s27 + $0x40] sm:$0xff] %v1562_v51   ;;  %v1950_v57 = vpop.f32.mrf.mxu1 }
  0xe7   : > { %v1021_v35 = vadd.f32 %v1020_v31, %v990_v29  ;;  %v952_v36 = vadd.f32 %v1636_v20, %v951_v30  ;;  %v992_v40 = vmul.f32 %v580_v32, %v580_v32 }
  0xe8   : > { %v1640_v37 = vpop.f32.mrf.mxu0  ;;  %v1952_v62 = vpop.f32.mrf.mxu1 }
  0xe9   : > { %v953_v39 = vadd.f32 %v952_v36, %v580_v32  ;;  %v1022_v41 = vadd.f32 %v1021_v35, %v991_v34  ;;  %v1537_v42 = vpack.c.bf16 %v1640_v37, %v1639_v27  ;;  %v995_v58 = vmul.f32 %v1640_v37, %v1640_v37 }
  0xea   : > { %v583_v43 = vpop.f32.mrf.mxu0  ;;  %v1577_v4 = vpack.c.bf16 %v1952_v62, %v1946_v52  ;;  %v1956_v5 = vpop.f32.mrf.mxu1 }
  0xeb   : > { %v1023_v46 = vadd.f32 %v1022_v41, %v992_v40  ;;  %1601 = vst [vmem:[%s1928_s27 + $0x18] sm:$0xff] %v1537_v42   ;;  %v1532_v47 = vpack.c.bf16 %v583_v43, %v580_v32  ;;  %v954_v48 = vadd.f32 %v953_v39, %v583_v43  ;;  %v993_v49 = vmul.f32 %v583_v43, %v583_v43 }
  0xec   : > { %v1643_v50 = vpop.f32.mrf.mxu0  ;;  %1609 = vst [vmem:[%s1928_s27 + $0x58] sm:$0xff] %v1577_v4   ;;  %v1572_v11 = vpack.c.bf16 %v1956_v5, %v1950_v57  ;;  %v1962_v12 = vpop.f32.mrf.mxu1 }
  0xed   : > { %1600 = vst [vmem:[%s1928_s27 + $0x10] sm:$0xff] %v1532_v47   ;;  %v955_v54 = vadd.f32 %v1639_v27, %v954_v48  ;;  %v1024_v55 = vadd.f32 %v1023_v46, %v993_v49  ;;  %v998_v13 = vmul.f32 %v1643_v50, %v1643_v50  ;;  %v1004_v48 = vmul.f32 %v1934_v33, %v1934_v33 }
  0xee   : > { %v596_v56 = vpop.f32.mrf.mxu0  ;;  %1608 = vst [vmem:[%s1928_s27 + $0x50] sm:$0xff] %v1572_v11   ;;  %v660_v17 = vpop.f32.mrf.mxu1 }
  0xef   : > { %v1025_v59 = vadd.f32 %v1024_v55, %v994_v53  ;;  %v956_v60 = vadd.f32 %v1640_v37, %v955_v54  ;;  %v996_v0 = vmul.f32 %v596_v56, %v596_v56  ;;  %v1005_v55 = vmul.f32 %v1940_v45, %v1940_v45 }
  0xf0   : > { %v1644_v61 = vpop.f32.mrf.mxu0  ;;  %v1966_v22 = vpop.f32.mrf.mxu1  ;;  %v1012_v11 = vmul.f32 %v660_v17, %v660_v17 }
  0xf1   : > { %v957_v63 = vadd.f32 %v956_v60, %v596_v56  ;;  %v1026_v1 = vadd.f32 %v1025_v59, %v995_v58  ;;  %v1547_v2 = vpack.c.bf16 %v1644_v61, %v1643_v50  ;;  %v999_v18 = vmul.f32 %v1644_v61, %v1644_v61 }
  0xf2   : > { %v599_v3 = vpop.f32.mrf.mxu0  ;;  %v1587_v29 = vpack.c.bf16 %v1966_v22, %v1962_v12  ;;  %v663_v30 = vpop.f32.mrf.mxu1  ;;  %v1006_v59 = vmul.f32 %v1931_v28, %v1931_v28 }
  0xf3   : > { %v1027_v6 = vadd.f32 %v1026_v1, %v996_v0  ;;  %1603 = vst [vmem:[%s1928_s27 + $0x28] sm:$0xff] %v1547_v2   ;;  %v1542_v7 = vpack.c.bf16 %v599_v3, %v596_v56  ;;  %v958_v8 = vadd.f32 %v957_v63, %v599_v3  ;;  %v997_v9 = vmul.f32 %v599_v3, %v599_v3 }
  0xf4   : > { %v1647_v10 = vpop.f32.mrf.mxu0  ;;  %1611 = vst [vmem:[%s1928_s27 + $0x68] sm:$0xff] %v1587_v29   ;;  %v1582_v36 = vpack.c.bf16 %v663_v30, %v660_v17  ;;  %v1663_v37 = vpop.f32.mrf.mxu1 }
  0xf5   : > { %1602 = vst [vmem:[%s1928_s27 + $0x20] sm:$0xff] %v1542_v7   ;;  %v959_v14 = vadd.f32 %v1643_v50, %v958_v8  ;;  %v1028_v15 = vadd.f32 %v1027_v6, %v997_v9  ;;  %v1002_v39 = vmul.f32 %v1647_v10, %v1647_v10  ;;  %v1010_v6 = vmul.f32 %v1946_v52, %v1946_v52 }
  0xf6   : > { %v612_v16 = vpop.f32.mrf.mxu0  ;;  %1610 = vst [vmem:[%s1928_s27 + $0x60] sm:$0xff] %v1582_v36   ;;  %v676_v42 = vpop.f32.mrf.mxu1 }
  0xf7   : > { %v1029_v19 = vadd.f32 %v1028_v15, %v998_v13  ;;  %v960_v20 = vadd.f32 %v1644_v61, %v959_v14  ;;  %v1000_v24 = vmul.f32 %v612_v16, %v612_v16 }
  0xf8   : > { %v1648_v21 = vpop.f32.mrf.mxu0  ;;  %v1664_v47 = vpop.f32.mrf.mxu1 }
  0xf9   : > { %v961_v23 = vadd.f32 %v960_v20, %v612_v16  ;;  %v1030_v25 = vadd.f32 %v1029_v19, %v999_v18  ;;  %v1557_v26 = vpack.c.bf16 %v1648_v21, %v1647_v10  ;;  %v1003_v43 = vmul.f32 %v1648_v21, %v1648_v21 }
  0xfa   : > { %v615_v27 = vpop.f32.mrf.mxu0  ;;  %v1597_v51 = vpack.c.bf16 %v1664_v47, %v1663_v37  ;;  %v679_v53 = vpop.f32.mrf.mxu1  ;;  %v1015_v19 = vmul.f32 %v1966_v22, %v1966_v22 }
  0xfb   : > { %v1031_v31 = vadd.f32 %v1030_v25, %v1000_v24  ;;  %1605 = vst [vmem:[%s1928_s27 + $0x38] sm:$0xff] %v1557_v26   ;;  %v1552_v32 = vpack.c.bf16 %v615_v27, %v612_v16  ;;  %v962_v34 = vadd.f32 %v961_v23, %v615_v27  ;;  %v1001_v35 = vmul.f32 %v615_v27, %v615_v27 }
  0xfc   : > { %1613 = vst [vmem:[%s1928_s27 + $0x78] sm:$0xff] %v1597_v51   ;;  %v1592_v58 = vpack.c.bf16 %v679_v53, %v676_v42  ;;  %v1013_v16 = vmul.f32 %v663_v30, %v663_v30  ;;  %v1017_v26 = vmul.f32 %v679_v53, %v679_v53  ;;  %v1018_v27 = vmul.f32 %v1663_v37, %v1663_v37  ;;  %v1106_v51 = vld [vmem:[%s1928_s27 + $0xc] sm:$0xf] (%p1868_p5) }
  0xfd   : > { %1604 = vst [vmem:[%s1928_s27 + $0x30] sm:$0xff] %v1552_v32   ;;  %v963_v40 = vadd.f32 %v1647_v10, %v962_v34  ;;  %v1032_v41 = vadd.f32 %v1031_v31, %v1001_v35  ;;  %1107 = vst [vmem:[%s2029_s24 + $0x18] sm:$0xf] (%p1868_p5), %v1106_v51 }
  0xfe   : > { %1612 = vst [vmem:[%s1928_s27 + $0x70] sm:$0xff] %v1592_v58   ;;  %v1116_v58 = vld [vmem:[%s1928_s27 + $0x20] sm:$0xf] (%p1868_p5) }
  0xff   : > { %v964_v44 = vadd.f32 %v1648_v21, %v963_v40  ;;  %v1033_v46 = vadd.f32 %v1032_v41, %v1002_v39  ;;  %1117 = vst [vmem:[%s2029_s24 + $0x40] sm:$0xf] (%p1868_p5), %v1116_v58 }
 0x101   : > { %v1034_v49 = vadd.f32 %v1033_v46, %v1003_v43  ;;  %v965_v50 = vadd.f32 %v964_v44, %v1934_v33  ;;  %v1007_v33 = vmul.f32 %v1936_v38, %v1936_v38 }
 0x103   : > { %v966_v54 = vadd.f32 %v965_v50, %v1940_v45  ;;  %v1035_v56 = vadd.f32 %v1034_v49, %v1004_v48  ;;  %v1008_v45 = vmul.f32 %v1950_v57, %v1950_v57  ;;  %v1100_v48 = vld [vmem:[%s1928_s27] sm:$0xf] (%p1868_p5)  ;;  %v1102_v49 = vld [vmem:[%s1928_s27 + $0x4] sm:$0xf] (%p1868_p5)  ;;  %v1104_v50 = vld [vmem:[%s1928_s27 + $0x8] sm:$0xf] (%p1868_p5) }
 0x104   : > { %1101 = vst [vmem:[%s2029_s24] sm:$0xf] (%p1868_p5), %v1100_v48  ;;  %1103 = vst [vmem:[%s2029_s24 + $0x8] sm:$0xf] (%p1868_p5), %v1102_v49 }
 0x105   : > { %v967_v60 = vadd.f32 %v1931_v28, %v966_v54  ;;  %v1036_v61 = vadd.f32 %v1035_v56, %v1005_v55  ;;  %v1009_v28 = vmul.f32 %v1956_v5, %v1956_v5  ;;  %v1110_v54 = vld [vmem:[%s1928_s27 + $0x14] sm:$0xf] (%p1868_p5)  ;;  %v1112_v55 = vld [vmem:[%s1928_s27 + $0x18] sm:$0xf] (%p1868_p5)  ;;  %v1114_v56 = vld [vmem:[%s1928_s27 + $0x1c] sm:$0xf] (%p1868_p5) }
 0x106   : > { %1105 = vst [vmem:[%s2029_s24 + $0x10] sm:$0xf] (%p1868_p5), %v1104_v50  ;;  %1111 = vst [vmem:[%s2029_s24 + $0x28] sm:$0xf] (%p1868_p5), %v1110_v54 }
 0x107   : > { %v1037_v63 = vadd.f32 %v1036_v61, %v1006_v59  ;;  %v968_v0 = vadd.f32 %v1936_v38, %v967_v60  ;;  %v1011_v38 = vmul.f32 %v1952_v62, %v1952_v62  ;;  %v1118_v59 = vld [vmem:[%s1928_s27 + $0x24] sm:$0xf] (%p1868_p5)  ;;  %1113 = vst [vmem:[%s2029_s24 + $0x30] sm:$0xf] (%p1868_p5), %v1112_v55  ;;  %1115 = vst [vmem:[%s2029_s24 + $0x38] sm:$0xf] (%p1868_p5), %v1114_v56 }
 0x108   : > { %1119 = vst [vmem:[%s2029_s24 + $0x48] sm:$0xf] (%p1868_p5), %v1118_v59  ;;  %v1120_v60 = vld [vmem:[%s1928_s27 + $0x28] sm:$0xf] (%p1868_p5)  ;;  %v1122_v61 = vld [vmem:[%s1928_s27 + $0x2c] sm:$0xf] (%p1868_p5) }
 0x109   : > { %v969_v1 = vadd.f32 %v968_v0, %v1950_v57  ;;  %v1038_v2 = vadd.f32 %v1037_v63, %v1007_v33  ;;  %v1124_v33 = vld [vmem:[%s1928_s27 + $0x30] sm:$0xf] (%p1868_p5)  ;;  %1121 = vst [vmem:[%s2029_s24 + $0x50] sm:$0xf] (%p1868_p5), %v1120_v60  ;;  %1123 = vst [vmem:[%s2029_s24 + $0x58] sm:$0xf] (%p1868_p5), %v1122_v61 }
 0x10a   : > { %1125 = vst [vmem:[%s2029_s24 + $0x60] sm:$0xf] (%p1868_p5), %v1124_v33  ;;  %v1126_v63 = vld [vmem:[%s1928_s27 + $0x34] sm:$0xf] (%p1868_p5)  ;;  %v1128_v0 = vld [vmem:[%s1928_s27 + $0x38] sm:$0xf] (%p1868_p5) }
 0x10b   : > { %v1039_v3 = vadd.f32 %v1038_v2, %v1008_v45  ;;  %v970_v4 = vadd.f32 %v969_v1, %v1956_v5  ;;  %v1014_v5 = vmul.f32 %v1962_v12, %v1962_v12  ;;  %v1130_v1 = vld [vmem:[%s1928_s27 + $0x3c] sm:$0xf] (%p1868_p5)  ;;  %1127 = vst [vmem:[%s2029_s24 + $0x68] sm:$0xf] (%p1868_p5), %v1126_v63  ;;  %1129 = vst [vmem:[%s2029_s24 + $0x70] sm:$0xf] (%p1868_p5), %v1128_v0 }
 0x10c   : > { %1131 = vst [vmem:[%s2029_s24 + $0x78] sm:$0xf] (%p1868_p5), %v1130_v1  ;;  %v1132_v45 = vld [vmem:[%s1928_s27 + $0x40] sm:$0xf] (%p1868_p5)  ;;  %v1134_v2 = vld [vmem:[%s1928_s27 + $0x44] sm:$0xf] (%p1868_p5) }
 0x10d   : > { %v971_v7 = vadd.f32 %v1946_v52, %v970_v4  ;;  %v1040_v8 = vadd.f32 %v1039_v3, %v1009_v28  ;;  %v1136_v3 = vld [vmem:[%s1928_s27 + $0x48] sm:$0xf] (%p1868_p5)  ;;  %1133 = vst [vmem:[%s2029_s24 + $0x80] sm:$0xf] (%p1868_p5), %v1132_v45  ;;  %1135 = vst [vmem:[%s2029_s24 + $0x88] sm:$0xf] (%p1868_p5), %v1134_v2 }
 0x10e   : > { %1137 = vst [vmem:[%s2029_s24 + $0x90] sm:$0xf] (%p1868_p5), %v1136_v3  ;;  %v1138_v4 = vld [vmem:[%s1928_s27 + $0x4c] sm:$0xf] (%p1868_p5)  ;;  %v1140_v28 = vld [vmem:[%s1928_s27 + $0x50] sm:$0xf] (%p1868_p5) }
 0x10f   : > { %v1041_v9 = vadd.f32 %v1040_v8, %v1010_v6  ;;  %v972_v10 = vadd.f32 %v1952_v62, %v971_v7  ;;  %v1142_v6 = vld [vmem:[%s1928_s27 + $0x54] sm:$0xf] (%p1868_p5)  ;;  %1139 = vst [vmem:[%s2029_s24 + $0x98] sm:$0xf] (%p1868_p5), %v1138_v4  ;;  %1141 = vst [vmem:[%s2029_s24 + $0xa0] sm:$0xf] (%p1868_p5), %v1140_v28 }
 0x110   : > { %1143 = vst [vmem:[%s2029_s24 + $0xa8] sm:$0xf] (%p1868_p5), %v1142_v6  ;;  %v1144_v7 = vld [vmem:[%s1928_s27 + $0x58] sm:$0xf] (%p1868_p5)  ;;  %v1146_v8 = vld [vmem:[%s1928_s27 + $0x5c] sm:$0xf] (%p1868_p5) }
 0x111   : > { %v973_v57 = vadd.f32 %v972_v10, %v660_v17  ;;  %v1042_v13 = vadd.f32 %v1041_v9, %v1011_v38  ;;  %v1016_v17 = vmul.f32 %v676_v42, %v676_v42  ;;  %v1148_v38 = vld [vmem:[%s1928_s27 + $0x60] sm:$0xf] (%p1868_p5)  ;;  %1145 = vst [vmem:[%s2029_s24 + $0xb0] sm:$0xf] (%p1868_p5), %v1144_v7  ;;  %1147 = vst [vmem:[%s2029_s24 + $0xb8] sm:$0xf] (%p1868_p5), %v1146_v8 }
 0x112   : > { %1149 = vst [vmem:[%s2029_s24 + $0xc0] sm:$0xf] (%p1868_p5), %v1148_v38  ;;  %v1150_v9 = vld [vmem:[%s1928_s27 + $0x64] sm:$0xf] (%p1868_p5)  ;;  %v1152_v10 = vld [vmem:[%s1928_s27 + $0x68] sm:$0xf] (%p1868_p5) }
 0x113   : > { %v1043_v14 = vadd.f32 %v1042_v13, %v1012_v11  ;;  %v974_v15 = vadd.f32 %v973_v57, %v663_v30  ;;  %v1154_v57 = vld [vmem:[%s1928_s27 + $0x6c] sm:$0xf] (%p1868_p5)  ;;  %1151 = vst [vmem:[%s2029_s24 + $0xc8] sm:$0xf] (%p1868_p5), %v1150_v9  ;;  %1153 = vst [vmem:[%s2029_s24 + $0xd0] sm:$0xf] (%p1868_p5), %v1152_v10 }
 0x114   : > { %1155 = vst [vmem:[%s2029_s24 + $0xd8] sm:$0xf] (%p1868_p5), %v1154_v57  ;;  %v1156_v11 = vld [vmem:[%s1928_s27 + $0x70] sm:$0xf] (%p1868_p5)  ;;  %v1158_v13 = vld [vmem:[%s1928_s27 + $0x74] sm:$0xf] (%p1868_p5) }
 0x115   : > { %v975_v18 = vadd.f32 %v1962_v12, %v974_v15  ;;  %v1044_v52 = vadd.f32 %v1043_v14, %v1013_v16  ;;  %v1019_v12 = vmul.f32 %v1664_v47, %v1664_v47  ;;  %v1160_v14 = vld [vmem:[%s1928_s27 + $0x78] sm:$0xf] (%p1868_p5)  ;;  %1157 = vst [vmem:[%s2029_s24 + $0xe0] sm:$0xf] (%p1868_p5), %v1156_v11  ;;  %1159 = vst [vmem:[%s2029_s24 + $0xe8] sm:$0xf] (%p1868_p5), %v1158_v13 }
 0x116   : > { %1161 = vst [vmem:[%s2029_s24 + $0xf0] sm:$0xf] (%p1868_p5), %v1160_v14  ;;  %v1162_v15 = vld [vmem:[%s1928_s27 + $0x7c] sm:$0xf] (%p1868_p5) }
 0x117   : > { %v1045_v20 = vadd.f32 %v1044_v52, %v1014_v5  ;;  %v976_v62 = vadd.f32 %v1966_v22, %v975_v18  ;;  %1163 = vst [vmem:[%s2029_s24 + $0xf8] sm:$0xf] (%p1868_p5), %v1162_v15 }
 0x119   : > { %v977_v21 = vadd.f32 %v976_v62, %v676_v42  ;;  %v1046_v23 = vadd.f32 %v1045_v20, %v1015_v19 }
 0x11b   : > { %v1047_v24 = vadd.f32 %v1046_v23, %v1016_v17  ;;  %v978_v25 = vadd.f32 %v977_v21, %v679_v53  ;;  %v1108_v53 = vld [vmem:[%s1928_s27 + $0x10] sm:$0xf] (%p1868_p5) }
 0x11c   : > { %1109 = vst [vmem:[%s2029_s24 + $0x20] sm:$0xf] (%p1868_p5), %v1108_v53 }
 0x11d   : > { %v979_v29 = vadd.f32 %v1663_v37, %v978_v25  ;;  %v1048_v30 = vadd.f32 %v1047_v24, %v1017_v26 }
 0x11f   : > { %v980_v31 = vadd.f32 %v1664_v47, %v979_v29  ;;  %v1049_v32 = vadd.f32 %v1048_v30, %v1018_v27 }
 0x121   : > { %v981_v34 = vrot.slane %v980_v31, 4  ;;  %v1050_v35 = vadd.f32 %v1049_v32, %v1019_v12 }
 0x123   : > { %v982_v36 = vadd.f32 %v981_v34, %v980_v31  ;;  %v1051_v39 = vrot.slane %v1050_v35, 4 }
 0x125   : > { %v983_v22 = vrot.slane %v982_v36, 2  ;;  %v1052_v40 = vadd.f32 %v1051_v39, %v1050_v35 }
 0x127   : > { %v984_v41 = vadd.f32 %v983_v22, %v982_v36  ;;  %v1053_v42 = vrot.slane %v1052_v40, 2 }
 0x129   : > { %v985_v43 = vrot.slane %v984_v41, 1  ;;  %v1054_v44 = vadd.f32 %v1053_v42, %v1052_v40 }
 0x12b   : > { %v986_v37 = vadd.f32 %v985_v43, %v984_v41  ;;  %v1055_v46 = vrot.slane %v1054_v44, 1  ;;  %1078 = sbr.rel (!%p1868_p5) target bundleno = 304 (0x130), region = 40 }
 0x12d   : > { %987 = vst [vmem:[%s287_s8] sm:$0x1] %v986_v37  ;;  %v1056_v47 = vadd.f32 %v1055_v46, %v1054_v44 }
 0x12f   : > { %1057 = vst [vmem:[%s294_s11] sm:$0x1] %v1056_v47 }
 0x130 PF: > { %s15_s21 = sadd.s32 1, %s1795_s21   ;;  %s2115_s15 = smov %s1775_s16 }
 0x131   : > { %p12_p12 = scmp.ge.s32.totalorder %s15_s21, 6   ;;  %s2116_s16 = smov %s1879_s30 }
 0x132   : > { %s2117_s17 = smov %s1787_s19  ;;  %s2118_s18 = smov %s1791_s20 }
 0x133   : > { %s2119_s19 = smov %s2122_s22  ;;  %s2120_s20 = smov %s2126_s23 }
 0x134   :  { %14 = sbr.rel (!%p12_p12) target bundleno = 4 (0x4), region = 134 }

// kernel: inception_d_forward.28
= control target key start
LH: loop header
LB: loop body
LE: loop exit
PB: predicated region body
PF: predicated region fallthrough
CT: control target
= control target key end

     0   :  { %s6157_s15 = smov 0   ;;  %s6159_s16 = smov 0   ;;  %s7513_s0 = inlined_call_operand.vmem [shape: bf16[512,1344], index: 0, kind: input, shape index: {}]   ;;  %s7514_s1 = inlined_call_operand.vmem [shape: bf16[1344,256], index: 1, kind: input, shape index: {}]   ;;  %s7515_s2 = inlined_call_operand.vmem [shape: bf16[512,256], index: 2, kind: output, shape index: {0}]   ;;  %s7516_s3 = inlined_call_operand.vmem [shape: f32[2,1,256], index: 3, kind: output, shape index: {1}]   ;;  %s7517_s4 = inlined_call_operand.vmem [shape: f32[2,1,256], index: 4, kind: output, shape index: {2}]  }
   0x1   :  { %s6161_s17 = smov 0   ;;  %s6163_s18 = smov 0  }
   0x2   :  { %s6165_s19 = smov 0   ;;  %s6167_s20 = smov 0  }
   0x3   :  { %s6169_s21 = smov 0   ;;  %s6171_s22 = smov 0  }
   0x4   :  { %s6173_s23 = smov 0  }
   0x5 LB: > { %s4556_s24 = sadd.s32 4294967295, %s6130_s23   ;;  %s30_s25 = sadd.s32 1, %s6122_s21  ;;  %s6130_s23 = sphi %s6173_s23, %s15_s23   ;;  %s6126_s22 = sphi %s6171_s22, %s7548_s22   ;;  %s6122_s21 = sphi %s6169_s21, %s7547_s21   ;;  %s6118_s20 = sphi %s6167_s20, %s7546_s20   ;;  %s6114_s19 = sphi %s6165_s19, %s7545_s19   ;;  %s6110_s18 = sphi %s6163_s18, %s7544_s18   ;;  %s6106_s17 = sphi %s6161_s17, %s7543_s17   ;;  %s6102_s16 = sphi %s6159_s16, %s7542_s16   ;;  %s6098_s15 = sphi %s6157_s15, %s7541_s15  }
   0x6   : > { %p32_p0 = scmp.ge.s32.totalorder %s30_s25, 2  ;;  %s34_s26 = sadd.s32 1, %s6126_s22 }
   0x7   : > { %s71_s27 = sadd.s32 1, %s6110_s18  ;;  %p78_p1 = scmp.ne.s32.totalorder %s6110_s18, %s6106_s17 }
   0x8   : > { %s7550_s25 = smov (%p32_p0, %s30_s25), 0  ;;  %s7552_s26 = smov (!%p32_p0, %s34_s26), %s6126_s22 }
   0x9   : > { %s67_s28 = ssub.s32 %s6122_s21, %s7550_s25  ;;  %p79_p2 = scmp.eq.s32.totalorder %s6130_s23, 0 }
   0xa   : > { %p36_p3 = scmp.ge.s32.totalorder %s7552_s26, 2  ;;  %p69_p4 = scmp.eq.s32.totalorder %s67_s28, 0 }
   0xb   : > { %p80_p5 = por %p79_p2, %p78_p1  ;;  %s99_s29 = sadd.s32 1, %s6102_s16 }
   0xc   : > { %s7554_s26 = smov (%p36_p3, %s7552_s26), 0  ;;  %p109_p6 = scmp.ne.s32.totalorder %s6102_s16, %s6098_s15 }
   0xd   : > { %s6218_s30 = scalar_select %p69_p4, %s6110_s18, %s71_s27  }
   0xe   : > { %s94_s5 = ssub.s32 %s6126_s22, %s7554_s26  ;;  %p110_p7 = scmp.eq.s32.totalorder %s4556_s24, 3 }
   0xf   : > { %s96_s6 = sor.u32 %s94_s5, %s67_s28  ;;  %p4559_p10 = scmp.ge.s32.totalorder %s6130_s23, 4 }
  0x10   : > { %p97_p8 = scmp.eq.s32.totalorder %s96_s6, 0  ;;  %p6224_p9 = por %p110_p7, %p109_p6 }
  0x11   : > { %188 = sbr.rel (%p4559_p10) target bundleno = 138 (0x8a), region = 16 }
  0x12   : > { %s6229_s8 = scalar_select %p97_p8, %s6102_s16, %s99_s29  }
  0x16   : > { %206 = sbr.rel (!%p80_p5) target bundleno = 138 (0x8a), region = 24  ;;  %s208_s9 = sand.u32 (%p80_p5), 1, %s6110_s18  }
  0x17   : > { %s4560_s10 = sshll.u32 (%p80_p5), %s6122_s21, 2  ;;  %s5645_s11 = smul.u32 (%p80_p5), 672, %s208_s9 }
  0x18   : > { %s6237_s14 = scalar_lea.vmem (%p80_p5), %s7514_s1, %s4560_s10 }
  0x19   : > { %v232_v0 = vld [vmem:[%s6237_s14] sm:$0xf] (%p80_p5)  ;;  %v234_v1 = vld [vmem:[%s6237_s14 + $0x8] sm:$0xf] (%p80_p5)  ;;  %v236_v2 = vld [vmem:[%s6237_s14 + $0x10] sm:$0xf] (%p80_p5) }
  0x1a   : > { %v238_v3 = vld [vmem:[%s6237_s14 + $0x18] sm:$0xf] (%p80_p5)  ;;  %v240_v4 = vld [vmem:[%s6237_s14 + $0x20] sm:$0xf] (%p80_p5)  ;;  %s6244_s24 = scalar_lea.vmem (%p80_p5), [#allocation3], %s5645_s11 }
  0x1b   : > { %233 = vst [vmem:[%s6244_s24] sm:$0xf] %v232_v0  ;;  %235 = vst [vmem:[%s6244_s24 + $0x4] sm:$0xf] %v234_v1  ;;  %v242_v5 = vld [vmem:[%s6237_s14 + $0x28] sm:$0xf] }
  0x1c   : > { %237 = vst [vmem:[%s6244_s24 + $0x8] sm:$0xf] %v236_v2  ;;  %239 = vst [vmem:[%s6244_s24 + $0xc] sm:$0xf] %v238_v3  ;;  %v244_v6 = vld [vmem:[%s6237_s14 + $0x30] sm:$0xf] }
  0x1d   : > { %241 = vst [vmem:[%s6244_s24 + $0x10] sm:$0xf] %v240_v4  ;;  %v246_v7 = vld [vmem:[%s6237_s14 + $0x38] sm:$0xf]  ;;  %243 = vst [vmem:[%s6244_s24 + $0x14] sm:$0xf] %v242_v5 }
  0x1e   : > { %245 = vst [vmem:[%s6244_s24 + $0x18] sm:$0xf] %v244_v6  ;;  %247 = vst [vmem:[%s6244_s24 + $0x1c] sm:$0xf] %v246_v7  ;;  %v248_v8 = vld [vmem:[%s6237_s14 + $0x40] sm:$0xf] }
  0x1f   : > { %v250_v9 = vld [vmem:[%s6237_s14 + $0x48] sm:$0xf]  ;;  %v252_v10 = vld [vmem:[%s6237_s14 + $0x50] sm:$0xf]  ;;  %249 = vst [vmem:[%s6244_s24 + $0x20] sm:$0xf] %v248_v8 }
  0x20   : > { %251 = vst [vmem:[%s6244_s24 + $0x24] sm:$0xf] %v250_v9  ;;  %253 = vst [vmem:[%s6244_s24 + $0x28] sm:$0xf] %v252_v10  ;;  %v254_v11 = vld [vmem:[%s6237_s14 + $0x58] sm:$0xf] }
  0x21   : > { %v256_v12 = vld [vmem:[%s6237_s14 + $0x60] sm:$0xf]  ;;  %v258_v13 = vld [vmem:[%s6237_s14 + $0x68] sm:$0xf]  ;;  %255 = vst [vmem:[%s6244_s24 + $0x2c] sm:$0xf] %v254_v11 }
  0x22   : > { %257 = vst [vmem:[%s6244_s24 + $0x30] sm:$0xf] %v256_v12  ;;  %259 = vst [vmem:[%s6244_s24 + $0x34] sm:$0xf] %v258_v13  ;;  %v260_v14 = vld [vmem:[%s6237_s14 + $0x70] sm:$0xf] }
  0x23   : > { %v262_v15 = vld [vmem:[%s6237_s14 + $0x78] sm:$0xf]  ;;  %v264_v16 = vld [vmem:[%s6237_s14 + $0x80] sm:$0xf]  ;;  %261 = vst [vmem:[%s6244_s24 + $0x38] sm:$0xf] %v260_v14 }
  0x24   : > { %263 = vst [vmem:[%s6244_s24 + $0x3c] sm:$0xf] %v262_v15  ;;  %265 = vst [vmem:[%s6244_s24 + $0x40] sm:$0xf] %v264_v16  ;;  %v266_v17 = vld [vmem:[%s6237_s14 + $0x88] sm:$0xf] }
  0x25   : > { %v268_v18 = vld [vmem:[%s6237_s14 + $0x90] sm:$0xf]  ;;  %v270_v19 = vld [vmem:[%s6237_s14 + $0x98] sm:$0xf]  ;;  %267 = vst [vmem:[%s6244_s24 + $0x44] sm:$0xf] %v266_v17 }
  0x26   : > { %269 = vst [vmem:[%s6244_s24 + $0x48] sm:$0xf] %v268_v18  ;;  %271 = vst [vmem:[%s6244_s24 + $0x4c] sm:$0xf] %v270_v19  ;;  %v272_v20 = vld [vmem:[%s6237_s14 + $0xa0] sm:$0xf] }
  0x27   : > { %v274_v21 = vld [vmem:[%s6237_s14 + $0xa8] sm:$0xf]  ;;  %v276_v22 = vld [vmem:[%s6237_s14 + $0xb0] sm:$0xf]  ;;  %273 = vst [vmem:[%s6244_s24 + $0x50] sm:$0xf] %v272_v20 }
  0x28   : > { %275 = vst [vmem:[%s6244_s24 + $0x54] sm:$0xf] %v274_v21  ;;  %277 = vst [vmem:[%s6244_s24 + $0x58] sm:$0xf] %v276_v22  ;;  %v278_v23 = vld [vmem:[%s6237_s14 + $0xb8] sm:$0xf] }
  0x29   : > { %v280_v24 = vld [vmem:[%s6237_s14 + $0xc0] sm:$0xf]  ;;  %v282_v25 = vld [vmem:[%s6237_s14 + $0xc8] sm:$0xf]  ;;  %279 = vst [vmem:[%s6244_s24 + $0x5c] sm:$0xf] %v278_v23 }
  0x2a   : > { %281 = vst [vmem:[%s6244_s24 + $0x60] sm:$0xf] %v280_v24  ;;  %283 = vst [vmem:[%s6244_s24 + $0x64] sm:$0xf] %v282_v25  ;;  %v284_v26 = vld [vmem:[%s6237_s14 + $0xd0] sm:$0xf] }
  0x2b   : > { %v286_v27 = vld [vmem:[%s6237_s14 + $0xd8] sm:$0xf]  ;;  %v288_v28 = vld [vmem:[%s6237_s14 + $0xe0] sm:$0xf]  ;;  %285 = vst [vmem:[%s6244_s24 + $0x68] sm:$0xf] %v284_v26 }
  0x2c   : > { %287 = vst [vmem:[%s6244_s24 + $0x6c] sm:$0xf] %v286_v27  ;;  %289 = vst [vmem:[%s6244_s24 + $0x70] sm:$0xf] %v288_v28  ;;  %v290_v29 = vld [vmem:[%s6237_s14 + $0xe8] sm:$0xf] }
  0x2d   : > { %v292_v30 = vld [vmem:[%s6237_s14 + $0xf0] sm:$0xf]  ;;  %v294_v31 = vld [vmem:[%s6237_s14 + $0xf8] sm:$0xf]  ;;  %291 = vst [vmem:[%s6244_s24 + $0x74] sm:$0xf] %v290_v29 }
  0x2e   : > { %293 = vst [vmem:[%s6244_s24 + $0x78] sm:$0xf] %v292_v30  ;;  %295 = vst [vmem:[%s6244_s24 + $0x7c] sm:$0xf] %v294_v31  ;;  %v296_v32 = vld [vmem:[%s6237_s14 + $0x100] sm:$0xf] }
  0x2f   : > { %v298_v33 = vld [vmem:[%s6237_s14 + $0x108] sm:$0xf]  ;;  %v300_v34 = vld [vmem:[%s6237_s14 + $0x110] sm:$0xf]  ;;  %297 = vst [vmem:[%s6244_s24 + $0x80] sm:$0xf] %v296_v32 }
  0x30   : > { %299 = vst [vmem:[%s6244_s24 + $0x84] sm:$0xf] %v298_v33  ;;  %301 = vst [vmem:[%s6244_s24 + $0x88] sm:$0xf] %v300_v34  ;;  %v302_v35 = vld [vmem:[%s6237_s14 + $0x118] sm:$0xf] }
  0x31   : > { %v304_v36 = vld [vmem:[%s6237_s14 + $0x120] sm:$0xf]  ;;  %v306_v37 = vld [vmem:[%s6237_s14 + $0x128] sm:$0xf]  ;;  %303 = vst [vmem:[%s6244_s24 + $0x8c] sm:$0xf] %v302_v35 }
  0x32   : > { %305 = vst [vmem:[%s6244_s24 + $0x90] sm:$0xf] %v304_v36  ;;  %307 = vst [vmem:[%s6244_s24 + $0x94] sm:$0xf] %v306_v37  ;;  %v308_v38 = vld [vmem:[%s6237_s14 + $0x130] sm:$0xf] }
  0x33   : > { %v310_v39 = vld [vmem:[%s6237_s14 + $0x138] sm:$0xf]  ;;  %v312_v40 = vld [vmem:[%s6237_s14 + $0x140] sm:$0xf]  ;;  %309 = vst [vmem:[%s6244_s24 + $0x98] sm:$0xf] %v308_v38 }
  0x34   : > { %311 = vst [vmem:[%s6244_s24 + $0x9c] sm:$0xf] %v310_v39  ;;  %313 = vst [vmem:[%s6244_s24 + $0xa0] sm:$0xf] %v312_v40  ;;  %v314_v41 = vld [vmem:[%s6237_s14 + $0x148] sm:$0xf] }
  0x35   : > { %v316_v42 = vld [vmem:[%s6237_s14 + $0x150] sm:$0xf]  ;;  %v318_v43 = vld [vmem:[%s6237_s14 + $0x158] sm:$0xf]  ;;  %315 = vst [vmem:[%s6244_s24 + $0xa4] sm:$0xf] %v314_v41 }
  0x36   : > { %317 = vst [vmem:[%s6244_s24 + $0xa8] sm:$0xf] %v316_v42  ;;  %319 = vst [vmem:[%s6244_s24 + $0xac] sm:$0xf] %v318_v43  ;;  %v320_v44 = vld [vmem:[%s6237_s14 + $0x160] sm:$0xf] }
  0x37   : > { %v322_v45 = vld [vmem:[%s6237_s14 + $0x168] sm:$0xf]  ;;  %v324_v46 = vld [vmem:[%s6237_s14 + $0x170] sm:$0xf]  ;;  %321 = vst [vmem:[%s6244_s24 + $0xb0] sm:$0xf] %v320_v44 }
  0x38   : > { %323 = vst [vmem:[%s6244_s24 + $0xb4] sm:$0xf] %v322_v45  ;;  %325 = vst [vmem:[%s6244_s24 + $0xb8] sm:$0xf] %v324_v46  ;;  %v326_v47 = vld [vmem:[%s6237_s14 + $0x178] sm:$0xf] }
  0x39   : > { %v328_v48 = vld [vmem:[%s6237_s14 + $0x180] sm:$0xf]  ;;  %v330_v49 = vld [vmem:[%s6237_s14 + $0x188] sm:$0xf]  ;;  %327 = vst [vmem:[%s6244_s24 + $0xbc] sm:$0xf] %v326_v47 }
  0x3a   : > { %329 = vst [vmem:[%s6244_s24 + $0xc0] sm:$0xf] %v328_v48  ;;  %331 = vst [vmem:[%s6244_s24 + $0xc4] sm:$0xf] %v330_v49  ;;  %v332_v50 = vld [vmem:[%s6237_s14 + $0x190] sm:$0xf] }
  0x3b   : > { %v334_v51 = vld [vmem:[%s6237_s14 + $0x198] sm:$0xf]  ;;  %v336_v52 = vld [vmem:[%s6237_s14 + $0x1a0] sm:$0xf]  ;;  %333 = vst [vmem:[%s6244_s24 + $0xc8] sm:$0xf] %v332_v50 }
  0x3c   : > { %335 = vst [vmem:[%s6244_s24 + $0xcc] sm:$0xf] %v334_v51  ;;  %337 = vst [vmem:[%s6244_s24 + $0xd0] sm:$0xf] %v336_v52  ;;  %v338_v53 = vld [vmem:[%s6237_s14 + $0x1a8] sm:$0xf] }
  0x3d   : > { %v340_v54 = vld [vmem:[%s6237_s14 + $0x1b0] sm:$0xf]  ;;  %v342_v55 = vld [vmem:[%s6237_s14 + $0x1b8] sm:$0xf]  ;;  %339 = vst [vmem:[%s6244_s24 + $0xd4] sm:$0xf] %v338_v53 }
  0x3e   : > { %341 = vst [vmem:[%s6244_s24 + $0xd8] sm:$0xf] %v340_v54  ;;  %343 = vst [vmem:[%s6244_s24 + $0xdc] sm:$0xf] %v342_v55  ;;  %v344_v56 = vld [vmem:[%s6237_s14 + $0x1c0] sm:$0xf] }
  0x3f   : > { %v346_v57 = vld [vmem:[%s6237_s14 + $0x1c8] sm:$0xf]  ;;  %v348_v58 = vld [vmem:[%s6237_s14 + $0x1d0] sm:$0xf]  ;;  %345 = vst [vmem:[%s6244_s24 + $0xe0] sm:$0xf] %v344_v56 }
  0x40   : > { %347 = vst [vmem:[%s6244_s24 + $0xe4] sm:$0xf] %v346_v57  ;;  %349 = vst [vmem:[%s6244_s24 + $0xe8] sm:$0xf] %v348_v58  ;;  %v350_v59 = vld [vmem:[%s6237_s14 + $0x1d8] sm:$0xf] }
  0x41   : > { %v352_v60 = vld [vmem:[%s6237_s14 + $0x1e0] sm:$0xf]  ;;  %v354_v61 = vld [vmem:[%s6237_s14 + $0x1e8] sm:$0xf]  ;;  %351 = vst [vmem:[%s6244_s24 + $0xec] sm:$0xf] %v350_v59 }
  0x42   : > { %353 = vst [vmem:[%s6244_s24 + $0xf0] sm:$0xf] %v352_v60  ;;  %355 = vst [vmem:[%s6244_s24 + $0xf4] sm:$0xf] %v354_v61  ;;  %v356_v62 = vld [vmem:[%s6237_s14 + $0x1f0] sm:$0xf] }
  0x43   : > { %v358_v63 = vld [vmem:[%s6237_s14 + $0x1f8] sm:$0xf]  ;;  %v360_v0 = vld [vmem:[%s6237_s14 + $0x200] sm:$0xf]  ;;  %357 = vst [vmem:[%s6244_s24 + $0xf8] sm:$0xf] %v356_v62 }
  0x44   : > { %359 = vst [vmem:[%s6244_s24 + $0xfc] sm:$0xf] %v358_v63  ;;  %361 = vst [vmem:[%s6244_s24 + $0x100] sm:$0xf] %v360_v0  ;;  %v362_v1 = vld [vmem:[%s6237_s14 + $0x208] sm:$0xf] }
  0x45   : > { %v364_v2 = vld [vmem:[%s6237_s14 + $0x210] sm:$0xf]  ;;  %v366_v3 = vld [vmem:[%s6237_s14 + $0x218] sm:$0xf]  ;;  %363 = vst [vmem:[%s6244_s24 + $0x104] sm:$0xf] %v362_v1 }
  0x46   : > { %365 = vst [vmem:[%s6244_s24 + $0x108] sm:$0xf] %v364_v2  ;;  %367 = vst [vmem:[%s6244_s24 + $0x10c] sm:$0xf] %v366_v3  ;;  %v368_v4 = vld [vmem:[%s6237_s14 + $0x220] sm:$0xf] }
  0x47   : > { %v370_v5 = vld [vmem:[%s6237_s14 + $0x228] sm:$0xf]  ;;  %v372_v6 = vld [vmem:[%s6237_s14 + $0x230] sm:$0xf]  ;;  %369 = vst [vmem:[%s6244_s24 + $0x110] sm:$0xf] %v368_v4 }
  0x48   : > { %371 = vst [vmem:[%s6244_s24 + $0x114] sm:$0xf] %v370_v5  ;;  %373 = vst [vmem:[%s6244_s24 + $0x118] sm:$0xf] %v372_v6  ;;  %v374_v7 = vld [vmem:[%s6237_s14 + $0x238] sm:$0xf] }
  0x49   : > { %v376_v8 = vld [vmem:[%s6237_s14 + $0x240] sm:$0xf]  ;;  %v378_v9 = vld [vmem:[%s6237_s14 + $0x248] sm:$0xf]  ;;  %375 = vst [vmem:[%s6244_s24 + $0x11c] sm:$0xf] %v374_v7 }
  0x4a   : > { %377 = vst [vmem:[%s6244_s24 + $0x120] sm:$0xf] %v376_v8  ;;  %379 = vst [vmem:[%s6244_s24 + $0x124] sm:$0xf] %v378_v9  ;;  %v380_v10 = vld [vmem:[%s6237_s14 + $0x250] sm:$0xf] }
  0x4b   : > { %v382_v11 = vld [vmem:[%s6237_s14 + $0x258] sm:$0xf]  ;;  %v384_v12 = vld [vmem:[%s6237_s14 + $0x260] sm:$0xf]  ;;  %381 = vst [vmem:[%s6244_s24 + $0x128] sm:$0xf] %v380_v10 }
  0x4c   : > { %383 = vst [vmem:[%s6244_s24 + $0x12c] sm:$0xf] %v382_v11  ;;  %385 = vst [vmem:[%s6244_s24 + $0x130] sm:$0xf] %v384_v12  ;;  %v386_v13 = vld [vmem:[%s6237_s14 + $0x268] sm:$0xf] }
  0x4d   : > { %v388_v14 = vld [vmem:[%s6237_s14 + $0x270] sm:$0xf]  ;;  %v390_v15 = vld [vmem:[%s6237_s14 + $0x278] sm:$0xf]  ;;  %387 = vst [vmem:[%s6244_s24 + $0x134] sm:$0xf] %v386_v13 }
  0x4e   : > { %389 = vst [vmem:[%s6244_s24 + $0x138] sm:$0xf] %v388_v14  ;;  %391 = vst [vmem:[%s6244_s24 + $0x13c] sm:$0xf] %v390_v15  ;;  %v392_v16 = vld [vmem:[%s6237_s14 + $0x280] sm:$0xf] }
  0x4f   : > { %v394_v17 = vld [vmem:[%s6237_s14 + $0x288] sm:$0xf]  ;;  %v396_v18 = vld [vmem:[%s6237_s14 + $0x290] sm:$0xf]  ;;  %393 = vst [vmem:[%s6244_s24 + $0x140] sm:$0xf] %v392_v16 }
  0x50   : > { %395 = vst [vmem:[%s6244_s24 + $0x144] sm:$0xf] %v394_v17  ;;  %397 = vst [vmem:[%s6244_s24 + $0x148] sm:$0xf] %v396_v18  ;;  %v398_v19 = vld [vmem:[%s6237_s14 + $0x298] sm:$0xf] }
  0x51   : > { %v400_v20 = vld [vmem:[%s6237_s14 + $0x2a0] sm:$0xf]  ;;  %v402_v21 = vld [vmem:[%s6237_s14 + $0x2a8] sm:$0xf]  ;;  %399 = vst [vmem:[%s6244_s24 + $0x14c] sm:$0xf] %v398_v19 }
  0x52   : > { %401 = vst [vmem:[%s6244_s24 + $0x150] sm:$0xf] %v400_v20  ;;  %403 = vst [vmem:[%s6244_s24 + $0x154] sm:$0xf] %v402_v21  ;;  %v404_v22 = vld [vmem:[%s6237_s14 + $0x2b0] sm:$0xf] }
  0x53   : > { %v406_v23 = vld [vmem:[%s6237_s14 + $0x2b8] sm:$0xf]  ;;  %v408_v24 = vld [vmem:[%s6237_s14 + $0x2c0] sm:$0xf]  ;;  %405 = vst [vmem:[%s6244_s24 + $0x158] sm:$0xf] %v404_v22 }
  0x54   : > { %407 = vst [vmem:[%s6244_s24 + $0x15c] sm:$0xf] %v406_v23  ;;  %409 = vst [vmem:[%s6244_s24 + $0x160] sm:$0xf] %v408_v24  ;;  %v410_v25 = vld [vmem:[%s6237_s14 + $0x2c8] sm:$0xf] }
  0x55   : > { %v412_v26 = vld [vmem:[%s6237_s14 + $0x2d0] sm:$0xf]  ;;  %v414_v27 = vld [vmem:[%s6237_s14 + $0x2d8] sm:$0xf]  ;;  %411 = vst [vmem:[%s6244_s24 + $0x164] sm:$0xf] %v410_v25 }
  0x56   : > { %413 = vst [vmem:[%s6244_s24 + $0x168] sm:$0xf] %v412_v26  ;;  %415 = vst [vmem:[%s6244_s24 + $0x16c] sm:$0xf] %v414_v27  ;;  %v416_v28 = vld [vmem:[%s6237_s14 + $0x2e0] sm:$0xf] }
  0x57   : > { %v418_v29 = vld [vmem:[%s6237_s14 + $0x2e8] sm:$0xf]  ;;  %v420_v30 = vld [vmem:[%s6237_s14 + $0x2f0] sm:$0xf]  ;;  %417 = vst [vmem:[%s6244_s24 + $0x170] sm:$0xf] %v416_v28 }
  0x58   : > { %419 = vst [vmem:[%s6244_s24 + $0x174] sm:$0xf] %v418_v29  ;;  %421 = vst [vmem:[%s6244_s24 + $0x178] sm:$0xf] %v420_v30  ;;  %v422_v31 = vld [vmem:[%s6237_s14 + $0x2f8] sm:$0xf] }
  0x59   : > { %v424_v32 = vld [vmem:[%s6237_s14 + $0x300] sm:$0xf]  ;;  %v426_v33 = vld [vmem:[%s6237_s14 + $0x308] sm:$0xf]  ;;  %423 = vst [vmem:[%s6244_s24 + $0x17c] sm:$0xf] %v422_v31 }
  0x5a   : > { %425 = vst [vmem:[%s6244_s24 + $0x180] sm:$0xf] %v424_v32  ;;  %427 = vst [vmem:[%s6244_s24 + $0x184] sm:$0xf] %v426_v33  ;;  %v428_v34 = vld [vmem:[%s6237_s14 + $0x310] sm:$0xf] }
  0x5b   : > { %v430_v35 = vld [vmem:[%s6237_s14 + $0x318] sm:$0xf]  ;;  %v432_v36 = vld [vmem:[%s6237_s14 + $0x320] sm:$0xf]  ;;  %429 = vst [vmem:[%s6244_s24 + $0x188] sm:$0xf] %v428_v34 }
  0x5c   : > { %431 = vst [vmem:[%s6244_s24 + $0x18c] sm:$0xf] %v430_v35  ;;  %433 = vst [vmem:[%s6244_s24 + $0x190] sm:$0xf] %v432_v36  ;;  %v434_v37 = vld [vmem:[%s6237_s14 + $0x328] sm:$0xf] }
  0x5d   : > { %v436_v38 = vld [vmem:[%s6237_s14 + $0x330] sm:$0xf]  ;;  %v438_v39 = vld [vmem:[%s6237_s14 + $0x338] sm:$0xf]  ;;  %435 = vst [vmem:[%s6244_s24 + $0x194] sm:$0xf] %v434_v37 }
  0x5e   : > { %437 = vst [vmem:[%s6244_s24 + $0x198] sm:$0xf] %v436_v38  ;;  %439 = vst [vmem:[%s6244_s24 + $0x19c] sm:$0xf] %v438_v39  ;;  %v440_v40 = vld [vmem:[%s6237_s14 + $0x340] sm:$0xf] }
  0x5f   : > { %v442_v41 = vld [vmem:[%s6237_s14 + $0x348] sm:$0xf]  ;;  %v444_v42 = vld [vmem:[%s6237_s14 + $0x350] sm:$0xf]  ;;  %441 = vst [vmem:[%s6244_s24 + $0x1a0] sm:$0xf] %v440_v40 }
  0x60   : > { %443 = vst [vmem:[%s6244_s24 + $0x1a4] sm:$0xf] %v442_v41  ;;  %445 = vst [vmem:[%s6244_s24 + $0x1a8] sm:$0xf] %v444_v42  ;;  %v446_v43 = vld [vmem:[%s6237_s14 + $0x358] sm:$0xf] }
  0x61   : > { %v448_v44 = vld [vmem:[%s6237_s14 + $0x360] sm:$0xf]  ;;  %v450_v45 = vld [vmem:[%s6237_s14 + $0x368] sm:$0xf]  ;;  %447 = vst [vmem:[%s6244_s24 + $0x1ac] sm:$0xf] %v446_v43 }
  0x62   : > { %449 = vst [vmem:[%s6244_s24 + $0x1b0] sm:$0xf] %v448_v44  ;;  %451 = vst [vmem:[%s6244_s24 + $0x1b4] sm:$0xf] %v450_v45  ;;  %v452_v46 = vld [vmem:[%s6237_s14 + $0x370] sm:$0xf] }
  0x63   : > { %v454_v47 = vld [vmem:[%s6237_s14 + $0x378] sm:$0xf]  ;;  %v456_v48 = vld [vmem:[%s6237_s14 + $0x380] sm:$0xf]  ;;  %453 = vst [vmem:[%s6244_s24 + $0x1b8] sm:$0xf] %v452_v46 }
  0x64   : > { %455 = vst [vmem:[%s6244_s24 + $0x1bc] sm:$0xf] %v454_v47  ;;  %457 = vst [vmem:[%s6244_s24 + $0x1c0] sm:$0xf] %v456_v48  ;;  %v458_v49 = vld [vmem:[%s6237_s14 + $0x388] sm:$0xf] }
  0x65   : > { %v460_v50 = vld [vmem:[%s6237_s14 + $0x390] sm:$0xf]  ;;  %v462_v51 = vld [vmem:[%s6237_s14 + $0x398] sm:$0xf]  ;;  %459 = vst [vmem:[%s6244_s24 + $0x1c4] sm:$0xf] %v458_v49 }
  0x66   : > { %461 = vst [vmem:[%s6244_s24 + $0x1c8] sm:$0xf] %v460_v50  ;;  %463 = vst [vmem:[%s6244_s24 + $0x1cc] sm:$0xf] %v462_v51  ;;  %v464_v52 = vld [vmem:[%s6237_s14 + $0x3a0] sm:$0xf] }
  0x67   : > { %v466_v53 = vld [vmem:[%s6237_s14 + $0x3a8] sm:$0xf]  ;;  %v468_v54 = vld [vmem:[%s6237_s14 + $0x3b0] sm:$0xf]  ;;  %465 = vst [vmem:[%s6244_s24 + $0x1d0] sm:$0xf] %v464_v52 }
  0x68   : > { %467 = vst [vmem:[%s6244_s24 + $0x1d4] sm:$0xf] %v466_v53  ;;  %469 = vst [vmem:[%s6244_s24 + $0x1d8] sm:$0xf] %v468_v54  ;;  %v470_v55 = vld [vmem:[%s6237_s14 + $0x3b8] sm:$0xf] }
  0x69   : > { %v472_v56 = vld [vmem:[%s6237_s14 + $0x3c0] sm:$0xf]  ;;  %v474_v57 = vld [vmem:[%s6237_s14 + $0x3c8] sm:$0xf]  ;;  %471 = vst [vmem:[%s6244_s24 + $0x1dc] sm:$0xf] %v470_v55 }
  0x6a   : > { %473 = vst [vmem:[%s6244_s24 + $0x1e0] sm:$0xf] %v472_v56  ;;  %475 = vst [vmem:[%s6244_s24 + $0x1e4] sm:$0xf] %v474_v57  ;;  %v476_v58 = vld [vmem:[%s6237_s14 + $0x3d0] sm:$0xf] }
  0x6b   : > { %v478_v59 = vld [vmem:[%s6237_s14 + $0x3d8] sm:$0xf]  ;;  %v480_v60 = vld [vmem:[%s6237_s14 + $0x3e0] sm:$0xf]  ;;  %477 = vst [vmem:[%s6244_s24 + $0x1e8] sm:$0xf] %v476_v58 }
  0x6c   : > { %479 = vst [vmem:[%s6244_s24 + $0x1ec] sm:$0xf] %v478_v59  ;;  %481 = vst [vmem:[%s6244_s24 + $0x1f0] sm:$0xf] %v480_v60  ;;  %v482_v61 = vld [vmem:[%s6237_s14 + $0x3e8] sm:$0xf] }
  0x6d   : > { %v484_v62 = vld [vmem:[%s6237_s14 + $0x3f0] sm:$0xf]  ;;  %v486_v63 = vld [vmem:[%s6237_s14 + $0x3f8] sm:$0xf]  ;;  %483 = vst [vmem:[%s6244_s24 + $0x1f4] sm:$0xf] %v482_v61 }
  0x6e   : > { %485 = vst [vmem:[%s6244_s24 + $0x1f8] sm:$0xf] %v484_v62  ;;  %487 = vst [vmem:[%s6244_s24 + $0x1fc] sm:$0xf] %v486_v63  ;;  %v488_v0 = vld [vmem:[%s6237_s14 + $0x400] sm:$0xf] }
  0x6f   : > { %v490_v1 = vld [vmem:[%s6237_s14 + $0x408] sm:$0xf]  ;;  %v492_v2 = vld [vmem:[%s6237_s14 + $0x410] sm:$0xf]  ;;  %489 = vst [vmem:[%s6244_s24 + $0x200] sm:$0xf] %v488_v0 }
  0x70   : > { %491 = vst [vmem:[%s6244_s24 + $0x204] sm:$0xf] %v490_v1  ;;  %493 = vst [vmem:[%s6244_s24 + $0x208] sm:$0xf] %v492_v2  ;;  %v494_v3 = vld [vmem:[%s6237_s14 + $0x418] sm:$0xf] }
  0x71   : > { %v496_v4 = vld [vmem:[%s6237_s14 + $0x420] sm:$0xf]  ;;  %v498_v5 = vld [vmem:[%s6237_s14 + $0x428] sm:$0xf]  ;;  %495 = vst [vmem:[%s6244_s24 + $0x20c] sm:$0xf] %v494_v3 }
  0x72   : > { %497 = vst [vmem:[%s6244_s24 + $0x210] sm:$0xf] %v496_v4  ;;  %499 = vst [vmem:[%s6244_s24 + $0x214] sm:$0xf] %v498_v5  ;;  %v500_v6 = vld [vmem:[%s6237_s14 + $0x430] sm:$0xf] }
  0x73   : > { %v502_v7 = vld [vmem:[%s6237_s14 + $0x438] sm:$0xf]  ;;  %v504_v8 = vld [vmem:[%s6237_s14 + $0x440] sm:$0xf]  ;;  %501 = vst [vmem:[%s6244_s24 + $0x218] sm:$0xf] %v500_v6 }
  0x74   : > { %503 = vst [vmem:[%s6244_s24 + $0x21c] sm:$0xf] %v502_v7  ;;  %505 = vst [vmem:[%s6244_s24 + $0x220] sm:$0xf] %v504_v8  ;;  %v506_v9 = vld [vmem:[%s6237_s14 + $0x448] sm:$0xf] }
  0x75   : > { %v508_v10 = vld [vmem:[%s6237_s14 + $0x450] sm:$0xf]  ;;  %v510_v11 = vld [vmem:[%s6237_s14 + $0x458] sm:$0xf]  ;;  %507 = vst [vmem:[%s6244_s24 + $0x224] sm:$0xf] %v506_v9 }
  0x76   : > { %509 = vst [vmem:[%s6244_s24 + $0x228] sm:$0xf] %v508_v10  ;;  %511 = vst [vmem:[%s6244_s24 + $0x22c] sm:$0xf] %v510_v11  ;;  %v512_v12 = vld [vmem:[%s6237_s14 + $0x460] sm:$0xf] }
  0x77   : > { %v514_v13 = vld [vmem:[%s6237_s14 + $0x468] sm:$0xf]  ;;  %v516_v14 = vld [vmem:[%s6237_s14 + $0x470] sm:$0xf]  ;;  %513 = vst [vmem:[%s6244_s24 + $0x230] sm:$0xf] %v512_v12 }
  0x78   : > { %515 = vst [vmem:[%s6244_s24 + $0x234] sm:$0xf] %v514_v13  ;;  %517 = vst [vmem:[%s6244_s24 + $0x238] sm:$0xf] %v516_v14  ;;  %v518_v15 = vld [vmem:[%s6237_s14 + $0x478] sm:$0xf] }
  0x79   : > { %v520_v16 = vld [vmem:[%s6237_s14 + $0x480] sm:$0xf]  ;;  %v522_v17 = vld [vmem:[%s6237_s14 + $0x488] sm:$0xf]  ;;  %519 = vst [vmem:[%s6244_s24 + $0x23c] sm:$0xf] %v518_v15 }
  0x7a   : > { %521 = vst [vmem:[%s6244_s24 + $0x240] sm:$0xf] %v520_v16  ;;  %523 = vst [vmem:[%s6244_s24 + $0x244] sm:$0xf] %v522_v17  ;;  %v524_v18 = vld [vmem:[%s6237_s14 + $0x490] sm:$0xf] }
  0x7b   : > { %v526_v19 = vld [vmem:[%s6237_s14 + $0x498] sm:$0xf]  ;;  %v528_v20 = vld [vmem:[%s6237_s14 + $0x4a0] sm:$0xf]  ;;  %525 = vst [vmem:[%s6244_s24 + $0x248] sm:$0xf] %v524_v18 }
  0x7c   : > { %527 = vst [vmem:[%s6244_s24 + $0x24c] sm:$0xf] %v526_v19  ;;  %529 = vst [vmem:[%s6244_s24 + $0x250] sm:$0xf] %v528_v20  ;;  %v530_v21 = vld [vmem:[%s6237_s14 + $0x4a8] sm:$0xf] }
  0x7d   : > { %v532_v22 = vld [vmem:[%s6237_s14 + $0x4b0] sm:$0xf]  ;;  %v534_v23 = vld [vmem:[%s6237_s14 + $0x4b8] sm:$0xf]  ;;  %531 = vst [vmem:[%s6244_s24 + $0x254] sm:$0xf] %v530_v21 }
  0x7e   : > { %533 = vst [vmem:[%s6244_s24 + $0x258] sm:$0xf] %v532_v22  ;;  %535 = vst [vmem:[%s6244_s24 + $0x25c] sm:$0xf] %v534_v23  ;;  %v536_v24 = vld [vmem:[%s6237_s14 + $0x4c0] sm:$0xf] }
  0x7f   : > { %v538_v25 = vld [vmem:[%s6237_s14 + $0x4c8] sm:$0xf]  ;;  %v540_v26 = vld [vmem:[%s6237_s14 + $0x4d0] sm:$0xf]  ;;  %537 = vst [vmem:[%s6244_s24 + $0x260] sm:$0xf] %v536_v24 }
  0x80   : > { %539 = vst [vmem:[%s6244_s24 + $0x264] sm:$0xf] %v538_v25  ;;  %541 = vst [vmem:[%s6244_s24 + $0x268] sm:$0xf] %v540_v26  ;;  %v542_v27 = vld [vmem:[%s6237_s14 + $0x4d8] sm:$0xf] }
  0x81   : > { %v544_v28 = vld [vmem:[%s6237_s14 + $0x4e0] sm:$0xf]  ;;  %v546_v29 = vld [vmem:[%s6237_s14 + $0x4e8] sm:$0xf]  ;;  %543 = vst [vmem:[%s6244_s24 + $0x26c] sm:$0xf] %v542_v27 }
  0x82   : > { %545 = vst [vmem:[%s6244_s24 + $0x270] sm:$0xf] %v544_v28  ;;  %547 = vst [vmem:[%s6244_s24 + $0x274] sm:$0xf] %v546_v29  ;;  %v548_v30 = vld [vmem:[%s6237_s14 + $0x4f0] sm:$0xf] }
  0x83   : > { %v550_v31 = vld [vmem:[%s6237_s14 + $0x4f8] sm:$0xf]  ;;  %v552_v32 = vld [vmem:[%s6237_s14 + $0x500] sm:$0xf]  ;;  %549 = vst [vmem:[%s6244_s24 + $0x278] sm:$0xf] %v548_v30 }
  0x84   : > { %551 = vst [vmem:[%s6244_s24 + $0x27c] sm:$0xf] %v550_v31  ;;  %553 = vst [vmem:[%s6244_s24 + $0x280] sm:$0xf] %v552_v32  ;;  %v554_v33 = vld [vmem:[%s6237_s14 + $0x508] sm:$0xf] }
  0x85   : > { %v556_v34 = vld [vmem:[%s6237_s14 + $0x510] sm:$0xf]  ;;  %v558_v35 = vld [vmem:[%s6237_s14 + $0x518] sm:$0xf]  ;;  %555 = vst [vmem:[%s6244_s24 + $0x284] sm:$0xf] %v554_v33 }
  0x86   : > { %557 = vst [vmem:[%s6244_s24 + $0x288] sm:$0xf] %v556_v34  ;;  %559 = vst [vmem:[%s6244_s24 + $0x28c] sm:$0xf] %v558_v35  ;;  %v560_v36 = vld [vmem:[%s6237_s14 + $0x520] sm:$0xf] }
  0x87   : > { %v562_v37 = vld [vmem:[%s6237_s14 + $0x528] sm:$0xf]  ;;  %v564_v38 = vld [vmem:[%s6237_s14 + $0x530] sm:$0xf]  ;;  %561 = vst [vmem:[%s6244_s24 + $0x290] sm:$0xf] %v560_v36 }
  0x88   : > { %563 = vst [vmem:[%s6244_s24 + $0x294] sm:$0xf] %v562_v37  ;;  %565 = vst [vmem:[%s6244_s24 + $0x298] sm:$0xf] %v564_v38  ;;  %v566_v39 = vld [vmem:[%s6237_s14 + $0x538] sm:$0xf] }
  0x89   : > { %567 = vst [vmem:[%s6244_s24 + $0x29c] sm:$0xf] %v566_v39 }
  0x8a PF: > { %p4561_p11 = scmp.ge.s32.totalorder %s6130_s23, 1  ;;  %p926_p12 = scmp.lt.s32.totalorder %s6130_s23, 5 }
  0x8c   : > { %p927_p13 = pnand %p4561_p11, %p926_p12 }
  0x8e   : > { %930 = sbr.rel (%p927_p13) target bundleno = 751 (0x2ef), region = 65 }
  0x93   : > { %s933_s27 = sand.u32 1, %s6106_s17   ;;  %s4563_s29 = sshll.u32 %s6118_s20, 5  ;;  %vm2822_vm0 = vcmask 523264  }
  0x94   : > { %s5646_s28 = smul.u32 672, %s933_s27  ;;  %p983_p0 = scmp.lt.s32.totalorder %s4563_s29, 63 }
  0x95   : > { %s960_s11 = sand.u32 1, %s6098_s15   ;;  %p995_p1 = scmp.lt.s32.totalorder %s6118_s20, 1 }
  0x96   : > { %s6581_s5 = scalar_lea.vmem [#allocation3], %s5646_s28  ;;  %s7556_s29 = smov (!%p983_p0, %s4563_s29), 63 }
  0x97   : > { %v5720_v40 = vld [vmem:[%s6581_s5 + $0x78] sm:$0xff]   ;;  %v5722_v42 = vld [vmem:[%s6581_s5 + $0x70] sm:$0xff]   ;;  %v5724_v44 = vld [vmem:[%s6581_s5 + $0x68] sm:$0xff]   ;;  %s5647_s17 = smul.u32 44, %s7556_s29  ;;  %s4562_s12 = sshll.u32 %s960_s11, 7 }
  0x98   : > { %v5721_v41 = vld [vmem:[%s6581_s5 + $0x38] sm:$0xff]   ;;  %5009 = vmatprep.subr.bf16.mxu0 %v5720_v40  ;;  %5629 = vmatprep.subr.bf16.mxu1 %v5720_v40  ;;  %v5723_v43 = vld [vmem:[%s6581_s5 + $0x30] sm:$0xff]   ;;  %v5725_v45 = vld [vmem:[%s6581_s5 + $0x28] sm:$0xff]   ;;  %s7310_s15 = scalar_lea.vmem [#allocation4], %s4562_s12  ;;  %p997_p2 = scmp.lt.s32.totalorder %s6114_s19, 1 }
  0x99   : > { %5010 = vmatpush3.bf16.msra.mxu0 %v5721_v41  ;;  %5637 = vmatpush3.bf16.msra.mxu1 %v5721_v41  ;;  %v5726_v46 = vld [vmem:[%s6581_s5 + $0x60] sm:$0xff]   ;;  %v5728_v48 = vld [vmem:[%s6581_s5 + $0x58] sm:$0xff]   ;;  %s6595_s10 = scalar_lea.vmem %s7513_s0, %s5647_s17  ;;  %v5730_v50 = vld [vmem:[%s6581_s5 + $0x50] sm:$0xff]  }
  0x9a   : > { %5011 = vmatprep.subr.bf16.mxu0 %v5722_v42  ;;  %5630 = vmatprep.subr.bf16.mxu1 %v5722_v42  ;;  %v5727_v47 = vld [vmem:[%s6581_s5 + $0x20] sm:$0xff]   ;;  %v5729_v49 = vld [vmem:[%s6581_s5 + $0x18] sm:$0xff]   ;;  %v5731_v53 = vld [vmem:[%s6581_s5 + $0x10] sm:$0xff]   ;;  %s996_s13 = scalar_select %p995_p1, %s6118_s20, 1 }
  0x9b   : > { %v5738_v51 = vld [vmem:[%s6595_s10 + $0x4] ss:$44 sps:$4 sm:$0xff]   ;;  %v5732_v54 = vld [vmem:[%s6581_s5 + $0x48] sm:$0xff]   ;;  %v5742_v58 = vld [vmem:[%s6581_s5 + $0xf8] sm:$0xff]   ;;  %s998_s14 = scalar_select %p997_p2, %s6114_s19, 1 }
  0x9c   : > { %v5741_v52 = vld [vmem:[%s6595_s10 + $0x424] ss:$44 sps:$4 sm:$0xff]   ;;  %2903 = vmatprep.mubr.bf16.mxu0 %v5738_v51  ;;  %v5733_v55 = vld [vmem:[%s6581_s5 + $0x8] sm:$0xff]   ;;  %v5743_v61 = vld [vmem:[%s6581_s5 + $0x178] sm:$0xff]   ;;  %s4565_s24 = sshll.u32 %s996_s13, 1 }
  0x9d   : > { %5012 = vmatpush3.bf16.msra.mxu0 %v5723_v43  ;;  %5638 = vmatpush3.bf16.msra.mxu1 %v5723_v43  ;;  %v5734_v56 = vld [vmem:[%s6581_s5 + $0x40] sm:$0xff]   ;;  %v5744_v62 = vld [vmem:[%s6581_s5 + $0xb8] sm:$0xff]   ;;  %v5746_v0 = vld [vmem:[%s6581_s5 + $0xf0] sm:$0xff]   ;;  %s1000_s27 = sadd.s32 %s4565_s24, %s998_s14 }
  0x9e   : > { %5013 = vmatprep.subr.bf16.mxu0 %v5724_v44  ;;  %5631 = vmatprep.subr.bf16.mxu1 %v5724_v44  ;;  %v5735_v57 = vld [vmem:[%s6581_s5] sm:$0xff]   ;;  %v5745_v63 = vld [vmem:[%s6581_s5 + $0x138] sm:$0xff]   ;;  %v5757_v3 = vld [vmem:[%s6581_s5 + $0x170] sm:$0xff]   ;;  %s1008_s9 = scalar_lea.vmem %s7517_s4, %s1000_s27 }
  0x9f   : > { %2999 = vmatprep.mubr.bf16.mxu1 %v5741_v52  ;;  %v5736_v59 = vld [vmem:[%s6595_s10] ss:$44 sps:$4 sm:$0xff]   ;;  %v5748_v1 = vld [vmem:[%s6595_s10 + $0x5c] ss:$44 sps:$4 sm:$0xff]   ;;  %v5747_v4 = vld [vmem:[%s6581_s5 + $0xb0] sm:$0xff]  }
  0xa0   : > { %v5739_v60 = vld [vmem:[%s6595_s10 + $0x420] ss:$44 sps:$4 sm:$0xff]   ;;  %v5750_v2 = vld [vmem:[%s6595_s10 + $0x47c] ss:$44 sps:$4 sm:$0xff]   ;;  %v5759_v5 = vld [vmem:[%s6581_s5 + $0x130] sm:$0xff]  }
  0xa1   : > { %5014 = vmatpush3.bf16.msra.mxu0 %v5725_v45  ;;  %5639 = vmatpush3.bf16.msra.mxu1 %v5725_v45  ;;  %v5752_v6 = vld [vmem:[%s6595_s10 + $0x58] ss:$44 sps:$4 sm:$0xff]   ;;  %v5754_v8 = vld [vmem:[%s6581_s5 + $0xe8] sm:$0xff]   ;;  %v5760_v11 = vld [vmem:[%s6595_s10 + $0xb4] ss:$44 sps:$4 sm:$0xff]  }
  0xa2   : > { %5015 = vmatprep.subr.bf16.mxu0 %v5726_v46  ;;  %5632 = vmatprep.subr.bf16.mxu1 %v5726_v46  ;;  %v5753_v7 = vld [vmem:[%s6595_s10 + $0x478] ss:$44 sps:$4 sm:$0xff]   ;;  %v5755_v9 = vld [vmem:[%s6581_s5 + $0xa8] sm:$0xff]   ;;  %v5762_v12 = vld [vmem:[%s6595_s10 + $0x4d4] ss:$44 sps:$4 sm:$0xff]  }
  0xa3   : > { %v5756_v10 = vld [vmem:[%s6581_s5 + $0xe0] sm:$0xff]   ;;  %v5766_v14 = vld [vmem:[%s6581_s5 + $0xd8] sm:$0xff]   ;;  %v5777_v17 = vld [vmem:[%s6581_s5 + $0x168] sm:$0xff]  }
  0xa4   : > { %v5758_v13 = vld [vmem:[%s6581_s5 + $0xa0] sm:$0xff]   ;;  %v5764_v15 = vld [vmem:[%s6595_s10 + $0xb0] ss:$44 sps:$4 sm:$0xff]   ;;  %v5779_v20 = vld [vmem:[%s6581_s5 + $0x128] sm:$0xff]  }
  0xa5   : > { %5016 = vmatpush3.bf16.msra.mxu0 %v5727_v47  ;;  %5640 = vmatpush3.bf16.msra.mxu1 %v5727_v47  ;;  %v5765_v16 = vld [vmem:[%s6595_s10 + $0x4d0] ss:$44 sps:$4 sm:$0xff]   ;;  %v5770_v21 = vld [vmem:[%s6595_s10 + $0x10c] ss:$44 sps:$4 sm:$0xff]   ;;  %v5774_v24 = vld [vmem:[%s6595_s10 + $0x108] ss:$44 sps:$4 sm:$0xff]  }
  0xa6   : > { %5017 = vmatprep.subr.bf16.mxu0 %v5728_v48  ;;  %5633 = vmatprep.subr.bf16.mxu1 %v5728_v48  ;;  %v5767_v18 = vld [vmem:[%s6581_s5 + $0x98] sm:$0xff]   ;;  %v5768_v19 = vld [vmem:[%s6581_s5 + $0xd0] sm:$0xff]   ;;  %v5776_v26 = vld [vmem:[%s6581_s5 + $0xc8] sm:$0xff]  }
  0xa7   : > { %v5772_v22 = vld [vmem:[%s6595_s10 + $0x52c] ss:$44 sps:$4 sm:$0xff]   ;;  %v5769_v23 = vld [vmem:[%s6581_s5 + $0x90] sm:$0xff]   ;;  %v5780_v29 = vld [vmem:[%s6581_s5 + $0xc0] sm:$0xff]  }
  0xa8   : > { %v5775_v25 = vld [vmem:[%s6595_s10 + $0x528] ss:$44 sps:$4 sm:$0xff]   ;;  %v5782_v28 = vld [vmem:[%s6595_s10 + $0x164] ss:$44 sps:$4 sm:$0xff]   ;;  %v5786_v32 = vld [vmem:[%s6595_s10 + $0xc] ss:$44 sps:$4 sm:$0xff]  }
  0xa9   : > { %5018 = vmatpush3.bf16.msra.mxu0 %v5729_v49  ;;  %5641 = vmatpush3.bf16.msra.mxu1 %v5729_v49  ;;  %v5778_v27 = vld [vmem:[%s6581_s5 + $0x88] sm:$0xff]   ;;  %v5790_v30 = vld [vmem:[%s6581_s5 + $0x160] sm:$0xff]   ;;  %v5788_v36 = vld [vmem:[%s6581_s5 + $0x1f8] sm:$0xff]  }
  0xaa   : > { %5019 = vmatprep.subr.bf16.mxu0 %v5730_v50  ;;  %5634 = vmatprep.subr.bf16.mxu1 %v5730_v50  ;;  %v5791_v31 = vld [vmem:[%s6581_s5 + $0x120] sm:$0xff]   ;;  %v5784_v34 = vld [vmem:[%s6595_s10 + $0x8] ss:$44 sps:$4 sm:$0xff]   ;;  %v5789_v37 = vld [vmem:[%s6581_s5 + $0x1b8] sm:$0xff]  }
  0xab   : > { %v5781_v33 = vld [vmem:[%s6581_s5 + $0x80] sm:$0xff]   ;;  %v5792_v38 = vld [vmem:[%s6595_s10 + $0x1bc] ss:$44 sps:$4 sm:$0xff]   ;;  %v5805_v42 = vld [vmem:[%s6581_s5 + $0x1f0] sm:$0xff]  }
  0xac   : > { %v5787_v35 = vld [vmem:[%s6595_s10 + $0x160] ss:$44 sps:$4 sm:$0xff]   ;;  %v5804_v39 = vld [vmem:[%s6581_s5 + $0x158] sm:$0xff]   ;;  %v5794_v40 = vld [vmem:[%s6595_s10 + $0x64] ss:$44 sps:$4 sm:$0xff]  }
  0xad   : > { %5020 = vmatpush3.bf16.msra.mxu0 %v5731_v53  ;;  %5642 = vmatpush3.bf16.msra.mxu1 %v5731_v53  ;;  %v5806_v41 = vld [vmem:[%s6581_s5 + $0x118] sm:$0xff]   ;;  %v5807_v43 = vld [vmem:[%s6581_s5 + $0x1b0] sm:$0xff]   ;;  %v5797_v47 = vld [vmem:[%s6595_s10 + $0x60] ss:$44 sps:$4 sm:$0xff]  }
  0xae   : > { %5021 = vmatprep.subr.bf16.mxu0 %v5732_v54  ;;  %5635 = vmatprep.subr.bf16.mxu1 %v5732_v54  ;;  %v5796_v44 = vld [vmem:[%s6595_s10 + $0x1b8] ss:$44 sps:$4 sm:$0xff]   ;;  %v5814_v45 = vld [vmem:[%s6581_s5 + $0x150] sm:$0xff]   ;;  %v5800_v49 = vld [vmem:[%s6595_s10 + $0xbc] ss:$44 sps:$4 sm:$0xff]  }
  0xaf   : > { %v5815_v46 = vld [vmem:[%s6581_s5 + $0x110] sm:$0xff]   ;;  %v5822_v50 = vld [vmem:[%s6581_s5 + $0x1e8] sm:$0xff]   ;;  %v5803_v53 = vld [vmem:[%s6595_s10 + $0xb8] ss:$44 sps:$4 sm:$0xff]  }
  0xb0   : > { %v5798_v48 = vld [vmem:[%s6595_s10 + $0x214] ss:$44 sps:$4 sm:$0xff]   ;;  %v5823_v51 = vld [vmem:[%s6581_s5 + $0x1a8] sm:$0xff]   ;;  %v5802_v52 = vld [vmem:[%s6595_s10 + $0x210] ss:$44 sps:$4 sm:$0xff]  }
  0xb1   : > { %5022 = vmatpush3.bf16.msra.mxu0 %v5733_v55  ;;  %5643 = vmatpush3.bf16.msra.mxu1 %v5733_v55  ;;  %v5808_v54 = vld [vmem:[%s6595_s10 + $0x26c] ss:$44 sps:$4 sm:$0xff]  }
  0xb2   : > { %5023 = vmatprep.subr.bf16.mxu0 %v5734_v56  ;;  %5636 = vmatprep.subr.bf16.mxu1 %v5734_v56  ;;  %v5830_v55 = vld [vmem:[%s6581_s5 + $0x148] sm:$0xff]  }
  0xb3   : > { %v5831_v56 = vld [vmem:[%s6581_s5 + $0x108] sm:$0xff]  }
  0xb5   : > { %5024 = vmatpush3.bf16.msra.mxu0 %v5735_v57  ;;  %5644 = vmatpush3.bf16.msra.mxu1 %v5735_v57  ;;  %v5810_v57 = vld [vmem:[%s6595_s10 + $0x114] ss:$44 sps:$4 sm:$0xff]  }
  0xb6   : > { %5121 = vmatprep.subr.bf16.mxu1 %v5742_v58  ;;  %5233 = vmatprep.subr.bf16.mxu0 %v5743_v61  ;;  %v5838_v58 = vld [vmem:[%s6581_s5 + $0x1e0] sm:$0xff]  }
  0xb7   : > { %v5840_v61 = vld [vmem:[%s6581_s5 + $0x140] sm:$0xff]  }
  0xb8   : > { %2904 = vmatmul.mubr.bf16.vlgmr.msra.gmra.mxu0 %v5736_v59  ;;  %3000 = vmatmul.mubr.bf16.vlgmr.msra.gmra.mxu1 %v5739_v60  ;;  %v5839_v59 = vld [vmem:[%s6581_s5 + $0x1a0] sm:$0xff]   ;;  %v5812_v60 = vld [vmem:[%s6595_s10 + $0x268] ss:$44 sps:$4 sm:$0xff]  }
  0xb9   : > { %5122 = vmatpush3.bf16.msra.mxu1 %v5744_v62  ;;  %5234 = vmatpush3.bf16.msra.mxu0 %v5745_v63  ;;  %v5841_v62 = vld [vmem:[%s6581_s5 + $0x100] sm:$0xff]   ;;  %v5813_v63 = vld [vmem:[%s6595_s10 + $0x110] ss:$44 sps:$4 sm:$0xff]  }
  0xba   : > { %5123 = vmatprep.subr.bf16.mxu1 %v5746_v0  ;;  %2911 = vmatprep.mubr.bf16.mxu0 %v5748_v1  ;;  %v5816_v0 = vld [vmem:[%s6595_s10 + $0x2c4] ss:$44 sps:$4 sm:$0xff]   ;;  %v5818_v1 = vld [vmem:[%s6595_s10 + $0x16c] ss:$44 sps:$4 sm:$0xff]  }
  0xbb   : > { %3007 = vmatprep.mubr.bf16.mxu1 %v5750_v2  ;;  %5235 = vmatprep.subr.bf16.mxu0 %v5757_v3  ;;  %v5854_v2 = vld [vmem:[%s6581_s5 + $0x1d8] sm:$0xff]   ;;  %v5820_v3 = vld [vmem:[%s6595_s10 + $0x2c0] ss:$44 sps:$4 sm:$0xff]  }
  0xbd   : > { %5124 = vmatpush3.bf16.msra.mxu1 %v5747_v4  ;;  %5236 = vmatpush3.bf16.msra.mxu0 %v5759_v5  ;;  %v5821_v4 = vld [vmem:[%s6595_s10 + $0x168] ss:$44 sps:$4 sm:$0xff]   ;;  %v5855_v5 = vld [vmem:[%s6581_s5 + $0x278] sm:$0xff]  }
  0xbe   : > { %5125 = vmatprep.subr.bf16.mxu1 %v5754_v8  ;;  %5237 = vmatprep.subr.bf16.mxu0 %v5777_v17  ;;  %v5826_v8 = vld [vmem:[%s6595_s10 + $0x1c4] ss:$44 sps:$4 sm:$0xff]   ;;  %v5842_v17 = vld [vmem:[%s6595_s10 + $0x3cc] ss:$44 sps:$4 sm:$0xff]  }
  0xc0   : > { %2912 = vmatmul.mubr.bf16.gmra.mxu0 %v5752_v6  ;;  %3008 = vmatmul.mubr.bf16.gmra.mxu1 %v5753_v7  ;;  %v5856_v6 = vld [vmem:[%s6581_s5 + $0x198] sm:$0xff]  }
  0xc1   : > { %5126 = vmatpush3.bf16.msra.mxu1 %v5755_v9  ;;  %2919 = vmatprep.mubr.bf16.mxu0 %v5760_v11  ;;  %v5824_v7 = vld [vmem:[%s6595_s10 + $0x31c] ss:$44 sps:$4 sm:$0xff]   ;;  %v5828_v9 = vld [vmem:[%s6595_s10 + $0x318] ss:$44 sps:$4 sm:$0xff]   ;;  %v5870_v11 = vld [vmem:[%s6581_s5 + $0x1d0] sm:$0xff]  }
  0xc2   : > { %5127 = vmatprep.subr.bf16.mxu1 %v5756_v10  ;;  %3015 = vmatprep.mubr.bf16.mxu1 %v5762_v12  ;;  %v5829_v10 = vld [vmem:[%s6595_s10 + $0x1c0] ss:$44 sps:$4 sm:$0xff]  }
  0xc3   : > { %5238 = vmatpush3.bf16.msra.mxu0 %v5779_v20  ;;  %v5832_v12 = vld [vmem:[%s6595_s10 + $0x374] ss:$44 sps:$4 sm:$0xff]   ;;  %v5888_v20 = vld [vmem:[%s6581_s5 + $0x188] sm:$0xff]  }
  0xc4   : > { %5239 = vmatprep.subr.bf16.mxu0 %v5790_v30  ;;  %v5858_v30 = vld [vmem:[%s6595_s10 + $0x324] ss:$44 sps:$4 sm:$0xff]  }
  0xc5   : > { %5128 = vmatpush3.bf16.msra.mxu1 %v5758_v13  ;;  %v5872_v13 = vld [vmem:[%s6581_s5 + $0x190] sm:$0xff]  }
  0xc6   : > { %5129 = vmatprep.subr.bf16.mxu1 %v5766_v14  ;;  %v5834_v14 = vld [vmem:[%s6595_s10 + $0x21c] ss:$44 sps:$4 sm:$0xff]  }
  0xc7   : > { %5240 = vmatpush3.bf16.msra.mxu0 %v5791_v31  ;;  %v5860_v31 = vld [vmem:[%s6595_s10 + $0x6c] ss:$44 sps:$4 sm:$0xff]  }
  0xc8   : > { %2920 = vmatmul.mubr.bf16.gmra.mxu0 %v5764_v15  ;;  %3016 = vmatmul.mubr.bf16.gmra.mxu1 %v5765_v16  ;;  %v5836_v15 = vld [vmem:[%s6595_s10 + $0x370] ss:$44 sps:$4 sm:$0xff]   ;;  %v5837_v16 = vld [vmem:[%s6595_s10 + $0x218] ss:$44 sps:$4 sm:$0xff]  }
  0xc9   : > { %5130 = vmatpush3.bf16.msra.mxu1 %v5767_v18  ;;  %2927 = vmatprep.mubr.bf16.mxu0 %v5770_v21  ;;  %v5886_v18 = vld [vmem:[%s6581_s5 + $0x1c8] sm:$0xff]  }
  0xca   : > { %5131 = vmatprep.subr.bf16.mxu1 %v5768_v19  ;;  %3023 = vmatprep.mubr.bf16.mxu1 %v5772_v22  ;;  %v5844_v19 = vld [vmem:[%s6595_s10 + $0x274] ss:$44 sps:$4 sm:$0xff]   ;;  %v5847_v22 = vld [vmem:[%s6595_s10 + $0x270] ss:$44 sps:$4 sm:$0xff]  }
  0xcb   : > { %5241 = vmatprep.subr.bf16.mxu0 %v5804_v39  ;;  %v5846_v21 = vld [vmem:[%s6595_s10 + $0x3c8] ss:$44 sps:$4 sm:$0xff]   ;;  %v5866_v39 = vld [vmem:[%s6595_s10 + $0xc4] ss:$44 sps:$4 sm:$0xff]  }
  0xcc   : > { %5242 = vmatpush3.bf16.msra.mxu0 %v5806_v41  ;;  %v5903_v41 = vld [vmem:[%s6581_s5 + $0x260] sm:$0xff]  }
  0xcd   : > { %5132 = vmatpush3.bf16.msra.mxu1 %v5769_v23  ;;  %5243 = vmatprep.subr.bf16.mxu0 %v5814_v45  ;;  %v5848_v23 = vld [vmem:[%s6595_s10 + $0x2cc] ss:$44 sps:$4 sm:$0xff]  }
  0xce   : > { %5133 = vmatprep.subr.bf16.mxu1 %v5776_v26  ;;  %v5904_v26 = vld [vmem:[%s6581_s5 + $0x180] sm:$0xff]  }
  0xcf   : > { %v5869_v45 = vld [vmem:[%s6595_s10 + $0xc0] ss:$44 sps:$4 sm:$0xff]  }
  0xd0   : > { %2928 = vmatmul.mubr.bf16.gmra.mxu0 %v5774_v24  ;;  %3024 = vmatmul.mubr.bf16.gmra.mxu1 %v5775_v25  ;;  %v5852_v24 = vld [vmem:[%s6595_s10 + $0x14] ss:$44 sps:$4 sm:$0xff]  }
  0xd1   : > { %5134 = vmatpush3.bf16.msra.mxu1 %v5778_v27  ;;  %2935 = vmatprep.mubr.bf16.mxu0 %v5782_v28  ;;  %v5902_v25 = vld [vmem:[%s6581_s5 + $0x1c0] sm:$0xff]   ;;  %v5850_v27 = vld [vmem:[%s6595_s10 + $0x10] ss:$44 sps:$4 sm:$0xff]   ;;  %v5853_v28 = vld [vmem:[%s6595_s10 + $0x2c8] ss:$44 sps:$4 sm:$0xff]  }
  0xd2   : > { %5135 = vmatprep.subr.bf16.mxu1 %v5780_v29  ;;  %3064 = vmatprep.mubr.bf16.mxu1 %v5786_v32  ;;  %v5857_v29 = vld [vmem:[%s6581_s5 + $0x238] sm:$0xff]   ;;  %v5871_v32 = vld [vmem:[%s6581_s5 + $0x270] sm:$0xff]  }
  0xd3   : > { %5244 = vmatpush3.bf16.msra.mxu0 %v5815_v46  ;;  %v5874_v46 = vld [vmem:[%s6595_s10 + $0x3d4] ss:$44 sps:$4 sm:$0xff]  }
  0xd4   : > { %5245 = vmatprep.subr.bf16.mxu0 %v5830_v55  ;;  %v5882_v55 = vld [vmem:[%s6595_s10 + $0x174] ss:$44 sps:$4 sm:$0xff]  }
  0xd5   : > { %5136 = vmatpush3.bf16.msra.mxu1 %v5781_v33  ;;  %v6710_v33 = vld [vmem:[%s6581_s5 + $0x298] sm:$0xff]  }
  0xd6   : > { %5345 = vmatprep.subr.bf16.mxu1 %v5788_v36  ;;  %v5862_v36 = vld [vmem:[%s6595_s10 + $0x320] ss:$44 sps:$4 sm:$0xff]  }
  0xd7   : > { %5246 = vmatpush3.bf16.msra.mxu0 %v5831_v56  ;;  %v5949_v56 = vld [vmem:[%s6581_s5 + $0x208] sm:$0xff]  }
  0xd8   : > { %2936 = vmatmul.mubr.bf16.gmra.mxu0 %v5787_v35  ;;  %3065 = vmatmul.mubr.bf16.vlgmr.msra.gmra.mxu1 %v5784_v34  ;;  %v5873_v34 = vld [vmem:[%s6581_s5 + $0x230] sm:$0xff]   ;;  %v5887_v35 = vld [vmem:[%s6581_s5 + $0x268] sm:$0xff]  }
  0xd9   : > { %5346 = vmatpush3.bf16.msra.mxu1 %v5789_v37  ;;  %2943 = vmatprep.mubr.bf16.mxu0 %v5792_v38  ;;  %v5863_v37 = vld [vmem:[%s6595_s10 + $0x68] ss:$44 sps:$4 sm:$0xff]  }
  0xda   : > { %3072 = vmatprep.mubr.bf16.mxu1 %v5794_v40  ;;  %5347 = vmatprep.subr.bf16.mxu1 %v5805_v42  ;;  %v5864_v38 = vld [vmem:[%s6595_s10 + $0x37c] ss:$44 sps:$4 sm:$0xff]   ;;  %v5868_v42 = vld [vmem:[%s6595_s10 + $0x378] ss:$44 sps:$4 sm:$0xff]  }
  0xdb   : > { %5247 = vmatprep.subr.bf16.mxu0 %v5840_v61  ;;  %v5889_v40 = vld [vmem:[%s6581_s5 + $0x228] sm:$0xff]   ;;  %v5890_v61 = vld [vmem:[%s6595_s10 + $0x484] ss:$44 sps:$4 sm:$0xff]  }
  0xdc   : > { %5248 = vmatpush3.bf16.msra.mxu0 %v5841_v62  ;;  %v5892_v62 = vld [vmem:[%s6595_s10 + $0x1cc] ss:$44 sps:$4 sm:$0xff]  }
  0xdd   : > { %5348 = vmatpush3.bf16.msra.mxu1 %v5807_v43  ;;  %5457 = vmatprep.subr.bf16.mxu0 %v5855_v5  ;;  %v5905_v43 = vld [vmem:[%s6581_s5 + $0x220] sm:$0xff]  }
  0xde   : > { %5349 = vmatprep.subr.bf16.mxu1 %v5822_v50  ;;  %v5878_v50 = vld [vmem:[%s6595_s10 + $0x3d0] ss:$44 sps:$4 sm:$0xff]   ;;  %v5906_v5 = vld [vmem:[%s6595_s10 + $0x534] ss:$44 sps:$4 sm:$0xff]  }
  0xe0   : > { %2944 = vmatmul.mubr.bf16.gmra.mxu0 %v5796_v44  ;;  %3073 = vmatmul.mubr.bf16.gmra.mxu1 %v5797_v47  ;;  %v5918_v44 = vld [vmem:[%s6581_s5 + $0x258] sm:$0xff]  }
  0xe1   : > { %2951 = vmatprep.mubr.bf16.mxu0 %v5798_v48  ;;  %3080 = vmatprep.mubr.bf16.mxu1 %v5800_v49  ;;  %v5876_v47 = vld [vmem:[%s6595_s10 + $0x11c] ss:$44 sps:$4 sm:$0xff]   ;;  %v5933_v49 = vld [vmem:[%s6581_s5 + $0x250] sm:$0xff]  }
  0xe2   : > { %5350 = vmatpush3.bf16.msra.mxu1 %v5823_v51  ;;  %v5920_v48 = vld [vmem:[%s6581_s5 + $0x218] sm:$0xff]   ;;  %v5934_v51 = vld [vmem:[%s6581_s5 + $0x210] sm:$0xff]  }
  0xe3   : > { %5351 = vmatprep.subr.bf16.mxu1 %v5838_v58  ;;  %v5963_v58 = vld [vmem:[%s6581_s5 + $0x200] sm:$0xff]  }
  0xe6   : > { %5352 = vmatpush3.bf16.msra.mxu1 %v5839_v59  ;;  %v5884_v59 = vld [vmem:[%s6595_s10 + $0x428] ss:$44 sps:$4 sm:$0xff]  }
  0xe7   : > { %5353 = vmatprep.subr.bf16.mxu1 %v5854_v2  ;;  %v5898_v2 = vld [vmem:[%s6595_s10 + $0x224] ss:$44 sps:$4 sm:$0xff]  }
  0xe8   : > { %2952 = vmatmul.mubr.bf16.gmra.mxu0 %v5802_v52  ;;  %3081 = vmatmul.mubr.bf16.gmra.mxu1 %v5803_v53  ;;  %v5947_v52 = vld [vmem:[%s6581_s5 + $0x248] sm:$0xff]   ;;  %v5879_v53 = vld [vmem:[%s6595_s10 + $0x118] ss:$44 sps:$4 sm:$0xff]  }
  0xe9   : > { %2959 = vmatprep.mubr.bf16.mxu0 %v5808_v54  ;;  %3088 = vmatprep.mubr.bf16.mxu1 %v5810_v57  ;;  %v5880_v54 = vld [vmem:[%s6595_s10 + $0x42c] ss:$44 sps:$4 sm:$0xff]   ;;  %v5962_v57 = vld [vmem:[%s6581_s5 + $0x240] sm:$0xff]  }
  0xea   : > { %5354 = vmatpush3.bf16.msra.mxu1 %v5856_v6  ;;  %v5908_v6 = vld [vmem:[%s6595_s10 + $0x27c] ss:$44 sps:$4 sm:$0xff]  }
  0xeb   : > { %5355 = vmatprep.subr.bf16.mxu1 %v5870_v11  ;;  %v5914_v11 = vld [vmem:[%s6595_s10 + $0x18] ss:$44 sps:$4 sm:$0xff]  }
  0xee   : > { %5356 = vmatpush3.bf16.msra.mxu1 %v5872_v13  ;;  %v5921_v13 = vld [vmem:[%s6595_s10 + $0x32c] ss:$44 sps:$4 sm:$0xff]  }
  0xef   : > { %5357 = vmatprep.subr.bf16.mxu1 %v5886_v18  ;;  %v5926_v18 = vld [vmem:[%s6595_s10 + $0x70] ss:$44 sps:$4 sm:$0xff]  }
  0xf0   : > { %2960 = vmatmul.mubr.bf16.gmra.mxu0 %v5812_v60  ;;  %3089 = vmatmul.mubr.bf16.gmra.mxu1 %v5813_v63  ;;  %v5885_v60 = vld [vmem:[%s6595_s10 + $0x170] ss:$44 sps:$4 sm:$0xff]   ;;  %v5894_v63 = vld [vmem:[%s6595_s10 + $0x480] ss:$44 sps:$4 sm:$0xff]  }
  0xf1   : > { %2967 = vmatprep.mubr.bf16.mxu0 %v5816_v0  ;;  %3096 = vmatprep.mubr.bf16.mxu1 %v5818_v1  ;;  %v5895_v0 = vld [vmem:[%s6595_s10 + $0x1c8] ss:$44 sps:$4 sm:$0xff]  }
  0xf2   : > { %5358 = vmatpush3.bf16.msra.mxu1 %v5888_v20  ;;  %v5896_v1 = vld [vmem:[%s6595_s10 + $0x4dc] ss:$44 sps:$4 sm:$0xff]   ;;  %v5929_v20 = vld [vmem:[%s6595_s10 + $0xcc] ss:$44 sps:$4 sm:$0xff]  }
  0xf3   : > { %5359 = vmatprep.subr.bf16.mxu1 %v5902_v25  ;;  %v5937_v25 = vld [vmem:[%s6595_s10 + $0x124] ss:$44 sps:$4 sm:$0xff]  }
  0xf6   : > { %5360 = vmatpush3.bf16.msra.mxu1 %v5904_v26  ;;  %v5939_v26 = vld [vmem:[%s6595_s10 + $0x3d8] ss:$44 sps:$4 sm:$0xff]  }
  0xf7   : > { %5589 = vmatprep.subr.bf16.mxu1 %v6710_v33 }
  0xf8   : > { %2968 = vmatmul.mubr.bf16.gmra.mxu0 %v5820_v3  ;;  %3097 = vmatmul.mubr.bf16.gmra.mxu1 %v5821_v4  ;;  %v5900_v3 = vld [vmem:[%s6595_s10 + $0x4d8] ss:$44 sps:$4 sm:$0xff]   ;;  %v5901_v4 = vld [vmem:[%s6595_s10 + $0x220] ss:$44 sps:$4 sm:$0xff]  }
  0xf9   : > { %2975 = vmatprep.mubr.bf16.mxu0 %v5824_v7  ;;  %3104 = vmatprep.mubr.bf16.mxu1 %v5826_v8  ;;  %v5910_v7 = vld [vmem:[%s6595_s10 + $0x530] ss:$44 sps:$4 sm:$0xff]   ;;  %v5911_v8 = vld [vmem:[%s6595_s10 + $0x278] ss:$44 sps:$4 sm:$0xff]  }
 0x100   : > { %2976 = vmatmul.mubr.bf16.gmra.mxu0 %v5828_v9  ;;  %3105 = vmatmul.mubr.bf16.gmra.mxu1 %v5829_v10  ;;  %v5912_v9 = vld [vmem:[%s6595_s10 + $0x2d4] ss:$44 sps:$4 sm:$0xff]   ;;  %v5916_v10 = vld [vmem:[%s6595_s10 + $0x1c] ss:$44 sps:$4 sm:$0xff]  }
 0x101   : > { %2983 = vmatprep.mubr.bf16.mxu0 %v5832_v12  ;;  %3112 = vmatprep.mubr.bf16.mxu1 %v5834_v14  ;;  %v5917_v12 = vld [vmem:[%s6595_s10 + $0x2d0] ss:$44 sps:$4 sm:$0xff]   ;;  %v5923_v14 = vld [vmem:[%s6595_s10 + $0x74] ss:$44 sps:$4 sm:$0xff]  }
 0x108   : > { %2984 = vmatmul.mubr.bf16.gmra.mxu0 %v5836_v15  ;;  %3113 = vmatmul.mubr.bf16.gmra.mxu1 %v5837_v16  ;;  %v5948_v15 = vld [vmem:[%s6581_s5 + $0x290] sm:$0xff]   ;;  %v5976_v16 = vld [vmem:[%s6581_s5 + $0x288] sm:$0xff]  }
 0x109   : > { %2991 = vmatprep.mubr.bf16.mxu0 %v5842_v17  ;;  %3120 = vmatprep.mubr.bf16.mxu1 %v5844_v19  ;;  %v5925_v17 = vld [vmem:[%s6595_s10 + $0x328] ss:$44 sps:$4 sm:$0xff]   ;;  %v5927_v19 = vld [vmem:[%s6595_s10 + $0x384] ss:$44 sps:$4 sm:$0xff]  }
 0x110   : > { %2992 = vmatmul.mubr.bf16.gmra.mxu0 %v5846_v21  ;;  %3121 = vmatmul.mubr.bf16.gmra.mxu1 %v5847_v22  ;;  %v6001_v21 = vld [vmem:[%s6581_s5 + $0x280] sm:$0xff]   ;;  %s1001_s5 = scalar_lea.vmem %s7516_s3, %s1000_s27 }
 0x111   : > { %3128 = vmatprep.mubr.bf16.mxu1 %v5848_v23  ;;  %3225 = vmatprep.mubr.bf16.mxu0 %v5852_v24  ;;  %v5931_v22 = vld [vmem:[%s6595_s10 + $0x380] ss:$44 sps:$4 sm:$0xff]   ;;  %v5932_v23 = vld [vmem:[%s6595_s10 + $0xc8] ss:$44 sps:$4 sm:$0xff]  }
 0x112   : > { %v5935_v24 = vld [vmem:[%s6595_s10 + $0x3dc] ss:$44 sps:$4 sm:$0xff]  }
 0x118   : > { %3129 = vmatmul.mubr.bf16.gmra.mxu1 %v5853_v28  ;;  %3226 = vmatmul.mubr.bf16.vlgmr.msra.gmra.mxu0 %v5850_v27  ;;  %v5940_v27 = vld [vmem:[%s6595_s10 + $0x120] ss:$44 sps:$4 sm:$0xff]  }
 0x119   : > { %5458 = vmatpush3.bf16.msra.mxu0 %v5857_v29  ;;  %3136 = vmatprep.mubr.bf16.mxu1 %v5858_v30  ;;  %v5941_v28 = vld [vmem:[%s6595_s10 + $0x434] ss:$44 sps:$4 sm:$0xff]   ;;  %v5943_v29 = vld [vmem:[%s6595_s10 + $0x17c] ss:$44 sps:$4 sm:$0xff]  }
 0x11a   : > { %3233 = vmatprep.mubr.bf16.mxu0 %v5860_v31  ;;  %5459 = vmatprep.subr.bf16.mxu0 %v5871_v32  ;;  %v5945_v30 = vld [vmem:[%s6595_s10 + $0x430] ss:$44 sps:$4 sm:$0xff]   ;;  %v5946_v31 = vld [vmem:[%s6595_s10 + $0x178] ss:$44 sps:$4 sm:$0xff]  }
 0x11b   : > { %v5950_v32 = vld [vmem:[%s6595_s10 + $0x48c] ss:$44 sps:$4 sm:$0xff]  }
 0x11d   : > { %5460 = vmatpush3.bf16.msra.mxu0 %v5873_v34 }
 0x11e   : > { %5461 = vmatprep.subr.bf16.mxu0 %v5887_v35 }
 0x120   : > { %3137 = vmatmul.mubr.bf16.gmra.mxu1 %v5862_v36  ;;  %3234 = vmatmul.mubr.bf16.gmra.mxu0 %v5863_v37 }
 0x121   : > { %3144 = vmatprep.mubr.bf16.mxu1 %v5864_v38  ;;  %3241 = vmatprep.mubr.bf16.mxu0 %v5866_v39 }
 0x122   : > { %5462 = vmatpush3.bf16.msra.mxu0 %v5889_v40 }
 0x123   : > { %5463 = vmatprep.subr.bf16.mxu0 %v5903_v41 }
 0x126   : > { %5464 = vmatpush3.bf16.msra.mxu0 %v5905_v43  ;;  %v5955_v43 = vld [vmem:[%s6595_s10 + $0x1d0] ss:$44 sps:$4 sm:$0xff]  }
 0x127   : > { %5465 = vmatprep.subr.bf16.mxu0 %v5918_v44  ;;  %v5956_v44 = vld [vmem:[%s6595_s10 + $0x4e4] ss:$44 sps:$4 sm:$0xff]  }
 0x128   : > { %3145 = vmatmul.mubr.bf16.gmra.mxu1 %v5868_v42  ;;  %3242 = vmatmul.mubr.bf16.gmra.mxu0 %v5869_v45  ;;  %v5954_v42 = vld [vmem:[%s6595_s10 + $0x488] ss:$44 sps:$4 sm:$0xff]   ;;  %v5958_v45 = vld [vmem:[%s6595_s10 + $0x22c] ss:$44 sps:$4 sm:$0xff]  }
 0x129   : > { %3152 = vmatprep.mubr.bf16.mxu1 %v5874_v46  ;;  %3249 = vmatprep.mubr.bf16.mxu0 %v5876_v47 }
 0x12a   : > { %5466 = vmatpush3.bf16.msra.mxu0 %v5920_v48 }
 0x12b   : > { %5467 = vmatprep.subr.bf16.mxu0 %v5933_v49 }
 0x12e   : > { %5468 = vmatpush3.bf16.msra.mxu0 %v5934_v51 }
 0x12f   : > { %5469 = vmatprep.subr.bf16.mxu0 %v5947_v52 }
 0x130   : > { %3153 = vmatmul.mubr.bf16.gmra.mxu1 %v5878_v50  ;;  %3250 = vmatmul.mubr.bf16.gmra.mxu0 %v5879_v53 }
 0x131   : > { %3160 = vmatprep.mubr.bf16.mxu1 %v5880_v54  ;;  %3257 = vmatprep.mubr.bf16.mxu0 %v5882_v55 }
 0x132   : > { %5470 = vmatpush3.bf16.msra.mxu0 %v5949_v56 }
 0x133   : > { %5471 = vmatprep.subr.bf16.mxu0 %v5962_v57 }
 0x136   : > { %5472 = vmatpush3.bf16.msra.mxu0 %v5963_v58  ;;  %v5960_v58 = vld [vmem:[%s6595_s10 + $0x4e0] ss:$44 sps:$4 sm:$0xff]  }
 0x138   : > { %3161 = vmatmul.mubr.bf16.gmra.mxu1 %v5884_v59  ;;  %3258 = vmatmul.mubr.bf16.gmra.mxu0 %v5885_v60  ;;  %v5961_v59 = vld [vmem:[%s6595_s10 + $0x228] ss:$44 sps:$4 sm:$0xff]  }
 0x139   : > { %3168 = vmatprep.mubr.bf16.mxu1 %v5890_v61  ;;  %3265 = vmatprep.mubr.bf16.mxu0 %v5892_v62  ;;  %v5964_v60 = vld [vmem:[%s6595_s10 + $0x53c] ss:$44 sps:$4 sm:$0xff]   ;;  %v5966_v61 = vld [vmem:[%s6595_s10 + $0x284] ss:$44 sps:$4 sm:$0xff]  }
 0x140   : > { %3169 = vmatmul.mubr.bf16.gmra.mxu1 %v5894_v63  ;;  %3266 = vmatmul.mubr.bf16.gmra.mxu0 %v5895_v0 }
 0x141   : > { %3176 = vmatprep.mubr.bf16.mxu1 %v5896_v1  ;;  %3273 = vmatprep.mubr.bf16.mxu0 %v5898_v2 }
 0x148   : > { %3177 = vmatmul.mubr.bf16.gmra.mxu1 %v5900_v3  ;;  %3274 = vmatmul.mubr.bf16.gmra.mxu0 %v5901_v4 }
 0x149   : > { %3184 = vmatprep.mubr.bf16.mxu1 %v5906_v5  ;;  %3281 = vmatprep.mubr.bf16.mxu0 %v5908_v6 }
 0x150   : > { %3185 = vmatmul.mubr.bf16.gmra.mxu1 %v5910_v7  ;;  %3282 = vmatmul.mubr.bf16.gmra.mxu0 %v5911_v8 }
 0x151   : > { %3289 = vmatprep.mubr.bf16.mxu0 %v5912_v9  ;;  %3386 = vmatprep.mubr.bf16.mxu1 %v5916_v10  ;;  %v5968_v10 = vld [vmem:[%s6595_s10 + $0x538] ss:$44 sps:$4 sm:$0xff]  }
 0x158   : > { %3290 = vmatmul.mubr.bf16.gmra.mxu0 %v5917_v12  ;;  %3387 = vmatmul.mubr.bf16.vlgmr.msra.gmra.mxu1 %v5914_v11  ;;  %v5969_v11 = vld [vmem:[%s6595_s10 + $0x280] ss:$44 sps:$4 sm:$0xff]   ;;  %v5972_v12 = vld [vmem:[%s6595_s10 + $0x2dc] ss:$44 sps:$4 sm:$0xff]  }
 0x159   : > { %5590 = vmatpush3.bf16.msra.mxu1 %v6710_v33  ;;  %3297 = vmatprep.mubr.bf16.mxu0 %v5921_v13  ;;  %v5952_v33 = vld [vmem:[%s6595_s10 + $0x1d4] ss:$44 sps:$4 sm:$0xff]   ;;  %v5975_v13 = vld [vmem:[%s6595_s10 + $0x24] ss:$44 sps:$4 sm:$0xff]  }
 0x15a   : > { %3394 = vmatprep.mubr.bf16.mxu1 %v5923_v14  ;;  %5591 = vmatprep.subr.bf16.mxu1 %v5948_v15 }
 0x15d   : > { %5592 = vmatpush3.bf16.msra.mxu1 %v5948_v15 }
 0x15e   : > { %5593 = vmatprep.subr.bf16.mxu1 %v5976_v16 }
 0x160   : > { %3298 = vmatmul.mubr.bf16.gmra.mxu0 %v5925_v17  ;;  %3395 = vmatmul.mubr.bf16.gmra.mxu1 %v5926_v18 }
 0x161   : > { %3305 = vmatprep.mubr.bf16.mxu0 %v5927_v19  ;;  %3402 = vmatprep.mubr.bf16.mxu1 %v5929_v20 }
 0x162   : > { %5594 = vmatpush3.bf16.msra.mxu1 %v5976_v16 }
 0x163   : > { %5595 = vmatprep.subr.bf16.mxu1 %v6001_v21 }
 0x166   : > { %5596 = vmatpush3.bf16.msra.mxu1 %v6001_v21 }
 0x168   : > { %3306 = vmatmul.mubr.bf16.gmra.mxu0 %v5931_v22  ;;  %3403 = vmatmul.mubr.bf16.gmra.mxu1 %v5932_v23 }
 0x169   : > { %3313 = vmatprep.mubr.bf16.mxu0 %v5935_v24  ;;  %3410 = vmatprep.mubr.bf16.mxu1 %v5937_v25 }
 0x170   : > { %3314 = vmatmul.mubr.bf16.gmra.mxu0 %v5939_v26  ;;  %3411 = vmatmul.mubr.bf16.gmra.mxu1 %v5940_v27  ;;  %v5970_v26 = vld [vmem:[%s6595_s10 + $0x2d8] ss:$44 sps:$4 sm:$0xff]   ;;  %v5973_v27 = vld [vmem:[%s6595_s10 + $0x20] ss:$44 sps:$4 sm:$0xff]  }
 0x171   : > { %3321 = vmatprep.mubr.bf16.mxu0 %v5941_v28  ;;  %3418 = vmatprep.mubr.bf16.mxu1 %v5943_v29  ;;  %v5979_v28 = vld [vmem:[%s6595_s10 + $0x334] ss:$44 sps:$4 sm:$0xff]   ;;  %v5982_v29 = vld [vmem:[%s6595_s10 + $0x7c] ss:$44 sps:$4 sm:$0xff]  }
 0x178   : > { %v5025_v34 = vpop.f32.mrf.mxu0  ;;  %v5097_v35 = vpop.f32.mrf.mxu1  ;;  %3322 = vmatmul.mubr.bf16.gmra.mxu0 %v5945_v30  ;;  %3419 = vmatmul.mubr.bf16.gmra.mxu1 %v5946_v31 }
 0x179   : > { %3329 = vmatprep.mubr.bf16.mxu0 %v5950_v32  ;;  %3426 = vmatprep.mubr.bf16.mxu1 %v5952_v33 }
 0x17a   : > { %v5026_v36 = vpop.f32.mrf.mxu0  ;;  %v5098_v37 = vpop.f32.mrf.mxu1 }
 0x17b   : > { %v6778_v38 = vadd.f32 %v5026_v36, %v5025_v34  ;;  %v6780_v39 = vadd.f32 %v5098_v37, %v5097_v35 }
 0x17c   : > { %v5028_v40 = vpop.f32.mrf.mxu0  ;;  %v5100_v41 = vpop.f32.mrf.mxu1 }
 0x17e   : > { %v5029_v46 = vpop.f32.mrf.mxu0  ;;  %v5101_v47 = vpop.f32.mrf.mxu1 }
 0x17f   : > { %v6786_v48 = vadd.f32 %v5029_v46, %v5028_v40  ;;  %v6788_v49 = vadd.f32 %v5101_v47, %v5100_v41  ;;  %v5985_v47 = vld [vmem:[%s6595_s10 + $0x38c] ss:$44 sps:$4 sm:$0xff]  }
 0x180   : > { %v5031_v50 = vpop.f32.mrf.mxu0  ;;  %v5103_v51 = vpop.f32.mrf.mxu1  ;;  %3330 = vmatmul.mubr.bf16.gmra.mxu0 %v5954_v42  ;;  %3427 = vmatmul.mubr.bf16.gmra.mxu1 %v5955_v43 }
 0x181   : > { %3337 = vmatprep.mubr.bf16.mxu0 %v5956_v44  ;;  %3434 = vmatprep.mubr.bf16.mxu1 %v5958_v45  ;;  %v5977_v44 = vld [vmem:[%s6595_s10 + $0x330] ss:$44 sps:$4 sm:$0xff]   ;;  %v5980_v45 = vld [vmem:[%s6595_s10 + $0x78] ss:$44 sps:$4 sm:$0xff]  }
 0x182   : > { %v5032_v52 = vpop.f32.mrf.mxu0  ;;  %v5104_v53 = vpop.f32.mrf.mxu1 }
 0x183   : > { %v6790_v54 = vadd.f32 %v5032_v52, %v5031_v50  ;;  %v6792_v55 = vadd.f32 %v5104_v53, %v5103_v51  ;;  %v5988_v50 = vld [vmem:[%s6595_s10 + $0xd4] ss:$44 sps:$4 sm:$0xff]  }
 0x184   : > { %v5034_v56 = vpop.f32.mrf.mxu0  ;;  %v5106_v57 = vpop.f32.mrf.mxu1 }
 0x186   : > { %v5035_v62 = vpop.f32.mrf.mxu0  ;;  %v5107_v63 = vpop.f32.mrf.mxu1 }
 0x187   : > { %v6798_v0 = vadd.f32 %v5035_v62, %v5034_v56  ;;  %v6800_v1 = vadd.f32 %v5107_v63, %v5106_v57 }
 0x188   : > { %v5037_v2 = vpop.f32.mrf.mxu0  ;;  %v5109_v3 = vpop.f32.mrf.mxu1  ;;  %3338 = vmatmul.mubr.bf16.gmra.mxu0 %v5960_v58  ;;  %3435 = vmatmul.mubr.bf16.gmra.mxu1 %v5961_v59 }
 0x189   : > { %3345 = vmatprep.mubr.bf16.mxu0 %v5964_v60  ;;  %3442 = vmatprep.mubr.bf16.mxu1 %v5966_v61 }
 0x18a   : > { %v5038_v4 = vpop.f32.mrf.mxu0  ;;  %v5110_v5 = vpop.f32.mrf.mxu1 }
 0x18b   : > { %v6802_v6 = vadd.f32 %v5038_v4, %v5037_v2  ;;  %v6804_v7 = vadd.f32 %v5110_v5, %v5109_v3  ;;  %v5983_v3 = vld [vmem:[%s6595_s10 + $0x388] ss:$44 sps:$4 sm:$0xff]   ;;  %v5986_v4 = vld [vmem:[%s6595_s10 + $0xd0] ss:$44 sps:$4 sm:$0xff]  }
 0x18c   : > { %v5040_v8 = vpop.f32.mrf.mxu0  ;;  %v5112_v9 = vpop.f32.mrf.mxu1 }
 0x18e   : > { %v5041_v14 = vpop.f32.mrf.mxu0  ;;  %v5113_v15 = vpop.f32.mrf.mxu1 }
 0x18f   : > { %v6810_v16 = vadd.f32 %v5041_v14, %v5040_v8  ;;  %v6812_v17 = vadd.f32 %v5113_v15, %v5112_v9  ;;  %v5991_v8 = vld [vmem:[%s6595_s10 + $0x3e4] ss:$44 sps:$4 sm:$0xff]   ;;  %v5994_v9 = vld [vmem:[%s6595_s10 + $0x12c] ss:$44 sps:$4 sm:$0xff]  }
 0x190   : > { %v5043_v18 = vpop.f32.mrf.mxu0  ;;  %v5115_v19 = vpop.f32.mrf.mxu1  ;;  %3346 = vmatmul.mubr.bf16.gmra.mxu0 %v5968_v10  ;;  %3443 = vmatmul.mubr.bf16.gmra.mxu1 %v5969_v11 }
 0x191   : > { %3450 = vmatprep.mubr.bf16.mxu1 %v5972_v12  ;;  %3547 = vmatprep.mubr.bf16.mxu0 %v5975_v13 }
 0x192   : > { %v5044_v20 = vpop.f32.mrf.mxu0  ;;  %v5116_v21 = vpop.f32.mrf.mxu1 }
 0x193   : > { %v6814_v22 = vadd.f32 %v5044_v20, %v5043_v18  ;;  %v6816_v23 = vadd.f32 %v5116_v21, %v5115_v19 }
 0x194   : > { %v5046_v24 = vpop.f32.mrf.mxu0  ;;  %v5118_v25 = vpop.f32.mrf.mxu1 }
 0x196   : > { %v5047_v30 = vpop.f32.mrf.mxu0  ;;  %v5119_v31 = vpop.f32.mrf.mxu1 }
 0x197   : > { %v6822_v32 = vadd.f32 %v5047_v30, %v5046_v24  ;;  %v6824_v33 = vadd.f32 %v5119_v31, %v5118_v25  ;;  %v5989_v25 = vld [vmem:[%s6595_s10 + $0x3e0] ss:$44 sps:$4 sm:$0xff]  }
 0x198   : > { %v5049_v34 = vpop.f32.mrf.mxu0  ;;  %v5137_v35 = vpop.f32.mrf.mxu1  ;;  %3451 = vmatmul.mubr.bf16.gmra.mxu1 %v5970_v26  ;;  %3548 = vmatmul.mubr.bf16.vlgmr.msra.gmra.mxu0 %v5973_v27  ;;  %v5992_v26 = vld [vmem:[%s6595_s10 + $0x128] ss:$44 sps:$4 sm:$0xff]  }
 0x199   : > { %3458 = vmatprep.mubr.bf16.mxu1 %v5979_v28  ;;  %3555 = vmatprep.mubr.bf16.mxu0 %v5982_v29  ;;  %v5997_v28 = vld [vmem:[%s6595_s10 + $0x43c] ss:$44 sps:$4 sm:$0xff]   ;;  %v6000_v29 = vld [vmem:[%s6595_s10 + $0x184] ss:$44 sps:$4 sm:$0xff]  }
 0x19a   : > { %v5050_v36 = vpop.f32.mrf.mxu0  ;;  %v5138_v37 = vpop.f32.mrf.mxu1 }
 0x19b   : > { %v6826_v40 = vadd.f32 %v5050_v36, %v5049_v34  ;;  %v5139_v41 = vadd.f32 %v5138_v37, %v5137_v35 }
 0x19c   : > { %v5052_v42 = vpop.f32.mrf.mxu0  ;;  %v5140_v43 = vpop.f32.mrf.mxu1 }
 0x19d   : > { %v6831_v46 = vadd.f32 %v5139_v41, %v6778_v38 }
 0x19e   : > { %v5053_v51 = vpop.f32.mrf.mxu0  ;;  %v5141_v52 = vpop.f32.mrf.mxu1 }
 0x19f   : > { %v6835_v53 = vadd.f32 %v5053_v51, %v5052_v42  ;;  %v5142_v56 = vadd.f32 %v5141_v52, %v5140_v43  ;;  %v6004_v52 = vld [vmem:[%s6595_s10 + $0x494] ss:$44 sps:$4 sm:$0xff]  }
 0x1a0   : > { %v5055_v57 = vpop.f32.mrf.mxu0  ;;  %v5143_v58 = vpop.f32.mrf.mxu1  ;;  %3459 = vmatmul.mubr.bf16.gmra.mxu1 %v5977_v44  ;;  %3556 = vmatmul.mubr.bf16.gmra.mxu0 %v5980_v45 }
 0x1a1   : > { %v6838_v59 = vadd.f32 %v5142_v56, %v6786_v48  ;;  %3466 = vmatprep.mubr.bf16.mxu1 %v5985_v47  ;;  %3563 = vmatprep.mubr.bf16.mxu0 %v5988_v50  ;;  %v5995_v47 = vld [vmem:[%s6595_s10 + $0x438] ss:$44 sps:$4 sm:$0xff]   ;;  %v5998_v50 = vld [vmem:[%s6595_s10 + $0x180] ss:$44 sps:$4 sm:$0xff]   ;;  %v6007_v56 = vld [vmem:[%s6595_s10 + $0x1dc] ss:$44 sps:$4 sm:$0xff]  }
 0x1a2   : > { %v5056_v38 = vpop.f32.mrf.mxu0  ;;  %v5144_v60 = vpop.f32.mrf.mxu1 }
 0x1a3   : > { %v6840_v61 = vadd.f32 %v5056_v38, %v5055_v57  ;;  %v5145_v62 = vadd.f32 %v5144_v60, %v5143_v58 }
 0x1a4   : > { %v5058_v63 = vpop.f32.mrf.mxu0  ;;  %v5146_v2 = vpop.f32.mrf.mxu1 }
 0x1a5   : > { %v6845_v5 = vadd.f32 %v5145_v62, %v6790_v54 }
 0x1a6   : > { %v5059_v10 = vpop.f32.mrf.mxu0  ;;  %v5147_v11 = vpop.f32.mrf.mxu1 }
 0x1a7   : > { %v6849_v48 = vadd.f32 %v5059_v10, %v5058_v63  ;;  %v5148_v12 = vadd.f32 %v5147_v11, %v5146_v2  ;;  %v6002_v10 = vld [vmem:[%s6595_s10 + $0x490] ss:$44 sps:$4 sm:$0xff]   ;;  %v6005_v11 = vld [vmem:[%s6595_s10 + $0x1d8] ss:$44 sps:$4 sm:$0xff]  }
 0x1a8   : > { %v5061_v13 = vpop.f32.mrf.mxu0  ;;  %v5149_v14 = vpop.f32.mrf.mxu1  ;;  %3467 = vmatmul.mubr.bf16.gmra.mxu1 %v5983_v3  ;;  %3564 = vmatmul.mubr.bf16.gmra.mxu0 %v5986_v4 }
 0x1a9   : > { %v6852_v15 = vadd.f32 %v5148_v12, %v6798_v0  ;;  %3474 = vmatprep.mubr.bf16.mxu1 %v5991_v8  ;;  %3571 = vmatprep.mubr.bf16.mxu0 %v5994_v9 }
 0x1aa   : > { %v5062_v54 = vpop.f32.mrf.mxu0  ;;  %v5150_v18 = vpop.f32.mrf.mxu1 }
 0x1ab   : > { %v6854_v19 = vadd.f32 %v5062_v54, %v5061_v13  ;;  %v5151_v20 = vadd.f32 %v5150_v18, %v5149_v14  ;;  %v6010_v13 = vld [vmem:[%s6595_s10 + $0x4ec] ss:$44 sps:$4 sm:$0xff]   ;;  %v6013_v14 = vld [vmem:[%s6595_s10 + $0x234] ss:$44 sps:$4 sm:$0xff]  }
 0x1ac   : > { %v5064_v21 = vpop.f32.mrf.mxu0  ;;  %v5152_v24 = vpop.f32.mrf.mxu1 }
 0x1ad   : > { %v6859_v27 = vadd.f32 %v5151_v20, %v6802_v6 }
 0x1ae   : > { %v5065_v30 = vpop.f32.mrf.mxu0  ;;  %v5153_v31 = vpop.f32.mrf.mxu1 }
 0x1af   : > { %v6863_v0 = vadd.f32 %v5065_v30, %v5064_v21  ;;  %v5154_v34 = vadd.f32 %v5153_v31, %v5152_v24 }
 0x1b0   : > { %v5067_v35 = vpop.f32.mrf.mxu0  ;;  %v5155_v36 = vpop.f32.mrf.mxu1  ;;  %3475 = vmatmul.mubr.bf16.gmra.mxu1 %v5989_v25  ;;  %3572 = vmatmul.mubr.bf16.gmra.mxu0 %v5992_v26 }
 0x1b1   : > { %v6866_v37 = vadd.f32 %v5154_v34, %v6810_v16  ;;  %3482 = vmatprep.mubr.bf16.mxu1 %v5997_v28  ;;  %3579 = vmatprep.mubr.bf16.mxu0 %v6000_v29  ;;  %v6008_v34 = vld [vmem:[%s6595_s10 + $0x4e8] ss:$44 sps:$4 sm:$0xff]  }
 0x1b2   : > { %v5068_v6 = vpop.f32.mrf.mxu0  ;;  %v5156_v41 = vpop.f32.mrf.mxu1 }
 0x1b3   : > { %v6868_v42 = vadd.f32 %v5068_v6, %v5067_v35  ;;  %v5157_v43 = vadd.f32 %v5156_v41, %v5155_v36  ;;  %v6011_v35 = vld [vmem:[%s6595_s10 + $0x230] ss:$44 sps:$4 sm:$0xff]   ;;  %v6019_v41 = vld [vmem:[%s6595_s10 + $0x28c] ss:$44 sps:$4 sm:$0xff]  }
 0x1b4   : > { %v5070_v44 = vpop.f32.mrf.mxu0  ;;  %v5158_v45 = vpop.f32.mrf.mxu1  ;;  %v6016_v6 = vld [vmem:[%s6595_s10 + $0x544] ss:$44 sps:$4 sm:$0xff]  }
 0x1b5   : > { %v6873_v51 = vadd.f32 %v5157_v43, %v6814_v22 }
 0x1b6   : > { %v5071_v57 = vpop.f32.mrf.mxu0  ;;  %v5159_v58 = vpop.f32.mrf.mxu1 }
 0x1b7   : > { %v6877_v16 = vadd.f32 %v5071_v57, %v5070_v44  ;;  %v5160_v38 = vadd.f32 %v5159_v58, %v5158_v45 }
 0x1b8   : > { %v5073_v60 = vpop.f32.mrf.mxu0  ;;  %v5161_v62 = vpop.f32.mrf.mxu1  ;;  %3483 = vmatmul.mubr.bf16.gmra.mxu1 %v5995_v47  ;;  %3580 = vmatmul.mubr.bf16.gmra.mxu0 %v5998_v50 }
 0x1b9   : > { %v6880_v63 = vadd.f32 %v5160_v38, %v6822_v32  ;;  %3490 = vmatprep.mubr.bf16.mxu1 %v6004_v52  ;;  %3587 = vmatprep.mubr.bf16.mxu0 %v6007_v56 }
 0x1ba   : > { %v5074_v22 = vpop.f32.mrf.mxu0  ;;  %v5162_v2 = vpop.f32.mrf.mxu1 }
 0x1bb   : > { %v6882_v3 = vadd.f32 %v5074_v22, %v5073_v60  ;;  %v5163_v4 = vadd.f32 %v5162_v2, %v5161_v62  ;;  %v6014_v62 = vld [vmem:[%s6595_s10 + $0x540] ss:$44 sps:$4 sm:$0xff]   ;;  %v6017_v22 = vld [vmem:[%s6595_s10 + $0x288] ss:$44 sps:$4 sm:$0xff]  }
 0x1bc   : > { %v5076_v8 = vpop.f32.mrf.mxu0  ;;  %v5164_v9 = vpop.f32.mrf.mxu1 }
 0x1bd   : > { %v6887_v12 = vadd.f32 %v5163_v4, %v6826_v40  ;;  %v6022_v4 = vld [vmem:[%s6595_s10 + $0x2e4] ss:$44 sps:$4 sm:$0xff]  }
 0x1be   : > { %v5077_v54 = vpop.f32.mrf.mxu0  ;;  %v5165_v18 = vpop.f32.mrf.mxu1 }
 0x1bf   : > { %v6891_v32 = vadd.f32 %v5077_v54, %v5076_v8  ;;  %v5166_v20 = vadd.f32 %v5165_v18, %v5164_v9  ;;  %v6023_v8 = vld [vmem:[%s6595_s10 + $0x28] ss:$44 sps:$4 sm:$0xff]  }
 0x1c0   : > { %v5079_v21 = vpop.f32.mrf.mxu0  ;;  %v5167_v24 = vpop.f32.mrf.mxu1  ;;  %3491 = vmatmul.mubr.bf16.gmra.mxu1 %v6002_v10  ;;  %3588 = vmatmul.mubr.bf16.gmra.mxu0 %v6005_v11 }
 0x1c1   : > { %v6894_v25 = vadd.f32 %v5166_v20, %v6835_v53  ;;  %3498 = vmatprep.mubr.bf16.mxu1 %v6010_v13  ;;  %3595 = vmatprep.mubr.bf16.mxu0 %v6013_v14 }
 0x1c2   : > { %v5080_v40 = vpop.f32.mrf.mxu0  ;;  %v5168_v26 = vpop.f32.mrf.mxu1 }
 0x1c3   : > { %v6896_v28 = vadd.f32 %v5080_v40, %v5079_v21  ;;  %v5169_v29 = vadd.f32 %v5168_v26, %v5167_v24  ;;  %v6020_v26 = vld [vmem:[%s6595_s10 + $0x2e0] ss:$44 sps:$4 sm:$0xff]  }
 0x1c4   : > { %v5082_v30 = vpop.f32.mrf.mxu0  ;;  %v5170_v31 = vpop.f32.mrf.mxu1 }
 0x1c5   : > { %v6901_v36 = vadd.f32 %v5169_v29, %v6840_v61  ;;  %v6024_v29 = vld [vmem:[%s6595_s10 + $0x80] ss:$44 sps:$4 sm:$0xff]  }
 0x1c6   : > { %v5083_v43 = vpop.f32.mrf.mxu0  ;;  %v5171_v44 = vpop.f32.mrf.mxu1 }
 0x1c7   : > { %v6905_v53 = vadd.f32 %v5083_v43, %v5082_v30  ;;  %v5172_v45 = vadd.f32 %v5171_v44, %v5170_v31  ;;  %v6027_v31 = vld [vmem:[%s6595_s10 + $0x33c] ss:$44 sps:$4 sm:$0xff]  }
 0x1c8   : > { %v5085_v47 = vpop.f32.mrf.mxu0  ;;  %v5173_v50 = vpop.f32.mrf.mxu1  ;;  %3499 = vmatmul.mubr.bf16.gmra.mxu1 %v6008_v34  ;;  %3596 = vmatmul.mubr.bf16.gmra.mxu0 %v6011_v35  ;;  %v6028_v34 = vld [vmem:[%s6595_s10 + $0xd8] ss:$44 sps:$4 sm:$0xff]  }
 0x1c9   : > { %v6908_v52 = vadd.f32 %v5172_v45, %v6849_v48  ;;  %3506 = vmatprep.mubr.bf16.mxu1 %v6016_v6  ;;  %3603 = vmatprep.mubr.bf16.mxu0 %v6019_v41 }
 0x1ca   : > { %v5086_v61 = vpop.f32.mrf.mxu0  ;;  %v5174_v56 = vpop.f32.mrf.mxu1 }
 0x1cb   : > { %v6910_v57 = vadd.f32 %v5086_v61, %v5085_v47  ;;  %v5175_v58 = vadd.f32 %v5174_v56, %v5173_v50 }
 0x1cc   : > { %v5088_v38 = vpop.f32.mrf.mxu0  ;;  %v5176_v60 = vpop.f32.mrf.mxu1 }
 0x1cd   : > { %v6915_v2 = vadd.f32 %v5175_v58, %v6854_v19 }
 0x1ce   : > { %v5089_v9 = vpop.f32.mrf.mxu0  ;;  %v5177_v10 = vpop.f32.mrf.mxu1 }
 0x1cf   : > { %v6919_v48 = vadd.f32 %v5089_v9, %v5088_v38  ;;  %v5178_v11 = vadd.f32 %v5177_v10, %v5176_v60  ;;  %v6025_v38 = vld [vmem:[%s6595_s10 + $0x338] ss:$44 sps:$4 sm:$0xff]   ;;  %v6029_v60 = vld [vmem:[%s6595_s10 + $0x130] ss:$44 sps:$4 sm:$0xff]  }
 0x1d0   : > { %v5091_v13 = vpop.f32.mrf.mxu0  ;;  %v5179_v14 = vpop.f32.mrf.mxu1  ;;  %3507 = vmatmul.mubr.bf16.gmra.mxu1 %v6014_v62  ;;  %3604 = vmatmul.mubr.bf16.gmra.mxu0 %v6017_v22 }
 0x1d1   : > { %v6922_v54 = vadd.f32 %v5178_v11, %v6863_v0  ;;  %3611 = vmatprep.mubr.bf16.mxu0 %v6022_v4  ;;  %5597 = vmatprep.mubr.msk.bf16.mxu1 %vm2822_vm0, %v6023_v8  ;;  %v6032_v4 = vld [vmem:[%s6595_s10 + $0x394] ss:$44 sps:$4 sm:$0xff]  }
 0x1d2   : > { %v5092_v19 = vpop.f32.mrf.mxu0  ;;  %v5180_v18 = vpop.f32.mrf.mxu1 }
 0x1d3   : > { %v6925_v20 = vadd.f32 %v5092_v19, %v5091_v13  ;;  %v5181_v21 = vadd.f32 %v5180_v18, %v5179_v14 }
 0x1d4   : > { %v5094_v24 = vpop.f32.mrf.mxu0  ;;  %v5182_v40 = vpop.f32.mrf.mxu1 }
 0x1d5   : > { %v6930_v30 = vadd.f32 %v5181_v21, %v6868_v42 }
 0x1d6   : > { %v5095_v35 = vpop.f32.mrf.mxu0  ;;  %v5183_v0 = vpop.f32.mrf.mxu1 }
 0x1d7   : > { %v6934_v6 = vadd.f32 %v5095_v35, %v5094_v24  ;;  %v5184_v41 = vadd.f32 %v5183_v0, %v5182_v40  ;;  %v6037_v35 = vld [vmem:[%s6595_s10 + $0x3ec] ss:$44 sps:$4 sm:$0xff]  }
 0x1d8   : > { %v5185_v43 = vpop.f32.mrf.mxu1  ;;  %v5249_v44 = vpop.f32.mrf.mxu0  ;;  %3612 = vmatmul.mubr.bf16.gmra.mxu0 %v6020_v26  ;;  %5598 = vmatmul.mubr.msk.bf16.vlgmr.msra.gmra.mxu1 %vm2822_vm0, %v6024_v29  ;;  %v6030_v29 = vld [vmem:[%s6595_s10 + $0x390] ss:$44 sps:$4 sm:$0xff]  }
 0x1d9   : > { %v6938_v45 = vadd.f32 %v5184_v41, %v6877_v16  ;;  %3619 = vmatprep.mubr.bf16.mxu0 %v6027_v31  ;;  %5601 = vmatprep.mubr.msk.bf16.mxu1 %vm2822_vm0, %v6028_v34  ;;  %v6033_v16 = vld [vmem:[%s6595_s10 + $0x188] ss:$44 sps:$4 sm:$0xff]   ;;  %v6034_v31 = vld [vmem:[%s6595_s10 + $0x1e0] ss:$44 sps:$4 sm:$0xff]  }
 0x1da   : > { %v5186_v42 = vpop.f32.mrf.mxu1  ;;  %v5250_v47 = vpop.f32.mrf.mxu0 }
 0x1db   : > { %v5187_v50 = vadd.f32 %v5186_v42, %v5185_v43  ;;  %v5251_v61 = vadd.f32 %v5250_v47, %v5249_v44 }
 0x1dc   : > { %v5188_v56 = vpop.f32.mrf.mxu1  ;;  %v5252_v58 = vpop.f32.mrf.mxu0 }
 0x1dd   : > { %v6944_v62 = vadd.f32 %v5187_v50, %v6882_v3  ;;  %v6947_v22 = vadd.f32 %v5251_v61, %v6831_v46 }
 0x1de   : > { %v5189_v8 = vpop.f32.mrf.mxu1  ;;  %v5253_v9 = vpop.f32.mrf.mxu0 }
 0x1df   : > { %v5190_v10 = vadd.f32 %v5189_v8, %v5188_v56  ;;  %v5254_v11 = vadd.f32 %v5253_v9, %v5252_v58  ;;  %v6042_v9 = vld [vmem:[%s6595_s10 + $0x444] ss:$44 sps:$4 sm:$0xff]  }
 0x1e0   : > { %v5191_v13 = vpop.f32.mrf.mxu1  ;;  %v5255_v14 = vpop.f32.mrf.mxu0  ;;  %3620 = vmatmul.mubr.bf16.gmra.mxu0 %v6025_v38  ;;  %5602 = vmatmul.mubr.msk.bf16.gmra.mxu1 %vm2822_vm0, %v6029_v60 }
 0x1e1   : > { %v6953_v3 = vadd.f32 %v5190_v10, %v6891_v32  ;;  %v6956_v46 = vadd.f32 %v5254_v11, %v6838_v59  ;;  %3627 = vmatprep.mubr.bf16.mxu0 %v6032_v4  ;;  %5605 = vmatprep.mubr.msk.bf16.mxu1 %vm2822_vm0, %v6033_v16  ;;  %v6038_v59 = vld [vmem:[%s6595_s10 + $0x238] ss:$44 sps:$4 sm:$0xff]   ;;  %v6035_v4 = vld [vmem:[%s6595_s10 + $0x3e8] ss:$44 sps:$4 sm:$0xff]   ;;  %v6039_v16 = vld [vmem:[%s6595_s10 + $0x290] ss:$44 sps:$4 sm:$0xff]  }
 0x1e2   : > { %v5192_v19 = vpop.f32.mrf.mxu1  ;;  %v5256_v18 = vpop.f32.mrf.mxu0 }
 0x1e3   : > { %v5193_v21 = vadd.f32 %v5192_v19, %v5191_v13  ;;  %v5257_v24 = vadd.f32 %v5256_v18, %v5255_v14 }
 0x1e4   : > { %v5194_v40 = vpop.f32.mrf.mxu1  ;;  %v5258_v26 = vpop.f32.mrf.mxu0 }
 0x1e5   : > { %v6962_v34 = vadd.f32 %v5193_v21, %v6896_v28  ;;  %v6965_v32 = vadd.f32 %v5257_v24, %v6845_v5 }
 0x1e6   : > { %v5195_v0 = vpop.f32.mrf.mxu1  ;;  %v5259_v41 = vpop.f32.mrf.mxu0 }
 0x1e7   : > { %v5196_v43 = vadd.f32 %v5195_v0, %v5194_v40  ;;  %v5260_v44 = vadd.f32 %v5259_v41, %v5258_v26  ;;  %v6047_v41 = vld [vmem:[%s6595_s10 + $0x49c] ss:$44 sps:$4 sm:$0xff]  }
 0x1e8   : > { %v5197_v42 = vpop.f32.mrf.mxu1  ;;  %v5261_v47 = vpop.f32.mrf.mxu0  ;;  %3628 = vmatmul.mubr.bf16.gmra.mxu0 %v6030_v29  ;;  %5606 = vmatmul.mubr.msk.bf16.gmra.mxu1 %vm2822_vm0, %v6034_v31 }
 0x1e9   : > { %v6971_v28 = vadd.f32 %v5196_v43, %v6905_v53  ;;  %v6974_v5 = vadd.f32 %v5260_v44, %v6852_v15  ;;  %3635 = vmatprep.mubr.bf16.mxu0 %v6037_v35  ;;  %5609 = vmatprep.mubr.msk.bf16.mxu1 %vm2822_vm0, %v6038_v59  ;;  %v6043_v15 = vld [vmem:[%s6595_s10 + $0x2e8] ss:$44 sps:$4 sm:$0xff]   ;;  %v6040_v35 = vld [vmem:[%s6595_s10 + $0x440] ss:$44 sps:$4 sm:$0xff]  }
 0x1ea   : > { %v5198_v50 = vpop.f32.mrf.mxu1  ;;  %v5262_v61 = vpop.f32.mrf.mxu0  ;;  %v6044_v59 = vld [vmem:[%s6595_s10 + $0x340] ss:$44 sps:$4 sm:$0xff]  }
 0x1eb   : > { %v5199_v56 = vadd.f32 %v5198_v50, %v5197_v42  ;;  %v5263_v58 = vadd.f32 %v5262_v61, %v5261_v47 }
 0x1ec   : > { %v5200_v38 = vpop.f32.mrf.mxu1  ;;  %v5264_v60 = vpop.f32.mrf.mxu0 }
 0x1ed   : > { %v6980_v8 = vadd.f32 %v5199_v56, %v6910_v57  ;;  %v6983_v53 = vadd.f32 %v5263_v58, %v6859_v27 }
 0x1ee   : > { %v5201_v10 = vpop.f32.mrf.mxu1  ;;  %v5265_v11 = vpop.f32.mrf.mxu0 }
 0x1ef   : > { %v5202_v13 = vadd.f32 %v5201_v10, %v5200_v38  ;;  %v5266_v14 = vadd.f32 %v5265_v11, %v5264_v60  ;;  %v6052_v11 = vld [vmem:[%s6595_s10 + $0x4f4] ss:$44 sps:$4 sm:$0xff]  }
 0x1f0   : > { %v5203_v19 = vpop.f32.mrf.mxu1  ;;  %v5267_v18 = vpop.f32.mrf.mxu0  ;;  %3636 = vmatmul.mubr.bf16.gmra.mxu0 %v6035_v4  ;;  %5610 = vmatmul.mubr.msk.bf16.gmra.mxu1 %vm2822_vm0, %v6039_v16 }
 0x1f1   : > { %v6989_v57 = vadd.f32 %v5202_v13, %v6919_v48  ;;  %v6992_v27 = vadd.f32 %v5266_v14, %v6866_v37  ;;  %3643 = vmatprep.mubr.bf16.mxu0 %v6042_v9  ;;  %5613 = vmatprep.mubr.msk.bf16.mxu1 %vm2822_vm0, %v6043_v15  ;;  %v6048_v37 = vld [vmem:[%s6595_s10 + $0x398] ss:$44 sps:$4 sm:$0xff]   ;;  %v6049_v15 = vld [vmem:[%s6595_s10 + $0x3f0] ss:$44 sps:$4 sm:$0xff]  }
 0x1f2   : > { %v5204_v21 = vpop.f32.mrf.mxu1  ;;  %v5268_v24 = vpop.f32.mrf.mxu0  ;;  %v6045_v9 = vld [vmem:[%s6595_s10 + $0x498] ss:$44 sps:$4 sm:$0xff]  }
 0x1f3   : > { %v5205_v40 = vadd.f32 %v5204_v21, %v5203_v19  ;;  %v5269_v26 = vadd.f32 %v5268_v24, %v5267_v18 }
 0x1f4   : > { %v5206_v29 = vpop.f32.mrf.mxu1  ;;  %v5270_v31 = vpop.f32.mrf.mxu0 }
 0x1f5   : > { %v6998_v0 = vadd.f32 %v5205_v40, %v6925_v20  ;;  %v7001_v48 = vadd.f32 %v5269_v26, %v6873_v51 }
 0x1f6   : > { %v5207_v43 = vpop.f32.mrf.mxu1  ;;  %v5271_v44 = vpop.f32.mrf.mxu0 }
 0x1f7   : > { %v5208_v42 = vadd.f32 %v5207_v43, %v5206_v29  ;;  %v5272_v47 = vadd.f32 %v5271_v44, %v5270_v31  ;;  %v6057_v44 = vld [vmem:[%s6595_s10 + $0x54c] ss:$44 sps:$4 sm:$0xff]  }
 0x1f8   : > { %v5209_v50 = vpop.f32.mrf.mxu1  ;;  %v5273_v61 = vpop.f32.mrf.mxu0  ;;  %3644 = vmatmul.mubr.bf16.gmra.mxu0 %v6040_v35  ;;  %5614 = vmatmul.mubr.msk.bf16.gmra.mxu1 %vm2822_vm0, %v6044_v59 }
 0x1f9   : > { %v7007_v20 = vadd.f32 %v5208_v42, %v6934_v6  ;;  %v7010_v51 = vadd.f32 %v5272_v47, %v6880_v63  ;;  %3651 = vmatprep.mubr.bf16.mxu0 %v6047_v41  ;;  %5617 = vmatprep.mubr.msk.bf16.mxu1 %vm2822_vm0, %v6048_v37  ;;  %v6053_v63 = vld [vmem:[%s6595_s10 + $0x448] ss:$44 sps:$4 sm:$0xff]   ;;  %v6050_v41 = vld [vmem:[%s6595_s10 + $0x4f0] ss:$44 sps:$4 sm:$0xff]   ;;  %v6054_v37 = vld [vmem:[%s6595_s10 + $0x4a0] ss:$44 sps:$4 sm:$0xff]  }
 0x1fa   : > { %v5210_v56 = vpop.f32.mrf.mxu1  ;;  %v5274_v58 = vpop.f32.mrf.mxu0 }
 0x1fb   : > { %v5211_v38 = vadd.f32 %v5210_v56, %v5209_v50  ;;  %v5275_v60 = vadd.f32 %v5274_v58, %v5273_v61 }
 0x1fc   : > { %v5212_v4 = vpop.f32.mrf.mxu1  ;;  %v5276_v16 = vpop.f32.mrf.mxu0 }
 0x1fd   : > { %v7016_v10 = vadd.f32 %v5211_v38, %v6780_v39  ;;  %v7019_v6 = vadd.f32 %v5275_v60, %v6887_v12 }
 0x1fe   : > { %v5213_v13 = vpop.f32.mrf.mxu1  ;;  %v5277_v14 = vpop.f32.mrf.mxu0 }
 0x1ff   : > { %v5214_v19 = vadd.f32 %v5213_v13, %v5212_v4  ;;  %v5278_v18 = vadd.f32 %v5277_v14, %v5276_v16 }
 0x200   : > { %v5215_v21 = vpop.f32.mrf.mxu1  ;;  %v5279_v24 = vpop.f32.mrf.mxu0  ;;  %3652 = vmatmul.mubr.bf16.gmra.mxu0 %v6045_v9  ;;  %5618 = vmatmul.mubr.msk.bf16.gmra.mxu1 %vm2822_vm0, %v6049_v15 }
 0x201   : > { %v7025_v39 = vadd.f32 %v5214_v19, %v6788_v49  ;;  %v7028_v12 = vadd.f32 %v5278_v18, %v6894_v25  ;;  %3659 = vmatprep.mubr.bf16.mxu0 %v6052_v11  ;;  %5621 = vmatprep.mubr.msk.bf16.mxu1 %vm2822_vm0, %v6053_v63  ;;  %v6058_v25 = vld [vmem:[%s6595_s10 + $0x4f8] ss:$44 sps:$4 sm:$0xff]   ;;  %v6055_v11 = vld [vmem:[%s6595_s10 + $0x548] ss:$44 sps:$4 sm:$0xff]   ;;  %v6059_v63 = vld [vmem:[%s6595_s10 + $0x550] ss:$44 sps:$4 sm:$0xff]  }
 0x202   : > { %v5216_v40 = vpop.f32.mrf.mxu1  ;;  %v5280_v26 = vpop.f32.mrf.mxu0  ;;  %s4913_s10 = sshll.u32 (%p6224_p9), %s6118_s20, 6 }
 0x203   : > { %v5217_v29 = vadd.f32 %v5216_v40, %v5215_v21  ;;  %v5281_v31 = vadd.f32 %v5280_v26, %v5279_v24  ;;  %s4227_s11 = sadd.s32 (%p6224_p9), %s6114_s19, %s4913_s10 }
 0x204   : > { %v5218_v35 = vpop.f32.mrf.mxu1  ;;  %v5282_v59 = vpop.f32.mrf.mxu0  ;;  %s4878_s7 = sshll.u32 (%p6224_p9), %s4227_s11, 2 }
 0x205   : > { %v7034_v43 = vadd.f32 %v5217_v29, %v6792_v55  ;;  %v7037_v49 = vadd.f32 %v5281_v31, %v6901_v36  ;;  %s7427_s14 = scalar_lea.vmem (%p6224_p9), %s7515_s2, %s4878_s7 }
 0x206   : > { %v5219_v42 = vpop.f32.mrf.mxu1  ;;  %v5283_v47 = vpop.f32.mrf.mxu0 }
 0x207   : > { %v5220_v50 = vadd.f32 %v5219_v42, %v5218_v35  ;;  %v5284_v61 = vadd.f32 %v5283_v47, %v5282_v59 }
 0x208   : > { %v5221_v56 = vpop.f32.mrf.mxu1  ;;  %v5285_v58 = vpop.f32.mrf.mxu0  ;;  %3660 = vmatmul.mubr.bf16.gmra.mxu0 %v6050_v41  ;;  %5622 = vmatmul.mubr.msk.bf16.gmra.mxu1 %vm2822_vm0, %v6054_v37 }
 0x209   : > { %v7043_v38 = vadd.f32 %v5220_v50, %v6800_v1  ;;  %v7046_v55 = vadd.f32 %v5284_v61, %v6908_v52  ;;  %3667 = vmatprep.mubr.bf16.mxu0 %v6057_v44  ;;  %5625 = vmatprep.mubr.msk.bf16.mxu1 %vm2822_vm0, %v6058_v25 }
 0x20a   : > { %v5222_v36 = vpop.f32.mrf.mxu1  ;;  %v5286_v60 = vpop.f32.mrf.mxu0 }
 0x20b   : > { %v5223_v4 = vadd.f32 %v5222_v36, %v5221_v56  ;;  %v5287_v16 = vadd.f32 %v5286_v60, %v5285_v58 }
 0x20c   : > { %v5224_v9 = vpop.f32.mrf.mxu1  ;;  %v5288_v15 = vpop.f32.mrf.mxu0 }
 0x20d   : > { %v7052_v13 = vadd.f32 %v5223_v4, %v6804_v7  ;;  %v7055_v1 = vadd.f32 %v5287_v16, %v6915_v2 }
 0x20e   : > { %v5225_v14 = vpop.f32.mrf.mxu1  ;;  %v5289_v52 = vpop.f32.mrf.mxu0 }
 0x20f   : > { %v5226_v19 = vadd.f32 %v5225_v14, %v5224_v9  ;;  %v5290_v18 = vadd.f32 %v5289_v52, %v5288_v15 }
 0x210   : > { %v5227_v21 = vpop.f32.mrf.mxu1  ;;  %v5291_v24 = vpop.f32.mrf.mxu0  ;;  %3668 = vmatmul.mubr.bf16.gmra.mxu0 %v6055_v11  ;;  %5626 = vmatmul.mubr.msk.bf16.gmra.mxu1 %vm2822_vm0, %v6059_v63 }
 0x211   : > { %v7059_v40 = vadd.f32 %v5226_v19, %v6812_v17  ;;  %v7062_v26 = vadd.f32 %v5290_v18, %v6922_v54 }
 0x212   : > { %v5228_v7 = vpop.f32.mrf.mxu1  ;;  %v5292_v29 = vpop.f32.mrf.mxu0 }
 0x213   : > { %v5229_v31 = vadd.f32 %v5228_v7, %v5227_v21  ;;  %v5293_v2 = vadd.f32 %v5292_v29, %v5291_v24 }
 0x214   : > { %v5230_v35 = vpop.f32.mrf.mxu1  ;;  %v5294_v59 = vpop.f32.mrf.mxu0 }
 0x215   : > { %v7065_v41 = vadd.f32 %v5229_v31, %v6816_v23  ;;  %v7068_v37 = vadd.f32 %v5293_v2, %v6930_v30 }
 0x216   : > { %v5231_v44 = vpop.f32.mrf.mxu1  ;;  %v5295_v25 = vpop.f32.mrf.mxu0 }
 0x217   : > { %v5232_v42 = vadd.f32 %v5231_v44, %v5230_v35  ;;  %v5296_v17 = vadd.f32 %v5295_v25, %v5294_v59 }
 0x218   : > { %v5297_v47 = vpop.f32.mrf.mxu0  ;;  %v5361_v50 = vpop.f32.mrf.mxu1 }
 0x219   : > { %v7071_v54 = vadd.f32 %v5232_v42, %v6824_v33  ;;  %v7074_v61 = vadd.f32 %v5296_v17, %v6938_v45 }
 0x21a   : > { %v5298_v56 = vpop.f32.mrf.mxu0  ;;  %v5362_v58 = vpop.f32.mrf.mxu1 }
 0x21b   : > { %v5299_v36 = vadd.f32 %v5298_v56, %v5297_v47  ;;  %v5363_v23 = vadd.f32 %v5362_v58, %v5361_v50 }
 0x21c   : > { %v5300_v60 = vpop.f32.mrf.mxu0  ;;  %v5364_v4 = vpop.f32.mrf.mxu1 }
 0x21d   : > { %v7077_v30 = vadd.f32 %v5299_v36, %v6944_v62  ;;  %v7080_v16 = vadd.f32 %v5363_v23, %v6947_v22 }
 0x21e   : > { %v5301_v9 = vpop.f32.mrf.mxu0  ;;  %v5365_v15 = vpop.f32.mrf.mxu1 }
 0x21f   : > { %v5302_v11 = vadd.f32 %v5301_v9, %v5300_v60  ;;  %v5366_v33 = vadd.f32 %v5365_v15, %v5364_v4 }
 0x220   : > { %v5303_v63 = vpop.f32.mrf.mxu0  ;;  %v5367_v14 = vpop.f32.mrf.mxu1 }
 0x221   : > { %v7083_v45 = vadd.f32 %v5302_v11, %v6953_v3  ;;  %v7086_v52 = vadd.f32 %v5366_v33, %v6956_v46 }
 0x222   : > { %v5304_v19 = vpop.f32.mrf.mxu0  ;;  %v5368_v18 = vpop.f32.mrf.mxu1 }
 0x223   : > { %v5305_v21 = vadd.f32 %v5304_v19, %v5303_v63  ;;  %v5369_v62 = vadd.f32 %v5368_v18, %v5367_v14 }
 0x224   : > { %v5306_v24 = vpop.f32.mrf.mxu0  ;;  %v5370_v7 = vpop.f32.mrf.mxu1 }
 0x225   : > { %v7089_v22 = vadd.f32 %v5305_v21, %v6962_v34  ;;  %v7092_v29 = vadd.f32 %v5369_v62, %v6965_v32 }
 0x226   : > { %v5307_v31 = vpop.f32.mrf.mxu0  ;;  %v5371_v2 = vpop.f32.mrf.mxu1 }
 0x227   : > { %v5308_v35 = vadd.f32 %v5307_v31, %v5306_v24  ;;  %v5372_v3 = vadd.f32 %v5371_v2, %v5370_v7 }
 0x228   : > { %v5309_v59 = vpop.f32.mrf.mxu0  ;;  %v5373_v44 = vpop.f32.mrf.mxu1 }
 0x229   : > { %v7095_v46 = vadd.f32 %v5308_v35, %v6971_v28  ;;  %v7098_v25 = vadd.f32 %v5372_v3, %v6974_v5 }
 0x22a   : > { %v5310_v42 = vpop.f32.mrf.mxu0  ;;  %v5374_v17 = vpop.f32.mrf.mxu1 }
 0x22b   : > { %v5311_v47 = vadd.f32 %v5310_v42, %v5309_v59  ;;  %v5375_v34 = vadd.f32 %v5374_v17, %v5373_v44 }
 0x22c   : > { %v5312_v50 = vpop.f32.mrf.mxu0  ;;  %v5376_v56 = vpop.f32.mrf.mxu1 }
 0x22d   : > { %v7101_v32 = vadd.f32 %v5311_v47, %v6980_v8  ;;  %v7104_v58 = vadd.f32 %v5375_v34, %v6983_v53 }
 0x22e   : > { %v5313_v36 = vpop.f32.mrf.mxu0  ;;  %v5377_v23 = vpop.f32.mrf.mxu1 }
 0x22f   : > { %v5314_v60 = vadd.f32 %v5313_v36, %v5312_v50  ;;  %v5378_v28 = vadd.f32 %v5377_v23, %v5376_v56 }
 0x230   : > { %v5315_v4 = vpop.f32.mrf.mxu0  ;;  %v5379_v9 = vpop.f32.mrf.mxu1 }
 0x231   : > { %v7107_v5 = vadd.f32 %v5314_v60, %v6989_v57  ;;  %v7110_v15 = vadd.f32 %v5378_v28, %v6992_v27 }
 0x232   : > { %v5316_v11 = vpop.f32.mrf.mxu0  ;;  %v5380_v33 = vpop.f32.mrf.mxu1 }
 0x233   : > { %v5317_v63 = vadd.f32 %v5316_v11, %v5315_v4  ;;  %v5381_v8 = vadd.f32 %v5380_v33, %v5379_v9 }
 0x234   : > { %v5318_v14 = vpop.f32.mrf.mxu0  ;;  %v5382_v19 = vpop.f32.mrf.mxu1 }
 0x235   : > { %v7113_v53 = vadd.f32 %v5317_v63, %v6998_v0  ;;  %v7116_v18 = vadd.f32 %v5381_v8, %v7001_v48 }
 0x236   : > { %v5319_v21 = vpop.f32.mrf.mxu0  ;;  %v5383_v62 = vpop.f32.mrf.mxu1 }
 0x237   : > { %v5320_v24 = vadd.f32 %v5319_v21, %v5318_v14  ;;  %v5384_v57 = vadd.f32 %v5383_v62, %v5382_v19 }
 0x238   : > { %v5321_v7 = vpop.f32.mrf.mxu0  ;;  %v5385_v31 = vpop.f32.mrf.mxu1 }
 0x239   : > { %v7119_v27 = vadd.f32 %v5320_v24, %v7007_v20  ;;  %v7122_v2 = vadd.f32 %v5384_v57, %v7010_v51 }
 0x23a   : > { %v5322_v35 = vpop.f32.mrf.mxu0  ;;  %v5386_v3 = vpop.f32.mrf.mxu1 }
 0x23b   : > { %v5323_v59 = vadd.f32 %v5322_v35, %v5321_v7  ;;  %v5387_v0 = vadd.f32 %v5386_v3, %v5385_v31 }
 0x23c   : > { %v5324_v44 = vpop.f32.mrf.mxu0  ;;  %v5388_v42 = vpop.f32.mrf.mxu1 }
 0x23d   : > { %v7125_v48 = vadd.f32 %v5323_v59, %v7016_v10  ;;  %v7128_v17 = vadd.f32 %v5387_v0, %v7019_v6 }
 0x23e   : > { %v5325_v47 = vpop.f32.mrf.mxu0  ;;  %v5389_v34 = vpop.f32.mrf.mxu1 }
 0x23f   : > { %v5326_v50 = vadd.f32 %v5325_v47, %v5324_v44  ;;  %v5390_v20 = vadd.f32 %v5389_v34, %v5388_v42 }
 0x240   : > { %v5327_v56 = vpop.f32.mrf.mxu0  ;;  %v5391_v36 = vpop.f32.mrf.mxu1 }
 0x241   : > { %v7131_v51 = vadd.f32 %v5326_v50, %v7025_v39  ;;  %v7134_v23 = vadd.f32 %v5390_v20, %v7028_v12 }
 0x242   : > { %v5328_v60 = vpop.f32.mrf.mxu0  ;;  %v5392_v28 = vpop.f32.mrf.mxu1 }
 0x243   : > { %v5329_v4 = vadd.f32 %v5328_v60, %v5327_v56  ;;  %v5393_v10 = vadd.f32 %v5392_v28, %v5391_v36 }
 0x244   : > { %v5330_v9 = vpop.f32.mrf.mxu0  ;;  %v5394_v11 = vpop.f32.mrf.mxu1 }
 0x245   : > { %v7137_v6 = vadd.f32 %v5329_v4, %v7034_v43  ;;  %v7140_v33 = vadd.f32 %v5393_v10, %v7037_v49 }
 0x246   : > { %v5331_v63 = vpop.f32.mrf.mxu0  ;;  %v5395_v8 = vpop.f32.mrf.mxu1 }
 0x247   : > { %v5332_v14 = vadd.f32 %v5331_v63, %v5330_v9  ;;  %v5396_v39 = vadd.f32 %v5395_v8, %v5394_v11 }
 0x248   : > { %v5333_v19 = vpop.f32.mrf.mxu0  ;;  %v5397_v21 = vpop.f32.mrf.mxu1 }
 0x249   : > { %v7143_v12 = vadd.f32 %v5332_v14, %v7043_v38  ;;  %v7146_v62 = vadd.f32 %v5396_v39, %v7046_v55 }
 0x24a   : > { %v5334_v24 = vpop.f32.mrf.mxu0  ;;  %v5398_v57 = vpop.f32.mrf.mxu1 }
 0x24b   : > { %v5335_v7 = vadd.f32 %v5334_v24, %v5333_v19  ;;  %v5399_v43 = vadd.f32 %v5398_v57, %v5397_v21 }
 0x24c   : > { %v5336_v31 = vpop.f32.mrf.mxu0  ;;  %v5400_v35 = vpop.f32.mrf.mxu1 }
 0x24d   : > { %v7149_v49 = vadd.f32 %v5335_v7, %v7052_v13  ;;  %v7152_v3 = vadd.f32 %v5399_v43, %v7055_v1 }
 0x24e   : > { %v5337_v59 = vpop.f32.mrf.mxu0  ;;  %v5401_v0 = vpop.f32.mrf.mxu1 }
 0x24f   : > { %v5338_v44 = vadd.f32 %v5337_v59, %v5336_v31  ;;  %v5402_v38 = vadd.f32 %v5401_v0, %v5400_v35 }
 0x250   : > { %v5339_v42 = vpop.f32.mrf.mxu0  ;;  %v5403_v47 = vpop.f32.mrf.mxu1 }
 0x251   : > { %v7155_v55 = vadd.f32 %v5338_v44, %v7059_v40  ;;  %v7158_v34 = vadd.f32 %v5402_v38, %v7062_v26 }
 0x252   : > { %v5340_v50 = vpop.f32.mrf.mxu0  ;;  %v5404_v20 = vpop.f32.mrf.mxu1 }
 0x253   : > { %v5341_v56 = vadd.f32 %v5340_v50, %v5339_v42  ;;  %v5405_v13 = vadd.f32 %v5404_v20, %v5403_v47 }
 0x254   : > { %v5342_v36 = vpop.f32.mrf.mxu0  ;;  %v5406_v60 = vpop.f32.mrf.mxu1 }
 0x255   : > { %v7161_v1 = vadd.f32 %v5341_v56, %v7065_v41  ;;  %v7164_v28 = vadd.f32 %v5405_v13, %v7068_v37 }
 0x256   : > { %v5343_v4 = vpop.f32.mrf.mxu0  ;;  %v5407_v10 = vpop.f32.mrf.mxu1 }
 0x257   : > { %v5344_v9 = vadd.f32 %v5343_v4, %v5342_v36  ;;  %v5408_v40 = vadd.f32 %v5407_v10, %v5406_v60 }
 0x258   : > { %v5409_v11 = vpop.f32.mrf.mxu1  ;;  %v5473_v63 = vpop.f32.mrf.mxu0 }
 0x259   : > { %v7167_v26 = vadd.f32 %v5344_v9, %v7071_v54  ;;  %v7170_v8 = vadd.f32 %v5408_v40, %v7074_v61 }
 0x25a   : > { %v5410_v14 = vpop.f32.mrf.mxu1  ;;  %v5474_v39 = vpop.f32.mrf.mxu0 }
 0x25b   : > { %v5411_v19 = vadd.f32 %v5410_v14, %v5409_v11  ;;  %v5475_v41 = vadd.f32 %v5474_v39, %v5473_v63 }
 0x25c   : > { %v5412_v21 = vpop.f32.mrf.mxu1  ;;  %v7172_v24 = vpop.f32.mrf.mxu0 }
 0x25d   : > { %v7175_v37 = vadd.f32 %v5411_v19, %v7077_v30  ;;  %v7178_v57 = vadd.f32 %v5475_v41, %v7080_v16 }
 0x25e   : > { %v5413_v7 = vpop.f32.mrf.mxu1  ;;  %v7180_v43 = vpop.f32.mrf.mxu0 }
 0x25f   : > { %v5414_v54 = vadd.f32 %v5413_v7, %v5412_v21 }
 0x260   : > { %v5415_v31 = vpop.f32.mrf.mxu1  ;;  %v7182_v61 = vpop.f32.mrf.mxu0 }
 0x261   : > { %v7185_v35 = vadd.f32 %v5414_v54, %v7083_v45 }
 0x262   : > { %v5416_v59 = vpop.f32.mrf.mxu1  ;;  %v7187_v0 = vpop.f32.mrf.mxu0 }
 0x263   : > { %v5417_v44 = vadd.f32 %v5416_v59, %v5415_v31 }
 0x264   : > { %v5418_v38 = vpop.f32.mrf.mxu1  ;;  %v7189_v30 = vpop.f32.mrf.mxu0 }
 0x265   : > { %v7192_v16 = vadd.f32 %v5417_v44, %v7089_v22 }
 0x266   : > { %v5419_v42 = vpop.f32.mrf.mxu1  ;;  %v7194_v47 = vpop.f32.mrf.mxu0 }
 0x267   : > { %v5420_v50 = vadd.f32 %v5419_v42, %v5418_v38 }
 0x268   : > { %v5421_v20 = vpop.f32.mrf.mxu1  ;;  %v7196_v56 = vpop.f32.mrf.mxu0 }
 0x269   : > { %v7199_v45 = vadd.f32 %v5420_v50, %v7095_v46 }
 0x26a   : > { %v5422_v13 = vpop.f32.mrf.mxu1  ;;  %v7201_v36 = vpop.f32.mrf.mxu0 }
 0x26b   : > { %v5423_v60 = vadd.f32 %v5422_v13, %v5421_v20 }
 0x26c   : > { %v5424_v4 = vpop.f32.mrf.mxu1  ;;  %v7203_v10 = vpop.f32.mrf.mxu0 }
 0x26d   : > { %v7206_v22 = vadd.f32 %v5423_v60, %v7101_v32 }
 0x26e   : > { %v5425_v9 = vpop.f32.mrf.mxu1  ;;  %v7208_v40 = vpop.f32.mrf.mxu0 }
 0x26f   : > { %v5426_v11 = vadd.f32 %v5425_v9, %v5424_v4 }
 0x270   : > { %v5427_v63 = vpop.f32.mrf.mxu1  ;;  %v7210_v14 = vpop.f32.mrf.mxu0 }
 0x271   : > { %v7213_v46 = vadd.f32 %v5426_v11, %v7107_v5 }
 0x272   : > { %v5428_v39 = vpop.f32.mrf.mxu1  ;;  %v7215_v19 = vpop.f32.mrf.mxu0 }
 0x273   : > { %7519 = vst [vmem:[#allocation5_spill] sm:$0xff] %v7213_v46  ;;  %v5429_v41 = vadd.f32 %v5428_v39, %v5427_v63 }
 0x274   : > { %v5430_v21 = vpop.f32.mrf.mxu1  ;;  %v7217_v7 = vpop.f32.mrf.mxu0 }
 0x275   : > { %v7220_v32 = vadd.f32 %v5429_v41, %v7113_v53 }
 0x276   : > { %v5431_v54 = vpop.f32.mrf.mxu1  ;;  %v7222_v31 = vpop.f32.mrf.mxu0 }
 0x277   : > { %7520 = vst [vmem:[#allocation6_spill] sm:$0xff] %v7220_v32  ;;  %v5432_v59 = vadd.f32 %v5431_v54, %v5430_v21 }
 0x278   : > { %v5433_v44 = vpop.f32.mrf.mxu1  ;;  %v7224_v38 = vpop.f32.mrf.mxu0 }
 0x279   : > { %v7227_v5 = vadd.f32 %v5432_v59, %v7119_v27 }
 0x27a   : > { %v5434_v42 = vpop.f32.mrf.mxu1  ;;  %v7229_v50 = vpop.f32.mrf.mxu0 }
 0x27b   : > { %7521 = vst [vmem:[#allocation7_spill] sm:$0xff] %v7227_v5  ;;  %v5435_v20 = vadd.f32 %v5434_v42, %v5433_v44 }
 0x27c   : > { %v5436_v13 = vpop.f32.mrf.mxu1  ;;  %v7231_v60 = vpop.f32.mrf.mxu0 }
 0x27d   : > { %v7234_v53 = vadd.f32 %v5435_v20, %v7125_v48 }
 0x27e   : > { %v5437_v4 = vpop.f32.mrf.mxu1  ;;  %v7236_v9 = vpop.f32.mrf.mxu0 }
 0x27f   : > { %7522 = vst [vmem:[#allocation8_spill] sm:$0xff] %v7234_v53  ;;  %v5438_v11 = vadd.f32 %v5437_v4, %v5436_v13 }
 0x280   : > { %v5439_v63 = vpop.f32.mrf.mxu1  ;;  %v7238_v39 = vpop.f32.mrf.mxu0 }
 0x281   : > { %v7241_v27 = vadd.f32 %v5438_v11, %v7131_v51 }
 0x282   : > { %v5440_v41 = vpop.f32.mrf.mxu1  ;;  %v7243_v21 = vpop.f32.mrf.mxu0 }
 0x283   : > { %7523 = vst [vmem:[#allocation9_spill] sm:$0xff] %v7241_v27  ;;  %v5441_v54 = vadd.f32 %v5440_v41, %v5439_v63 }
 0x284   : > { %v5442_v59 = vpop.f32.mrf.mxu1  ;;  %v7245_v44 = vpop.f32.mrf.mxu0 }
 0x285   : > { %v7248_v48 = vadd.f32 %v5441_v54, %v7137_v6 }
 0x286   : > { %v5443_v42 = vpop.f32.mrf.mxu1  ;;  %v7250_v20 = vpop.f32.mrf.mxu0 }
 0x287   : > { %7524 = vst [vmem:[#allocation10_spill] sm:$0xff] %v7248_v48  ;;  %v5444_v13 = vadd.f32 %v5443_v42, %v5442_v59 }
 0x288   : > { %v5445_v4 = vpop.f32.mrf.mxu1  ;;  %v7252_v53 = vpop.f32.mrf.mxu0 }
 0x289   : > { %v7255_v51 = vadd.f32 %v5444_v13, %v7143_v12 }
 0x28a   : > { %v5446_v11 = vpop.f32.mrf.mxu1  ;;  %v7257_v27 = vpop.f32.mrf.mxu0 }
 0x28b   : > { %7525 = vst [vmem:[#allocation11_spill] sm:$0xff] %v7255_v51  ;;  %v5447_v63 = vadd.f32 %v5446_v11, %v5445_v4 }
 0x28c   : > { %v5448_v41 = vpop.f32.mrf.mxu1  ;;  %v7259_v46 = vpop.f32.mrf.mxu0 }
 0x28d   : > { %v7262_v6 = vadd.f32 %v5447_v63, %v7149_v49 }
 0x28e   : > { %v5449_v54 = vpop.f32.mrf.mxu1  ;;  %v7264_v48 = vpop.f32.mrf.mxu0 }
 0x28f   : > { %7526 = vst [vmem:[#allocation12_spill] sm:$0xff] %v7262_v6  ;;  %v5450_v59 = vadd.f32 %v5449_v54, %v5448_v41  ;;  %v5481_v41 = vadd.f32 %v7187_v0, %v7182_v61 }
 0x290   : > { %v5451_v42 = vpop.f32.mrf.mxu1  ;;  %v7266_v5 = vpop.f32.mrf.mxu0 }
 0x291   : > { %v7269_v12 = vadd.f32 %v5450_v59, %v7155_v55  ;;  %v5484_v55 = vadd.f32 %v7194_v47, %v7189_v30 }
 0x292   : > { %v5452_v13 = vpop.f32.mrf.mxu1  ;;  %v7271_v51 = vpop.f32.mrf.mxu0 }
 0x293   : > { %7527 = vst [vmem:[#allocation13_spill] sm:$0xff] %v7269_v12  ;;  %v5453_v4 = vadd.f32 %v5452_v13, %v5451_v42  ;;  %v5478_v42 = vadd.f32 %v7180_v43, %v7172_v24  ;;  %v3561_v61 = vadd.f32 %v5484_v55, %v7098_v25  ;;  %v5493_v43 = vadd.f32 %v7215_v19, %v7210_v14 }
 0x294   : > { %v5454_v11 = vpop.f32.mrf.mxu1  ;;  %v7273_v32 = vpop.f32.mrf.mxu0  ;;  %v5496_v25 = vadd.f32 %v7222_v31, %v7217_v7  ;;  %v5490_v14 = vadd.f32 %v7208_v40, %v7203_v10 }
 0x295   : > { %v7276_v49 = vadd.f32 %v5453_v4, %v7161_v1  ;;  %v3553_v24 = vadd.f32 %v5478_v42, %v7086_v52  ;;  %v3574_v19 = vadd.f32 %v5493_v43, %v7116_v18 }
 0x296   : > { %v5455_v63 = vpop.f32.mrf.mxu1  ;;  %v7278_v6 = vpop.f32.mrf.mxu0  ;;  %v3569_v43 = vadd.f32 %v5490_v14, %v7110_v15 }
 0x297   : > { %7528 = vst [vmem:[#allocation14_spill] sm:$0xff] %v7276_v49  ;;  %v5456_v54 = vadd.f32 %v5455_v63, %v5454_v11  ;;  %v3558_v49 = vadd.f32 %v5481_v41, %v7092_v29 }
 0x298   : > { %v7284_v59 = vpop.f32.mrf.mxu0  ;;  %v5599_v12 = vpop.f32.mrf.mxu1 }
 0x299   : > { %v7290_v1 = vadd.f32 %v5456_v54, %v7167_v26  ;;  %v3719_v47 = vadd.f32 %v5599_v12, %v3558_v49  ;;  %v5487_v26 = vadd.f32 %v7201_v36, %v7196_v56 }
 0x29a   : > { %v7292_v13 = vpop.f32.mrf.mxu0  ;;  %v3710_v4 = vpop.f32.mrf.mxu1 }
 0x29b   : > { %7529 = vst [vmem:[#allocation15_spill] sm:$0xff] %v7290_v1  ;;  %v3711_v11 = vadd.f32 %v3710_v4, %v7178_v57  ;;  %v3566_v31 = vadd.f32 %v5487_v26, %v7104_v58  ;;  %v4136_v4 = vmul.f32 %v3719_v47, %v3719_v47  ;;  %v5499_v58 = vadd.f32 %v7229_v50, %v7224_v38 }
 0x29c   : > { %v7296_v0 = vpop.f32.mrf.mxu0  ;;  %v5600_v30 = vpop.f32.mrf.mxu1  ;;  %v5505_v26 = vadd.f32 %v7243_v21, %v7238_v39  ;;  %v5502_v50 = vadd.f32 %v7236_v9, %v7231_v60 }
 0x29d   : > { %v3722_v63 = vadd.f32 %v5600_v30, %v3561_v61  ;;  %v4134_v49 = vmul.f32 %v3711_v11, %v3711_v11  ;;  %v3582_v15 = vadd.f32 %v5499_v58, %v7128_v17  ;;  %v5511_v17 = vadd.f32 %v7257_v27, %v7252_v53 }
 0x29e   : > { %v7304_v54 = vpop.f32.mrf.mxu0  ;;  %v3713_v29 = vpop.f32.mrf.mxu1 }
 0x29f   : > { %v4922_v41 = vpack.c.bf16 %v3722_v63, %v3719_v47  ;;  %v3714_v55 = vadd.f32 %v3713_v29, %v3553_v24  ;;  %v3577_v24 = vadd.f32 %v5496_v25, %v7122_v2  ;;  %v4137_v29 = vmul.f32 %v3722_v63, %v3722_v63 }
 0x2a0   : > { %v7308_v12 = vpop.f32.mrf.mxu0  ;;  %v5603_v57 = vpop.f32.mrf.mxu1 }
 0x2a1   : > { %4994 = vst [vmem:[%s7310_s15 + $0x8] sm:$0xff] %v4922_v41   ;;  %v4917_v52 = vpack.c.bf16 %v3714_v55, %v3711_v11  ;;  %v4096_v56 = vadd.f32 %v3714_v55, %v3711_v11  ;;  %v4135_v36 = vmul.f32 %v3714_v55, %v3714_v55  ;;  %v3735_v10 = vadd.f32 %v5603_v57, %v3574_v19 }
 0x2a2   : > { %v7316_v7 = vpop.f32.mrf.mxu0  ;;  %v3726_v42 = vpop.f32.mrf.mxu1 }
 0x2a3   : > { %4918 = vst [vmem:[%s7310_s15] sm:$0xff] %v4917_v52   ;;  %v4097_v61 = vadd.f32 %v4096_v56, %v3719_v47  ;;  %v4166_v30 = vadd.f32 %v4135_v36, %v4134_v49  ;;  %v3727_v41 = vadd.f32 %v3726_v42, %v3566_v31  ;;  %v5508_v47 = vadd.f32 %v7250_v20, %v7245_v44 }
 0x2a4   : > { %v7321_v11 = vpop.f32.mrf.mxu0  ;;  %v5604_v55 = vpop.f32.mrf.mxu1  ;;  %v4140_v42 = vmul.f32 %v3735_v10, %v3735_v10 }
 0x2a5   : > { %v4167_v1 = vadd.f32 %v4166_v30, %v4136_v4  ;;  %v4098_v40 = vadd.f32 %v4097_v61, %v3722_v63  ;;  %v3738_v18 = vadd.f32 %v5604_v55, %v3577_v24  ;;  %v4138_v52 = vmul.f32 %v3727_v41, %v3727_v41 }
 0x2a6   : > { %v7329_v2 = vpop.f32.mrf.mxu0  ;;  %v3729_v25 = vpop.f32.mrf.mxu1  ;;  %v3593_v31 = vadd.f32 %v5508_v47, %v7146_v62 }
 0x2a7   : > { %v4099_v49 = vadd.f32 %v4098_v40, %v3727_v41  ;;  %v4168_v57 = vadd.f32 %v4167_v1, %v4137_v29  ;;  %v4932_v63 = vpack.c.bf16 %v3738_v18, %v3735_v10  ;;  %v3730_v56 = vadd.f32 %v3729_v25, %v3569_v43 }
 0x2a8   : > { %v7332_v36 = vpop.f32.mrf.mxu0  ;;  %v5607_v38 = vpop.f32.mrf.mxu1  ;;  %v3590_v1 = vadd.f32 %v5505_v26, %v7140_v33  ;;  %v4141_v55 = vmul.f32 %v3738_v18, %v3738_v18  ;;  %v5520_v26 = vadd.f32 %v7278_v6, %v7273_v32  ;;  %v3598_v32 = vadd.f32 %v5511_v17, %v7152_v3 }
 0x2a9   : > { %v4169_v39 = vadd.f32 %v4168_v57, %v4138_v52  ;;  %4996 = vst [vmem:[%s7310_s15 + $0x18] sm:$0xff] %v4932_v63   ;;  %v4927_v21 = vpack.c.bf16 %v3730_v56, %v3727_v41  ;;  %v4100_v44 = vadd.f32 %v4099_v49, %v3730_v56  ;;  %v4139_v20 = vmul.f32 %v3730_v56, %v3730_v56 }
 0x2aa   : > { %v7337_v19 = vpop.f32.mrf.mxu0  ;;  %v3742_v14 = vpop.f32.mrf.mxu1  ;;  %v3751_v24 = vadd.f32 %v5607_v38, %v3590_v1  ;;  %v3585_v41 = vadd.f32 %v5502_v50, %v7134_v23  ;;  %v3609_v38 = vadd.f32 %v5520_v26, %v7170_v8  ;;  %v5523_v1 = vadd.f32 %v7292_v13, %v7284_v59 }
 0x2ab   : > { %4995 = vst [vmem:[%s7310_s15 + $0x10] sm:$0xff] %v4927_v21   ;;  %v4101_v4 = vadd.f32 %v4100_v44, %v3735_v10  ;;  %v4170_v61 = vadd.f32 %v4169_v39, %v4139_v20  ;;  %v3743_v30 = vadd.f32 %v3742_v14, %v3582_v15  ;;  %v5517_v10 = vadd.f32 %v7271_v51, %v7266_v5 }
 0x2ac   : > { %v7343_v60 = vpop.f32.mrf.mxu0  ;;  %v5608_v9 = vpop.f32.mrf.mxu1  ;;  %v4144_v50 = vmul.f32 %v3751_v24, %v3751_v24  ;;  %v5529_v8 = vadd.f32 %v7316_v7, %v7308_v12  ;;  %v5526_v13 = vadd.f32 %v7304_v54, %v7296_v0  ;;  %v3614_v7 = vadd.f32 %v5523_v1, %v7175_v37 }
 0x2ad   : > { %v3754_v29 = vadd.f32 %v5608_v9, %v3593_v31  ;;  %v4171_v33 = vadd.f32 %v4170_v61, %v4140_v42  ;;  %v4102_v40 = vadd.f32 %v4101_v4, %v3738_v18  ;;  %v4142_v25 = vmul.f32 %v3743_v30, %v3743_v30 }
 0x2ae   : > { %v7348_v62 = vpop.f32.mrf.mxu0  ;;  %v3745_v58 = vpop.f32.mrf.mxu1  ;;  %v5514_v18 = vadd.f32 %v7264_v48, %v7259_v46  ;;  %v3606_v56 = vadd.f32 %v5517_v10, %v7164_v28  ;;  %v5532_v61 = vadd.f32 %v7329_v2, %v7321_v11  ;;  %v3622_v2 = vadd.f32 %v5529_v8, %v7192_v16  ;;  %v7532_v8 = vld [vmem:[#allocation5_spill] sm:$0xff] }
 0x2af   : > { %v4942_v47 = vpack.c.bf16 %v3754_v29, %v3751_v24  ;;  %v3746_v43 = vadd.f32 %v3745_v58, %v3585_v41  ;;  %v4103_v23 = vadd.f32 %v4102_v40, %v3743_v30  ;;  %v4172_v49 = vadd.f32 %v4171_v33, %v4141_v55 }
 0x2b0   : > { %v7354_v53 = vpop.f32.mrf.mxu0  ;;  %v5611_v27 = vpop.f32.mrf.mxu1  ;;  %v3601_v14 = vadd.f32 %v5514_v18, %v7158_v34  ;;  %v4145_v3 = vmul.f32 %v3754_v29, %v3754_v29  ;;  %v3625_v58 = vadd.f32 %v5532_v61, %v7199_v45 }
 0x2b1   : > { %4998 = vst [vmem:[%s7310_s15 + $0x28] sm:$0xff] %v4942_v47   ;;  %v4937_v52 = vpack.c.bf16 %v3746_v43, %v3743_v30  ;;  %v4143_v57 = vmul.f32 %v3746_v43, %v3746_v43  ;;  %v4173_v63 = vadd.f32 %v4172_v49, %v4142_v25  ;;  %v4104_v5 = vadd.f32 %v4103_v23, %v3746_v43 }
 0x2b2   : > { %v5540_v51 = vpop.f32.mrf.mxu0  ;;  %v3758_v6 = vpop.f32.mrf.mxu1  ;;  %v3767_v48 = vadd.f32 %v5611_v27, %v3606_v56  ;;  %v3617_v49 = vadd.f32 %v5526_v13, %v7185_v35  ;;  %v5535_v27 = vadd.f32 %v7337_v19, %v7332_v36  ;;  %v5538_v36 = vadd.f32 %v7348_v62, %v7343_v60 }
 0x2b3   : > { %4997 = vst [vmem:[%s7310_s15 + $0x20] sm:$0xff] %v4937_v52   ;;  %v4105_v39 = vadd.f32 %v4104_v5, %v3751_v24  ;;  %v4174_v21 = vadd.f32 %v4173_v63, %v4143_v57  ;;  %v3759_v44 = vadd.f32 %v3758_v6, %v3598_v32  ;;  %v5541_v45 = vadd.f32 %v5540_v51, %v7354_v53 }
 0x2b4   : > { %v5542_v20 = vpop.f32.mrf.mxu0  ;;  %v5612_v46 = vpop.f32.mrf.mxu1  ;;  %v4148_v10 = vmul.f32 %v3767_v48, %v3767_v48  ;;  %v3630_v53 = vadd.f32 %v5535_v27, %v7206_v22  ;;  %v3633_v61 = vadd.f32 %v5538_v36, %v7532_v8  ;;  %v7535_v27 = vld [vmem:[#allocation11_spill] sm:$0xff] }
 0x2b5   : > { %v3770_v15 = vadd.f32 %v5612_v46, %v3609_v38  ;;  %v4175_v31 = vadd.f32 %v4174_v21, %v4144_v50  ;;  %v4106_v42 = vadd.f32 %v4105_v39, %v3754_v29  ;;  %v4146_v34 = vmul.f32 %v3759_v44, %v3759_v44 }
 0x2b6   : > { %v5543_v28 = vpop.f32.mrf.mxu0  ;;  %v3761_v4 = vpop.f32.mrf.mxu1 }
 0x2b7   : > { %v4952_v30 = vpack.c.bf16 %v3770_v15, %v3767_v48  ;;  %v3762_v9 = vadd.f32 %v3761_v4, %v3601_v14  ;;  %v4107_v24 = vadd.f32 %v4106_v42, %v3759_v44  ;;  %v4176_v41 = vadd.f32 %v4175_v31, %v4145_v3 }
 0x2b8   : > { %v5545_v17 = vpop.f32.mrf.mxu0  ;;  %v5615_v59 = vpop.f32.mrf.mxu1  ;;  %v4149_v37 = vmul.f32 %v3770_v15, %v3770_v15  ;;  %v5544_v63 = vadd.f32 %v5543_v28, %v5542_v20  ;;  %v7530_v20 = vld [vmem:[#allocation6_spill] sm:$0xff] }
 0x2b9   : > { %5000 = vst [vmem:[%s7310_s15 + $0x38] sm:$0xff] %v4952_v30   ;;  %v4947_v29 = vpack.c.bf16 %v3762_v9, %v3759_v44  ;;  %v4147_v55 = vmul.f32 %v3762_v9, %v3762_v9  ;;  %v4177_v33 = vadd.f32 %v4176_v41, %v4146_v34  ;;  %v4108_v40 = vadd.f32 %v4107_v24, %v3762_v9 }
 0x2ba   : > { %v5546_v12 = vpop.f32.mrf.mxu0  ;;  %v3774_v11 = vpop.f32.mrf.mxu1  ;;  %v3783_v54 = vadd.f32 %v5615_v59, %v3622_v2 }
 0x2bb   : > { %4999 = vst [vmem:[%s7310_s15 + $0x30] sm:$0xff] %v4947_v29   ;;  %v4109_v26 = vadd.f32 %v4108_v40, %v3767_v48  ;;  %v4178_v47 = vadd.f32 %v4177_v33, %v4147_v55  ;;  %v3775_v43 = vadd.f32 %v3774_v11, %v3614_v7  ;;  %v3638_v48 = vadd.f32 %v5541_v45, %v7530_v20 }
 0x2bc   : > { %v5548_v23 = vpop.f32.mrf.mxu0  ;;  %v5616_v0 = vpop.f32.mrf.mxu1  ;;  %v4152_v1 = vmul.f32 %v3783_v54, %v3783_v54  ;;  %v5547_v30 = vadd.f32 %v5546_v12, %v5545_v17 }
 0x2bd   : > { %v3786_v25 = vadd.f32 %v5616_v0, %v3625_v58  ;;  %v4179_v18 = vadd.f32 %v4178_v47, %v4148_v10  ;;  %v4110_v52 = vadd.f32 %v4109_v26, %v3770_v15  ;;  %v4150_v56 = vmul.f32 %v3775_v43, %v3775_v43  ;;  %v7531_v15 = vld [vmem:[#allocation7_spill] sm:$0xff] }
 0x2be   : > { %v5549_v16 = vpop.f32.mrf.mxu0  ;;  %v3777_v57 = vpop.f32.mrf.mxu1  ;;  %v3641_v14 = vadd.f32 %v5544_v63, %v7531_v15 }
 0x2bf   : > { %v4962_v5 = vpack.c.bf16 %v3786_v25, %v3783_v54  ;;  %v3778_v32 = vadd.f32 %v3777_v57, %v3617_v49  ;;  %v4111_v6 = vadd.f32 %v4110_v52, %v3775_v43  ;;  %v4180_v38 = vadd.f32 %v4179_v18, %v4149_v37 }
 0x2c0   : > { %v5551_v50 = vpop.f32.mrf.mxu0  ;;  %v5619_v35 = vpop.f32.mrf.mxu1  ;;  %v4153_v9 = vmul.f32 %v3786_v25, %v3786_v25  ;;  %v5550_v58 = vadd.f32 %v5549_v16, %v5548_v23 }
 0x2c1   : > { %5002 = vst [vmem:[%s7310_s15 + $0x48] sm:$0xff] %v4962_v5   ;;  %v4957_v19 = vpack.c.bf16 %v3778_v32, %v3775_v43  ;;  %v4151_v39 = vmul.f32 %v3778_v32, %v3778_v32  ;;  %v4181_v21 = vadd.f32 %v4180_v38, %v4150_v56  ;;  %v4112_v44 = vadd.f32 %v4111_v6, %v3778_v32  ;;  %v7533_v43 = vld [vmem:[#allocation8_spill] sm:$0xff]  ;;  %v7536_v32 = vld [vmem:[#allocation9_spill] sm:$0xff] }
 0x2c2   : > { %v5552_v46 = vpop.f32.mrf.mxu0  ;;  %v3790_v51 = vpop.f32.mrf.mxu1  ;;  %v3799_v62 = vadd.f32 %v5619_v35, %v3638_v48  ;;  %v3646_v0 = vadd.f32 %v5547_v30, %v7533_v43  ;;  %v3649_v6 = vadd.f32 %v5550_v58, %v7536_v32 }
 0x2c3   : > { %5001 = vst [vmem:[%s7310_s15 + $0x40] sm:$0xff] %v4957_v19   ;;  %v4113_v3 = vadd.f32 %v4112_v44, %v3783_v54  ;;  %v4182_v31 = vadd.f32 %v4181_v21, %v4151_v39  ;;  %v3791_v42 = vadd.f32 %v3790_v51, %v3630_v53  ;;  %v5553_v59 = vadd.f32 %v5552_v46, %v5551_v50 }
 0x2c4   : > { %v5554_v28 = vpop.f32.mrf.mxu0  ;;  %v5620_v60 = vpop.f32.mrf.mxu1  ;;  %v4156_v18 = vmul.f32 %v3799_v62, %v3799_v62 }
 0x2c5   : > { %v3802_v4 = vadd.f32 %v5620_v60, %v3641_v14  ;;  %v4183_v22 = vadd.f32 %v4182_v31, %v4152_v1  ;;  %v4114_v24 = vadd.f32 %v4113_v3, %v3786_v25  ;;  %v4154_v40 = vmul.f32 %v3791_v42, %v3791_v42  ;;  %v7534_v25 = vld [vmem:[#allocation10_spill] sm:$0xff] }
 0x2c6   : > { %v5555_v34 = vpop.f32.mrf.mxu0  ;;  %v3793_v41 = vpop.f32.mrf.mxu1  ;;  %v3654_v49 = vadd.f32 %v5553_v59, %v7534_v25 }
 0x2c7   : > { %v4972_v13 = vpack.c.bf16 %v3802_v4, %v3799_v62  ;;  %v5556_v29 = vadd.f32 %v5555_v34, %v5554_v28  ;;  %v3794_v55 = vadd.f32 %v3793_v41, %v3633_v61  ;;  %v4115_v33 = vadd.f32 %v4114_v24, %v3791_v42  ;;  %v7538_v24 = vld [vmem:[#allocation14_spill] sm:$0xff]  ;;  %v7539_v41 = vld [vmem:[#allocation13_spill] sm:$0xff] }
 0x2c8   : > { %v4184_v7 = vadd.f32 %v4183_v22, %v4153_v9  ;;  %v5557_v11 = vpop.f32.mrf.mxu0  ;;  %v5623_v2 = vpop.f32.mrf.mxu1  ;;  %v4157_v56 = vmul.f32 %v3802_v4, %v3802_v4 }
 0x2c9   : > { %5004 = vst [vmem:[%s7310_s15 + $0x58] sm:$0xff] %v4972_v13   ;;  %v4967_v10 = vpack.c.bf16 %v3794_v55, %v3791_v42  ;;  %v4155_v17 = vmul.f32 %v3794_v55, %v3794_v55  ;;  %v4116_v26 = vadd.f32 %v4115_v33, %v3794_v55  ;;  %v3657_v37 = vadd.f32 %v5556_v29, %v7535_v27  ;;  %v7537_v42 = vld [vmem:[#allocation12_spill] sm:$0xff] }
 0x2ca   : > { %v4185_v12 = vadd.f32 %v4184_v7, %v4154_v40  ;;  %v5558_v47 = vpop.f32.mrf.mxu0  ;;  %v3806_v54 = vpop.f32.mrf.mxu1  ;;  %v3815_v16 = vadd.f32 %v5623_v2, %v3654_v49 }
 0x2cb   : > { %5003 = vst [vmem:[%s7310_s15 + $0x50] sm:$0xff] %v4967_v10   ;;  %v4117_v52 = vadd.f32 %v4116_v26, %v3799_v62  ;;  %v3807_v45 = vadd.f32 %v3806_v54, %v3646_v0  ;;  %v5559_v50 = vadd.f32 %v5558_v47, %v5557_v11 }
 0x2cc   : > { %v4186_v57 = vadd.f32 %v4185_v12, %v4155_v17  ;;  %v5560_v63 = vpop.f32.mrf.mxu0  ;;  %v5624_v23 = vpop.f32.mrf.mxu1  ;;  %v7540_v12 = vld [vmem:[#allocation15_spill] sm:$0xff] }
 0x2cd   : > { %v3818_v5 = vadd.f32 %v5624_v23, %v3657_v37  ;;  %v4118_v35 = vadd.f32 %v4117_v52, %v3802_v4  ;;  %v4158_v46 = vmul.f32 %v3807_v45, %v3807_v45  ;;  %v3662_v28 = vadd.f32 %v5559_v50, %v7537_v42  ;;  %v4270_v42 = vld [vmem:[%s7310_s15 + $0x30] sm:$0xf] (%p6224_p9) }
 0x2ce   : > { %v4187_v38 = vadd.f32 %v4186_v57, %v4156_v18  ;;  %v5561_v36 = vpop.f32.mrf.mxu0  ;;  %v3809_v19 = vpop.f32.mrf.mxu1  ;;  %v4160_v4 = vmul.f32 %v3815_v16, %v3815_v16  ;;  %4271 = vst [vmem:[%s7427_s14 + $0x60] sm:$0xf] (%p6224_p9), %v4270_v42 }
 0x2cf   : > { %v4982_v39 = vpack.c.bf16 %v3818_v5, %v3815_v16  ;;  %v3810_v21 = vadd.f32 %v3809_v19, %v3649_v6  ;;  %v4119_v44 = vadd.f32 %v4118_v35, %v3807_v45  ;;  %v5562_v48 = vadd.f32 %v5561_v36, %v5560_v63 }
 0x2d0   : > { %v4188_v53 = vadd.f32 %v4187_v38, %v4157_v56  ;;  %v5563_v51 = vpop.f32.mrf.mxu0  ;;  %v5627_v20 = vpop.f32.mrf.mxu1  ;;  %v4161_v13 = vmul.f32 %v3818_v5, %v3818_v5 }
 0x2d1   : > { %5006 = vst [vmem:[%s7310_s15 + $0x68] sm:$0xff] %v4982_v39   ;;  %v4977_v15 = vpack.c.bf16 %v3810_v21, %v3807_v45  ;;  %v4159_v14 = vmul.f32 %v3810_v21, %v3810_v21  ;;  %v4120_v3 = vadd.f32 %v4119_v44, %v3810_v21  ;;  %v3665_v59 = vadd.f32 %v5562_v48, %v7539_v41  ;;  %v4246_v21 = vld [vmem:[%s7310_s15] sm:$0xf] (%p6224_p9)  ;;  %v4248_v44 = vld [vmem:[%s7310_s15 + $0x4] sm:$0xf] (%p6224_p9) }
 0x2d2   : > { %v4189_v1 = vadd.f32 %v4188_v53, %v4158_v46  ;;  %v5564_v31 = vpop.f32.mrf.mxu0  ;;  %v3822_v60 = vpop.f32.mrf.mxu1  ;;  %v4250_v46 = vld [vmem:[%s7310_s15 + $0x8] sm:$0xf] (%p6224_p9)  ;;  %v4252_v53 = vld [vmem:[%s7310_s15 + $0xc] sm:$0xf] (%p6224_p9)  ;;  %v4258_v48 = vld [vmem:[%s7310_s15 + $0x18] sm:$0xf] (%p6224_p9) }
 0x2d3   : > { %5005 = vst [vmem:[%s7310_s15 + $0x60] sm:$0xff] %v4977_v15   ;;  %v5565_v62 = vadd.f32 %v5564_v31, %v5563_v51  ;;  %v4121_v8 = vadd.f32 %v4120_v3, %v3815_v16  ;;  %v3823_v30 = vadd.f32 %v3822_v60, %v3662_v28  ;;  %v4254_v51 = vld [vmem:[%s7310_s15 + $0x10] sm:$0xf] (%p6224_p9)  ;;  %v4260_v15 = vld [vmem:[%s7310_s15 + $0x1c] sm:$0xf] (%p6224_p9)  ;;  %4247 = vst [vmem:[%s7427_s14] sm:$0xf] (%p6224_p9), %v4246_v21 }
 0x2d4   : > { %v4190_v61 = vadd.f32 %v4189_v1, %v4159_v14  ;;  %v5566_v9 = vpop.f32.mrf.mxu0  ;;  %v5628_v22 = vpop.f32.mrf.mxu1  ;;  %v4262_v14 = vld [vmem:[%s7310_s15 + $0x20] sm:$0xf] (%p6224_p9)  ;;  %v4264_v1 = vld [vmem:[%s7310_s15 + $0x24] sm:$0xf] (%p6224_p9)  ;;  %4249 = vst [vmem:[%s7427_s14 + $0x8] sm:$0xf] (%p6224_p9), %v4248_v44 }
 0x2d5   : > { %v3670_v34 = vadd.f32 %v5565_v62, %v7538_v24  ;;  %v4122_v55 = vadd.f32 %v4121_v8, %v3818_v5  ;;  %v4162_v10 = vmul.f32 %v3823_v30, %v3823_v30  ;;  %4251 = vst [vmem:[%s7427_s14 + $0x10] sm:$0xf] (%p6224_p9), %v4250_v46  ;;  %4253 = vst [vmem:[%s7427_s14 + $0x18] sm:$0xf] (%p6224_p9), %v4252_v53  ;;  %v4266_v3 = vld [vmem:[%s7310_s15 + $0x28] sm:$0xf] (%p6224_p9) }
 0x2d6   : > { %v4191_v29 = vadd.f32 %v4190_v61, %v4160_v4  ;;  %v5567_v33 = vpop.f32.mrf.mxu0  ;;  %v3825_v40 = vpop.f32.mrf.mxu1  ;;  %4255 = vst [vmem:[%s7427_s14 + $0x20] sm:$0xf] (%p6224_p9), %v4254_v51  ;;  %4259 = vst [vmem:[%s7427_s14 + $0x30] sm:$0xf] (%p6224_p9), %v4258_v48  ;;  %v4268_v31 = vld [vmem:[%s7310_s15 + $0x2c] sm:$0xf] (%p6224_p9) }
 0x2d7   : > { %v5568_v7 = vadd.f32 %v5567_v33, %v5566_v9  ;;  %v3826_v11 = vadd.f32 %v3825_v40, %v3665_v59  ;;  %v3831_v2 = vadd.f32 %v5627_v20, %v3670_v34  ;;  %v4123_v58 = vadd.f32 %v4122_v55, %v3823_v30  ;;  %v4256_v20 = vld [vmem:[%s7310_s15 + $0x14] sm:$0xf] (%p6224_p9)  ;;  %4261 = vst [vmem:[%s7427_s14 + $0x38] sm:$0xf] (%p6224_p9), %v4260_v15  ;;  %v4274_v60 = vld [vmem:[%s7310_s15 + $0x38] sm:$0xf] (%p6224_p9) }
 0x2d8   : > { %v4192_v17 = vadd.f32 %v4191_v29, %v4161_v13  ;;  %4257 = vst [vmem:[%s7427_s14 + $0x28] sm:$0xf] (%p6224_p9), %v4256_v20  ;;  %4263 = vst [vmem:[%s7427_s14 + $0x40] sm:$0xf] (%p6224_p9), %v4262_v14  ;;  %v4272_v28 = vld [vmem:[%s7310_s15 + $0x34] sm:$0xf] (%p6224_p9) }
 0x2d9   : > { %v3673_v26 = vadd.f32 %v5568_v7, %v7540_v12  ;;  %v4987_v47 = vpack.c.bf16 %v3826_v11, %v3823_v30  ;;  %v4163_v43 = vmul.f32 %v3826_v11, %v3826_v11  ;;  %v4124_v54 = vadd.f32 %v4123_v58, %v3826_v11  ;;  %4265 = vst [vmem:[%s7427_s14 + $0x48] sm:$0xf] (%p6224_p9), %v4264_v1  ;;  %v4276_v62 = vld [vmem:[%s7310_s15 + $0x3c] sm:$0xf] (%p6224_p9)  ;;  %v4278_v4 = vld [vmem:[%s7310_s15 + $0x40] sm:$0xf] (%p6224_p9) }
 0x2da   : > { %v4193_v0 = vadd.f32 %v4192_v17, %v4162_v10  ;;  %v4164_v49 = vmul.f32 %v3831_v2, %v3831_v2  ;;  %4267 = vst [vmem:[%s7427_s14 + $0x50] sm:$0xf] (%p6224_p9), %v4266_v3  ;;  %4269 = vst [vmem:[%s7427_s14 + $0x58] sm:$0xf] (%p6224_p9), %v4268_v31  ;;  %v4280_v8 = vld [vmem:[%s7310_s15 + $0x44] sm:$0xf] (%p6224_p9) }
 0x2db   : > { %v3834_v25 = vadd.f32 %v5628_v22, %v3673_v26  ;;  %5007 = vst [vmem:[%s7310_s15 + $0x70] sm:$0xff] %v4987_v47   ;;  %v4125_v27 = vadd.f32 %v4124_v54, %v3831_v2  ;;  %4273 = vst [vmem:[%s7427_s14 + $0x68] sm:$0xf] (%p6224_p9), %v4272_v28  ;;  %v4282_v61 = vld [vmem:[%s7310_s15 + $0x48] sm:$0xf] (%p6224_p9) }
 0x2dc   : > { %v4194_v37 = vadd.f32 %v4193_v0, %v4163_v43  ;;  %4275 = vst [vmem:[%s7427_s14 + $0x70] sm:$0xf] (%p6224_p9), %v4274_v60  ;;  %4277 = vst [vmem:[%s7427_s14 + $0x78] sm:$0xf] (%p6224_p9), %v4276_v62  ;;  %v4284_v30 = vld [vmem:[%s7310_s15 + $0x4c] sm:$0xf] (%p6224_p9) }
 0x2dd   : > { %v4992_v18 = vpack.c.bf16 %v3834_v25, %v3831_v2  ;;  %v4165_v52 = vmul.f32 %v3834_v25, %v3834_v25  ;;  %v4126_v57 = vadd.f32 %v4125_v27, %v3834_v25  ;;  %4279 = vst [vmem:[%s7427_s14 + $0x80] sm:$0xf] (%p6224_p9), %v4278_v4  ;;  %4281 = vst [vmem:[%s7427_s14 + $0x88] sm:$0xf] (%p6224_p9), %v4280_v8  ;;  %v4286_v9 = vld [vmem:[%s7310_s15 + $0x50] sm:$0xf] (%p6224_p9) }
 0x2de   : > { %v4195_v45 = vadd.f32 %v4194_v37, %v4164_v49  ;;  %4283 = vst [vmem:[%s7427_s14 + $0x90] sm:$0xf] (%p6224_p9), %v4282_v61  ;;  %v4288_v22 = vld [vmem:[%s7310_s15 + $0x54] sm:$0xf] (%p6224_p9)  ;;  %4285 = vst [vmem:[%s7427_s14 + $0x98] sm:$0xf] (%p6224_p9), %v4284_v30 }
 0x2df   : > { %5008 = vst [vmem:[%s7310_s15 + $0x78] sm:$0xff] %v4992_v18   ;;  %v4127_v63 = vrot.slane %v4126_v57, 4  ;;  %4287 = vst [vmem:[%s7427_s14 + $0xa0] sm:$0xf] (%p6224_p9), %v4286_v9  ;;  %v4290_v24 = vld [vmem:[%s7310_s15 + $0x58] sm:$0xf] (%p6224_p9) }
 0x2e0   : > { %v4196_v23 = vadd.f32 %v4195_v45, %v4165_v52  ;;  %4289 = vst [vmem:[%s7427_s14 + $0xa8] sm:$0xf] (%p6224_p9), %v4288_v22  ;;  %v4292_v34 = vld [vmem:[%s7310_s15 + $0x5c] sm:$0xf] (%p6224_p9)  ;;  %v4294_v41 = vld [vmem:[%s7310_s15 + $0x60] sm:$0xf] (%p6224_p9) }
 0x2e1   : > { %v4128_v16 = vadd.f32 %v4127_v63, %v4126_v57  ;;  %4291 = vst [vmem:[%s7427_s14 + $0xb0] sm:$0xf] (%p6224_p9), %v4290_v24  ;;  %4293 = vst [vmem:[%s7427_s14 + $0xb8] sm:$0xf] (%p6224_p9), %v4292_v34  ;;  %v4296_v59 = vld [vmem:[%s7310_s15 + $0x64] sm:$0xf] (%p6224_p9) }
 0x2e2   : > { %v4197_v5 = vrot.slane %v4196_v23, 4  ;;  %4295 = vst [vmem:[%s7427_s14 + $0xc0] sm:$0xf] (%p6224_p9), %v4294_v41  ;;  %v4298_v13 = vld [vmem:[%s7310_s15 + $0x68] sm:$0xf] (%p6224_p9) }
 0x2e3   : > { %v4129_v32 = vrot.slane %v4128_v16, 2  ;;  %v4300_v29 = vld [vmem:[%s7310_s15 + $0x6c] sm:$0xf] (%p6224_p9)  ;;  %4297 = vst [vmem:[%s7427_s14 + $0xc8] sm:$0xf] (%p6224_p9), %v4296_v59 }
 0x2e4   : > { %v4198_v6 = vadd.f32 %v4197_v5, %v4196_v23  ;;  %4299 = vst [vmem:[%s7427_s14 + $0xd0] sm:$0xf] (%p6224_p9), %v4298_v13  ;;  %4301 = vst [vmem:[%s7427_s14 + $0xd8] sm:$0xf] (%p6224_p9), %v4300_v29  ;;  %v4302_v55 = vld [vmem:[%s7310_s15 + $0x70] sm:$0xf] (%p6224_p9) }
 0x2e5   : > { %v4130_v56 = vadd.f32 %v4129_v32, %v4128_v16  ;;  %v4304_v33 = vld [vmem:[%s7310_s15 + $0x74] sm:$0xf] (%p6224_p9)  ;;  %4303 = vst [vmem:[%s7427_s14 + $0xe0] sm:$0xf] (%p6224_p9), %v4302_v55 }
 0x2e6   : > { %v4199_v38 = vrot.slane %v4198_v6, 2  ;;  %v4306_v40 = vld [vmem:[%s7310_s15 + $0x78] sm:$0xf] (%p6224_p9)  ;;  %4305 = vst [vmem:[%s7427_s14 + $0xe8] sm:$0xf] (%p6224_p9), %v4304_v33 }
 0x2e7   : > { %v4131_v50 = vrot.slane %v4130_v56, 1  ;;  %4307 = vst [vmem:[%s7427_s14 + $0xf0] sm:$0xf] (%p6224_p9), %v4306_v40  ;;  %v4308_v7 = vld [vmem:[%s7310_s15 + $0x7c] sm:$0xf] (%p6224_p9) }
 0x2e8   : > { %v4200_v35 = vadd.f32 %v4199_v38, %v4198_v6  ;;  %4309 = vst [vmem:[%s7427_s14 + $0xf8] sm:$0xf] (%p6224_p9), %v4308_v7 }
 0x2e9   : > { %v4132_v36 = vadd.f32 %v4131_v50, %v4130_v56 }
 0x2ea   : > { %v4201_v19 = vrot.slane %v4200_v35, 1  ;;  %4224 = sbr.rel (!%p6224_p9) target bundleno = 751 (0x2ef), region = 81 }
 0x2eb   : > { %4133 = vst [vmem:[%s1001_s5] sm:$0x1] %v4132_v36 }
 0x2ec   : > { %v4202_v39 = vadd.f32 %v4201_v19, %v4200_v35 }
 0x2ee   : > { %4203 = vst [vmem:[%s1008_s9] sm:$0x1] %v4202_v39 }
 0x2ef PF: > { %s15_s23 = sadd.s32 1, %s6130_s23   ;;  %s7541_s15 = smov %s6102_s16 }
 0x2f0   : > { %p12_p3 = scmp.ge.s32.totalorder %s15_s23, 6   ;;  %s7542_s16 = smov %s6229_s8 }
 0x2f1   : > { %s7543_s17 = smov %s6110_s18  ;;  %s7544_s18 = smov %s6218_s30 }
 0x2f2   : > { %s7545_s19 = smov %s6122_s21  ;;  %s7546_s20 = smov %s6126_s22 }
 0x2f3   : > { %s7547_s21 = smov %s7550_s25  ;;  %s7548_s22 = smov %s7554_s26 }
 0x2f4   :  { %14 = sbr.rel (!%p12_p3) target bundleno = 5 (0x5), region = 180 }

// kernel: inception_d_forward.34
= control target key start
LH: loop header
LB: loop body
LE: loop exit
PB: predicated region body
PF: predicated region fallthrough
CT: control target
= control target key end

     0   :  { %s4794_s15 = smov 0   ;;  %s4796_s16 = smov 0   ;;  %s5961_s0 = inlined_call_operand.vmem [shape: bf16[112,1728], index: 0, kind: input, shape index: {}]   ;;  %s5962_s1 = inlined_call_operand.vmem [shape: bf16[1728,256], index: 1, kind: input, shape index: {}]   ;;  %s5963_s2 = inlined_call_operand.vmem [shape: bf16[112,256], index: 2, kind: output, shape index: {0}]   ;;  %s5964_s3 = inlined_call_operand.vmem [shape: f32[1,1,256], index: 3, kind: output, shape index: {1}]   ;;  %s5965_s4 = inlined_call_operand.vmem [shape: f32[1,1,256], index: 4, kind: output, shape index: {2}]  }
   0x1   :  { %s4798_s17 = smov 0   ;;  %s4800_s18 = smov 0  }
   0x2   :  { %s4802_s19 = smov 0  }
   0x3 LB: > { %s30_s20 = sadd.s32 1, %s4762_s18  ;;  %s3773_s21 = sadd.s32 4294967295, %s4766_s19   ;;  %s4766_s19 = sphi %s4802_s19, %s15_s19   ;;  %s4762_s18 = sphi %s4800_s18, %s6012_s18   ;;  %s4758_s17 = sphi %s4798_s17, %s6011_s17   ;;  %s4754_s16 = sphi %s4796_s16, %s6010_s16   ;;  %s4750_s15 = sphi %s4794_s15, %s6009_s15  }
   0x4   : > { %p32_p0 = scmp.ge.s32.totalorder %s30_s20, 2  ;;  %p78_p1 = scmp.ne.s32.totalorder %s4754_s16, %s4750_s15 }
   0x5   : > { %p79_p2 = scmp.eq.s32.totalorder %s4766_s19, 0  ;;  %p110_p4 = scmp.eq.s32.totalorder %s3773_s21, 1 }
   0x6   : > { %s6014_s20 = smov (%p32_p0, %s30_s20), 0  ;;  %s71_s23 = sadd.s32 1, %s4754_s16 }
   0x7   : > { %p80_p3 = por %p79_p2, %p78_p1  ;;  %s67_s22 = ssub.s32 %s4762_s18, %s6014_s20 }
   0x8   : > { %p69_p5 = scmp.eq.s32.totalorder %s67_s22, 0  ;;  %p4829_p6 = por %p110_p4, %p78_p1 }
   0x9   : > { %p3777_p7 = scmp.ge.s32.totalorder %s4766_s19, 2 }
   0xa   : > { %s4834_s25 = scalar_select %p69_p5, %s4754_s16, %s71_s23  }
   0xb   : > { %203 = sbr.rel (%p3777_p7) target bundleno = 164 (0xa4), region = 20 }
  0x10   : > { %206 = sbr.rel (!%p80_p3) target bundleno = 164 (0xa4), region = 24  ;;  %s208_s26 = sand.u32 (%p80_p3), 1, %s4754_s16  }
  0x11   : > { %s3778_s27 = sshll.u32 (%p80_p3), %s4762_s18, 2  ;;  %s4429_s28 = smul.u32 (%p80_p3), 864, %s208_s26 }
  0x12   : > { %s4842_s5 = scalar_lea.vmem (%p80_p3), %s5962_s1, %s3778_s27 }
  0x13   : > { %v232_v0 = vld [vmem:[%s4842_s5] sm:$0xf] (%p80_p3)  ;;  %v234_v1 = vld [vmem:[%s4842_s5 + $0x8] sm:$0xf] (%p80_p3)  ;;  %v236_v2 = vld [vmem:[%s4842_s5 + $0x10] sm:$0xf] (%p80_p3) }
  0x14   : > { %v238_v3 = vld [vmem:[%s4842_s5 + $0x18] sm:$0xf] (%p80_p3)  ;;  %v240_v4 = vld [vmem:[%s4842_s5 + $0x20] sm:$0xf] (%p80_p3)  ;;  %s4849_s6 = scalar_lea.vmem (%p80_p3), [#allocation3], %s4429_s28 }
  0x15   : > { %233 = vst [vmem:[%s4849_s6] sm:$0xf] %v232_v0  ;;  %235 = vst [vmem:[%s4849_s6 + $0x4] sm:$0xf] %v234_v1  ;;  %v242_v5 = vld [vmem:[%s4842_s5 + $0x28] sm:$0xf] }
  0x16   : > { %237 = vst [vmem:[%s4849_s6 + $0x8] sm:$0xf] %v236_v2  ;;  %239 = vst [vmem:[%s4849_s6 + $0xc] sm:$0xf] %v238_v3  ;;  %v244_v6 = vld [vmem:[%s4842_s5 + $0x30] sm:$0xf] }
  0x17   : > { %241 = vst [vmem:[%s4849_s6 + $0x10] sm:$0xf] %v240_v4  ;;  %v246_v7 = vld [vmem:[%s4842_s5 + $0x38] sm:$0xf]  ;;  %243 = vst [vmem:[%s4849_s6 + $0x14] sm:$0xf] %v242_v5 }
  0x18   : > { %245 = vst [vmem:[%s4849_s6 + $0x18] sm:$0xf] %v244_v6  ;;  %247 = vst [vmem:[%s4849_s6 + $0x1c] sm:$0xf] %v246_v7  ;;  %v248_v8 = vld [vmem:[%s4842_s5 + $0x40] sm:$0xf] }
  0x19   : > { %v250_v9 = vld [vmem:[%s4842_s5 + $0x48] sm:$0xf]  ;;  %v252_v10 = vld [vmem:[%s4842_s5 + $0x50] sm:$0xf]  ;;  %249 = vst [vmem:[%s4849_s6 + $0x20] sm:$0xf] %v248_v8 }
  0x1a   : > { %251 = vst [vmem:[%s4849_s6 + $0x24] sm:$0xf] %v250_v9  ;;  %253 = vst [vmem:[%s4849_s6 + $0x28] sm:$0xf] %v252_v10  ;;  %v254_v11 = vld [vmem:[%s4842_s5 + $0x58] sm:$0xf] }
  0x1b   : > { %v256_v12 = vld [vmem:[%s4842_s5 + $0x60] sm:$0xf]  ;;  %v258_v13 = vld [vmem:[%s4842_s5 + $0x68] sm:$0xf]  ;;  %255 = vst [vmem:[%s4849_s6 + $0x2c] sm:$0xf] %v254_v11 }
  0x1c   : > { %257 = vst [vmem:[%s4849_s6 + $0x30] sm:$0xf] %v256_v12  ;;  %259 = vst [vmem:[%s4849_s6 + $0x34] sm:$0xf] %v258_v13  ;;  %v260_v14 = vld [vmem:[%s4842_s5 + $0x70] sm:$0xf] }
  0x1d   : > { %v262_v15 = vld [vmem:[%s4842_s5 + $0x78] sm:$0xf]  ;;  %v264_v16 = vld [vmem:[%s4842_s5 + $0x80] sm:$0xf]  ;;  %261 = vst [vmem:[%s4849_s6 + $0x38] sm:$0xf] %v260_v14 }
  0x1e   : > { %263 = vst [vmem:[%s4849_s6 + $0x3c] sm:$0xf] %v262_v15  ;;  %265 = vst [vmem:[%s4849_s6 + $0x40] sm:$0xf] %v264_v16  ;;  %v266_v17 = vld [vmem:[%s4842_s5 + $0x88] sm:$0xf] }
  0x1f   : > { %v268_v18 = vld [vmem:[%s4842_s5 + $0x90] sm:$0xf]  ;;  %v270_v19 = vld [vmem:[%s4842_s5 + $0x98] sm:$0xf]  ;;  %267 = vst [vmem:[%s4849_s6 + $0x44] sm:$0xf] %v266_v17 }
  0x20   : > { %269 = vst [vmem:[%s4849_s6 + $0x48] sm:$0xf] %v268_v18  ;;  %271 = vst [vmem:[%s4849_s6 + $0x4c] sm:$0xf] %v270_v19  ;;  %v272_v20 = vld [vmem:[%s4842_s5 + $0xa0] sm:$0xf] }
  0x21   : > { %v274_v21 = vld [vmem:[%s4842_s5 + $0xa8] sm:$0xf]  ;;  %v276_v22 = vld [vmem:[%s4842_s5 + $0xb0] sm:$0xf]  ;;  %273 = vst [vmem:[%s4849_s6 + $0x50] sm:$0xf] %v272_v20 }
  0x22   : > { %275 = vst [vmem:[%s4849_s6 + $0x54] sm:$0xf] %v274_v21  ;;  %277 = vst [vmem:[%s4849_s6 + $0x58] sm:$0xf] %v276_v22  ;;  %v278_v23 = vld [vmem:[%s4842_s5 + $0xb8] sm:$0xf] }
  0x23   : > { %v280_v24 = vld [vmem:[%s4842_s5 + $0xc0] sm:$0xf]  ;;  %v282_v25 = vld [vmem:[%s4842_s5 + $0xc8] sm:$0xf]  ;;  %279 = vst [vmem:[%s4849_s6 + $0x5c] sm:$0xf] %v278_v23 }
  0x24   : > { %281 = vst [vmem:[%s4849_s6 + $0x60] sm:$0xf] %v280_v24  ;;  %283 = vst [vmem:[%s4849_s6 + $0x64] sm:$0xf] %v282_v25  ;;  %v284_v26 = vld [vmem:[%s4842_s5 + $0xd0] sm:$0xf] }
  0x25   : > { %v286_v27 = vld [vmem:[%s4842_s5 + $0xd8] sm:$0xf]  ;;  %v288_v28 = vld [vmem:[%s4842_s5 + $0xe0] sm:$0xf]  ;;  %285 = vst [vmem:[%s4849_s6 + $0x68] sm:$0xf] %v284_v26 }
  0x26   : > { %287 = vst [vmem:[%s4849_s6 + $0x6c] sm:$0xf] %v286_v27  ;;  %289 = vst [vmem:[%s4849_s6 + $0x70] sm:$0xf] %v288_v28  ;;  %v290_v29 = vld [vmem:[%s4842_s5 + $0xe8] sm:$0xf] }
  0x27   : > { %v292_v30 = vld [vmem:[%s4842_s5 + $0xf0] sm:$0xf]  ;;  %v294_v31 = vld [vmem:[%s4842_s5 + $0xf8] sm:$0xf]  ;;  %291 = vst [vmem:[%s4849_s6 + $0x74] sm:$0xf] %v290_v29 }
  0x28   : > { %293 = vst [vmem:[%s4849_s6 + $0x78] sm:$0xf] %v292_v30  ;;  %295 = vst [vmem:[%s4849_s6 + $0x7c] sm:$0xf] %v294_v31  ;;  %v296_v32 = vld [vmem:[%s4842_s5 + $0x100] sm:$0xf] }
  0x29   : > { %v298_v33 = vld [vmem:[%s4842_s5 + $0x108] sm:$0xf]  ;;  %v300_v34 = vld [vmem:[%s4842_s5 + $0x110] sm:$0xf]  ;;  %297 = vst [vmem:[%s4849_s6 + $0x80] sm:$0xf] %v296_v32 }
  0x2a   : > { %299 = vst [vmem:[%s4849_s6 + $0x84] sm:$0xf] %v298_v33  ;;  %301 = vst [vmem:[%s4849_s6 + $0x88] sm:$0xf] %v300_v34  ;;  %v302_v35 = vld [vmem:[%s4842_s5 + $0x118] sm:$0xf] }
  0x2b   : > { %v304_v36 = vld [vmem:[%s4842_s5 + $0x120] sm:$0xf]  ;;  %v306_v37 = vld [vmem:[%s4842_s5 + $0x128] sm:$0xf]  ;;  %303 = vst [vmem:[%s4849_s6 + $0x8c] sm:$0xf] %v302_v35 }
  0x2c   : > { %305 = vst [vmem:[%s4849_s6 + $0x90] sm:$0xf] %v304_v36  ;;  %307 = vst [vmem:[%s4849_s6 + $0x94] sm:$0xf] %v306_v37  ;;  %v308_v38 = vld [vmem:[%s4842_s5 + $0x130] sm:$0xf] }
  0x2d   : > { %v310_v39 = vld [vmem:[%s4842_s5 + $0x138] sm:$0xf]  ;;  %v312_v40 = vld [vmem:[%s4842_s5 + $0x140] sm:$0xf]  ;;  %309 = vst [vmem:[%s4849_s6 + $0x98] sm:$0xf] %v308_v38 }
  0x2e   : > { %311 = vst [vmem:[%s4849_s6 + $0x9c] sm:$0xf] %v310_v39  ;;  %313 = vst [vmem:[%s4849_s6 + $0xa0] sm:$0xf] %v312_v40  ;;  %v314_v41 = vld [vmem:[%s4842_s5 + $0x148] sm:$0xf] }
  0x2f   : > { %v316_v42 = vld [vmem:[%s4842_s5 + $0x150] sm:$0xf]  ;;  %v318_v43 = vld [vmem:[%s4842_s5 + $0x158] sm:$0xf]  ;;  %315 = vst [vmem:[%s4849_s6 + $0xa4] sm:$0xf] %v314_v41 }
  0x30   : > { %317 = vst [vmem:[%s4849_s6 + $0xa8] sm:$0xf] %v316_v42  ;;  %319 = vst [vmem:[%s4849_s6 + $0xac] sm:$0xf] %v318_v43  ;;  %v320_v44 = vld [vmem:[%s4842_s5 + $0x160] sm:$0xf] }
  0x31   : > { %v322_v45 = vld [vmem:[%s4842_s5 + $0x168] sm:$0xf]  ;;  %v324_v46 = vld [vmem:[%s4842_s5 + $0x170] sm:$0xf]  ;;  %321 = vst [vmem:[%s4849_s6 + $0xb0] sm:$0xf] %v320_v44 }
  0x32   : > { %323 = vst [vmem:[%s4849_s6 + $0xb4] sm:$0xf] %v322_v45  ;;  %325 = vst [vmem:[%s4849_s6 + $0xb8] sm:$0xf] %v324_v46  ;;  %v326_v47 = vld [vmem:[%s4842_s5 + $0x178] sm:$0xf] }
  0x33   : > { %v328_v48 = vld [vmem:[%s4842_s5 + $0x180] sm:$0xf]  ;;  %v330_v49 = vld [vmem:[%s4842_s5 + $0x188] sm:$0xf]  ;;  %327 = vst [vmem:[%s4849_s6 + $0xbc] sm:$0xf] %v326_v47 }
  0x34   : > { %329 = vst [vmem:[%s4849_s6 + $0xc0] sm:$0xf] %v328_v48  ;;  %331 = vst [vmem:[%s4849_s6 + $0xc4] sm:$0xf] %v330_v49  ;;  %v332_v50 = vld [vmem:[%s4842_s5 + $0x190] sm:$0xf] }
  0x35   : > { %v334_v51 = vld [vmem:[%s4842_s5 + $0x198] sm:$0xf]  ;;  %v336_v52 = vld [vmem:[%s4842_s5 + $0x1a0] sm:$0xf]  ;;  %333 = vst [vmem:[%s4849_s6 + $0xc8] sm:$0xf] %v332_v50 }
  0x36   : > { %335 = vst [vmem:[%s4849_s6 + $0xcc] sm:$0xf] %v334_v51  ;;  %337 = vst [vmem:[%s4849_s6 + $0xd0] sm:$0xf] %v336_v52  ;;  %v338_v53 = vld [vmem:[%s4842_s5 + $0x1a8] sm:$0xf] }
  0x37   : > { %v340_v54 = vld [vmem:[%s4842_s5 + $0x1b0] sm:$0xf]  ;;  %v342_v55 = vld [vmem:[%s4842_s5 + $0x1b8] sm:$0xf]  ;;  %339 = vst [vmem:[%s4849_s6 + $0xd4] sm:$0xf] %v338_v53 }
  0x38   : > { %341 = vst [vmem:[%s4849_s6 + $0xd8] sm:$0xf] %v340_v54  ;;  %343 = vst [vmem:[%s4849_s6 + $0xdc] sm:$0xf] %v342_v55  ;;  %v344_v56 = vld [vmem:[%s4842_s5 + $0x1c0] sm:$0xf] }
  0x39   : > { %v346_v57 = vld [vmem:[%s4842_s5 + $0x1c8] sm:$0xf]  ;;  %v348_v58 = vld [vmem:[%s4842_s5 + $0x1d0] sm:$0xf]  ;;  %345 = vst [vmem:[%s4849_s6 + $0xe0] sm:$0xf] %v344_v56 }
  0x3a   : > { %347 = vst [vmem:[%s4849_s6 + $0xe4] sm:$0xf] %v346_v57  ;;  %349 = vst [vmem:[%s4849_s6 + $0xe8] sm:$0xf] %v348_v58  ;;  %v350_v59 = vld [vmem:[%s4842_s5 + $0x1d8] sm:$0xf] }
  0x3b   : > { %v352_v60 = vld [vmem:[%s4842_s5 + $0x1e0] sm:$0xf]  ;;  %v354_v61 = vld [vmem:[%s4842_s5 + $0x1e8] sm:$0xf]  ;;  %351 = vst [vmem:[%s4849_s6 + $0xec] sm:$0xf] %v350_v59 }
  0x3c   : > { %353 = vst [vmem:[%s4849_s6 + $0xf0] sm:$0xf] %v352_v60  ;;  %355 = vst [vmem:[%s4849_s6 + $0xf4] sm:$0xf] %v354_v61  ;;  %v356_v62 = vld [vmem:[%s4842_s5 + $0x1f0] sm:$0xf] }
  0x3d   : > { %v358_v63 = vld [vmem:[%s4842_s5 + $0x1f8] sm:$0xf]  ;;  %v360_v0 = vld [vmem:[%s4842_s5 + $0x200] sm:$0xf]  ;;  %357 = vst [vmem:[%s4849_s6 + $0xf8] sm:$0xf] %v356_v62 }
  0x3e   : > { %359 = vst [vmem:[%s4849_s6 + $0xfc] sm:$0xf] %v358_v63  ;;  %361 = vst [vmem:[%s4849_s6 + $0x100] sm:$0xf] %v360_v0  ;;  %v362_v1 = vld [vmem:[%s4842_s5 + $0x208] sm:$0xf] }
  0x3f   : > { %v364_v2 = vld [vmem:[%s4842_s5 + $0x210] sm:$0xf]  ;;  %v366_v3 = vld [vmem:[%s4842_s5 + $0x218] sm:$0xf]  ;;  %363 = vst [vmem:[%s4849_s6 + $0x104] sm:$0xf] %v362_v1 }
  0x40   : > { %365 = vst [vmem:[%s4849_s6 + $0x108] sm:$0xf] %v364_v2  ;;  %367 = vst [vmem:[%s4849_s6 + $0x10c] sm:$0xf] %v366_v3  ;;  %v368_v4 = vld [vmem:[%s4842_s5 + $0x220] sm:$0xf] }
  0x41   : > { %v370_v5 = vld [vmem:[%s4842_s5 + $0x228] sm:$0xf]  ;;  %v372_v6 = vld [vmem:[%s4842_s5 + $0x230] sm:$0xf]  ;;  %369 = vst [vmem:[%s4849_s6 + $0x110] sm:$0xf] %v368_v4 }
  0x42   : > { %371 = vst [vmem:[%s4849_s6 + $0x114] sm:$0xf] %v370_v5  ;;  %373 = vst [vmem:[%s4849_s6 + $0x118] sm:$0xf] %v372_v6  ;;  %v374_v7 = vld [vmem:[%s4842_s5 + $0x238] sm:$0xf] }
  0x43   : > { %v376_v8 = vld [vmem:[%s4842_s5 + $0x240] sm:$0xf]  ;;  %v378_v9 = vld [vmem:[%s4842_s5 + $0x248] sm:$0xf]  ;;  %375 = vst [vmem:[%s4849_s6 + $0x11c] sm:$0xf] %v374_v7 }
  0x44   : > { %377 = vst [vmem:[%s4849_s6 + $0x120] sm:$0xf] %v376_v8  ;;  %379 = vst [vmem:[%s4849_s6 + $0x124] sm:$0xf] %v378_v9  ;;  %v380_v10 = vld [vmem:[%s4842_s5 + $0x250] sm:$0xf] }
  0x45   : > { %v382_v11 = vld [vmem:[%s4842_s5 + $0x258] sm:$0xf]  ;;  %v384_v12 = vld [vmem:[%s4842_s5 + $0x260] sm:$0xf]  ;;  %381 = vst [vmem:[%s4849_s6 + $0x128] sm:$0xf] %v380_v10 }
  0x46   : > { %383 = vst [vmem:[%s4849_s6 + $0x12c] sm:$0xf] %v382_v11  ;;  %385 = vst [vmem:[%s4849_s6 + $0x130] sm:$0xf] %v384_v12  ;;  %v386_v13 = vld [vmem:[%s4842_s5 + $0x268] sm:$0xf] }
  0x47   : > { %v388_v14 = vld [vmem:[%s4842_s5 + $0x270] sm:$0xf]  ;;  %v390_v15 = vld [vmem:[%s4842_s5 + $0x278] sm:$0xf]  ;;  %387 = vst [vmem:[%s4849_s6 + $0x134] sm:$0xf] %v386_v13 }
  0x48   : > { %389 = vst [vmem:[%s4849_s6 + $0x138] sm:$0xf] %v388_v14  ;;  %391 = vst [vmem:[%s4849_s6 + $0x13c] sm:$0xf] %v390_v15  ;;  %v392_v16 = vld [vmem:[%s4842_s5 + $0x280] sm:$0xf] }
  0x49   : > { %v394_v17 = vld [vmem:[%s4842_s5 + $0x288] sm:$0xf]  ;;  %v396_v18 = vld [vmem:[%s4842_s5 + $0x290] sm:$0xf]  ;;  %393 = vst [vmem:[%s4849_s6 + $0x140] sm:$0xf] %v392_v16 }
  0x4a   : > { %395 = vst [vmem:[%s4849_s6 + $0x144] sm:$0xf] %v394_v17  ;;  %397 = vst [vmem:[%s4849_s6 + $0x148] sm:$0xf] %v396_v18  ;;  %v398_v19 = vld [vmem:[%s4842_s5 + $0x298] sm:$0xf] }
  0x4b   : > { %v400_v20 = vld [vmem:[%s4842_s5 + $0x2a0] sm:$0xf]  ;;  %v402_v21 = vld [vmem:[%s4842_s5 + $0x2a8] sm:$0xf]  ;;  %399 = vst [vmem:[%s4849_s6 + $0x14c] sm:$0xf] %v398_v19 }
  0x4c   : > { %401 = vst [vmem:[%s4849_s6 + $0x150] sm:$0xf] %v400_v20  ;;  %403 = vst [vmem:[%s4849_s6 + $0x154] sm:$0xf] %v402_v21  ;;  %v404_v22 = vld [vmem:[%s4842_s5 + $0x2b0] sm:$0xf] }
  0x4d   : > { %v406_v23 = vld [vmem:[%s4842_s5 + $0x2b8] sm:$0xf]  ;;  %v408_v24 = vld [vmem:[%s4842_s5 + $0x2c0] sm:$0xf]  ;;  %405 = vst [vmem:[%s4849_s6 + $0x158] sm:$0xf] %v404_v22 }
  0x4e   : > { %407 = vst [vmem:[%s4849_s6 + $0x15c] sm:$0xf] %v406_v23  ;;  %409 = vst [vmem:[%s4849_s6 + $0x160] sm:$0xf] %v408_v24  ;;  %v410_v25 = vld [vmem:[%s4842_s5 + $0x2c8] sm:$0xf] }
  0x4f   : > { %v412_v26 = vld [vmem:[%s4842_s5 + $0x2d0] sm:$0xf]  ;;  %v414_v27 = vld [vmem:[%s4842_s5 + $0x2d8] sm:$0xf]  ;;  %411 = vst [vmem:[%s4849_s6 + $0x164] sm:$0xf] %v410_v25 }
  0x50   : > { %413 = vst [vmem:[%s4849_s6 + $0x168] sm:$0xf] %v412_v26  ;;  %415 = vst [vmem:[%s4849_s6 + $0x16c] sm:$0xf] %v414_v27  ;;  %v416_v28 = vld [vmem:[%s4842_s5 + $0x2e0] sm:$0xf] }
  0x51   : > { %v418_v29 = vld [vmem:[%s4842_s5 + $0x2e8] sm:$0xf]  ;;  %v420_v30 = vld [vmem:[%s4842_s5 + $0x2f0] sm:$0xf]  ;;  %417 = vst [vmem:[%s4849_s6 + $0x170] sm:$0xf] %v416_v28 }
  0x52   : > { %419 = vst [vmem:[%s4849_s6 + $0x174] sm:$0xf] %v418_v29  ;;  %421 = vst [vmem:[%s4849_s6 + $0x178] sm:$0xf] %v420_v30  ;;  %v422_v31 = vld [vmem:[%s4842_s5 + $0x2f8] sm:$0xf] }
  0x53   : > { %v424_v32 = vld [vmem:[%s4842_s5 + $0x300] sm:$0xf]  ;;  %v426_v33 = vld [vmem:[%s4842_s5 + $0x308] sm:$0xf]  ;;  %423 = vst [vmem:[%s4849_s6 + $0x17c] sm:$0xf] %v422_v31 }
  0x54   : > { %425 = vst [vmem:[%s4849_s6 + $0x180] sm:$0xf] %v424_v32  ;;  %427 = vst [vmem:[%s4849_s6 + $0x184] sm:$0xf] %v426_v33  ;;  %v428_v34 = vld [vmem:[%s4842_s5 + $0x310] sm:$0xf] }
  0x55   : > { %v430_v35 = vld [vmem:[%s4842_s5 + $0x318] sm:$0xf]  ;;  %v432_v36 = vld [vmem:[%s4842_s5 + $0x320] sm:$0xf]  ;;  %429 = vst [vmem:[%s4849_s6 + $0x188] sm:$0xf] %v428_v34 }
  0x56   : > { %431 = vst [vmem:[%s4849_s6 + $0x18c] sm:$0xf] %v430_v35  ;;  %433 = vst [vmem:[%s4849_s6 + $0x190] sm:$0xf] %v432_v36  ;;  %v434_v37 = vld [vmem:[%s4842_s5 + $0x328] sm:$0xf] }
  0x57   : > { %v436_v38 = vld [vmem:[%s4842_s5 + $0x330] sm:$0xf]  ;;  %v438_v39 = vld [vmem:[%s4842_s5 + $0x338] sm:$0xf]  ;;  %435 = vst [vmem:[%s4849_s6 + $0x194] sm:$0xf] %v434_v37 }
  0x58   : > { %437 = vst [vmem:[%s4849_s6 + $0x198] sm:$0xf] %v436_v38  ;;  %439 = vst [vmem:[%s4849_s6 + $0x19c] sm:$0xf] %v438_v39  ;;  %v440_v40 = vld [vmem:[%s4842_s5 + $0x340] sm:$0xf] }
  0x59   : > { %v442_v41 = vld [vmem:[%s4842_s5 + $0x348] sm:$0xf]  ;;  %v444_v42 = vld [vmem:[%s4842_s5 + $0x350] sm:$0xf]  ;;  %441 = vst [vmem:[%s4849_s6 + $0x1a0] sm:$0xf] %v440_v40 }
  0x5a   : > { %443 = vst [vmem:[%s4849_s6 + $0x1a4] sm:$0xf] %v442_v41  ;;  %445 = vst [vmem:[%s4849_s6 + $0x1a8] sm:$0xf] %v444_v42  ;;  %v446_v43 = vld [vmem:[%s4842_s5 + $0x358] sm:$0xf] }
  0x5b   : > { %v448_v44 = vld [vmem:[%s4842_s5 + $0x360] sm:$0xf]  ;;  %v450_v45 = vld [vmem:[%s4842_s5 + $0x368] sm:$0xf]  ;;  %447 = vst [vmem:[%s4849_s6 + $0x1ac] sm:$0xf] %v446_v43 }
  0x5c   : > { %449 = vst [vmem:[%s4849_s6 + $0x1b0] sm:$0xf] %v448_v44  ;;  %451 = vst [vmem:[%s4849_s6 + $0x1b4] sm:$0xf] %v450_v45  ;;  %v452_v46 = vld [vmem:[%s4842_s5 + $0x370] sm:$0xf] }
  0x5d   : > { %v454_v47 = vld [vmem:[%s4842_s5 + $0x378] sm:$0xf]  ;;  %v456_v48 = vld [vmem:[%s4842_s5 + $0x380] sm:$0xf]  ;;  %453 = vst [vmem:[%s4849_s6 + $0x1b8] sm:$0xf] %v452_v46 }
  0x5e   : > { %455 = vst [vmem:[%s4849_s6 + $0x1bc] sm:$0xf] %v454_v47  ;;  %457 = vst [vmem:[%s4849_s6 + $0x1c0] sm:$0xf] %v456_v48  ;;  %v458_v49 = vld [vmem:[%s4842_s5 + $0x388] sm:$0xf] }
  0x5f   : > { %v460_v50 = vld [vmem:[%s4842_s5 + $0x390] sm:$0xf]  ;;  %v462_v51 = vld [vmem:[%s4842_s5 + $0x398] sm:$0xf]  ;;  %459 = vst [vmem:[%s4849_s6 + $0x1c4] sm:$0xf] %v458_v49 }
  0x60   : > { %461 = vst [vmem:[%s4849_s6 + $0x1c8] sm:$0xf] %v460_v50  ;;  %463 = vst [vmem:[%s4849_s6 + $0x1cc] sm:$0xf] %v462_v51  ;;  %v464_v52 = vld [vmem:[%s4842_s5 + $0x3a0] sm:$0xf] }
  0x61   : > { %v466_v53 = vld [vmem:[%s4842_s5 + $0x3a8] sm:$0xf]  ;;  %v468_v54 = vld [vmem:[%s4842_s5 + $0x3b0] sm:$0xf]  ;;  %465 = vst [vmem:[%s4849_s6 + $0x1d0] sm:$0xf] %v464_v52 }
  0x62   : > { %467 = vst [vmem:[%s4849_s6 + $0x1d4] sm:$0xf] %v466_v53  ;;  %469 = vst [vmem:[%s4849_s6 + $0x1d8] sm:$0xf] %v468_v54  ;;  %v470_v55 = vld [vmem:[%s4842_s5 + $0x3b8] sm:$0xf] }
  0x63   : > { %v472_v56 = vld [vmem:[%s4842_s5 + $0x3c0] sm:$0xf]  ;;  %v474_v57 = vld [vmem:[%s4842_s5 + $0x3c8] sm:$0xf]  ;;  %471 = vst [vmem:[%s4849_s6 + $0x1dc] sm:$0xf] %v470_v55 }
  0x64   : > { %473 = vst [vmem:[%s4849_s6 + $0x1e0] sm:$0xf] %v472_v56  ;;  %475 = vst [vmem:[%s4849_s6 + $0x1e4] sm:$0xf] %v474_v57  ;;  %v476_v58 = vld [vmem:[%s4842_s5 + $0x3d0] sm:$0xf] }
  0x65   : > { %v478_v59 = vld [vmem:[%s4842_s5 + $0x3d8] sm:$0xf]  ;;  %v480_v60 = vld [vmem:[%s4842_s5 + $0x3e0] sm:$0xf]  ;;  %477 = vst [vmem:[%s4849_s6 + $0x1e8] sm:$0xf] %v476_v58 }
  0x66   : > { %479 = vst [vmem:[%s4849_s6 + $0x1ec] sm:$0xf] %v478_v59  ;;  %481 = vst [vmem:[%s4849_s6 + $0x1f0] sm:$0xf] %v480_v60  ;;  %v482_v61 = vld [vmem:[%s4842_s5 + $0x3e8] sm:$0xf] }
  0x67   : > { %v484_v62 = vld [vmem:[%s4842_s5 + $0x3f0] sm:$0xf]  ;;  %v486_v63 = vld [vmem:[%s4842_s5 + $0x3f8] sm:$0xf]  ;;  %483 = vst [vmem:[%s4849_s6 + $0x1f4] sm:$0xf] %v482_v61 }
  0x68   : > { %485 = vst [vmem:[%s4849_s6 + $0x1f8] sm:$0xf] %v484_v62  ;;  %487 = vst [vmem:[%s4849_s6 + $0x1fc] sm:$0xf] %v486_v63  ;;  %v488_v0 = vld [vmem:[%s4842_s5 + $0x400] sm:$0xf] }
  0x69   : > { %v490_v1 = vld [vmem:[%s4842_s5 + $0x408] sm:$0xf]  ;;  %v492_v2 = vld [vmem:[%s4842_s5 + $0x410] sm:$0xf]  ;;  %489 = vst [vmem:[%s4849_s6 + $0x200] sm:$0xf] %v488_v0 }
  0x6a   : > { %491 = vst [vmem:[%s4849_s6 + $0x204] sm:$0xf] %v490_v1  ;;  %493 = vst [vmem:[%s4849_s6 + $0x208] sm:$0xf] %v492_v2  ;;  %v494_v3 = vld [vmem:[%s4842_s5 + $0x418] sm:$0xf] }
  0x6b   : > { %v496_v4 = vld [vmem:[%s4842_s5 + $0x420] sm:$0xf]  ;;  %v498_v5 = vld [vmem:[%s4842_s5 + $0x428] sm:$0xf]  ;;  %495 = vst [vmem:[%s4849_s6 + $0x20c] sm:$0xf] %v494_v3 }
  0x6c   : > { %497 = vst [vmem:[%s4849_s6 + $0x210] sm:$0xf] %v496_v4  ;;  %499 = vst [vmem:[%s4849_s6 + $0x214] sm:$0xf] %v498_v5  ;;  %v500_v6 = vld [vmem:[%s4842_s5 + $0x430] sm:$0xf] }
  0x6d   : > { %v502_v7 = vld [vmem:[%s4842_s5 + $0x438] sm:$0xf]  ;;  %v504_v8 = vld [vmem:[%s4842_s5 + $0x440] sm:$0xf]  ;;  %501 = vst [vmem:[%s4849_s6 + $0x218] sm:$0xf] %v500_v6 }
  0x6e   : > { %503 = vst [vmem:[%s4849_s6 + $0x21c] sm:$0xf] %v502_v7  ;;  %505 = vst [vmem:[%s4849_s6 + $0x220] sm:$0xf] %v504_v8  ;;  %v506_v9 = vld [vmem:[%s4842_s5 + $0x448] sm:$0xf] }
  0x6f   : > { %v508_v10 = vld [vmem:[%s4842_s5 + $0x450] sm:$0xf]  ;;  %v510_v11 = vld [vmem:[%s4842_s5 + $0x458] sm:$0xf]  ;;  %507 = vst [vmem:[%s4849_s6 + $0x224] sm:$0xf] %v506_v9 }
  0x70   : > { %509 = vst [vmem:[%s4849_s6 + $0x228] sm:$0xf] %v508_v10  ;;  %511 = vst [vmem:[%s4849_s6 + $0x22c] sm:$0xf] %v510_v11  ;;  %v512_v12 = vld [vmem:[%s4842_s5 + $0x460] sm:$0xf] }
  0x71   : > { %v514_v13 = vld [vmem:[%s4842_s5 + $0x468] sm:$0xf]  ;;  %v516_v14 = vld [vmem:[%s4842_s5 + $0x470] sm:$0xf]  ;;  %513 = vst [vmem:[%s4849_s6 + $0x230] sm:$0xf] %v512_v12 }
  0x72   : > { %515 = vst [vmem:[%s4849_s6 + $0x234] sm:$0xf] %v514_v13  ;;  %517 = vst [vmem:[%s4849_s6 + $0x238] sm:$0xf] %v516_v14  ;;  %v518_v15 = vld [vmem:[%s4842_s5 + $0x478] sm:$0xf] }
  0x73   : > { %v520_v16 = vld [vmem:[%s4842_s5 + $0x480] sm:$0xf]  ;;  %v522_v17 = vld [vmem:[%s4842_s5 + $0x488] sm:$0xf]  ;;  %519 = vst [vmem:[%s4849_s6 + $0x23c] sm:$0xf] %v518_v15 }
  0x74   : > { %521 = vst [vmem:[%s4849_s6 + $0x240] sm:$0xf] %v520_v16  ;;  %523 = vst [vmem:[%s4849_s6 + $0x244] sm:$0xf] %v522_v17  ;;  %v524_v18 = vld [vmem:[%s4842_s5 + $0x490] sm:$0xf] }
  0x75   : > { %v526_v19 = vld [vmem:[%s4842_s5 + $0x498] sm:$0xf]  ;;  %v528_v20 = vld [vmem:[%s4842_s5 + $0x4a0] sm:$0xf]  ;;  %525 = vst [vmem:[%s4849_s6 + $0x248] sm:$0xf] %v524_v18 }
  0x76   : > { %527 = vst [vmem:[%s4849_s6 + $0x24c] sm:$0xf] %v526_v19  ;;  %529 = vst [vmem:[%s4849_s6 + $0x250] sm:$0xf] %v528_v20  ;;  %v530_v21 = vld [vmem:[%s4842_s5 + $0x4a8] sm:$0xf] }
  0x77   : > { %v532_v22 = vld [vmem:[%s4842_s5 + $0x4b0] sm:$0xf]  ;;  %v534_v23 = vld [vmem:[%s4842_s5 + $0x4b8] sm:$0xf]  ;;  %531 = vst [vmem:[%s4849_s6 + $0x254] sm:$0xf] %v530_v21 }
  0x78   : > { %533 = vst [vmem:[%s4849_s6 + $0x258] sm:$0xf] %v532_v22  ;;  %535 = vst [vmem:[%s4849_s6 + $0x25c] sm:$0xf] %v534_v23  ;;  %v536_v24 = vld [vmem:[%s4842_s5 + $0x4c0] sm:$0xf] }
  0x79   : > { %v538_v25 = vld [vmem:[%s4842_s5 + $0x4c8] sm:$0xf]  ;;  %v540_v26 = vld [vmem:[%s4842_s5 + $0x4d0] sm:$0xf]  ;;  %537 = vst [vmem:[%s4849_s6 + $0x260] sm:$0xf] %v536_v24 }
  0x7a   : > { %539 = vst [vmem:[%s4849_s6 + $0x264] sm:$0xf] %v538_v25  ;;  %541 = vst [vmem:[%s4849_s6 + $0x268] sm:$0xf] %v540_v26  ;;  %v542_v27 = vld [vmem:[%s4842_s5 + $0x4d8] sm:$0xf] }
  0x7b   : > { %v544_v28 = vld [vmem:[%s4842_s5 + $0x4e0] sm:$0xf]  ;;  %v546_v29 = vld [vmem:[%s4842_s5 + $0x4e8] sm:$0xf]  ;;  %543 = vst [vmem:[%s4849_s6 + $0x26c] sm:$0xf] %v542_v27 }
  0x7c   : > { %545 = vst [vmem:[%s4849_s6 + $0x270] sm:$0xf] %v544_v28  ;;  %547 = vst [vmem:[%s4849_s6 + $0x274] sm:$0xf] %v546_v29  ;;  %v548_v30 = vld [vmem:[%s4842_s5 + $0x4f0] sm:$0xf] }
  0x7d   : > { %v550_v31 = vld [vmem:[%s4842_s5 + $0x4f8] sm:$0xf]  ;;  %v552_v32 = vld [vmem:[%s4842_s5 + $0x500] sm:$0xf]  ;;  %549 = vst [vmem:[%s4849_s6 + $0x278] sm:$0xf] %v548_v30 }
  0x7e   : > { %551 = vst [vmem:[%s4849_s6 + $0x27c] sm:$0xf] %v550_v31  ;;  %553 = vst [vmem:[%s4849_s6 + $0x280] sm:$0xf] %v552_v32  ;;  %v554_v33 = vld [vmem:[%s4842_s5 + $0x508] sm:$0xf] }
  0x7f   : > { %v556_v34 = vld [vmem:[%s4842_s5 + $0x510] sm:$0xf]  ;;  %v558_v35 = vld [vmem:[%s4842_s5 + $0x518] sm:$0xf]  ;;  %555 = vst [vmem:[%s4849_s6 + $0x284] sm:$0xf] %v554_v33 }
  0x80   : > { %557 = vst [vmem:[%s4849_s6 + $0x288] sm:$0xf] %v556_v34  ;;  %559 = vst [vmem:[%s4849_s6 + $0x28c] sm:$0xf] %v558_v35  ;;  %v560_v36 = vld [vmem:[%s4842_s5 + $0x520] sm:$0xf] }
  0x81   : > { %v562_v37 = vld [vmem:[%s4842_s5 + $0x528] sm:$0xf]  ;;  %v564_v38 = vld [vmem:[%s4842_s5 + $0x530] sm:$0xf]  ;;  %561 = vst [vmem:[%s4849_s6 + $0x290] sm:$0xf] %v560_v36 }
  0x82   : > { %563 = vst [vmem:[%s4849_s6 + $0x294] sm:$0xf] %v562_v37  ;;  %565 = vst [vmem:[%s4849_s6 + $0x298] sm:$0xf] %v564_v38  ;;  %v566_v39 = vld [vmem:[%s4842_s5 + $0x538] sm:$0xf] }
  0x83   : > { %v568_v40 = vld [vmem:[%s4842_s5 + $0x540] sm:$0xf]  ;;  %v570_v41 = vld [vmem:[%s4842_s5 + $0x548] sm:$0xf]  ;;  %567 = vst [vmem:[%s4849_s6 + $0x29c] sm:$0xf] %v566_v39 }
  0x84   : > { %569 = vst [vmem:[%s4849_s6 + $0x2a0] sm:$0xf] %v568_v40  ;;  %571 = vst [vmem:[%s4849_s6 + $0x2a4] sm:$0xf] %v570_v41  ;;  %v572_v42 = vld [vmem:[%s4842_s5 + $0x550] sm:$0xf] }
  0x85   : > { %v574_v43 = vld [vmem:[%s4842_s5 + $0x558] sm:$0xf]  ;;  %v576_v44 = vld [vmem:[%s4842_s5 + $0x560] sm:$0xf]  ;;  %573 = vst [vmem:[%s4849_s6 + $0x2a8] sm:$0xf] %v572_v42 }
  0x86   : > { %575 = vst [vmem:[%s4849_s6 + $0x2ac] sm:$0xf] %v574_v43  ;;  %577 = vst [vmem:[%s4849_s6 + $0x2b0] sm:$0xf] %v576_v44  ;;  %v578_v45 = vld [vmem:[%s4842_s5 + $0x568] sm:$0xf] }
  0x87   : > { %v580_v46 = vld [vmem:[%s4842_s5 + $0x570] sm:$0xf]  ;;  %v582_v47 = vld [vmem:[%s4842_s5 + $0x578] sm:$0xf]  ;;  %579 = vst [vmem:[%s4849_s6 + $0x2b4] sm:$0xf] %v578_v45 }
  0x88   : > { %581 = vst [vmem:[%s4849_s6 + $0x2b8] sm:$0xf] %v580_v46  ;;  %583 = vst [vmem:[%s4849_s6 + $0x2bc] sm:$0xf] %v582_v47  ;;  %v584_v48 = vld [vmem:[%s4842_s5 + $0x580] sm:$0xf] }
  0x89   : > { %v586_v49 = vld [vmem:[%s4842_s5 + $0x588] sm:$0xf]  ;;  %v588_v50 = vld [vmem:[%s4842_s5 + $0x590] sm:$0xf]  ;;  %585 = vst [vmem:[%s4849_s6 + $0x2c0] sm:$0xf] %v584_v48 }
  0x8a   : > { %587 = vst [vmem:[%s4849_s6 + $0x2c4] sm:$0xf] %v586_v49  ;;  %589 = vst [vmem:[%s4849_s6 + $0x2c8] sm:$0xf] %v588_v50  ;;  %v590_v51 = vld [vmem:[%s4842_s5 + $0x598] sm:$0xf] }
  0x8b   : > { %v592_v52 = vld [vmem:[%s4842_s5 + $0x5a0] sm:$0xf]  ;;  %v594_v53 = vld [vmem:[%s4842_s5 + $0x5a8] sm:$0xf]  ;;  %591 = vst [vmem:[%s4849_s6 + $0x2cc] sm:$0xf] %v590_v51 }
  0x8c   : > { %593 = vst [vmem:[%s4849_s6 + $0x2d0] sm:$0xf] %v592_v52  ;;  %595 = vst [vmem:[%s4849_s6 + $0x2d4] sm:$0xf] %v594_v53  ;;  %v596_v54 = vld [vmem:[%s4842_s5 + $0x5b0] sm:$0xf] }
  0x8d   : > { %v598_v55 = vld [vmem:[%s4842_s5 + $0x5b8] sm:$0xf]  ;;  %v600_v56 = vld [vmem:[%s4842_s5 + $0x5c0] sm:$0xf]  ;;  %597 = vst [vmem:[%s4849_s6 + $0x2d8] sm:$0xf] %v596_v54 }
  0x8e   : > { %599 = vst [vmem:[%s4849_s6 + $0x2dc] sm:$0xf] %v598_v55  ;;  %601 = vst [vmem:[%s4849_s6 + $0x2e0] sm:$0xf] %v600_v56  ;;  %v602_v57 = vld [vmem:[%s4842_s5 + $0x5c8] sm:$0xf] }
  0x8f   : > { %v604_v58 = vld [vmem:[%s4842_s5 + $0x5d0] sm:$0xf]  ;;  %v606_v59 = vld [vmem:[%s4842_s5 + $0x5d8] sm:$0xf]  ;;  %603 = vst [vmem:[%s4849_s6 + $0x2e4] sm:$0xf] %v602_v57 }
  0x90   : > { %605 = vst [vmem:[%s4849_s6 + $0x2e8] sm:$0xf] %v604_v58  ;;  %607 = vst [vmem:[%s4849_s6 + $0x2ec] sm:$0xf] %v606_v59  ;;  %v608_v60 = vld [vmem:[%s4842_s5 + $0x5e0] sm:$0xf] }
  0x91   : > { %v610_v61 = vld [vmem:[%s4842_s5 + $0x5e8] sm:$0xf]  ;;  %v612_v62 = vld [vmem:[%s4842_s5 + $0x5f0] sm:$0xf]  ;;  %609 = vst [vmem:[%s4849_s6 + $0x2f0] sm:$0xf] %v608_v60 }
  0x92   : > { %611 = vst [vmem:[%s4849_s6 + $0x2f4] sm:$0xf] %v610_v61  ;;  %613 = vst [vmem:[%s4849_s6 + $0x2f8] sm:$0xf] %v612_v62  ;;  %v614_v63 = vld [vmem:[%s4842_s5 + $0x5f8] sm:$0xf] }
  0x93   : > { %v616_v0 = vld [vmem:[%s4842_s5 + $0x600] sm:$0xf]  ;;  %v618_v1 = vld [vmem:[%s4842_s5 + $0x608] sm:$0xf]  ;;  %615 = vst [vmem:[%s4849_s6 + $0x2fc] sm:$0xf] %v614_v63 }
  0x94   : > { %617 = vst [vmem:[%s4849_s6 + $0x300] sm:$0xf] %v616_v0  ;;  %619 = vst [vmem:[%s4849_s6 + $0x304] sm:$0xf] %v618_v1  ;;  %v620_v2 = vld [vmem:[%s4842_s5 + $0x610] sm:$0xf] }
  0x95   : > { %v622_v3 = vld [vmem:[%s4842_s5 + $0x618] sm:$0xf]  ;;  %v624_v4 = vld [vmem:[%s4842_s5 + $0x620] sm:$0xf]  ;;  %621 = vst [vmem:[%s4849_s6 + $0x308] sm:$0xf] %v620_v2 }
  0x96   : > { %623 = vst [vmem:[%s4849_s6 + $0x30c] sm:$0xf] %v622_v3  ;;  %625 = vst [vmem:[%s4849_s6 + $0x310] sm:$0xf] %v624_v4  ;;  %v626_v5 = vld [vmem:[%s4842_s5 + $0x628] sm:$0xf] }
  0x97   : > { %v628_v6 = vld [vmem:[%s4842_s5 + $0x630] sm:$0xf]  ;;  %v630_v7 = vld [vmem:[%s4842_s5 + $0x638] sm:$0xf]  ;;  %627 = vst [vmem:[%s4849_s6 + $0x314] sm:$0xf] %v626_v5 }
  0x98   : > { %629 = vst [vmem:[%s4849_s6 + $0x318] sm:$0xf] %v628_v6  ;;  %631 = vst [vmem:[%s4849_s6 + $0x31c] sm:$0xf] %v630_v7  ;;  %v632_v8 = vld [vmem:[%s4842_s5 + $0x640] sm:$0xf] }
  0x99   : > { %v634_v9 = vld [vmem:[%s4842_s5 + $0x648] sm:$0xf]  ;;  %v636_v10 = vld [vmem:[%s4842_s5 + $0x650] sm:$0xf]  ;;  %633 = vst [vmem:[%s4849_s6 + $0x320] sm:$0xf] %v632_v8 }
  0x9a   : > { %635 = vst [vmem:[%s4849_s6 + $0x324] sm:$0xf] %v634_v9  ;;  %637 = vst [vmem:[%s4849_s6 + $0x328] sm:$0xf] %v636_v10  ;;  %v638_v11 = vld [vmem:[%s4842_s5 + $0x658] sm:$0xf] }
  0x9b   : > { %v640_v12 = vld [vmem:[%s4842_s5 + $0x660] sm:$0xf]  ;;  %v642_v13 = vld [vmem:[%s4842_s5 + $0x668] sm:$0xf]  ;;  %639 = vst [vmem:[%s4849_s6 + $0x32c] sm:$0xf] %v638_v11 }
  0x9c   : > { %641 = vst [vmem:[%s4849_s6 + $0x330] sm:$0xf] %v640_v12  ;;  %643 = vst [vmem:[%s4849_s6 + $0x334] sm:$0xf] %v642_v13  ;;  %v644_v14 = vld [vmem:[%s4842_s5 + $0x670] sm:$0xf] }
  0x9d   : > { %v646_v15 = vld [vmem:[%s4842_s5 + $0x678] sm:$0xf]  ;;  %v648_v16 = vld [vmem:[%s4842_s5 + $0x680] sm:$0xf]  ;;  %645 = vst [vmem:[%s4849_s6 + $0x338] sm:$0xf] %v644_v14 }
  0x9e   : > { %647 = vst [vmem:[%s4849_s6 + $0x33c] sm:$0xf] %v646_v15  ;;  %649 = vst [vmem:[%s4849_s6 + $0x340] sm:$0xf] %v648_v16  ;;  %v650_v17 = vld [vmem:[%s4842_s5 + $0x688] sm:$0xf] }
  0x9f   : > { %v652_v18 = vld [vmem:[%s4842_s5 + $0x690] sm:$0xf]  ;;  %v654_v19 = vld [vmem:[%s4842_s5 + $0x698] sm:$0xf]  ;;  %651 = vst [vmem:[%s4849_s6 + $0x344] sm:$0xf] %v650_v17 }
  0xa0   : > { %653 = vst [vmem:[%s4849_s6 + $0x348] sm:$0xf] %v652_v18  ;;  %655 = vst [vmem:[%s4849_s6 + $0x34c] sm:$0xf] %v654_v19  ;;  %v656_v20 = vld [vmem:[%s4842_s5 + $0x6a0] sm:$0xf] }
  0xa1   : > { %v658_v21 = vld [vmem:[%s4842_s5 + $0x6a8] sm:$0xf]  ;;  %v660_v22 = vld [vmem:[%s4842_s5 + $0x6b0] sm:$0xf]  ;;  %657 = vst [vmem:[%s4849_s6 + $0x350] sm:$0xf] %v656_v20 }
  0xa2   : > { %659 = vst [vmem:[%s4849_s6 + $0x354] sm:$0xf] %v658_v21  ;;  %661 = vst [vmem:[%s4849_s6 + $0x358] sm:$0xf] %v660_v22  ;;  %v662_v23 = vld [vmem:[%s4842_s5 + $0x6b8] sm:$0xf] }
  0xa3   : > { %663 = vst [vmem:[%s4849_s6 + $0x35c] sm:$0xf] %v662_v23 }
  0xa4 PF: > { %p3779_p8 = scmp.ge.s32.totalorder %s4766_s19, 1  ;;  %p1118_p9 = scmp.lt.s32.totalorder %s4766_s19, 3 }
  0xa6   : > { %p1119_p10 = pnand %p3779_p8, %p1118_p9 }
  0xa8   : > { %1122 = sbr.rel (%p1119_p10) target bundleno = 624 (0x270), region = 65 }
  0xad   : > { %s1125_s7 = sand.u32 1, %s4750_s15   ;;  %v4491_v24 = vld [vmem:[%s5961_s0 + $0x1c4] ss:$56 sps:$4 sm:$0xff]   ;;  %v4489_v43 = vld [vmem:[%s5961_s0 + $0x1c0] ss:$56 sps:$4 sm:$0xff]   ;;  %vm2679_vm0 = vcmask 523264  }
  0xae   : > { %s4430_s8 = smul.u32 864, %s1125_s7  ;;  %v4494_v25 = vld [vmem:[%s5961_s0 + $0x4] ss:$56 sps:$4 sm:$0xff]   ;;  %2765 = vmatprep.mubr.bf16.mxu1 %v4491_v24  ;;  %v4492_v44 = vld [vmem:[%s5961_s0] ss:$56 sps:$4 sm:$0xff]   ;;  %p1189_p11 = scmp.lt.s32.totalorder %s4758_s17, 1 }
  0xaf   : > { %2733 = vmatprep.mubr.bf16.mxu0 %v4494_v25  ;;  %v4503_v49 = vld [vmem:[%s5961_s0 + $0x74] ss:$56 sps:$4 sm:$0xff]   ;;  %v4506_v55 = vld [vmem:[%s5961_s0 + $0x70] ss:$56 sps:$4 sm:$0xff]   ;;  %v4517_v62 = vld [vmem:[%s5961_s0 + $0xe4] ss:$56 sps:$4 sm:$0xff]  }
  0xb0   : > { %s5289_s13 = scalar_lea.vmem [#allocation3], %s4430_s8  ;;  %v4509_v51 = vld [vmem:[%s5961_s0 + $0x234] ss:$56 sps:$4 sm:$0xff]   ;;  %v4512_v59 = vld [vmem:[%s5961_s0 + $0x230] ss:$56 sps:$4 sm:$0xff]   ;;  %s4431_s9 = smul.u32 56, %s1125_s7 }
  0xb1   : > { %v4473_v26 = vld [vmem:[%s5289_s13 + $0x78] sm:$0xff]   ;;  %v4475_v28 = vld [vmem:[%s5289_s13 + $0x70] sm:$0xff]   ;;  %v4477_v30 = vld [vmem:[%s5289_s13 + $0x68] sm:$0xff]   ;;  %s1190_s7 = scalar_select %p1189_p11, %s4758_s17, 1 }
  0xb2   : > { %v4474_v27 = vld [vmem:[%s5289_s13 + $0x38] sm:$0xff]   ;;  %4413 = vmatprep.subr.bf16.mxu1 %v4473_v26  ;;  %4065 = vmatprep.subr.bf16.mxu0 %v4473_v26  ;;  %v4476_v29 = vld [vmem:[%s5289_s13 + $0x30] sm:$0xff]   ;;  %v4478_v31 = vld [vmem:[%s5289_s13 + $0x28] sm:$0xff]   ;;  %s5866_s15 = scalar_lea.vmem [#allocation4], %s4431_s9  ;;  %s4007_s23 = sshll.u32 (%p4829_p6), %s4758_s17, 2 }
  0xb3   : > { %4421 = vmatpush3.bf16.msra.mxu1 %v4474_v27  ;;  %4066 = vmatpush3.bf16.msra.mxu0 %v4474_v27  ;;  %v4479_v32 = vld [vmem:[%s5289_s13 + $0x60] sm:$0xff]   ;;  %v4481_v34 = vld [vmem:[%s5289_s13 + $0x58] sm:$0xff]   ;;  %v4483_v36 = vld [vmem:[%s5289_s13 + $0x50] sm:$0xff]   ;;  %s1193_s12 = scalar_lea.vmem %s5964_s3, %s1190_s7  ;;  %s1200_s22 = scalar_lea.vmem %s5965_s4, %s1190_s7 }
  0xb4   : > { %4414 = vmatprep.subr.bf16.mxu1 %v4475_v28  ;;  %4067 = vmatprep.subr.bf16.mxu0 %v4475_v28  ;;  %v4480_v33 = vld [vmem:[%s5289_s13 + $0x20] sm:$0xff]   ;;  %v4482_v35 = vld [vmem:[%s5289_s13 + $0x18] sm:$0xff]   ;;  %v4484_v37 = vld [vmem:[%s5289_s13 + $0x10] sm:$0xff]   ;;  %s3518_s28 = scalar_lea.vmem (%p4829_p6), %s5963_s2, %s4007_s23 }
  0xb5   : > { %v4485_v38 = vld [vmem:[%s5289_s13 + $0x48] sm:$0xff]   ;;  %v4487_v40 = vld [vmem:[%s5289_s13 + $0x40] sm:$0xff]   ;;  %v4495_v42 = vld [vmem:[%s5289_s13 + $0xf8] sm:$0xff]  }
  0xb6   : > { %v4486_v39 = vld [vmem:[%s5289_s13 + $0x8] sm:$0xff]   ;;  %v4488_v41 = vld [vmem:[%s5289_s13] sm:$0xff]   ;;  %v4497_v45 = vld [vmem:[%s5289_s13 + $0x178] sm:$0xff]  }
  0xb7   : > { %4422 = vmatpush3.bf16.msra.mxu1 %v4476_v29  ;;  %4068 = vmatpush3.bf16.msra.mxu0 %v4476_v29  ;;  %v4496_v46 = vld [vmem:[%s5289_s13 + $0xb8] sm:$0xff]   ;;  %v4499_v48 = vld [vmem:[%s5289_s13 + $0xf0] sm:$0xff]   ;;  %v4505_v54 = vld [vmem:[%s5289_s13 + $0xe8] sm:$0xff]  }
  0xb8   : > { %4415 = vmatprep.subr.bf16.mxu1 %v4477_v30  ;;  %4069 = vmatprep.subr.bf16.mxu0 %v4477_v30  ;;  %v4498_v47 = vld [vmem:[%s5289_s13 + $0x138] sm:$0xff]   ;;  %v4501_v50 = vld [vmem:[%s5289_s13 + $0x170] sm:$0xff]   ;;  %v4508_v56 = vld [vmem:[%s5289_s13 + $0x168] sm:$0xff]  }
  0xb9   : > { %v4500_v52 = vld [vmem:[%s5289_s13 + $0xb0] sm:$0xff]   ;;  %v4507_v57 = vld [vmem:[%s5289_s13 + $0xa8] sm:$0xff]   ;;  %v4513_v60 = vld [vmem:[%s5289_s13 + $0xe0] sm:$0xff]  }
  0xba   : > { %v4502_v53 = vld [vmem:[%s5289_s13 + $0x130] sm:$0xff]   ;;  %v4511_v58 = vld [vmem:[%s5289_s13 + $0x128] sm:$0xff]   ;;  %v4515_v61 = vld [vmem:[%s5289_s13 + $0x160] sm:$0xff]  }
  0xbb   : > { %4423 = vmatpush3.bf16.msra.mxu1 %v4478_v31  ;;  %4070 = vmatpush3.bf16.msra.mxu0 %v4478_v31  ;;  %v4514_v63 = vld [vmem:[%s5289_s13 + $0xa0] sm:$0xff]   ;;  %v4519_v2 = vld [vmem:[%s5289_s13 + $0xd8] sm:$0xff]   ;;  %v4527_v8 = vld [vmem:[%s5289_s13 + $0xd0] sm:$0xff]  }
  0xbc   : > { %4416 = vmatprep.subr.bf16.mxu1 %v4479_v32  ;;  %4071 = vmatprep.subr.bf16.mxu0 %v4479_v32  ;;  %v4523_v0 = vld [vmem:[%s5961_s0 + $0x2a4] ss:$56 sps:$4 sm:$0xff]   ;;  %v4520_v3 = vld [vmem:[%s5961_s0 + $0xe0] ss:$56 sps:$4 sm:$0xff]   ;;  %v4529_v9 = vld [vmem:[%s5289_s13 + $0x150] sm:$0xff]  }
  0xbd   : > { %v4516_v1 = vld [vmem:[%s5289_s13 + $0x120] sm:$0xff]   ;;  %v4522_v4 = vld [vmem:[%s5289_s13 + $0x158] sm:$0xff]   ;;  %v4528_v10 = vld [vmem:[%s5289_s13 + $0x90] sm:$0xff]  }
  0xbe   : > { %v4521_v5 = vld [vmem:[%s5289_s13 + $0x98] sm:$0xff]   ;;  %v4531_v11 = vld [vmem:[%s5961_s0 + $0x154] ss:$56 sps:$4 sm:$0xff]   ;;  %v4534_v15 = vld [vmem:[%s5961_s0 + $0x150] ss:$56 sps:$4 sm:$0xff]  }
  0xbf   : > { %4424 = vmatpush3.bf16.msra.mxu1 %v4480_v33  ;;  %4072 = vmatpush3.bf16.msra.mxu0 %v4480_v33  ;;  %v4525_v6 = vld [vmem:[%s5289_s13 + $0x118] sm:$0xff]   ;;  %v4530_v12 = vld [vmem:[%s5289_s13 + $0x110] sm:$0xff]   ;;  %v4533_v13 = vld [vmem:[%s5289_s13 + $0xc8] sm:$0xff]  }
  0xc0   : > { %4417 = vmatprep.subr.bf16.mxu1 %v4481_v34  ;;  %4073 = vmatprep.subr.bf16.mxu0 %v4481_v34  ;;  %v4526_v7 = vld [vmem:[%s5961_s0 + $0x2a0] ss:$56 sps:$4 sm:$0xff]   ;;  %v4536_v14 = vld [vmem:[%s5289_s13 + $0x148] sm:$0xff]   ;;  %v4551_v29 = vld [vmem:[%s5961_s0 + $0x7c] ss:$56 sps:$4 sm:$0xff]  }
  0xc1   : > { %v4535_v16 = vld [vmem:[%s5289_s13 + $0x88] sm:$0xff]   ;;  %v4538_v19 = vld [vmem:[%s5289_s13 + $0xc0] sm:$0xff]   ;;  %v4548_v24 = vld [vmem:[%s5289_s13 + $0x1f8] sm:$0xff]  }
  0xc2   : > { %v4544_v17 = vld [vmem:[%s5961_s0 + $0xc] ss:$56 sps:$4 sm:$0xff]   ;;  %v4542_v25 = vld [vmem:[%s5961_s0 + $0x8] ss:$56 sps:$4 sm:$0xff]   ;;  %v4550_v27 = vld [vmem:[%s5289_s13 + $0x278] sm:$0xff]  }
  0xc3   : > { %4425 = vmatpush3.bf16.msra.mxu1 %v4482_v35  ;;  %4074 = vmatpush3.bf16.msra.mxu0 %v4482_v35  ;;  %v4537_v18 = vld [vmem:[%s5289_s13 + $0x108] sm:$0xff]   ;;  %v4540_v20 = vld [vmem:[%s5289_s13 + $0x140] sm:$0xff]   ;;  %v4549_v28 = vld [vmem:[%s5289_s13 + $0x1b8] sm:$0xff]  }
  0xc4   : > { %4418 = vmatprep.subr.bf16.mxu1 %v4483_v36  ;;  %4075 = vmatprep.subr.bf16.mxu0 %v4483_v36  ;;  %v4539_v21 = vld [vmem:[%s5289_s13 + $0x80] sm:$0xff]   ;;  %v4547_v22 = vld [vmem:[%s5961_s0 + $0x14] ss:$56 sps:$4 sm:$0xff]   ;;  %v4545_v26 = vld [vmem:[%s5961_s0 + $0x10] ss:$56 sps:$4 sm:$0xff]  }
  0xc5   : > { %v4541_v23 = vld [vmem:[%s5289_s13 + $0x100] sm:$0xff]   ;;  %v4553_v30 = vld [vmem:[%s5289_s13 + $0x1f0] sm:$0xff]   ;;  %v4554_v31 = vld [vmem:[%s5289_s13 + $0x238] sm:$0xff]  }
  0xc6   : > { %v4556_v32 = vld [vmem:[%s5961_s0 + $0x84] ss:$56 sps:$4 sm:$0xff]   ;;  %v4560_v33 = vld [vmem:[%s5289_s13 + $0x270] sm:$0xff]   ;;  %v4561_v35 = vld [vmem:[%s5289_s13 + $0x1e8] sm:$0xff]  }
  0xc7   : > { %4426 = vmatpush3.bf16.msra.mxu1 %v4484_v37  ;;  %4076 = vmatpush3.bf16.msra.mxu0 %v4484_v37  ;;  %v4558_v34 = vld [vmem:[%s5289_s13 + $0x1b0] sm:$0xff]  }
  0xc8   : > { %4419 = vmatprep.subr.bf16.mxu1 %v4485_v38  ;;  %4077 = vmatprep.subr.bf16.mxu0 %v4485_v38  ;;  %v4555_v36 = vld [vmem:[%s5961_s0 + $0x78] ss:$56 sps:$4 sm:$0xff]  }
  0xc9   : > { %v4562_v37 = vld [vmem:[%s5289_s13 + $0x230] sm:$0xff]   ;;  %v4559_v38 = vld [vmem:[%s5961_s0 + $0x80] ss:$56 sps:$4 sm:$0xff]  }
  0xcb   : > { %4427 = vmatpush3.bf16.msra.mxu1 %v4486_v39  ;;  %4078 = vmatpush3.bf16.msra.mxu0 %v4486_v39  ;;  %v4563_v39 = vld [vmem:[%s5961_s0 + $0xec] ss:$56 sps:$4 sm:$0xff]  }
  0xcc   : > { %4420 = vmatprep.subr.bf16.mxu1 %v4487_v40  ;;  %4079 = vmatprep.subr.bf16.mxu0 %v4487_v40  ;;  %v4565_v40 = vld [vmem:[%s5289_s13 + $0x1a8] sm:$0xff]  }
  0xcf   : > { %4428 = vmatpush3.bf16.msra.mxu1 %v4488_v41  ;;  %4080 = vmatpush3.bf16.msra.mxu0 %v4488_v41  ;;  %v4567_v41 = vld [vmem:[%s5961_s0 + $0xf4] ss:$56 sps:$4 sm:$0xff]  }
  0xd0   : > { %4123 = vmatprep.subr.bf16.mxu1 %v4495_v42  ;;  %4181 = vmatprep.subr.bf16.mxu0 %v4497_v45  ;;  %v4570_v42 = vld [vmem:[%s5289_s13 + $0x268] sm:$0xff]   ;;  %v4573_v45 = vld [vmem:[%s5289_s13 + $0x1a0] sm:$0xff]  }
  0xd2   : > { %2766 = vmatmul.mubr.bf16.vlgmr.msra.gmra.mxu1 %v4489_v43  ;;  %2734 = vmatmul.mubr.bf16.vlgmr.msra.gmra.mxu0 %v4492_v44  ;;  %v4571_v43 = vld [vmem:[%s5289_s13 + $0x1e0] sm:$0xff]   ;;  %v4572_v44 = vld [vmem:[%s5289_s13 + $0x228] sm:$0xff]  }
  0xd3   : > { %4124 = vmatpush3.bf16.msra.mxu1 %v4496_v46  ;;  %4182 = vmatpush3.bf16.msra.mxu0 %v4498_v47  ;;  %v4566_v46 = vld [vmem:[%s5961_s0 + $0xe8] ss:$56 sps:$4 sm:$0xff]  }
  0xd4   : > { %4125 = vmatprep.subr.bf16.mxu1 %v4499_v48  ;;  %4183 = vmatprep.subr.bf16.mxu0 %v4501_v50  ;;  %v4569_v47 = vld [vmem:[%s5961_s0 + $0xf0] ss:$56 sps:$4 sm:$0xff]   ;;  %v4574_v48 = vld [vmem:[%s5961_s0 + $0x15c] ss:$56 sps:$4 sm:$0xff]   ;;  %v4580_v50 = vld [vmem:[%s5289_s13 + $0x260] sm:$0xff]  }
  0xd5   : > { %2741 = vmatprep.mubr.bf16.mxu0 %v4503_v49  ;;  %2773 = vmatprep.mubr.bf16.mxu1 %v4509_v51  ;;  %v4577_v49 = vld [vmem:[%s5961_s0 + $0x164] ss:$56 sps:$4 sm:$0xff]  }
  0xd6   : > { %v4581_v51 = vld [vmem:[%s5289_s13 + $0x1d8] sm:$0xff]  }
  0xd7   : > { %4126 = vmatpush3.bf16.msra.mxu1 %v4500_v52  ;;  %4184 = vmatpush3.bf16.msra.mxu0 %v4502_v53  ;;  %v4582_v52 = vld [vmem:[%s5289_s13 + $0x220] sm:$0xff]   ;;  %v4583_v53 = vld [vmem:[%s5289_s13 + $0x198] sm:$0xff]  }
  0xd8   : > { %4127 = vmatprep.subr.bf16.mxu1 %v4505_v54  ;;  %4185 = vmatprep.subr.bf16.mxu0 %v4508_v56  ;;  %v4576_v54 = vld [vmem:[%s5961_s0 + $0x158] ss:$56 sps:$4 sm:$0xff]   ;;  %v4584_v56 = vld [vmem:[%s5961_s0 + $0x1cc] ss:$56 sps:$4 sm:$0xff]  }
  0xda   : > { %2742 = vmatmul.mubr.bf16.gmra.mxu0 %v4506_v55  ;;  %2774 = vmatmul.mubr.bf16.gmra.mxu1 %v4512_v59  ;;  %v4579_v55 = vld [vmem:[%s5961_s0 + $0x160] ss:$56 sps:$4 sm:$0xff]   ;;  %v4591_v59 = vld [vmem:[%s5289_s13 + $0x1d0] sm:$0xff]  }
  0xdb   : > { %4128 = vmatpush3.bf16.msra.mxu1 %v4507_v57  ;;  %4186 = vmatpush3.bf16.msra.mxu0 %v4511_v58  ;;  %v4587_v57 = vld [vmem:[%s5961_s0 + $0x1d4] ss:$56 sps:$4 sm:$0xff]   ;;  %v4590_v58 = vld [vmem:[%s5289_s13 + $0x258] sm:$0xff]  }
  0xdc   : > { %4129 = vmatprep.subr.bf16.mxu1 %v4513_v60  ;;  %4187 = vmatprep.subr.bf16.mxu0 %v4515_v61  ;;  %v4592_v60 = vld [vmem:[%s5289_s13 + $0x218] sm:$0xff]   ;;  %v4593_v61 = vld [vmem:[%s5289_s13 + $0x190] sm:$0xff]  }
  0xdd   : > { %2749 = vmatprep.mubr.bf16.mxu0 %v4517_v62  ;;  %2781 = vmatprep.mubr.bf16.mxu1 %v4523_v0  ;;  %v4586_v62 = vld [vmem:[%s5961_s0 + $0x1c8] ss:$56 sps:$4 sm:$0xff]   ;;  %v4600_v0 = vld [vmem:[%s5289_s13 + $0x250] sm:$0xff]  }
  0xdf   : > { %4130 = vmatpush3.bf16.msra.mxu1 %v4514_v63  ;;  %4188 = vmatpush3.bf16.msra.mxu0 %v4516_v1  ;;  %v4589_v63 = vld [vmem:[%s5961_s0 + $0x1d0] ss:$56 sps:$4 sm:$0xff]   ;;  %v4594_v1 = vld [vmem:[%s5961_s0 + $0x23c] ss:$56 sps:$4 sm:$0xff]  }
  0xe0   : > { %4131 = vmatprep.subr.bf16.mxu1 %v4519_v2  ;;  %4189 = vmatprep.subr.bf16.mxu0 %v4522_v4  ;;  %v4597_v2 = vld [vmem:[%s5961_s0 + $0x244] ss:$56 sps:$4 sm:$0xff]   ;;  %v4602_v4 = vld [vmem:[%s5289_s13 + $0x210] sm:$0xff]  }
  0xe2   : > { %2750 = vmatmul.mubr.bf16.gmra.mxu0 %v4520_v3  ;;  %2782 = vmatmul.mubr.bf16.gmra.mxu1 %v4526_v7  ;;  %v4601_v3 = vld [vmem:[%s5289_s13 + $0x1c8] sm:$0xff]   ;;  %v4611_v7 = vld [vmem:[%s5289_s13 + $0x1c0] sm:$0xff]  }
  0xe3   : > { %4132 = vmatpush3.bf16.msra.mxu1 %v4521_v5  ;;  %4190 = vmatpush3.bf16.msra.mxu0 %v4525_v6  ;;  %v4603_v5 = vld [vmem:[%s5289_s13 + $0x188] sm:$0xff]  }
  0xe4   : > { %4133 = vmatprep.subr.bf16.mxu1 %v4527_v8  ;;  %4191 = vmatprep.subr.bf16.mxu0 %v4529_v9  ;;  %v4609_v6 = vld [vmem:[%s5289_s13 + $0x248] sm:$0xff]   ;;  %v4596_v8 = vld [vmem:[%s5961_s0 + $0x238] ss:$56 sps:$4 sm:$0xff]  }
  0xe5   : > { %2757 = vmatprep.mubr.bf16.mxu0 %v4531_v11  ;;  %2822 = vmatprep.mubr.bf16.mxu1 %v4544_v17  ;;  %v4599_v9 = vld [vmem:[%s5961_s0 + $0x240] ss:$56 sps:$4 sm:$0xff]   ;;  %v4604_v11 = vld [vmem:[%s5961_s0 + $0x2ac] ss:$56 sps:$4 sm:$0xff]  }
  0xe6   : > { %v4606_v17 = vld [vmem:[%s5961_s0 + $0x2a8] ss:$56 sps:$4 sm:$0xff]  }
  0xe7   : > { %4134 = vmatpush3.bf16.msra.mxu1 %v4528_v10  ;;  %4192 = vmatpush3.bf16.msra.mxu0 %v4530_v12  ;;  %v4612_v10 = vld [vmem:[%s5289_s13 + $0x208] sm:$0xff]   ;;  %v4613_v12 = vld [vmem:[%s5289_s13 + $0x180] sm:$0xff]  }
  0xe8   : > { %4135 = vmatprep.subr.bf16.mxu1 %v4533_v13  ;;  %4193 = vmatprep.subr.bf16.mxu0 %v4536_v14  ;;  %v4614_v13 = vld [vmem:[%s5289_s13 + $0x240] sm:$0xff]   ;;  %v4607_v14 = vld [vmem:[%s5961_s0 + $0x2b4] ss:$56 sps:$4 sm:$0xff]  }
  0xea   : > { %2758 = vmatmul.mubr.bf16.gmra.mxu0 %v4534_v15  ;;  %v4615_v15 = vld [vmem:[%s5289_s13 + $0x200] sm:$0xff]  }
  0xeb   : > { %4136 = vmatpush3.bf16.msra.mxu1 %v4535_v16  ;;  %4194 = vmatpush3.bf16.msra.mxu0 %v4537_v18  ;;  %v4622_v16 = vld [vmem:[%s5289_s13 + $0x2f8] sm:$0xff]   ;;  %v4768_v18 = vmov 0  }
  0xec   : > { %4137 = vmatprep.subr.bf16.mxu1 %v4538_v19  ;;  %4195 = vmatprep.subr.bf16.mxu0 %v4540_v20  ;;  %v4610_v19 = vld [vmem:[%s5961_s0 + $0x2b0] ss:$56 sps:$4 sm:$0xff]   ;;  %v4618_v20 = vld [vmem:[%s5961_s0 + $0x1c] ss:$56 sps:$4 sm:$0xff]  }
  0xed   : > { %2911 = vmatprep.mubr.bf16.mxu0 %v4547_v22  ;;  %v4616_v22 = vld [vmem:[%s5961_s0 + $0x18] ss:$56 sps:$4 sm:$0xff]  }
  0xef   : > { %4138 = vmatpush3.bf16.msra.mxu1 %v4539_v21  ;;  %4196 = vmatpush3.bf16.msra.mxu0 %v4541_v23  ;;  %v4621_v21 = vld [vmem:[%s5961_s0 + $0x24] ss:$56 sps:$4 sm:$0xff]   ;;  %v4619_v23 = vld [vmem:[%s5961_s0 + $0x20] ss:$56 sps:$4 sm:$0xff]  }
  0xf0   : > { %4239 = vmatprep.subr.bf16.mxu1 %v4548_v24  ;;  %4297 = vmatprep.subr.bf16.mxu0 %v4550_v27  ;;  %v4623_v24 = vld [vmem:[%s5289_s13 + $0x2b8] sm:$0xff]  }
  0xf1   : > { %v4627_v27 = vld [vmem:[%s5289_s13 + $0x338] sm:$0xff]  }
  0xf2   : > { %2823 = vmatmul.mubr.bf16.vlgmr.msra.gmra.mxu1 %v4542_v25  ;;  %2912 = vmatmul.mubr.bf16.vlgmr.msra.gmra.mxu0 %v4545_v26  ;;  %v4624_v25 = vld [vmem:[%s5961_s0 + $0x8c] ss:$56 sps:$4 sm:$0xff]   ;;  %v4626_v26 = vld [vmem:[%s5289_s13 + $0x2f0] sm:$0xff]  }
  0xf3   : > { %4240 = vmatpush3.bf16.msra.mxu1 %v4549_v28  ;;  %2830 = vmatprep.mubr.bf16.mxu1 %v4551_v29  ;;  %v4629_v28 = vld [vmem:[%s5961_s0 + $0x94] ss:$56 sps:$4 sm:$0xff]  }
  0xf4   : > { %4241 = vmatprep.subr.bf16.mxu1 %v4553_v30  ;;  %4298 = vmatpush3.bf16.msra.mxu0 %v4554_v31  ;;  %v4631_v29 = vld [vmem:[%s5289_s13 + $0x2b0] sm:$0xff]   ;;  %v4628_v31 = vld [vmem:[%s5961_s0 + $0x88] ss:$56 sps:$4 sm:$0xff]  }
  0xf5   : > { %2919 = vmatprep.mubr.bf16.mxu0 %v4556_v32  ;;  %4299 = vmatprep.subr.bf16.mxu0 %v4560_v33  ;;  %v4633_v30 = vld [vmem:[%s5289_s13 + $0x330] sm:$0xff]   ;;  %v4634_v32 = vld [vmem:[%s5289_s13 + $0x2e8] sm:$0xff]  }
  0xf6   : > { %v4632_v33 = vld [vmem:[%s5961_s0 + $0x90] ss:$56 sps:$4 sm:$0xff]  }
  0xf7   : > { %4242 = vmatpush3.bf16.msra.mxu1 %v4558_v34  ;;  %v4635_v34 = vld [vmem:[%s5961_s0 + $0xfc] ss:$56 sps:$4 sm:$0xff]  }
  0xf8   : > { %4243 = vmatprep.subr.bf16.mxu1 %v4561_v35  ;;  %4300 = vmatpush3.bf16.msra.mxu0 %v4562_v37  ;;  %v4637_v35 = vld [vmem:[%s5289_s13 + $0x2a8] sm:$0xff]  }
  0xf9   : > { %4301 = vmatprep.subr.bf16.mxu0 %v4570_v42  ;;  %v4642_v37 = vld [vmem:[%s5289_s13 + $0x328] sm:$0xff]   ;;  %v4641_v42 = vld [vmem:[%s5961_s0 + $0x100] ss:$56 sps:$4 sm:$0xff]  }
  0xfa   : > { %2831 = vmatmul.mubr.bf16.gmra.mxu1 %v4555_v36  ;;  %2920 = vmatmul.mubr.bf16.gmra.mxu0 %v4559_v38  ;;  %v4639_v36 = vld [vmem:[%s5961_s0 + $0x104] ss:$56 sps:$4 sm:$0xff]  }
  0xfb   : > { %2838 = vmatprep.mubr.bf16.mxu1 %v4563_v39  ;;  %4244 = vmatpush3.bf16.msra.mxu1 %v4565_v40  ;;  %v4643_v38 = vld [vmem:[%s5289_s13 + $0x2e0] sm:$0xff]  }
  0xfc   : > { %2927 = vmatprep.mubr.bf16.mxu0 %v4567_v41  ;;  %4245 = vmatprep.subr.bf16.mxu1 %v4571_v43  ;;  %v4644_v39 = vld [vmem:[%s5289_s13 + $0x320] sm:$0xff]   ;;  %v4638_v41 = vld [vmem:[%s5961_s0 + $0xf8] ss:$56 sps:$4 sm:$0xff]  }
  0xfd   : > { %4302 = vmatpush3.bf16.msra.mxu0 %v4572_v44  ;;  %v4645_v40 = vld [vmem:[%s5289_s13 + $0x2a0] sm:$0xff]   ;;  %v4653_v43 = vld [vmem:[%s5289_s13 + $0x2d8] sm:$0xff]  }
  0xfe   : > { %4303 = vmatprep.subr.bf16.mxu0 %v4580_v50  ;;  %v4646_v44 = vld [vmem:[%s5961_s0 + $0x16c] ss:$56 sps:$4 sm:$0xff]   ;;  %v4648_v50 = vld [vmem:[%s5961_s0 + $0x168] ss:$56 sps:$4 sm:$0xff]  }
  0xff   : > { %4246 = vmatpush3.bf16.msra.mxu1 %v4573_v45  ;;  %v4649_v45 = vld [vmem:[%s5961_s0 + $0x174] ss:$56 sps:$4 sm:$0xff]  }
 0x100   : > { %4247 = vmatprep.subr.bf16.mxu1 %v4581_v51  ;;  %v4651_v51 = vld [vmem:[%s5961_s0 + $0x170] ss:$56 sps:$4 sm:$0xff]  }
 0x101   : > { %4304 = vmatpush3.bf16.msra.mxu0 %v4582_v52  ;;  %v4664_v52 = vld [vmem:[%s5289_s13 + $0x290] sm:$0xff]  }
 0x102   : > { %2839 = vmatmul.mubr.bf16.gmra.mxu1 %v4566_v46  ;;  %2928 = vmatmul.mubr.bf16.gmra.mxu0 %v4569_v47  ;;  %v4652_v46 = vld [vmem:[%s5289_s13 + $0x318] sm:$0xff]  }
 0x103   : > { %2846 = vmatprep.mubr.bf16.mxu1 %v4574_v48  ;;  %2935 = vmatprep.mubr.bf16.mxu0 %v4577_v49  ;;  %v4654_v47 = vld [vmem:[%s5289_s13 + $0x298] sm:$0xff]   ;;  %v4663_v48 = vld [vmem:[%s5289_s13 + $0x2d0] sm:$0xff]  }
 0x104   : > { %4248 = vmatpush3.bf16.msra.mxu1 %v4583_v53  ;;  %4305 = vmatprep.subr.bf16.mxu0 %v4590_v58  ;;  %v4655_v49 = vld [vmem:[%s5289_s13 + $0x310] sm:$0xff]   ;;  %v4665_v58 = vld [vmem:[%s5289_s13 + $0x300] sm:$0xff]  }
 0x105   : > { %4249 = vmatprep.subr.bf16.mxu1 %v4591_v59  ;;  %4306 = vmatpush3.bf16.msra.mxu0 %v4592_v60  ;;  %v4656_v53 = vld [vmem:[%s5961_s0 + $0x1dc] ss:$56 sps:$4 sm:$0xff]   ;;  %v4682_v59 = vld [vmem:[%s5289_s13 + $0x2c0] sm:$0xff]  }
 0x106   : > { %4307 = vmatprep.subr.bf16.mxu0 %v4600_v0  ;;  %v4683_v60 = vld [vmem:[%s5289_s13 + $0x280] sm:$0xff]   ;;  %v4669_v0 = vld [vmem:[%s5961_s0 + $0x254] ss:$56 sps:$4 sm:$0xff]  }
 0x108   : > { %4250 = vmatpush3.bf16.msra.mxu1 %v4593_v61  ;;  %v4658_v61 = vld [vmem:[%s5961_s0 + $0x1d8] ss:$56 sps:$4 sm:$0xff]  }
 0x109   : > { %4251 = vmatprep.subr.bf16.mxu1 %v4601_v3  ;;  %4308 = vmatpush3.bf16.msra.mxu0 %v4602_v4  ;;  %v4668_v3 = vld [vmem:[%s5961_s0 + $0x248] ss:$56 sps:$4 sm:$0xff]  }
 0x10a   : > { %2847 = vmatmul.mubr.bf16.gmra.mxu1 %v4576_v54  ;;  %2936 = vmatmul.mubr.bf16.gmra.mxu0 %v4579_v55  ;;  %v4672_v54 = vld [vmem:[%s5289_s13 + $0x2c8] sm:$0xff]   ;;  %v4659_v55 = vld [vmem:[%s5961_s0 + $0x1e4] ss:$56 sps:$4 sm:$0xff]  }
 0x10b   : > { %2854 = vmatprep.mubr.bf16.mxu1 %v4584_v56  ;;  %2943 = vmatprep.mubr.bf16.mxu0 %v4587_v57  ;;  %v4662_v56 = vld [vmem:[%s5289_s13 + $0x308] sm:$0xff]  }
 0x10c   : > { %4252 = vmatpush3.bf16.msra.mxu1 %v4603_v5  ;;  %4309 = vmatprep.subr.bf16.mxu0 %v4609_v6  ;;  %v4674_v57 = vld [vmem:[%s5289_s13 + $0x288] sm:$0xff]   ;;  %v4676_v5 = vld [vmem:[%s5961_s0 + $0x2bc] ss:$56 sps:$4 sm:$0xff]  }
 0x10d   : > { %4253 = vmatprep.subr.bf16.mxu1 %v4611_v7  ;;  %4310 = vmatpush3.bf16.msra.mxu0 %v4612_v10  ;;  %v4671_v4 = vld [vmem:[%s5961_s0 + $0x250] ss:$56 sps:$4 sm:$0xff]   ;;  %v4679_v6 = vld [vmem:[%s5961_s0 + $0x2c4] ss:$56 sps:$4 sm:$0xff]   ;;  %v4681_v10 = vld [vmem:[%s5961_s0 + $0x2c0] ss:$56 sps:$4 sm:$0xff]  }
 0x10e   : > { %4311 = vmatprep.subr.bf16.mxu0 %v4614_v13  ;;  %v4684_v7 = vld [vmem:[%s5289_s13 + $0x348] sm:$0xff]  }
 0x10f   : > { %v4686_v13 = vld [vmem:[%s5961_s0 + $0x28] ss:$56 sps:$4 sm:$0xff]  }
 0x110   : > { %4254 = vmatpush3.bf16.msra.mxu1 %v4613_v12  ;;  %v4691_v12 = vld [vmem:[%s5961_s0 + $0x34] ss:$56 sps:$4 sm:$0xff]  }
 0x111   : > { %4312 = vmatpush3.bf16.msra.mxu0 %v4615_v15  ;;  %4355 = vmatprep.subr.bf16.mxu1 %v4622_v16  ;;  %v4692_v15 = vld [vmem:[%s5961_s0 + $0x9c] ss:$56 sps:$4 sm:$0xff]  }
 0x112   : > { %2855 = vmatmul.mubr.bf16.gmra.mxu1 %v4586_v62  ;;  %2944 = vmatmul.mubr.bf16.gmra.mxu0 %v4589_v63  ;;  %v4661_v62 = vld [vmem:[%s5961_s0 + $0x1e0] ss:$56 sps:$4 sm:$0xff]   ;;  %v4666_v63 = vld [vmem:[%s5961_s0 + $0x24c] ss:$56 sps:$4 sm:$0xff]  }
 0x113   : > { %2862 = vmatprep.mubr.bf16.mxu1 %v4594_v1  ;;  %2951 = vmatprep.mubr.bf16.mxu0 %v4597_v2  ;;  %v4673_v1 = vld [vmem:[%s5289_s13 + $0x358] sm:$0xff]   ;;  %v4675_v2 = vld [vmem:[%s5289_s13 + $0x350] sm:$0xff]  }
 0x114   : > { %3235 = vmatprep.subr.bf16.mxu0 %v4768_v18  ;;  %v4695_v16 = vld [vmem:[%s5961_s0 + $0xa4] ss:$56 sps:$4 sm:$0xff]  }
 0x11a   : > { %2863 = vmatmul.mubr.bf16.gmra.mxu1 %v4596_v8  ;;  %2952 = vmatmul.mubr.bf16.gmra.mxu0 %v4599_v9  ;;  %v4685_v8 = vld [vmem:[%s5289_s13 + $0x340] sm:$0xff]   ;;  %v4678_v9 = vld [vmem:[%s5961_s0 + $0x2b8] ss:$56 sps:$4 sm:$0xff]  }
 0x11b   : > { %2870 = vmatprep.mubr.bf16.mxu1 %v4604_v11  ;;  %2959 = vmatprep.mubr.bf16.mxu0 %v4607_v14  ;;  %v4688_v11 = vld [vmem:[%s5961_s0 + $0x2c] ss:$56 sps:$4 sm:$0xff]   ;;  %v4689_v14 = vld [vmem:[%s5961_s0 + $0x30] ss:$56 sps:$4 sm:$0xff]  }
 0x122   : > { %2871 = vmatmul.mubr.bf16.gmra.mxu1 %v4606_v17  ;;  %2960 = vmatmul.mubr.bf16.gmra.mxu0 %v4610_v19  ;;  %v4694_v17 = vld [vmem:[%s5961_s0 + $0x98] ss:$56 sps:$4 sm:$0xff]   ;;  %v4698_v19 = vld [vmem:[%s5961_s0 + $0x10c] ss:$56 sps:$4 sm:$0xff]  }
 0x123   : > { %3000 = vmatprep.mubr.bf16.mxu1 %v4618_v20  ;;  %3089 = vmatprep.mubr.bf16.mxu0 %v4621_v21  ;;  %v4701_v20 = vld [vmem:[%s5961_s0 + $0x114] ss:$56 sps:$4 sm:$0xff]   ;;  %v4700_v21 = vld [vmem:[%s5961_s0 + $0x108] ss:$56 sps:$4 sm:$0xff]  }
 0x12a   : > { %3001 = vmatmul.mubr.bf16.vlgmr.msra.gmra.mxu1 %v4616_v22  ;;  %3090 = vmatmul.mubr.bf16.vlgmr.msra.gmra.mxu0 %v4619_v23  ;;  %v4703_v22 = vld [vmem:[%s5961_s0 + $0x110] ss:$56 sps:$4 sm:$0xff]   ;;  %v4704_v23 = vld [vmem:[%s5961_s0 + $0x17c] ss:$56 sps:$4 sm:$0xff]  }
 0x12b   : > { %4356 = vmatpush3.bf16.msra.mxu1 %v4623_v24  ;;  %3008 = vmatprep.mubr.bf16.mxu1 %v4624_v25  ;;  %v4707_v24 = vld [vmem:[%s5961_s0 + $0x184] ss:$56 sps:$4 sm:$0xff]   ;;  %v4706_v25 = vld [vmem:[%s5961_s0 + $0x178] ss:$56 sps:$4 sm:$0xff]  }
 0x12c   : > { %4357 = vmatprep.subr.bf16.mxu1 %v4626_v26  ;;  %3236 = vmatpush1.bf16.msra.mxu0 %v4627_v27  ;;  %v4709_v26 = vld [vmem:[%s5961_s0 + $0x180] ss:$56 sps:$4 sm:$0xff]   ;;  %v4710_v27 = vld [vmem:[%s5961_s0 + $0x1ec] ss:$56 sps:$4 sm:$0xff]  }
 0x12d   : > { %3097 = vmatprep.mubr.bf16.mxu0 %v4629_v28  ;;  %3237 = vmatprep.subr.bf16.mxu0 %v4768_v18  ;;  %v4713_v28 = vld [vmem:[%s5961_s0 + $0x1f4] ss:$56 sps:$4 sm:$0xff]  }
 0x12f   : > { %4358 = vmatpush3.bf16.msra.mxu1 %v4631_v29  ;;  %v4712_v29 = vld [vmem:[%s5961_s0 + $0x1e8] ss:$56 sps:$4 sm:$0xff]  }
 0x130   : > { %3238 = vmatpush1.bf16.msra.mxu0 %v4633_v30  ;;  %4359 = vmatprep.subr.bf16.mxu1 %v4634_v32  ;;  %v4715_v30 = vld [vmem:[%s5961_s0 + $0x1f0] ss:$56 sps:$4 sm:$0xff]   ;;  %v4719_v32 = vld [vmem:[%s5961_s0 + $0x264] ss:$56 sps:$4 sm:$0xff]  }
 0x131   : > { %3239 = vmatprep.subr.bf16.mxu0 %v4768_v18 }
 0x132   : > { %3009 = vmatmul.mubr.bf16.gmra.mxu1 %v4628_v31  ;;  %3098 = vmatmul.mubr.bf16.gmra.mxu0 %v4632_v33  ;;  %v4716_v31 = vld [vmem:[%s5961_s0 + $0x25c] ss:$56 sps:$4 sm:$0xff]   ;;  %v4718_v33 = vld [vmem:[%s5961_s0 + $0x258] ss:$56 sps:$4 sm:$0xff]  }
 0x133   : > { %3016 = vmatprep.mubr.bf16.mxu1 %v4635_v34  ;;  %4360 = vmatpush3.bf16.msra.mxu1 %v4637_v35  ;;  %v4721_v34 = vld [vmem:[%s5961_s0 + $0x260] ss:$56 sps:$4 sm:$0xff]   ;;  %v4722_v35 = vld [vmem:[%s5961_s0 + $0x2cc] ss:$56 sps:$4 sm:$0xff]  }
 0x134   : > { %3105 = vmatprep.mubr.bf16.mxu0 %v4639_v36  ;;  %3240 = vmatpush1.bf16.msra.mxu0 %v4642_v37  ;;  %v4725_v36 = vld [vmem:[%s5961_s0 + $0x2d4] ss:$56 sps:$4 sm:$0xff]   ;;  %v4724_v37 = vld [vmem:[%s5961_s0 + $0x2c8] ss:$56 sps:$4 sm:$0xff]  }
 0x135   : > { %3241 = vmatprep.subr.bf16.mxu0 %v4768_v18  ;;  %4361 = vmatprep.subr.bf16.mxu1 %v4643_v38  ;;  %v4727_v38 = vld [vmem:[%s5961_s0 + $0x2d0] ss:$56 sps:$4 sm:$0xff]  }
 0x137   : > { %4362 = vmatpush3.bf16.msra.mxu1 %v4645_v40 }
 0x138   : > { %3242 = vmatpush1.bf16.msra.mxu0 %v4644_v39  ;;  %4363 = vmatprep.subr.bf16.mxu1 %v4653_v43 }
 0x139   : > { %3243 = vmatprep.subr.bf16.mxu0 %v4768_v18 }
 0x13a   : > { %3017 = vmatmul.mubr.bf16.gmra.mxu1 %v4638_v41  ;;  %3106 = vmatmul.mubr.bf16.gmra.mxu0 %v4641_v42 }
 0x13b   : > { %3024 = vmatprep.mubr.bf16.mxu1 %v4646_v44  ;;  %3113 = vmatprep.mubr.bf16.mxu0 %v4649_v45 }
 0x13c   : > { %3244 = vmatpush1.bf16.msra.mxu0 %v4652_v46  ;;  %4364 = vmatpush3.bf16.msra.mxu1 %v4654_v47 }
 0x13d   : > { %3245 = vmatprep.subr.bf16.mxu0 %v4768_v18  ;;  %4365 = vmatprep.subr.bf16.mxu1 %v4663_v48 }
 0x140   : > { %3246 = vmatpush1.bf16.msra.mxu0 %v4655_v49  ;;  %4366 = vmatpush3.bf16.msra.mxu1 %v4664_v52 }
 0x141   : > { %3247 = vmatprep.subr.bf16.mxu0 %v4768_v18  ;;  %4367 = vmatprep.subr.bf16.mxu1 %v4672_v54 }
 0x142   : > { %3025 = vmatmul.mubr.bf16.gmra.mxu1 %v4648_v50  ;;  %3114 = vmatmul.mubr.bf16.gmra.mxu0 %v4651_v51 }
 0x143   : > { %3032 = vmatprep.mubr.bf16.mxu1 %v4656_v53  ;;  %3121 = vmatprep.mubr.bf16.mxu0 %v4659_v55 }
 0x144   : > { %3248 = vmatpush1.bf16.msra.mxu0 %v4662_v56  ;;  %4368 = vmatpush3.bf16.msra.mxu1 %v4674_v57 }
 0x145   : > { %3249 = vmatprep.subr.bf16.mxu0 %v4768_v18  ;;  %4369 = vmatprep.subr.bf16.mxu1 %v4682_v59 }
 0x148   : > { %3250 = vmatpush1.bf16.msra.mxu0 %v4665_v58  ;;  %4370 = vmatpush3.bf16.msra.mxu1 %v4683_v60 }
 0x149   : > { %3259 = vmatprep.subr.bf16.mxu0 %v4768_v18 }
 0x14a   : > { %3033 = vmatmul.mubr.bf16.gmra.mxu1 %v4658_v61  ;;  %3122 = vmatmul.mubr.bf16.gmra.mxu0 %v4661_v62 }
 0x14b   : > { %3040 = vmatprep.mubr.bf16.mxu1 %v4666_v63  ;;  %3129 = vmatprep.mubr.bf16.mxu0 %v4669_v0 }
 0x14c   : > { %3260 = vmatpush2.bf16.msra.mxu0 %v4673_v1 }
 0x14d   : > { %3261 = vmatprep.subr.bf16.mxu0 %v4768_v18 }
 0x150   : > { %3262 = vmatpush2.bf16.msra.mxu0 %v4675_v2 }
 0x151   : > { %3263 = vmatprep.subr.bf16.mxu0 %v4768_v18 }
 0x152   : > { %3041 = vmatmul.mubr.bf16.gmra.mxu1 %v4668_v3  ;;  %3130 = vmatmul.mubr.bf16.gmra.mxu0 %v4671_v4 }
 0x153   : > { %3048 = vmatprep.mubr.bf16.mxu1 %v4676_v5  ;;  %3137 = vmatprep.mubr.bf16.mxu0 %v4679_v6 }
 0x154   : > { %3264 = vmatpush2.bf16.msra.mxu0 %v4684_v7 }
 0x155   : > { %3265 = vmatprep.subr.bf16.mxu0 %v4768_v18  ;;  %v4697_v18 = vld [vmem:[%s5961_s0 + $0xa0] ss:$56 sps:$4 sm:$0xff]  }
 0x158   : > { %3266 = vmatpush2.bf16.msra.mxu0 %v4685_v8 }
 0x15a   : > { %3049 = vmatmul.mubr.bf16.gmra.mxu1 %v4678_v9  ;;  %3138 = vmatmul.mubr.bf16.gmra.mxu0 %v4681_v10 }
 0x15b   : > { %3178 = vmatprep.mubr.bf16.mxu1 %v4688_v11  ;;  %3986 = vmatprep.mubr.msk.bf16.mxu0 %vm2679_vm0, %v4691_v12 }
 0x162   : > { %3179 = vmatmul.mubr.bf16.vlgmr.msra.gmra.mxu1 %v4686_v13  ;;  %3268 = vmatmul.mubr.bf16.vlgmr.msra.gmra.mxu0 %v4689_v14 }
 0x163   : > { %3186 = vmatprep.mubr.bf16.mxu1 %v4692_v15  ;;  %3987 = vmatprep.mubr.msk.bf16.mxu0 %vm2679_vm0, %v4695_v16 }
 0x16a   : > { %3187 = vmatmul.mubr.bf16.gmra.mxu1 %v4694_v17  ;;  %3276 = vmatmul.mubr.bf16.gmra.mxu0 %v4697_v18 }
 0x16b   : > { %3194 = vmatprep.mubr.bf16.mxu1 %v4698_v19  ;;  %3988 = vmatprep.mubr.msk.bf16.mxu0 %vm2679_vm0, %v4701_v20 }
 0x172   : > { %3195 = vmatmul.mubr.bf16.gmra.mxu1 %v4700_v21  ;;  %3284 = vmatmul.mubr.bf16.gmra.mxu0 %v4703_v22 }
 0x173   : > { %3202 = vmatprep.mubr.bf16.mxu1 %v4704_v23  ;;  %3989 = vmatprep.mubr.msk.bf16.mxu0 %vm2679_vm0, %v4707_v24 }
 0x17a   : > { %3203 = vmatmul.mubr.bf16.gmra.mxu1 %v4706_v25  ;;  %3292 = vmatmul.mubr.bf16.gmra.mxu0 %v4709_v26 }
 0x17b   : > { %3210 = vmatprep.mubr.bf16.mxu1 %v4710_v27  ;;  %3990 = vmatprep.mubr.msk.bf16.mxu0 %vm2679_vm0, %v4713_v28 }
 0x182   : > { %3211 = vmatmul.mubr.bf16.gmra.mxu1 %v4712_v29  ;;  %3300 = vmatmul.mubr.bf16.gmra.mxu0 %v4715_v30 }
 0x183   : > { %3218 = vmatprep.mubr.bf16.mxu1 %v4716_v31  ;;  %3991 = vmatprep.mubr.msk.bf16.mxu0 %vm2679_vm0, %v4719_v32 }
 0x18a   : > { %3219 = vmatmul.mubr.bf16.gmra.mxu1 %v4718_v33  ;;  %3308 = vmatmul.mubr.bf16.gmra.mxu0 %v4721_v34 }
 0x18b   : > { %3226 = vmatprep.mubr.bf16.mxu1 %v4722_v35  ;;  %3992 = vmatprep.mubr.msk.bf16.mxu0 %vm2679_vm0, %v4725_v36 }
 0x192   : > { %v4105_v39 = vpop.f32.mrf.mxu1  ;;  %3227 = vmatmul.mubr.bf16.gmra.mxu1 %v4724_v37  ;;  %v4081_v40 = vpop.f32.mrf.mxu0  ;;  %3316 = vmatmul.mubr.bf16.gmra.mxu0 %v4727_v38 }
 0x194   : > { %v4106_v41 = vpop.f32.mrf.mxu1  ;;  %v4082_v42 = vpop.f32.mrf.mxu0 }
 0x195   : > { %v5706_v43 = vadd.f32 %v4106_v41, %v4105_v39  ;;  %v4083_v44 = vadd.f32 %v4082_v42, %v4081_v40 }
 0x196   : > { %v4108_v45 = vpop.f32.mrf.mxu1  ;;  %v4084_v46 = vpop.f32.mrf.mxu0 }
 0x198   : > { %v4109_v47 = vpop.f32.mrf.mxu1  ;;  %v4085_v48 = vpop.f32.mrf.mxu0 }
 0x199   : > { %v5708_v49 = vadd.f32 %v4109_v47, %v4108_v45  ;;  %v4086_v50 = vadd.f32 %v4085_v48, %v4084_v46 }
 0x19a   : > { %v4087_v51 = vpop.f32.mrf.mxu0  ;;  %v4111_v52 = vpop.f32.mrf.mxu1 }
 0x19c   : > { %v4088_v53 = vpop.f32.mrf.mxu0  ;;  %v4112_v54 = vpop.f32.mrf.mxu1 }
 0x19d   : > { %v4089_v55 = vadd.f32 %v4088_v53, %v4087_v51  ;;  %v5710_v56 = vadd.f32 %v4112_v54, %v4111_v52 }
 0x19e   : > { %v4090_v57 = vpop.f32.mrf.mxu0  ;;  %v4114_v58 = vpop.f32.mrf.mxu1 }
 0x1a0   : > { %v4091_v59 = vpop.f32.mrf.mxu0  ;;  %v4115_v60 = vpop.f32.mrf.mxu1 }
 0x1a1   : > { %v4092_v61 = vadd.f32 %v4091_v59, %v4090_v57  ;;  %v5712_v62 = vadd.f32 %v4115_v60, %v4114_v58 }
 0x1a2   : > { %v4093_v63 = vpop.f32.mrf.mxu0  ;;  %v4117_v0 = vpop.f32.mrf.mxu1 }
 0x1a4   : > { %v4094_v1 = vpop.f32.mrf.mxu0  ;;  %v4118_v2 = vpop.f32.mrf.mxu1 }
 0x1a5   : > { %v4095_v3 = vadd.f32 %v4094_v1, %v4093_v63  ;;  %v5714_v4 = vadd.f32 %v4118_v2, %v4117_v0 }
 0x1a6   : > { %v4096_v5 = vpop.f32.mrf.mxu0  ;;  %v4120_v6 = vpop.f32.mrf.mxu1 }
 0x1a8   : > { %v4097_v7 = vpop.f32.mrf.mxu0  ;;  %v4121_v8 = vpop.f32.mrf.mxu1 }
 0x1a9   : > { %v4098_v9 = vadd.f32 %v4097_v7, %v4096_v5  ;;  %v5716_v10 = vadd.f32 %v4121_v8, %v4120_v6 }
 0x1aa   : > { %v4099_v11 = vpop.f32.mrf.mxu0 }
 0x1ac   : > { %v4100_v12 = vpop.f32.mrf.mxu0 }
 0x1ad   : > { %v4101_v13 = vadd.f32 %v4100_v12, %v4099_v11 }
 0x1ae   : > { %v4102_v14 = vpop.f32.mrf.mxu0 }
 0x1b0   : > { %v4103_v15 = vpop.f32.mrf.mxu0 }
 0x1b1   : > { %v5718_v16 = vadd.f32 %v4103_v15, %v4102_v14 }
 0x1b2   : > { %v4139_v17 = vpop.f32.mrf.mxu1  ;;  %v4197_v18 = vpop.f32.mrf.mxu0 }
 0x1b4   : > { %v4140_v19 = vpop.f32.mrf.mxu1  ;;  %v4198_v20 = vpop.f32.mrf.mxu0 }
 0x1b5   : > { %v4141_v21 = vadd.f32 %v4140_v19, %v4139_v17  ;;  %v4199_v22 = vadd.f32 %v4198_v20, %v4197_v18 }
 0x1b6   : > { %v4142_v23 = vpop.f32.mrf.mxu1  ;;  %v4200_v24 = vpop.f32.mrf.mxu0 }
 0x1b7   : > { %v2825_v25 = vadd.f32 %v4141_v21, %v4083_v44 }
 0x1b8   : > { %v4143_v26 = vpop.f32.mrf.mxu1  ;;  %v4201_v27 = vpop.f32.mrf.mxu0 }
 0x1b9   : > { %v5720_v28 = vadd.f32 %v4199_v22, %v2825_v25  ;;  %v4144_v29 = vadd.f32 %v4143_v26, %v4142_v23  ;;  %v4202_v30 = vadd.f32 %v4201_v27, %v4200_v24 }
 0x1ba   : > { %v4145_v31 = vpop.f32.mrf.mxu1  ;;  %v4203_v32 = vpop.f32.mrf.mxu0 }
 0x1bb   : > { %v2828_v33 = vadd.f32 %v4144_v29, %v4086_v50 }
 0x1bc   : > { %v4146_v34 = vpop.f32.mrf.mxu1  ;;  %v4204_v35 = vpop.f32.mrf.mxu0 }
 0x1bd   : > { %v5722_v36 = vadd.f32 %v4202_v30, %v2828_v33  ;;  %v4147_v37 = vadd.f32 %v4146_v34, %v4145_v31  ;;  %v4205_v38 = vadd.f32 %v4204_v35, %v4203_v32 }
 0x1be   : > { %v4148_v39 = vpop.f32.mrf.mxu1  ;;  %v4206_v40 = vpop.f32.mrf.mxu0 }
 0x1bf   : > { %v2833_v41 = vadd.f32 %v4147_v37, %v4089_v55 }
 0x1c0   : > { %v4149_v42 = vpop.f32.mrf.mxu1  ;;  %v4207_v44 = vpop.f32.mrf.mxu0 }
 0x1c1   : > { %v5724_v45 = vadd.f32 %v4205_v38, %v2833_v41  ;;  %v4150_v46 = vadd.f32 %v4149_v42, %v4148_v39  ;;  %v4208_v47 = vadd.f32 %v4207_v44, %v4206_v40 }
 0x1c2   : > { %v4151_v48 = vpop.f32.mrf.mxu1  ;;  %v4209_v51 = vpop.f32.mrf.mxu0 }
 0x1c3   : > { %v2836_v52 = vadd.f32 %v4150_v46, %v4092_v61 }
 0x1c4   : > { %v4152_v53 = vpop.f32.mrf.mxu1  ;;  %v4210_v50 = vpop.f32.mrf.mxu0 }
 0x1c5   : > { %v5726_v54 = vadd.f32 %v4208_v47, %v2836_v52  ;;  %v4153_v57 = vadd.f32 %v4152_v53, %v4151_v48  ;;  %v4211_v58 = vadd.f32 %v4210_v50, %v4209_v51 }
 0x1c6   : > { %v4154_v59 = vpop.f32.mrf.mxu1  ;;  %v4212_v60 = vpop.f32.mrf.mxu0 }
 0x1c7   : > { %v2841_v63 = vadd.f32 %v4153_v57, %v4095_v3 }
 0x1c8   : > { %v4155_v0 = vpop.f32.mrf.mxu1  ;;  %v4213_v55 = vpop.f32.mrf.mxu0 }
 0x1c9   : > { %v5728_v1 = vadd.f32 %v4211_v58, %v2841_v63  ;;  %v4156_v2 = vadd.f32 %v4155_v0, %v4154_v59  ;;  %v4214_v5 = vadd.f32 %v4213_v55, %v4212_v60 }
 0x1ca   : > { %v4157_v6 = vpop.f32.mrf.mxu1  ;;  %v4215_v7 = vpop.f32.mrf.mxu0 }
 0x1cb   : > { %v2844_v8 = vadd.f32 %v4156_v2, %v4098_v9 }
 0x1cc   : > { %v4158_v11 = vpop.f32.mrf.mxu1  ;;  %v4216_v61 = vpop.f32.mrf.mxu0 }
 0x1cd   : > { %v5730_v12 = vadd.f32 %v4214_v5, %v2844_v8  ;;  %v4159_v14 = vadd.f32 %v4158_v11, %v4157_v6  ;;  %v4217_v15 = vadd.f32 %v4216_v61, %v4215_v7 }
 0x1ce   : > { %v4160_v17 = vpop.f32.mrf.mxu1  ;;  %v4218_v18 = vpop.f32.mrf.mxu0 }
 0x1cf   : > { %v2849_v19 = vadd.f32 %v4159_v14, %v4101_v13 }
 0x1d0   : > { %v4161_v20 = vpop.f32.mrf.mxu1  ;;  %v4219_v3 = vpop.f32.mrf.mxu0 }
 0x1d1   : > { %v5732_v21 = vadd.f32 %v4217_v15, %v2849_v19  ;;  %v4162_v22 = vadd.f32 %v4161_v20, %v4160_v17  ;;  %v4220_v23 = vadd.f32 %v4219_v3, %v4218_v18 }
 0x1d2   : > { %v4163_v24 = vpop.f32.mrf.mxu1  ;;  %v4221_v25 = vpop.f32.mrf.mxu0 }
 0x1d3   : > { %v2852_v26 = vadd.f32 %v4162_v22, %v5718_v16 }
 0x1d4   : > { %v4164_v9 = vpop.f32.mrf.mxu1  ;;  %v4222_v27 = vpop.f32.mrf.mxu0 }
 0x1d5   : > { %v5735_v29 = vadd.f32 %v4220_v23, %v2852_v26  ;;  %v4165_v30 = vadd.f32 %v4164_v9, %v4163_v24  ;;  %v4223_v31 = vadd.f32 %v4222_v27, %v4221_v25 }
 0x1d6   : > { %v4166_v32 = vpop.f32.mrf.mxu1  ;;  %v4224_v33 = vpop.f32.mrf.mxu0 }
 0x1d7   : > { %v2857_v13 = vadd.f32 %v4165_v30, %v5706_v43 }
 0x1d8   : > { %v4167_v34 = vpop.f32.mrf.mxu1  ;;  %v4225_v35 = vpop.f32.mrf.mxu0 }
 0x1d9   : > { %v5738_v37 = vadd.f32 %v4223_v31, %v2857_v13  ;;  %v4168_v38 = vadd.f32 %v4167_v34, %v4166_v32  ;;  %v4226_v39 = vadd.f32 %v4225_v35, %v4224_v33 }
 0x1da   : > { %v4169_v40 = vpop.f32.mrf.mxu1  ;;  %v4227_v41 = vpop.f32.mrf.mxu0 }
 0x1db   : > { %v2860_v16 = vadd.f32 %v4168_v38, %v5708_v49 }
 0x1dc   : > { %v4170_v42 = vpop.f32.mrf.mxu1  ;;  %v4228_v44 = vpop.f32.mrf.mxu0 }
 0x1dd   : > { %v5741_v46 = vadd.f32 %v4226_v39, %v2860_v16  ;;  %v4171_v47 = vadd.f32 %v4170_v42, %v4169_v40  ;;  %v4229_v48 = vadd.f32 %v4228_v44, %v4227_v41 }
 0x1de   : > { %v4172_v51 = vpop.f32.mrf.mxu1  ;;  %v4230_v52 = vpop.f32.mrf.mxu0 }
 0x1df   : > { %v2865_v43 = vadd.f32 %v4171_v47, %v5710_v56 }
 0x1e0   : > { %v4173_v53 = vpop.f32.mrf.mxu1  ;;  %v4231_v50 = vpop.f32.mrf.mxu0 }
 0x1e1   : > { %v5744_v57 = vadd.f32 %v4229_v48, %v2865_v43  ;;  %v4174_v58 = vadd.f32 %v4173_v53, %v4172_v51  ;;  %v4232_v59 = vadd.f32 %v4231_v50, %v4230_v52 }
 0x1e2   : > { %v4175_v60 = vpop.f32.mrf.mxu1  ;;  %v4233_v63 = vpop.f32.mrf.mxu0 }
 0x1e3   : > { %5967 = vst [vmem:[#allocation5_spill] sm:$0xff] %v5744_v57  ;;  %v2868_v49 = vadd.f32 %v4174_v58, %v5712_v62 }
 0x1e4   : > { %v4176_v0 = vpop.f32.mrf.mxu1  ;;  %v4234_v55 = vpop.f32.mrf.mxu0 }
 0x1e5   : > { %v5747_v2 = vadd.f32 %v4232_v59, %v2868_v49  ;;  %v4177_v5 = vadd.f32 %v4176_v0, %v4175_v60  ;;  %v4235_v6 = vadd.f32 %v4234_v55, %v4233_v63 }
 0x1e6   : > { %v4178_v7 = vpop.f32.mrf.mxu1  ;;  %v4236_v8 = vpop.f32.mrf.mxu0 }
 0x1e7   : > { %5968 = vst [vmem:[#allocation6_spill] sm:$0xff] %v5747_v2  ;;  %v2873_v56 = vadd.f32 %v4177_v5, %v5714_v4 }
 0x1e8   : > { %v4179_v11 = vpop.f32.mrf.mxu1  ;;  %v4237_v61 = vpop.f32.mrf.mxu0 }
 0x1e9   : > { %v5750_v14 = vadd.f32 %v4235_v6, %v2873_v56  ;;  %v4180_v15 = vadd.f32 %v4179_v11, %v4178_v7  ;;  %v4238_v17 = vadd.f32 %v4237_v61, %v4236_v8 }
 0x1ea   : > { %v4255_v18 = vpop.f32.mrf.mxu1  ;;  %v4313_v19 = vpop.f32.mrf.mxu0 }
 0x1eb   : > { %5969 = vst [vmem:[#allocation7_spill] sm:$0xff] %v5750_v14  ;;  %v2876_v62 = vadd.f32 %v4180_v15, %v5716_v10 }
 0x1ec   : > { %v4256_v20 = vpop.f32.mrf.mxu1  ;;  %v4314_v3 = vpop.f32.mrf.mxu0 }
 0x1ed   : > { %v5753_v22 = vadd.f32 %v4238_v17, %v2876_v62  ;;  %v4257_v2 = vadd.f32 %v4256_v20, %v4255_v18 }
 0x1ee   : > { %v4258_v23 = vpop.f32.mrf.mxu1  ;;  %v5755_v24 = vpop.f32.mrf.mxu0 }
 0x1ef   : > { %5970 = vst [vmem:[#allocation8_spill] sm:$0xff] %v5753_v22 }
 0x1f0   : > { %v4259_v25 = vpop.f32.mrf.mxu1  ;;  %v5757_v26 = vpop.f32.mrf.mxu0 }
 0x1f2   : > { %v4261_v4 = vpop.f32.mrf.mxu1  ;;  %v5759_v9 = vpop.f32.mrf.mxu0 }
 0x1f4   : > { %v4262_v27 = vpop.f32.mrf.mxu1  ;;  %v5761_v30 = vpop.f32.mrf.mxu0 }
 0x1f5   : > { %v4263_v20 = vadd.f32 %v4262_v27, %v4261_v4 }
 0x1f6   : > { %v4264_v31 = vpop.f32.mrf.mxu1  ;;  %v5763_v32 = vpop.f32.mrf.mxu0 }
 0x1f8   : > { %v4265_v10 = vpop.f32.mrf.mxu1  ;;  %v5765_v33 = vpop.f32.mrf.mxu0 }
 0x1fa   : > { %v5767_v13 = vpop.f32.mrf.mxu1  ;;  %v5769_v34 = vpop.f32.mrf.mxu0 }
 0x1fc   : > { %v5771_v35 = vpop.f32.mrf.mxu1  ;;  %v5773_v38 = vpop.f32.mrf.mxu0 }
 0x1fe   : > { %v5775_v39 = vpop.f32.mrf.mxu1  ;;  %v5777_v40 = vpop.f32.mrf.mxu0 }
 0x200   : > { %v5779_v41 = vpop.f32.mrf.mxu1  ;;  %v5781_v16 = vpop.f32.mrf.mxu0 }
 0x202   : > { %v5783_v42 = vpop.f32.mrf.mxu1  ;;  %v5785_v44 = vpop.f32.mrf.mxu0 }
 0x204   : > { %v5787_v47 = vpop.f32.mrf.mxu1  ;;  %v5789_v48 = vpop.f32.mrf.mxu0 }
 0x206   : > { %v5791_v51 = vpop.f32.mrf.mxu1  ;;  %v5793_v52 = vpop.f32.mrf.mxu0 }
 0x208   : > { %v5795_v43 = vpop.f32.mrf.mxu1  ;;  %v5797_v53 = vpop.f32.mrf.mxu0 }
 0x20a   : > { %v5799_v50 = vpop.f32.mrf.mxu1  ;;  %v5801_v58 = vpop.f32.mrf.mxu0 }
 0x20c   : > { %v5803_v59 = vpop.f32.mrf.mxu1  ;;  %v5805_v60 = vpop.f32.mrf.mxu0 }
 0x20e   : > { %v5807_v63 = vpop.f32.mrf.mxu1  ;;  %v5809_v49 = vpop.f32.mrf.mxu0 }
 0x20f   : > { %5971 = vst [vmem:[#allocation9_spill] sm:$0xff] %v5809_v49 }
 0x210   : > { %v5811_v0 = vpop.f32.mrf.mxu1  ;;  %v5813_v55 = vpop.f32.mrf.mxu0 }
 0x211   : > { %5972 = vst [vmem:[#allocation10_spill] sm:$0xff] %v5813_v55 }
 0x212   : > { %v5815_v5 = vpop.f32.mrf.mxu1  ;;  %v5817_v6 = vpop.f32.mrf.mxu0 }
 0x213   : > { %5973 = vst [vmem:[#allocation11_spill] sm:$0xff] %v5817_v6  ;;  %v4260_v6 = vadd.f32 %v4259_v25, %v4258_v23  ;;  %v4321_v23 = vadd.f32 %v5761_v30, %v5759_v9  ;;  %v4324_v9 = vadd.f32 %v5765_v33, %v5763_v32 }
 0x214   : > { %v5819_v7 = vpop.f32.mrf.mxu1  ;;  %v5821_v8 = vpop.f32.mrf.mxu0 }
 0x215   : > { %5974 = vst [vmem:[#allocation12_spill] sm:$0xff] %v5819_v7  ;;  %5975 = vst [vmem:[#allocation13_spill] sm:$0xff] %v5821_v8  ;;  %v3006_v18 = vadd.f32 %v4260_v6, %v5722_v36  ;;  %v4266_v7 = vadd.f32 %v4265_v10, %v4264_v31 }
 0x216   : > { %v5823_v56 = vpop.f32.mrf.mxu1  ;;  %v5825_v11 = vpop.f32.mrf.mxu0 }
 0x217   : > { %5976 = vst [vmem:[#allocation14_spill] sm:$0xff] %v5823_v56  ;;  %5977 = vst [vmem:[#allocation15_spill] sm:$0xff] %v5825_v11  ;;  %v3014_v6 = vadd.f32 %v4266_v7, %v5726_v54  ;;  %v4327_v54 = vadd.f32 %v5773_v38, %v5769_v34  ;;  %v4272_v7 = vadd.f32 %v5779_v41, %v5775_v39 }
 0x218   : > { %v5827_v61 = vpop.f32.mrf.mxu1  ;;  %v5829_v15 = vpop.f32.mrf.mxu0  ;;  %v4275_v38 = vadd.f32 %v5787_v47, %v5783_v42  ;;  %v4333_v42 = vadd.f32 %v5789_v48, %v5785_v44 }
 0x219   : > { %5978 = vst [vmem:[#allocation16_spill] sm:$0xff] %v5827_v61  ;;  %5979 = vst [vmem:[#allocation17_spill] sm:$0xff] %v5829_v15  ;;  %v3003_v61 = vadd.f32 %v4257_v2, %v5720_v28  ;;  %v4315_v15 = vadd.f32 %v4314_v3, %v4313_v19  ;;  %v3011_v3 = vadd.f32 %v4263_v20, %v5724_v45 }
 0x21a   : > { %v5831_v17 = vpop.f32.mrf.mxu1  ;;  %v5833_v62 = vpop.f32.mrf.mxu0  ;;  %v3022_v34 = vadd.f32 %v4272_v7, %v5730_v12 }
 0x21b   : > { %5980 = vst [vmem:[#allocation18_spill] sm:$0xff] %v5831_v17  ;;  %5981 = vst [vmem:[#allocation19_spill] sm:$0xff] %v5833_v62 }
 0x21c   : > { %v5835_v22 = vpop.f32.mrf.mxu1  ;;  %v5837_v14 = vpop.f32.mrf.mxu0 }
 0x21d   : > { %5982 = vst [vmem:[#allocation20_spill] sm:$0xff] %v5835_v22  ;;  %5983 = vst [vmem:[#allocation21_spill] sm:$0xff] %v5837_v14  ;;  %v3092_v22 = vadd.f32 %v4315_v15, %v3003_v61  ;;  %v3103_v15 = vadd.f32 %v4324_v9, %v3014_v6 }
 0x21e   : > { %v5839_v57 = vpop.f32.mrf.mxu1  ;;  %v5841_v8 = vpop.f32.mrf.mxu0 }
 0x21f   : > { %5984 = vst [vmem:[#allocation22_spill] sm:$0xff] %v5839_v57  ;;  %5985 = vst [vmem:[#allocation23_spill] sm:$0xff] %v5841_v8 }
 0x220   : > { %v5843_v56 = vpop.f32.mrf.mxu1  ;;  %v5845_v11 = vpop.f32.mrf.mxu0 }
 0x221   : > { %5986 = vst [vmem:[#allocation24_spill] sm:$0xff] %v5843_v56  ;;  %5987 = vst [vmem:[#allocation25_spill] sm:$0xff] %v5845_v11  ;;  %v4318_v56 = vadd.f32 %v5757_v26, %v5755_v24  ;;  %v4269_v26 = vadd.f32 %v5771_v35, %v5767_v13 }
 0x222   : > { %v4371_v17 = vpop.f32.mrf.mxu1  ;;  %v3269_v55 = vpop.f32.mrf.mxu0 }
 0x223   : > { %v3095_v19 = vadd.f32 %v4318_v56, %v3006_v18 }
 0x224   : > { %v4372_v62 = vpop.f32.mrf.mxu1  ;;  %v3271_v49 = vpop.f32.mrf.mxu0 }
 0x225   : > { %v4373_v57 = vadd.f32 %v4372_v62, %v4371_v17 }
 0x226   : > { %v4374_v14 = vpop.f32.mrf.mxu1  ;;  %v3272_v8 = vpop.f32.mrf.mxu0 }
 0x227   : > { %v3181_v11 = vadd.f32 %v4373_v57, %v3092_v22  ;;  %v3100_v22 = vadd.f32 %v4321_v23, %v3011_v3 }
 0x228   : > { %v4375_v28 = vpop.f32.mrf.mxu1  ;;  %v3274_v2 = vpop.f32.mrf.mxu0 }
 0x229   : > { %v4376_v25 = vadd.f32 %v4375_v28, %v4374_v14  ;;  %v3270_v49 = vadd.f32 %v3269_v55, %v3181_v11 }
 0x22a   : > { %v4377_v36 = vpop.f32.mrf.mxu1  ;;  %v3277_v4 = vpop.f32.mrf.mxu0 }
 0x22b   : > { %v3184_v27 = vadd.f32 %v4376_v25, %v3095_v19  ;;  %v3459_v14 = vmul.f32 %v3270_v49, %v3270_v49  ;;  %v4330_v25 = vadd.f32 %v5781_v16, %v5777_v40 }
 0x22c   : > { %v4378_v24 = vpop.f32.mrf.mxu1  ;;  %v3279_v57 = vpop.f32.mrf.mxu0 }
 0x22d   : > { %v3273_v31 = vadd.f32 %v3272_v8, %v3184_v27  ;;  %v4379_v45 = vadd.f32 %v4378_v24, %v4377_v36  ;;  %v3019_v8 = vadd.f32 %v4269_v26, %v5728_v1  ;;  %v3111_v12 = vadd.f32 %v4330_v25, %v3022_v34 }
 0x22e   : > { %v4380_v30 = vpop.f32.mrf.mxu1  ;;  %v3280_v10 = vpop.f32.mrf.mxu0  ;;  %v3027_v57 = vadd.f32 %v4275_v38, %v5732_v21  ;;  %v4278_v26 = vadd.f32 %v5795_v43, %v5791_v51  ;;  %v4281_v21 = vadd.f32 %v5803_v59, %v5799_v50  ;;  %v4339_v50 = vadd.f32 %v5805_v60, %v5801_v58  ;;  %v5988_v60 = vld [vmem:[#allocation12_spill] sm:$0xff] }
 0x22f   : > { %v4027_v55 = vpack.c.bf16 %v3273_v31, %v3270_v49  ;;  %v3439_v56 = vadd.f32 %v3273_v31, %v3270_v49  ;;  %v3460_v11 = vmul.f32 %v3273_v31, %v3273_v31  ;;  %v3189_v61 = vadd.f32 %v4379_v45, %v3100_v22 }
 0x230   : > { %v4381_v13 = vpop.f32.mrf.mxu1  ;;  %v3282_v35 = vpop.f32.mrf.mxu0  ;;  %v3108_v1 = vadd.f32 %v4327_v54, %v3019_v8  ;;  %v3030_v48 = vadd.f32 %v4278_v26, %v5735_v29  ;;  %v4284_v29 = vadd.f32 %v5811_v0, %v5807_v63  ;;  %v4287_v63 = vadd.f32 %v5988_v60, %v5815_v5 }
 0x231   : > { %4028 = vst [vmem:[%s5866_s15] sm:$0xff] %v4027_v55   ;;  %v3473_v32 = vadd.f32 %v3460_v11, %v3459_v14  ;;  %v3278_v33 = vadd.f32 %v3277_v4, %v3189_v61  ;;  %v4382_v17 = vadd.f32 %v4381_v13, %v4380_v30  ;;  %v3116_v55 = vadd.f32 %v4333_v42, %v3027_v57  ;;  %v5993_v42 = vld [vmem:[#allocation14_spill] sm:$0xff] }
 0x232   : > { %v4383_v62 = vpop.f32.mrf.mxu1  ;;  %v3285_v18 = vpop.f32.mrf.mxu0  ;;  %v4336_v61 = vadd.f32 %v5797_v53, %v5793_v52 }
 0x233   : > { %v3440_v20 = vadd.f32 %v3439_v56, %v3278_v33  ;;  %v3461_v28 = vmul.f32 %v3278_v33, %v3278_v33  ;;  %v3192_v2 = vadd.f32 %v4382_v17, %v3103_v15 }
 0x234   : > { %v4384_v39 = vpop.f32.mrf.mxu1  ;;  %v3287_v41 = vpop.f32.mrf.mxu0  ;;  %v3119_v17 = vadd.f32 %v4336_v61, %v3030_v48  ;;  %v5997_v48 = vld [vmem:[#allocation18_spill] sm:$0xff] }
 0x235   : > { %v3474_v19 = vadd.f32 %v3473_v32, %v3461_v28  ;;  %v3281_v3 = vadd.f32 %v3280_v10, %v3192_v2  ;;  %v4385_v23 = vadd.f32 %v4384_v39, %v4383_v62  ;;  %v3035_v32 = vadd.f32 %v4281_v21, %v5738_v37 }
 0x236   : > { %v4386_v49 = vpop.f32.mrf.mxu1  ;;  %v3288_v36 = vpop.f32.mrf.mxu0  ;;  %v3038_v37 = vadd.f32 %v4284_v29, %v5741_v46  ;;  %v5991_v46 = vld [vmem:[#allocation11_spill] sm:$0xff] }
 0x237   : > { %v4032_v4 = vpack.c.bf16 %v3281_v3, %v3278_v33  ;;  %v3441_v27 = vadd.f32 %v3440_v20, %v3281_v3  ;;  %v3462_v6 = vmul.f32 %v3281_v3, %v3281_v3  ;;  %v3197_v24 = vadd.f32 %v4385_v23, %v3108_v1  ;;  %v5990_v3 = vld [vmem:[#allocation10_spill] sm:$0xff] }
 0x238   : > { %v4387_v47 = vpop.f32.mrf.mxu1  ;;  %v3290_v22 = vpop.f32.mrf.mxu0  ;;  %v3124_v38 = vadd.f32 %v4339_v50, %v3035_v32 }
 0x239   : > { %4059 = vst [vmem:[%s5866_s15 + $0x8] sm:$0xff] %v4032_v4   ;;  %v3475_v31 = vadd.f32 %v3474_v19, %v3462_v6  ;;  %v3286_v40 = vadd.f32 %v3285_v18, %v3197_v24  ;;  %v4388_v16 = vadd.f32 %v4387_v47, %v4386_v49  ;;  %v5989_v19 = vld [vmem:[#allocation9_spill] sm:$0xff]  ;;  %v5994_v47 = vld [vmem:[#allocation16_spill] sm:$0xff] }
 0x23a   : > { %v4389_v45 = vpop.f32.mrf.mxu1  ;;  %v3293_v9 = vpop.f32.mrf.mxu0  ;;  %v4342_v23 = vadd.f32 %v5990_v3, %v5989_v19  ;;  %v4290_v5 = vadd.f32 %v5994_v47, %v5993_v42 }
 0x23b   : > { %v3442_v14 = vadd.f32 %v3441_v27, %v3286_v40  ;;  %v3463_v30 = vmul.f32 %v3286_v40, %v3286_v40  ;;  %v3200_v10 = vadd.f32 %v4388_v16, %v3111_v12  ;;  %v5992_v12 = vld [vmem:[#allocation13_spill] sm:$0xff] }
 0x23c   : > { %v4390_v56 = vpop.f32.mrf.mxu1  ;;  %v3295_v44 = vpop.f32.mrf.mxu0  ;;  %v3127_v24 = vadd.f32 %v4342_v23, %v3038_v37  ;;  %v4345_v57 = vadd.f32 %v5992_v12, %v5991_v46  ;;  %v6004_v37 = vld [vmem:[#allocation22_spill] sm:$0xff]  ;;  %v6007_v12 = vld [vmem:[#allocation23_spill] sm:$0xff] }
 0x23d   : > { %v3476_v11 = vadd.f32 %v3475_v31, %v3463_v30  ;;  %v3289_v51 = vadd.f32 %v3288_v36, %v3200_v10  ;;  %v4391_v43 = vadd.f32 %v4390_v56, %v4389_v45  ;;  %v5995_v31 = vld [vmem:[#allocation5_spill] sm:$0xff]  ;;  %v5996_v56 = vld [vmem:[#allocation6_spill] sm:$0xff] }
 0x23e   : > { %v4392_v15 = vpop.f32.mrf.mxu1  ;;  %v3296_v54 = vpop.f32.mrf.mxu0  ;;  %v3046_v44 = vadd.f32 %v4290_v5, %v5996_v56 }
 0x23f   : > { %v4037_v7 = vpack.c.bf16 %v3289_v51, %v3286_v40  ;;  %v3443_v13 = vadd.f32 %v3442_v14, %v3289_v51  ;;  %v3464_v35 = vmul.f32 %v3289_v51, %v3289_v51  ;;  %v3205_v8 = vadd.f32 %v4391_v43, %v3116_v55 }
 0x240   : > { %v4393_v59 = vpop.f32.mrf.mxu1  ;;  %v3298_v33 = vpop.f32.mrf.mxu0  ;;  %v3043_v40 = vadd.f32 %v4287_v63, %v5995_v31 }
 0x241   : > { %4060 = vst [vmem:[%s5866_s15 + $0x10] sm:$0xff] %v4037_v7   ;;  %v3477_v62 = vadd.f32 %v3476_v11, %v3464_v35  ;;  %v3294_v52 = vadd.f32 %v3293_v9, %v3205_v8  ;;  %v4394_v53 = vadd.f32 %v4393_v59, %v4392_v15  ;;  %v5998_v11 = vld [vmem:[#allocation20_spill] sm:$0xff]  ;;  %v5999_v35 = vld [vmem:[#allocation15_spill] sm:$0xff]  ;;  %v6000_v8 = vld [vmem:[#allocation17_spill] sm:$0xff] }
 0x242   : > { %v4395_v18 = vpop.f32.mrf.mxu1  ;;  %v3301_v20 = vpop.f32.mrf.mxu0  ;;  %v4293_v51 = vadd.f32 %v5998_v11, %v5997_v48  ;;  %v3132_v15 = vadd.f32 %v4345_v57, %v3043_v40  ;;  %v4348_v32 = vadd.f32 %v6000_v8, %v5999_v35  ;;  %v6008_v57 = vld [vmem:[#allocation25_spill] sm:$0xff] }
 0x243   : > { %v3444_v28 = vadd.f32 %v3443_v13, %v3294_v52  ;;  %v3465_v2 = vmul.f32 %v3294_v52, %v3294_v52  ;;  %v3208_v34 = vadd.f32 %v4394_v53, %v3119_v17  ;;  %v6001_v53 = vld [vmem:[#allocation7_spill] sm:$0xff]  ;;  %v4354_v42 = vadd.f32 %v6008_v57, %v6007_v12 }
 0x244   : > { %v4396_v39 = vpop.f32.mrf.mxu1  ;;  %v3303_v58 = vpop.f32.mrf.mxu0 }
 0x245   : > { %v3478_v0 = vadd.f32 %v3477_v62, %v3465_v2  ;;  %v3297_v41 = vadd.f32 %v3296_v54, %v3208_v34  ;;  %v4397_v1 = vadd.f32 %v4396_v39, %v4395_v18  ;;  %v3051_v18 = vadd.f32 %v4293_v51, %v6001_v53  ;;  %v6005_v39 = vld [vmem:[#allocation24_spill] sm:$0xff] }
 0x246   : > { %v4398_v25 = vpop.f32.mrf.mxu1  ;;  %v3304_v49 = vpop.f32.mrf.mxu0  ;;  %v4296_v58 = vadd.f32 %v6005_v39, %v6004_v37  ;;  %v3539_v53 = vld [vmem:[%s5866_s15 + $0x8] sm:$0xf] (%p4829_p6) }
 0x247   : > { %v4042_v36 = vpack.c.bf16 %v3297_v41, %v3294_v52  ;;  %v3445_v4 = vadd.f32 %v3444_v28, %v3297_v41  ;;  %v3466_v27 = vmul.f32 %v3297_v41, %v3297_v41  ;;  %v3213_v6 = vadd.f32 %v4397_v1, %v3124_v38  ;;  %v6003_v28 = vld [vmem:[#allocation21_spill] sm:$0xff]  ;;  %3540 = vst [vmem:[%s3518_s28 + $0x10] sm:$0xf] (%p4829_p6), %v3539_v53 }
 0x248   : > { %v4399_v22 = vpop.f32.mrf.mxu1  ;;  %v3306_v26 = vpop.f32.mrf.mxu0  ;;  %v3135_v52 = vadd.f32 %v4348_v32, %v3046_v44 }
 0x249   : > { %4061 = vst [vmem:[%s5866_s15 + $0x18] sm:$0xff] %v4042_v36   ;;  %v3479_v16 = vadd.f32 %v3478_v0, %v3466_v27  ;;  %v3302_v45 = vadd.f32 %v3301_v20, %v3213_v6  ;;  %v4400_v9 = vadd.f32 %v4399_v22, %v4398_v25  ;;  %v6002_v20 = vld [vmem:[#allocation19_spill] sm:$0xff] }
 0x24a   : > { %v4401_v14 = vpop.f32.mrf.mxu1  ;;  %v3309_v30 = vpop.f32.mrf.mxu0  ;;  %v4351_v2 = vadd.f32 %v6003_v28, %v6002_v20  ;;  %v3543_v20 = vld [vmem:[%s5866_s15 + $0x10] sm:$0xf] (%p4829_p6)  ;;  %v3545_v28 = vld [vmem:[%s5866_s15 + $0x14] sm:$0xf] (%p4829_p6) }
 0x24b   : > { %v3446_v10 = vadd.f32 %v3445_v4, %v3302_v45  ;;  %v3467_v55 = vmul.f32 %v3302_v45, %v3302_v45  ;;  %v3216_v21 = vadd.f32 %v4400_v9, %v3127_v24  ;;  %v6006_v4 = vld [vmem:[#allocation8_spill] sm:$0xff]  ;;  %3544 = vst [vmem:[%s3518_s28 + $0x20] sm:$0xf] (%p4829_p6), %v3543_v20  ;;  %3546 = vst [vmem:[%s3518_s28 + $0x28] sm:$0xf] (%p4829_p6), %v3545_v28 }
 0x24c   : > { %v4402_v43 = vpop.f32.mrf.mxu1  ;;  %v3311_v61 = vpop.f32.mrf.mxu0  ;;  %v3140_v25 = vadd.f32 %v4351_v2, %v3051_v18  ;;  %v3054_v27 = vadd.f32 %v4296_v58, %v6006_v4  ;;  %v3541_v18 = vld [vmem:[%s5866_s15 + $0xc] sm:$0xf] (%p4829_p6) }
 0x24d   : > { %v3480_v54 = vadd.f32 %v3479_v16, %v3467_v55  ;;  %v3305_v7 = vadd.f32 %v3304_v49, %v3216_v21  ;;  %v4403_v13 = vadd.f32 %v4402_v43, %v4401_v14  ;;  %3542 = vst [vmem:[%s3518_s28 + $0x18] sm:$0xf] (%p4829_p6), %v3541_v18 }
 0x24e   : > { %v4404_v50 = vpop.f32.mrf.mxu1  ;;  %v3312_v29 = vpop.f32.mrf.mxu0  ;;  %v3143_v9 = vadd.f32 %v4354_v42, %v3054_v27 }
 0x24f   : > { %v4047_v59 = vpack.c.bf16 %v3305_v7, %v3302_v45  ;;  %v3447_v33 = vadd.f32 %v3446_v10, %v3305_v7  ;;  %v3468_v17 = vmul.f32 %v3305_v7, %v3305_v7  ;;  %v3221_v62 = vadd.f32 %v4403_v13, %v3132_v15 }
 0x250   : > { %v4405_v34 = vpop.f32.mrf.mxu1  ;;  %v3314_v38 = vpop.f32.mrf.mxu0  ;;  %v3547_v2 = vld [vmem:[%s5866_s15 + $0x18] sm:$0xf] (%p4829_p6) }
 0x251   : > { %4062 = vst [vmem:[%s5866_s15 + $0x20] sm:$0xff] %v4047_v59   ;;  %v3481_v60 = vadd.f32 %v3480_v54, %v3468_v17  ;;  %v3310_v63 = vadd.f32 %v3309_v30, %v3221_v62  ;;  %v4406_v0 = vadd.f32 %v4405_v34, %v4404_v50  ;;  %v3535_v62 = vld [vmem:[%s5866_s15] sm:$0xf] (%p4829_p6)  ;;  %v3549_v34 = vld [vmem:[%s5866_s15 + $0x1c] sm:$0xf] (%p4829_p6) }
 0x252   : > { %v4407_v41 = vpop.f32.mrf.mxu1  ;;  %v3317_v1 = vpop.f32.mrf.mxu0  ;;  %3536 = vst [vmem:[%s3518_s28] sm:$0xf] (%p4829_p6), %v3535_v62  ;;  %3548 = vst [vmem:[%s3518_s28 + $0x30] sm:$0xf] (%p4829_p6), %v3547_v2 }
 0x253   : > { %v3448_v19 = vadd.f32 %v3447_v33, %v3310_v63  ;;  %v3469_v3 = vmul.f32 %v3310_v63, %v3310_v63  ;;  %v3224_v23 = vadd.f32 %v4406_v0, %v3135_v52  ;;  %v3537_v52 = vld [vmem:[%s5866_s15 + $0x4] sm:$0xf] (%p4829_p6)  ;;  %3550 = vst [vmem:[%s3518_s28 + $0x38] sm:$0xf] (%p4829_p6), %v3549_v34 }
 0x254   : > { %v4408_v49 = vpop.f32.mrf.mxu1  ;;  %v3319_v36 = vpop.f32.mrf.mxu0  ;;  %3538 = vst [vmem:[%s3518_s28 + $0x8] sm:$0xf] (%p4829_p6), %v3537_v52 }
 0x255   : > { %v3482_v6 = vadd.f32 %v3481_v60, %v3469_v3  ;;  %v3313_v24 = vadd.f32 %v3312_v29, %v3224_v23  ;;  %v4409_v46 = vadd.f32 %v4408_v49, %v4407_v41 }
 0x256   : > { %v4410_v47 = vpop.f32.mrf.mxu1  ;;  %v3320_v5 = vpop.f32.mrf.mxu0 }
 0x257   : > { %v4052_v22 = vpack.c.bf16 %v3313_v24, %v3310_v63  ;;  %v3449_v26 = vadd.f32 %v3448_v19, %v3313_v24  ;;  %v3470_v31 = vmul.f32 %v3313_v24, %v3313_v24  ;;  %v3229_v40 = vadd.f32 %v4409_v46, %v3140_v25 }
 0x258   : > { %v4411_v16 = vpop.f32.mrf.mxu1  ;;  %v3322_v45 = vpop.f32.mrf.mxu0  ;;  %v3551_v38 = vld [vmem:[%s5866_s15 + $0x20] sm:$0xf] (%p4829_p6)  ;;  %v3553_v37 = vld [vmem:[%s5866_s15 + $0x24] sm:$0xf] (%p4829_p6) }
 0x259   : > { %4063 = vst [vmem:[%s5866_s15 + $0x28] sm:$0xff] %v4052_v22   ;;  %v3483_v14 = vadd.f32 %v3482_v6, %v3470_v31  ;;  %v3318_v30 = vadd.f32 %v3317_v1, %v3229_v40  ;;  %v4412_v10 = vadd.f32 %v4411_v16, %v4410_v47  ;;  %3552 = vst [vmem:[%s3518_s28 + $0x40] sm:$0xf] (%p4829_p6), %v3551_v38 }
 0x25a   : > { %3554 = vst [vmem:[%s3518_s28 + $0x48] sm:$0xf] (%p4829_p6), %v3553_v37 }
 0x25b   : > { %v3450_v55 = vadd.f32 %v3449_v26, %v3318_v30  ;;  %v3471_v21 = vmul.f32 %v3318_v30, %v3318_v30  ;;  %v3232_v56 = vadd.f32 %v4412_v10, %v3143_v9 }
 0x25d   : > { %v3484_v44 = vadd.f32 %v3483_v14, %v3471_v21  ;;  %v3321_v48 = vadd.f32 %v3320_v5, %v3232_v56 }
 0x25f   : > { %v4057_v11 = vpack.c.bf16 %v3321_v48, %v3318_v30  ;;  %v3451_v51 = vadd.f32 %v3450_v55, %v3321_v48  ;;  %v3472_v43 = vmul.f32 %v3321_v48, %v3321_v48 }
 0x260   : > { %v3555_v39 = vld [vmem:[%s5866_s15 + $0x28] sm:$0xf] (%p4829_p6)  ;;  %v3557_v58 = vld [vmem:[%s5866_s15 + $0x2c] sm:$0xf] (%p4829_p6) }
 0x261   : > { %4064 = vst [vmem:[%s5866_s15 + $0x30] sm:$0xff] %v4057_v11   ;;  %v3452_v61 = vrot.slane %v3451_v51, 4  ;;  %v3485_v15 = vadd.f32 %v3484_v44, %v3472_v43  ;;  %3556 = vst [vmem:[%s3518_s28 + $0x50] sm:$0xf] (%p4829_p6), %v3555_v39 }
 0x262   : > { %3558 = vst [vmem:[%s3518_s28 + $0x58] sm:$0xf] (%p4829_p6), %v3557_v58 }
 0x263   : > { %v3453_v54 = vadd.f32 %v3452_v61, %v3451_v51  ;;  %v3486_v7 = vrot.slane %v3485_v15, 4 }
 0x265   : > { %v3454_v13 = vrot.slane %v3453_v54, 2  ;;  %v3487_v35 = vadd.f32 %v3486_v7, %v3485_v15 }
 0x267   : > { %v3455_v8 = vadd.f32 %v3454_v13, %v3453_v54  ;;  %v3488_v32 = vrot.slane %v3487_v35, 2 }
 0x268   : > { %v3559_v60 = vld [vmem:[%s5866_s15 + $0x30] sm:$0xf] (%p4829_p6)  ;;  %v3561_v63 = vld [vmem:[%s5866_s15 + $0x34] sm:$0xf] (%p4829_p6) }
 0x269   : > { %v3456_v50 = vrot.slane %v3455_v8, 1  ;;  %v3489_v29 = vadd.f32 %v3488_v32, %v3487_v35  ;;  %3560 = vst [vmem:[%s3518_s28 + $0x60] sm:$0xf] (%p4829_p6), %v3559_v60  ;;  %3562 = vst [vmem:[%s3518_s28 + $0x68] sm:$0xf] (%p4829_p6), %v3561_v63 }
 0x26b   : > { %v3457_v59 = vadd.f32 %v3456_v50, %v3455_v8  ;;  %v3490_v33 = vrot.slane %v3489_v29, 1  ;;  %3513 = sbr.rel (!%p4829_p6) target bundleno = 624 (0x270), region = 81 }
 0x26d   : > { %3458 = vst [vmem:[%s1193_s12] sm:$0x1] %v3457_v59  ;;  %v3491_v17 = vadd.f32 %v3490_v33, %v3489_v29 }
 0x26f   : > { %3492 = vst [vmem:[%s1200_s22] sm:$0x1] %v3491_v17 }
 0x270 PF: > { %s15_s19 = sadd.s32 1, %s4766_s19   ;;  %s6009_s15 = smov %s4754_s16 }
 0x271   : > { %p12_p12 = scmp.ge.s32.totalorder %s15_s19, 4   ;;  %s6010_s16 = smov %s4834_s25 }
 0x272   : > { %s6011_s17 = smov %s4762_s18  ;;  %s6012_s18 = smov %s6014_s20 }
 0x273   :  { %14 = sbr.rel (!%p12_p12) target bundleno = 3 (0x3), region = 180 }

// kernel: inception_d_forward.35
= control target key start
LH: loop header
LB: loop body
LE: loop exit
PB: predicated region body
PF: predicated region fallthrough
CT: control target
= control target key end

     0   :  { %s435_s18 = smov 0   ;;  %s464_s0 = inlined_call_operand.vmem [shape: f32[1,1,256], index: 0, kind: input, shape index: {}]   ;;  %s465_s1 = inlined_call_operand.vmem [shape: f32[1,1,256], index: 1, kind: input, shape index: {}]   ;;  %s466_s2 = inlined_call_operand.vmem [shape: f32[1,256], index: 2, kind: input, shape index: {}]   ;;  %s467_s3 = inlined_call_operand.vmem [shape: f32[1,256], index: 3, kind: input, shape index: {}]   ;;  %s468_s4 = inlined_call_operand.vmem [shape: f32[1,256], index: 4, kind: output, shape index: {0}]   ;;  %s469_s5 = inlined_call_operand.vmem [shape: f32[1,256], index: 5, kind: output, shape index: {1}]  }
   0x1 LB: > { %s380_s19 = sadd.s32 4294967295, %s403_s18   ;;  %p384_p0 = scmp.ge.s32.totalorder %s403_s18, 1  ;;  %s403_s18 = sphi %s435_s18, %s16_s18  }
   0x2   : > { %p212_p1 = scmp.lt.s32.totalorder %s403_s18, 3 }
   0x4   : > { %p213_p2 = pnand %p384_p0, %p212_p1 }
   0x5   : > { %p248_p3 = scmp.lt.s32.totalorder (!%p213_p2), %s380_s19, 1 }
   0x6   : > { %216 = sbr.rel (%p213_p2) target bundleno = 45 (0x2d), region = 36 }
   0xb   : > { %s471_s19 = smov (!%p248_p3, %s380_s19), 1 }
   0xc   : > { %s250_s22 = scalar_lea.vmem %s464_s0, %s471_s19  ;;  %s253_s25 = scalar_lea.vmem %s465_s1, %s471_s19 }
   0xd   : > { %v266_v0 = vld [vmem:[%s250_s22] sm:$0x1]  ;;  %s256_s28 = scalar_lea.vmem %s466_s2, %s471_s19  ;;  %s259_s6 = scalar_lea.vmem %s467_s3, %s471_s19 }
   0xe   : > { %v269_v1 = vld [vmem:[%s253_s25] sm:$0x1]  ;;  %v268_v2 = vmul.f32 0.010204081, %v266_v0  ;;  %s262_s9 = scalar_lea.vmem %s468_s4, %s471_s19  ;;  %s265_s12 = scalar_lea.vmem %s469_s5, %s471_s19 }
   0xf   : > { %v271_v3 = vmul.f32 0.010204081, %v269_v1  ;;  %v277_v8 = vld [vmem:[%s256_s28] sm:$0x1] }
  0x10   : > { %v272_v4 = vmul.f32 %v268_v2, %v268_v2  ;;  %v280_v11 = vld [vmem:[%s259_s6] sm:$0x1] }
  0x12   : > { %v273_v5 = vsub.f32 %v271_v3, %v272_v4 }
  0x14   : > { %v274_v6 = vmax.f32 %v273_v5, 0.0 }
  0x16   : > { %v275_v7 = vadd.f32 0.001, %v274_v6 }
  0x18   : > { %395 = vrsqrt.f32 %v275_v7 }
  0x25   : > { %v396_v9 = vpop.eup %395 }
  0x26   : > { %v278_v10 = vmul.f32 %v396_v9, %v277_v8 }
  0x28   : > { %279 = vst [vmem:[%s262_s9] sm:$0x1] %v278_v10  ;;  %v281_v12 = vmul.f32 %v278_v10, %v268_v2 }
  0x2a   : > { %v282_v13 = vsub.f32 %v280_v11, %v281_v12 }
  0x2c   : > { %283 = vst [vmem:[%s265_s12] sm:$0x1] %v282_v13 }
  0x2d PF: > { %s16_s18 = sadd.s32 1, %s403_s18  }
  0x2e   : > { %p13_p4 = scmp.ge.s32.totalorder %s16_s18, 4  }
  0x30   :  { %15 = sbr.rel (!%p13_p4) target bundleno = 1 (0x1), region = 87 }

// kernel: inception_d_forward.36
= control target key start
LH: loop header
LB: loop body
LE: loop exit
PB: predicated region body
PF: predicated region fallthrough
CT: control target
= control target key end

     0   :  { %s871_s12 = smov 0   ;;  %s873_s13 = smov 0   ;;  %s987_s0 = inlined_call_operand.vmem [shape: bf16[112,256], index: 0, kind: input, shape index: {}]   ;;  %s988_s1 = inlined_call_operand.vmem [shape: f32[1,256], index: 1, kind: input, shape index: {}]   ;;  %s989_s2 = inlined_call_operand.vmem [shape: f32[1,256], index: 2, kind: input, shape index: {}]   ;;  %s990_s3 = inlined_call_operand.vmem [shape: bf16[112,256], index: 3, kind: output, shape index: {}]  }
   0x1   :  { %s875_s14 = smov 0   ;;  %s877_s15 = smov 0  }
   0x2   :  { %s879_s16 = smov 0  }
   0x3 LB: > { %s22_s17 = sadd.s32 1, %s845_s15  ;;  %s655_s18 = sadd.s32 4294967295, %s849_s16   ;;  %s849_s16 = sphi %s879_s16, %s13_s16   ;;  %s845_s15 = sphi %s877_s15, %s995_s15   ;;  %s841_s14 = sphi %s875_s14, %s994_s14   ;;  %s837_s13 = sphi %s873_s13, %s993_s13   ;;  %s833_s12 = sphi %s871_s12, %s992_s12  }
   0x4   : > { %p23_p0 = scmp.ge.s32.totalorder %s22_s17, 2  ;;  %p41_p1 = scmp.ne.s32.totalorder %s837_s13, %s833_s12 }
   0x5   : > { %p42_p2 = scmp.eq.s32.totalorder %s849_s16, 0  ;;  %p125_p4 = scmp.eq.s32.totalorder %s655_s18, 1 }
   0x6   : > { %s997_s17 = smov (%p23_p0, %s22_s17), 0  ;;  %s34_s20 = sadd.s32 1, %s837_s13 }
   0x7   : > { %p43_p3 = por %p42_p2, %p41_p1  ;;  %s30_s19 = ssub.s32 %s845_s15, %s997_s17 }
   0x8   : > { %p32_p5 = scmp.eq.s32.totalorder %s30_s19, 0  ;;  %p906_p6 = por %p125_p4, %p41_p1 }
   0x9   : > { %p658_p7 = scmp.ge.s32.totalorder %s849_s16, 2 }
   0xa   : > { %s911_s22 = scalar_select %p32_p5, %s837_s13, %s34_s20  }
   0xb   : > { %147 = sbr.rel (%p658_p7) target bundleno = 29 (0x1d), region = 16 }
  0x10   : > { %150 = sbr.rel (!%p43_p3) target bundleno = 29 (0x1d), region = 20  ;;  %s152_s23 = sand.u32 (%p43_p3), 1, %s837_s13  }
  0x11   : > { %s659_s24 = sshll.u32 (%p43_p3), %s845_s15, 2  ;;  %s769_s25 = smul.u32 (%p43_p3), 56, %s152_s23 }
  0x12   : > { %s159_s28 = scalar_lea.vmem (%p43_p3), %s987_s0, %s659_s24 }
  0x13   : > { %v176_v0 = vld [vmem:[%s159_s28] sm:$0xf] (%p43_p3)  ;;  %v178_v1 = vld [vmem:[%s159_s28 + $0x8] sm:$0xf] (%p43_p3)  ;;  %v180_v2 = vld [vmem:[%s159_s28 + $0x10] sm:$0xf] (%p43_p3) }
  0x14   : > { %v182_v3 = vld [vmem:[%s159_s28 + $0x18] sm:$0xf] (%p43_p3)  ;;  %v184_v4 = vld [vmem:[%s159_s28 + $0x20] sm:$0xf] (%p43_p3)  ;;  %s154_s29 = scalar_lea.vmem (%p43_p3), [#allocation2], %s769_s25 }
  0x15   : > { %177 = vst [vmem:[%s154_s29] sm:$0xf] %v176_v0  ;;  %179 = vst [vmem:[%s154_s29 + $0x4] sm:$0xf] %v178_v1  ;;  %v186_v5 = vld [vmem:[%s159_s28 + $0x28] sm:$0xf] }
  0x16   : > { %181 = vst [vmem:[%s154_s29 + $0x8] sm:$0xf] %v180_v2  ;;  %183 = vst [vmem:[%s154_s29 + $0xc] sm:$0xf] %v182_v3  ;;  %v188_v6 = vld [vmem:[%s159_s28 + $0x30] sm:$0xf] }
  0x17   : > { %185 = vst [vmem:[%s154_s29 + $0x10] sm:$0xf] %v184_v4  ;;  %v190_v7 = vld [vmem:[%s159_s28 + $0x38] sm:$0xf]  ;;  %187 = vst [vmem:[%s154_s29 + $0x14] sm:$0xf] %v186_v5 }
  0x18   : > { %189 = vst [vmem:[%s154_s29 + $0x18] sm:$0xf] %v188_v6  ;;  %191 = vst [vmem:[%s154_s29 + $0x1c] sm:$0xf] %v190_v7  ;;  %v192_v8 = vld [vmem:[%s159_s28 + $0x40] sm:$0xf] }
  0x19   : > { %v194_v9 = vld [vmem:[%s159_s28 + $0x48] sm:$0xf]  ;;  %v196_v10 = vld [vmem:[%s159_s28 + $0x50] sm:$0xf]  ;;  %193 = vst [vmem:[%s154_s29 + $0x20] sm:$0xf] %v192_v8 }
  0x1a   : > { %195 = vst [vmem:[%s154_s29 + $0x24] sm:$0xf] %v194_v9  ;;  %197 = vst [vmem:[%s154_s29 + $0x28] sm:$0xf] %v196_v10  ;;  %v198_v11 = vld [vmem:[%s159_s28 + $0x58] sm:$0xf] }
  0x1b   : > { %v200_v12 = vld [vmem:[%s159_s28 + $0x60] sm:$0xf]  ;;  %v202_v13 = vld [vmem:[%s159_s28 + $0x68] sm:$0xf]  ;;  %199 = vst [vmem:[%s154_s29 + $0x2c] sm:$0xf] %v198_v11 }
  0x1c   : > { %201 = vst [vmem:[%s154_s29 + $0x30] sm:$0xf] %v200_v12  ;;  %203 = vst [vmem:[%s154_s29 + $0x34] sm:$0xf] %v202_v13 }
  0x1d PF: > { %p660_p8 = scmp.ge.s32.totalorder %s849_s16, 1  ;;  %p266_p9 = scmp.lt.s32.totalorder %s849_s16, 3 }
  0x1f   : > { %p267_p10 = pnand %p660_p8, %p266_p9 }
  0x20   : > { %s273_s30 = sand.u32 (!%p267_p10), 1, %s833_s12   ;;  %p302_p11 = scmp.lt.s32.totalorder (!%p267_p10), %s841_s14, 1 }
  0x21   : > { %270 = sbr.rel (%p267_p10) target bundleno = 69 (0x45), region = 69 }
  0x22   : > { %s923_s4 = smul.u32 (!%p267_p10), 56, %s273_s30 }
  0x24   : > { %s933_s18 = scalar_lea.vmem (!%p267_p10), [#allocation2], %s923_s4  ;;  %s943_s12 = scalar_lea.vmem (!%p267_p10), [#allocation3], %s923_s4 }
  0x26   : > { %s303_s5 = scalar_select %p302_p11, %s841_s14, 1  ;;  %v695_v14 = vld [vmem:[%s933_s18] sm:$0xff]   ;;  %v757_v15 = vld [vmem:[%s933_s18 + $0x8] sm:$0xff]   ;;  %v758_v16 = vld [vmem:[%s933_s18 + $0x10] sm:$0xff]  }
  0x27   : > { %v696_v17 = vunpack.c.l.bf16 %v695_v14  ;;  %v697_v18 = vunpack.c.h.bf16 %v695_v14  ;;  %v700_v20 = vunpack.c.l.bf16 %v757_v15  ;;  %v701_v21 = vunpack.c.h.bf16 %v757_v15  ;;  %v759_v22 = vld [vmem:[%s933_s18 + $0x18] sm:$0xff]   ;;  %v760_v44 = vld [vmem:[%s933_s18 + $0x20] sm:$0xff]   ;;  %v761_v49 = vld [vmem:[%s933_s18 + $0x28] sm:$0xff]   ;;  %s677_s19 = sshll.u32 (%p906_p6), %s841_s14, 2 }
  0x28   : > { %s304_s8 = scalar_lea.vmem %s988_s1, %s303_s5  ;;  %s307_s11 = scalar_lea.vmem %s989_s2, %s303_s5  ;;  %v704_v24 = vunpack.c.l.bf16 %v758_v16  ;;  %v705_v25 = vunpack.c.h.bf16 %v758_v16  ;;  %v708_v26 = vunpack.c.l.bf16 %v759_v22  ;;  %v709_v27 = vunpack.c.h.bf16 %v759_v22  ;;  %v762_v54 = vld [vmem:[%s933_s18 + $0x30] sm:$0xff]  }
  0x29   : > { %v661_v19 = vld [vmem:[%s304_s8] ss:$0 sm:$0xff]  ;;  %v712_v57 = vunpack.c.l.bf16 %v760_v44  ;;  %v713_v58 = vunpack.c.h.bf16 %v760_v44  ;;  %v716_v61 = vunpack.c.l.bf16 %v761_v49  ;;  %v717_v62 = vunpack.c.h.bf16 %v761_v49  ;;  %s474_s24 = scalar_lea.vmem (%p906_p6), %s990_s3, %s677_s19 }
  0x2a   : > { %v662_v23 = vld [vmem:[%s307_s11] ss:$0 sm:$0xff]  ;;  %v344_v28 = vmul.f32 %v696_v17, %v661_v19  ;;  %v345_v29 = vmul.f32 %v697_v18, %v661_v19  ;;  %v346_v30 = vmul.f32 %v700_v20, %v661_v19  ;;  %v347_v31 = vmul.f32 %v701_v21, %v661_v19 }
  0x2b   : > { %v348_v32 = vmul.f32 %v704_v24, %v661_v19  ;;  %v349_v33 = vmul.f32 %v705_v25, %v661_v19  ;;  %v350_v34 = vmul.f32 %v708_v26, %v661_v19  ;;  %v351_v35 = vmul.f32 %v709_v27, %v661_v19 }
  0x2c   : > { %v365_v36 = vadd.f32 %v662_v23, %v344_v28  ;;  %v366_v37 = vadd.f32 %v662_v23, %v345_v29  ;;  %v367_v38 = vadd.f32 %v662_v23, %v346_v30  ;;  %v368_v39 = vadd.f32 %v662_v23, %v347_v31 }
  0x2d   : > { %v369_v40 = vadd.f32 %v662_v23, %v348_v32  ;;  %v370_v41 = vadd.f32 %v662_v23, %v349_v33  ;;  %v371_v42 = vadd.f32 %v662_v23, %v350_v34  ;;  %v372_v43 = vadd.f32 %v662_v23, %v351_v35 }
  0x2e   : > { %v379_v45 = vmax.f32 %v365_v36, 0.0  ;;  %v380_v46 = vmax.f32 %v366_v37, 0.0  ;;  %v381_v47 = vmax.f32 %v367_v38, 0.0  ;;  %v382_v48 = vmax.f32 %v368_v39, 0.0 }
  0x2f   : > { %v383_v50 = vmax.f32 %v369_v40, 0.0  ;;  %v384_v51 = vmax.f32 %v370_v41, 0.0  ;;  %v385_v52 = vmax.f32 %v371_v42, 0.0  ;;  %v386_v53 = vmax.f32 %v372_v43, 0.0 }
  0x30   : > { %v725_v55 = vpack.c.bf16 %v380_v46, %v379_v45  ;;  %v730_v56 = vpack.c.bf16 %v382_v48, %v381_v47  ;;  %v352_v63 = vmul.f32 %v712_v57, %v661_v19  ;;  %v353_v0 = vmul.f32 %v713_v58, %v661_v19 }
  0x31   : > { %v735_v59 = vpack.c.bf16 %v384_v51, %v383_v50  ;;  %v740_v60 = vpack.c.bf16 %v386_v53, %v385_v52  ;;  %v720_v1 = vunpack.c.l.bf16 %v762_v54  ;;  %v721_v2 = vunpack.c.h.bf16 %v762_v54 }
  0x32   : > { %726 = vst [vmem:[%s943_s12] sm:$0xff] %v725_v55   ;;  %763 = vst [vmem:[%s943_s12 + $0x8] sm:$0xff] %v730_v56   ;;  %v354_v3 = vmul.f32 %v716_v61, %v661_v19  ;;  %v355_v4 = vmul.f32 %v717_v62, %v661_v19  ;;  %v373_v5 = vadd.f32 %v662_v23, %v352_v63 }
  0x33   : > { %764 = vst [vmem:[%s943_s12 + $0x10] sm:$0xff] %v735_v59   ;;  %765 = vst [vmem:[%s943_s12 + $0x18] sm:$0xff] %v740_v60   ;;  %v374_v6 = vadd.f32 %v662_v23, %v353_v0  ;;  %v356_v7 = vmul.f32 %v720_v1, %v661_v19  ;;  %v357_v8 = vmul.f32 %v721_v2, %v661_v19 }
  0x34   : > { %v375_v9 = vadd.f32 %v662_v23, %v354_v3  ;;  %v376_v10 = vadd.f32 %v662_v23, %v355_v4  ;;  %v387_v11 = vmax.f32 %v373_v5, 0.0 }
  0x35   : > { %v388_v12 = vmax.f32 %v374_v6, 0.0  ;;  %v377_v13 = vadd.f32 %v662_v23, %v356_v7  ;;  %v378_v14 = vadd.f32 %v662_v23, %v357_v8 }
  0x36   : > { %v389_v15 = vmax.f32 %v375_v9, 0.0  ;;  %v390_v16 = vmax.f32 %v376_v10, 0.0 }
  0x37   : > { %v745_v17 = vpack.c.bf16 %v388_v12, %v387_v11  ;;  %v391_v18 = vmax.f32 %v377_v13, 0.0  ;;  %v392_v20 = vmax.f32 %v378_v14, 0.0  ;;  %469 = sbr.rel (!%p906_p6) target bundleno = 69 (0x45), region = 77 }
  0x38   : > { %v750_v21 = vpack.c.bf16 %v390_v16, %v389_v15 }
  0x39   : > { %766 = vst [vmem:[%s943_s12 + $0x20] sm:$0xff] %v745_v17   ;;  %v755_v22 = vpack.c.bf16 %v392_v20, %v391_v18  ;;  %v491_v19 = vld [vmem:[%s943_s12] sm:$0xf] (%p906_p6)  ;;  %v493_v23 = vld [vmem:[%s943_s12 + $0x4] sm:$0xf] (%p906_p6) }
  0x3a   : > { %767 = vst [vmem:[%s943_s12 + $0x28] sm:$0xff] %v750_v21   ;;  %v495_v24 = vld [vmem:[%s943_s12 + $0x8] sm:$0xf] (%p906_p6)  ;;  %v497_v25 = vld [vmem:[%s943_s12 + $0xc] sm:$0xf] (%p906_p6)  ;;  %492 = vst [vmem:[%s474_s24] sm:$0xf] (%p906_p6), %v491_v19 }
  0x3b   : > { %768 = vst [vmem:[%s943_s12 + $0x30] sm:$0xff] %v755_v22   ;;  %v499_v26 = vld [vmem:[%s943_s12 + $0x10] sm:$0xf] (%p906_p6)  ;;  %494 = vst [vmem:[%s474_s24 + $0x8] sm:$0xf] (%p906_p6), %v493_v23 }
  0x3c   : > { %496 = vst [vmem:[%s474_s24 + $0x10] sm:$0xf] %v495_v24  ;;  %498 = vst [vmem:[%s474_s24 + $0x18] sm:$0xf] %v497_v25  ;;  %v501_v27 = vld [vmem:[%s943_s12 + $0x14] sm:$0xf] }
  0x3d   : > { %500 = vst [vmem:[%s474_s24 + $0x20] sm:$0xf] %v499_v26  ;;  %v503_v28 = vld [vmem:[%s943_s12 + $0x18] sm:$0xf]  ;;  %v505_v29 = vld [vmem:[%s943_s12 + $0x1c] sm:$0xf] }
  0x3e   : > { %502 = vst [vmem:[%s474_s24 + $0x28] sm:$0xf] %v501_v27  ;;  %504 = vst [vmem:[%s474_s24 + $0x30] sm:$0xf] %v503_v28 }
  0x3f   : > { %506 = vst [vmem:[%s474_s24 + $0x38] sm:$0xf] %v505_v29 }
  0x40   : > { %v507_v30 = vld [vmem:[%s943_s12 + $0x20] sm:$0xf]  ;;  %v509_v31 = vld [vmem:[%s943_s12 + $0x24] sm:$0xf] }
  0x41   : > { %v511_v32 = vld [vmem:[%s943_s12 + $0x28] sm:$0xf]  ;;  %508 = vst [vmem:[%s474_s24 + $0x40] sm:$0xf] %v507_v30  ;;  %510 = vst [vmem:[%s474_s24 + $0x48] sm:$0xf] %v509_v31 }
  0x42   : > { %512 = vst [vmem:[%s474_s24 + $0x50] sm:$0xf] %v511_v32  ;;  %v513_v33 = vld [vmem:[%s943_s12 + $0x2c] sm:$0xf]  ;;  %v515_v34 = vld [vmem:[%s943_s12 + $0x30] sm:$0xf] }
  0x43   : > { %v517_v35 = vld [vmem:[%s943_s12 + $0x34] sm:$0xf]  ;;  %514 = vst [vmem:[%s474_s24 + $0x58] sm:$0xf] %v513_v33  ;;  %516 = vst [vmem:[%s474_s24 + $0x60] sm:$0xf] %v515_v34 }
  0x44   : > { %518 = vst [vmem:[%s474_s24 + $0x68] sm:$0xf] %v517_v35 }
  0x45 PF: > { %s13_s16 = sadd.s32 1, %s849_s16   ;;  %s992_s12 = smov %s837_s13 }
  0x46   : > { %p10_p12 = scmp.ge.s32.totalorder %s13_s16, 4   ;;  %s993_s13 = smov %s911_s22 }
  0x47   : > { %s994_s14 = smov %s845_s15  ;;  %s995_s15 = smov %s997_s17 }
  0x48   :  { %12 = sbr.rel (!%p10_p12) target bundleno = 3 (0x3), region = 155 }

// kernel: inception_d_forward.23
= control target key start
LH: loop header
LB: loop body
LE: loop exit
PB: predicated region body
PF: predicated region fallthrough
CT: control target
= control target key end

     0   :  { %s435_s18 = smov 0   ;;  %s464_s0 = inlined_call_operand.vmem [shape: f32[1,1,384], index: 0, kind: input, shape index: {}]   ;;  %s465_s1 = inlined_call_operand.vmem [shape: f32[1,1,384], index: 1, kind: input, shape index: {}]   ;;  %s466_s2 = inlined_call_operand.vmem [shape: f32[1,384], index: 2, kind: input, shape index: {}]   ;;  %s467_s3 = inlined_call_operand.vmem [shape: f32[1,384], index: 3, kind: input, shape index: {}]   ;;  %s468_s4 = inlined_call_operand.vmem [shape: f32[1,384], index: 4, kind: output, shape index: {0}]   ;;  %s469_s5 = inlined_call_operand.vmem [shape: f32[1,384], index: 5, kind: output, shape index: {1}]  }
   0x1 LB: > { %s380_s19 = sadd.s32 4294967295, %s403_s18   ;;  %p384_p0 = scmp.ge.s32.totalorder %s403_s18, 1  ;;  %s403_s18 = sphi %s435_s18, %s16_s18  }
   0x2   : > { %p212_p1 = scmp.lt.s32.totalorder %s403_s18, 4 }
   0x4   : > { %p213_p2 = pnand %p384_p0, %p212_p1 }
   0x5   : > { %p248_p3 = scmp.lt.s32.totalorder (!%p213_p2), %s380_s19, 2 }
   0x6   : > { %216 = sbr.rel (%p213_p2) target bundleno = 45 (0x2d), region = 36 }
   0xb   : > { %s471_s19 = smov (!%p248_p3, %s380_s19), 2 }
   0xc   : > { %s250_s22 = scalar_lea.vmem %s464_s0, %s471_s19  ;;  %s253_s25 = scalar_lea.vmem %s465_s1, %s471_s19 }
   0xd   : > { %v266_v0 = vld [vmem:[%s250_s22] sm:$0x1]  ;;  %s256_s28 = scalar_lea.vmem %s466_s2, %s471_s19  ;;  %s259_s6 = scalar_lea.vmem %s467_s3, %s471_s19 }
   0xe   : > { %v269_v1 = vld [vmem:[%s253_s25] sm:$0x1]  ;;  %v268_v2 = vmul.f32 0.010204081, %v266_v0  ;;  %s262_s9 = scalar_lea.vmem %s468_s4, %s471_s19  ;;  %s265_s12 = scalar_lea.vmem %s469_s5, %s471_s19 }
   0xf   : > { %v271_v3 = vmul.f32 0.010204081, %v269_v1  ;;  %v277_v8 = vld [vmem:[%s256_s28] sm:$0x1] }
  0x10   : > { %v272_v4 = vmul.f32 %v268_v2, %v268_v2  ;;  %v280_v11 = vld [vmem:[%s259_s6] sm:$0x1] }
  0x12   : > { %v273_v5 = vsub.f32 %v271_v3, %v272_v4 }
  0x14   : > { %v274_v6 = vmax.f32 %v273_v5, 0.0 }
  0x16   : > { %v275_v7 = vadd.f32 0.001, %v274_v6 }
  0x18   : > { %395 = vrsqrt.f32 %v275_v7 }
  0x25   : > { %v396_v9 = vpop.eup %395 }
  0x26   : > { %v278_v10 = vmul.f32 %v396_v9, %v277_v8 }
  0x28   : > { %279 = vst [vmem:[%s262_s9] sm:$0x1] %v278_v10  ;;  %v281_v12 = vmul.f32 %v278_v10, %v268_v2 }
  0x2a   : > { %v282_v13 = vsub.f32 %v280_v11, %v281_v12 }
  0x2c   : > { %283 = vst [vmem:[%s265_s12] sm:$0x1] %v282_v13 }
  0x2d PF: > { %s16_s18 = sadd.s32 1, %s403_s18  }
  0x2e   : > { %p13_p4 = scmp.ge.s32.totalorder %s16_s18, 5  }
  0x30   :  { %15 = sbr.rel (!%p13_p4) target bundleno = 1 (0x1), region = 87 }

// kernel: inception_d_forward.24
= control target key start
LH: loop header
LB: loop body
LE: loop exit
PB: predicated region body
PF: predicated region fallthrough
CT: control target
= control target key end

     0   :  { %s871_s12 = smov 0   ;;  %s873_s13 = smov 0   ;;  %s987_s0 = inlined_call_operand.vmem [shape: bf16[112,384], index: 0, kind: input, shape index: {}]   ;;  %s988_s1 = inlined_call_operand.vmem [shape: f32[1,384], index: 1, kind: input, shape index: {}]   ;;  %s989_s2 = inlined_call_operand.vmem [shape: f32[1,384], index: 2, kind: input, shape index: {}]   ;;  %s990_s3 = inlined_call_operand.vmem [shape: bf16[112,384], index: 3, kind: output, shape index: {}]  }
   0x1   :  { %s875_s14 = smov 0   ;;  %s877_s15 = smov 0  }
   0x2   :  { %s879_s16 = smov 0  }
   0x3 LB: > { %s22_s17 = sadd.s32 1, %s845_s15  ;;  %s655_s18 = sadd.s32 4294967295, %s849_s16   ;;  %s849_s16 = sphi %s879_s16, %s13_s16   ;;  %s845_s15 = sphi %s877_s15, %s995_s15   ;;  %s841_s14 = sphi %s875_s14, %s994_s14   ;;  %s837_s13 = sphi %s873_s13, %s993_s13   ;;  %s833_s12 = sphi %s871_s12, %s992_s12  }
   0x4   : > { %p23_p0 = scmp.ge.s32.totalorder %s22_s17, 3  ;;  %p41_p1 = scmp.ne.s32.totalorder %s837_s13, %s833_s12 }
   0x5   : > { %p42_p2 = scmp.eq.s32.totalorder %s849_s16, 0  ;;  %p125_p4 = scmp.eq.s32.totalorder %s655_s18, 2 }
   0x6   : > { %s997_s17 = smov (%p23_p0, %s22_s17), 0  ;;  %s34_s20 = sadd.s32 1, %s837_s13 }
   0x7   : > { %p43_p3 = por %p42_p2, %p41_p1  ;;  %s30_s19 = ssub.s32 %s845_s15, %s997_s17 }
   0x8   : > { %p32_p5 = scmp.eq.s32.totalorder %s30_s19, 0  ;;  %p906_p6 = por %p125_p4, %p41_p1 }
   0x9   : > { %p658_p7 = scmp.ge.s32.totalorder %s849_s16, 3 }
   0xa   : > { %s911_s22 = scalar_select %p32_p5, %s837_s13, %s34_s20  }
   0xb   : > { %147 = sbr.rel (%p658_p7) target bundleno = 29 (0x1d), region = 16 }
  0x10   : > { %150 = sbr.rel (!%p43_p3) target bundleno = 29 (0x1d), region = 20  ;;  %s152_s23 = sand.u32 (%p43_p3), 1, %s837_s13  }
  0x11   : > { %s659_s24 = sshll.u32 (%p43_p3), %s845_s15, 2  ;;  %s769_s25 = smul.u32 (%p43_p3), 56, %s152_s23 }
  0x12   : > { %s159_s28 = scalar_lea.vmem (%p43_p3), %s987_s0, %s659_s24 }
  0x13   : > { %v176_v0 = vld [vmem:[%s159_s28] sm:$0xf] (%p43_p3)  ;;  %v178_v1 = vld [vmem:[%s159_s28 + $0xc] sm:$0xf] (%p43_p3)  ;;  %v180_v2 = vld [vmem:[%s159_s28 + $0x18] sm:$0xf] (%p43_p3) }
  0x14   : > { %v182_v3 = vld [vmem:[%s159_s28 + $0x24] sm:$0xf] (%p43_p3)  ;;  %v184_v4 = vld [vmem:[%s159_s28 + $0x30] sm:$0xf] (%p43_p3)  ;;  %s154_s29 = scalar_lea.vmem (%p43_p3), [#allocation2], %s769_s25 }
  0x15   : > { %177 = vst [vmem:[%s154_s29] sm:$0xf] %v176_v0  ;;  %179 = vst [vmem:[%s154_s29 + $0x4] sm:$0xf] %v178_v1  ;;  %v186_v5 = vld [vmem:[%s159_s28 + $0x3c] sm:$0xf] }
  0x16   : > { %181 = vst [vmem:[%s154_s29 + $0x8] sm:$0xf] %v180_v2  ;;  %183 = vst [vmem:[%s154_s29 + $0xc] sm:$0xf] %v182_v3  ;;  %v188_v6 = vld [vmem:[%s159_s28 + $0x48] sm:$0xf] }
  0x17   : > { %185 = vst [vmem:[%s154_s29 + $0x10] sm:$0xf] %v184_v4  ;;  %v190_v7 = vld [vmem:[%s159_s28 + $0x54] sm:$0xf]  ;;  %187 = vst [vmem:[%s154_s29 + $0x14] sm:$0xf] %v186_v5 }
  0x18   : > { %189 = vst [vmem:[%s154_s29 + $0x18] sm:$0xf] %v188_v6  ;;  %191 = vst [vmem:[%s154_s29 + $0x1c] sm:$0xf] %v190_v7  ;;  %v192_v8 = vld [vmem:[%s159_s28 + $0x60] sm:$0xf] }
  0x19   : > { %v194_v9 = vld [vmem:[%s159_s28 + $0x6c] sm:$0xf]  ;;  %v196_v10 = vld [vmem:[%s159_s28 + $0x78] sm:$0xf]  ;;  %193 = vst [vmem:[%s154_s29 + $0x20] sm:$0xf] %v192_v8 }
  0x1a   : > { %195 = vst [vmem:[%s154_s29 + $0x24] sm:$0xf] %v194_v9  ;;  %197 = vst [vmem:[%s154_s29 + $0x28] sm:$0xf] %v196_v10  ;;  %v198_v11 = vld [vmem:[%s159_s28 + $0x84] sm:$0xf] }
  0x1b   : > { %v200_v12 = vld [vmem:[%s159_s28 + $0x90] sm:$0xf]  ;;  %v202_v13 = vld [vmem:[%s159_s28 + $0x9c] sm:$0xf]  ;;  %199 = vst [vmem:[%s154_s29 + $0x2c] sm:$0xf] %v198_v11 }
  0x1c   : > { %201 = vst [vmem:[%s154_s29 + $0x30] sm:$0xf] %v200_v12  ;;  %203 = vst [vmem:[%s154_s29 + $0x34] sm:$0xf] %v202_v13 }
  0x1d PF: > { %p660_p8 = scmp.ge.s32.totalorder %s849_s16, 1  ;;  %p266_p9 = scmp.lt.s32.totalorder %s849_s16, 4 }
  0x1f   : > { %p267_p10 = pnand %p660_p8, %p266_p9 }
  0x20   : > { %s273_s30 = sand.u32 (!%p267_p10), 1, %s833_s12   ;;  %p302_p11 = scmp.lt.s32.totalorder (!%p267_p10), %s841_s14, 2 }
  0x21   : > { %270 = sbr.rel (%p267_p10) target bundleno = 69 (0x45), region = 69 }
  0x22   : > { %s923_s4 = smul.u32 (!%p267_p10), 56, %s273_s30 }
  0x24   : > { %s933_s18 = scalar_lea.vmem (!%p267_p10), [#allocation2], %s923_s4  ;;  %s943_s12 = scalar_lea.vmem (!%p267_p10), [#allocation3], %s923_s4 }
  0x26   : > { %s303_s5 = scalar_select %p302_p11, %s841_s14, 2  ;;  %v695_v14 = vld [vmem:[%s933_s18] sm:$0xff]   ;;  %v757_v15 = vld [vmem:[%s933_s18 + $0x8] sm:$0xff]   ;;  %v758_v16 = vld [vmem:[%s933_s18 + $0x10] sm:$0xff]  }
  0x27   : > { %v696_v17 = vunpack.c.l.bf16 %v695_v14  ;;  %v697_v18 = vunpack.c.h.bf16 %v695_v14  ;;  %v700_v20 = vunpack.c.l.bf16 %v757_v15  ;;  %v701_v21 = vunpack.c.h.bf16 %v757_v15  ;;  %v759_v22 = vld [vmem:[%s933_s18 + $0x18] sm:$0xff]   ;;  %v760_v44 = vld [vmem:[%s933_s18 + $0x20] sm:$0xff]   ;;  %v761_v49 = vld [vmem:[%s933_s18 + $0x28] sm:$0xff]   ;;  %s677_s19 = sshll.u32 (%p906_p6), %s841_s14, 2 }
  0x28   : > { %s304_s8 = scalar_lea.vmem %s988_s1, %s303_s5  ;;  %s307_s11 = scalar_lea.vmem %s989_s2, %s303_s5  ;;  %v704_v24 = vunpack.c.l.bf16 %v758_v16  ;;  %v705_v25 = vunpack.c.h.bf16 %v758_v16  ;;  %v708_v26 = vunpack.c.l.bf16 %v759_v22  ;;  %v709_v27 = vunpack.c.h.bf16 %v759_v22  ;;  %v762_v54 = vld [vmem:[%s933_s18 + $0x30] sm:$0xff]  }
  0x29   : > { %v661_v19 = vld [vmem:[%s304_s8] ss:$0 sm:$0xff]  ;;  %v712_v57 = vunpack.c.l.bf16 %v760_v44  ;;  %v713_v58 = vunpack.c.h.bf16 %v760_v44  ;;  %v716_v61 = vunpack.c.l.bf16 %v761_v49  ;;  %v717_v62 = vunpack.c.h.bf16 %v761_v49  ;;  %s474_s24 = scalar_lea.vmem (%p906_p6), %s990_s3, %s677_s19 }
  0x2a   : > { %v662_v23 = vld [vmem:[%s307_s11] ss:$0 sm:$0xff]  ;;  %v344_v28 = vmul.f32 %v696_v17, %v661_v19  ;;  %v345_v29 = vmul.f32 %v697_v18, %v661_v19  ;;  %v346_v30 = vmul.f32 %v700_v20, %v661_v19  ;;  %v347_v31 = vmul.f32 %v701_v21, %v661_v19 }
  0x2b   : > { %v348_v32 = vmul.f32 %v704_v24, %v661_v19  ;;  %v349_v33 = vmul.f32 %v705_v25, %v661_v19  ;;  %v350_v34 = vmul.f32 %v708_v26, %v661_v19  ;;  %v351_v35 = vmul.f32 %v709_v27, %v661_v19 }
  0x2c   : > { %v365_v36 = vadd.f32 %v662_v23, %v344_v28  ;;  %v366_v37 = vadd.f32 %v662_v23, %v345_v29  ;;  %v367_v38 = vadd.f32 %v662_v23, %v346_v30  ;;  %v368_v39 = vadd.f32 %v662_v23, %v347_v31 }
  0x2d   : > { %v369_v40 = vadd.f32 %v662_v23, %v348_v32  ;;  %v370_v41 = vadd.f32 %v662_v23, %v349_v33  ;;  %v371_v42 = vadd.f32 %v662_v23, %v350_v34  ;;  %v372_v43 = vadd.f32 %v662_v23, %v351_v35 }
  0x2e   : > { %v379_v45 = vmax.f32 %v365_v36, 0.0  ;;  %v380_v46 = vmax.f32 %v366_v37, 0.0  ;;  %v381_v47 = vmax.f32 %v367_v38, 0.0  ;;  %v382_v48 = vmax.f32 %v368_v39, 0.0 }
  0x2f   : > { %v383_v50 = vmax.f32 %v369_v40, 0.0  ;;  %v384_v51 = vmax.f32 %v370_v41, 0.0  ;;  %v385_v52 = vmax.f32 %v371_v42, 0.0  ;;  %v386_v53 = vmax.f32 %v372_v43, 0.0 }
  0x30   : > { %v725_v55 = vpack.c.bf16 %v380_v46, %v379_v45  ;;  %v730_v56 = vpack.c.bf16 %v382_v48, %v381_v47  ;;  %v352_v63 = vmul.f32 %v712_v57, %v661_v19  ;;  %v353_v0 = vmul.f32 %v713_v58, %v661_v19 }
  0x31   : > { %v735_v59 = vpack.c.bf16 %v384_v51, %v383_v50  ;;  %v740_v60 = vpack.c.bf16 %v386_v53, %v385_v52  ;;  %v720_v1 = vunpack.c.l.bf16 %v762_v54  ;;  %v721_v2 = vunpack.c.h.bf16 %v762_v54 }
  0x32   : > { %726 = vst [vmem:[%s943_s12] sm:$0xff] %v725_v55   ;;  %763 = vst [vmem:[%s943_s12 + $0x8] sm:$0xff] %v730_v56   ;;  %v354_v3 = vmul.f32 %v716_v61, %v661_v19  ;;  %v355_v4 = vmul.f32 %v717_v62, %v661_v19  ;;  %v373_v5 = vadd.f32 %v662_v23, %v352_v63 }
  0x33   : > { %764 = vst [vmem:[%s943_s12 + $0x10] sm:$0xff] %v735_v59   ;;  %765 = vst [vmem:[%s943_s12 + $0x18] sm:$0xff] %v740_v60   ;;  %v374_v6 = vadd.f32 %v662_v23, %v353_v0  ;;  %v356_v7 = vmul.f32 %v720_v1, %v661_v19  ;;  %v357_v8 = vmul.f32 %v721_v2, %v661_v19 }
  0x34   : > { %v375_v9 = vadd.f32 %v662_v23, %v354_v3  ;;  %v376_v10 = vadd.f32 %v662_v23, %v355_v4  ;;  %v387_v11 = vmax.f32 %v373_v5, 0.0 }
  0x35   : > { %v388_v12 = vmax.f32 %v374_v6, 0.0  ;;  %v377_v13 = vadd.f32 %v662_v23, %v356_v7  ;;  %v378_v14 = vadd.f32 %v662_v23, %v357_v8 }
  0x36   : > { %v389_v15 = vmax.f32 %v375_v9, 0.0  ;;  %v390_v16 = vmax.f32 %v376_v10, 0.0 }
  0x37   : > { %v745_v17 = vpack.c.bf16 %v388_v12, %v387_v11  ;;  %v391_v18 = vmax.f32 %v377_v13, 0.0  ;;  %v392_v20 = vmax.f32 %v378_v14, 0.0  ;;  %469 = sbr.rel (!%p906_p6) target bundleno = 69 (0x45), region = 77 }
  0x38   : > { %v750_v21 = vpack.c.bf16 %v390_v16, %v389_v15 }
  0x39   : > { %766 = vst [vmem:[%s943_s12 + $0x20] sm:$0xff] %v745_v17   ;;  %v755_v22 = vpack.c.bf16 %v392_v20, %v391_v18  ;;  %v491_v19 = vld [vmem:[%s943_s12] sm:$0xf] (%p906_p6)  ;;  %v493_v23 = vld [vmem:[%s943_s12 + $0x4] sm:$0xf] (%p906_p6) }
  0x3a   : > { %767 = vst [vmem:[%s943_s12 + $0x28] sm:$0xff] %v750_v21   ;;  %v495_v24 = vld [vmem:[%s943_s12 + $0x8] sm:$0xf] (%p906_p6)  ;;  %v497_v25 = vld [vmem:[%s943_s12 + $0xc] sm:$0xf] (%p906_p6)  ;;  %492 = vst [vmem:[%s474_s24] sm:$0xf] (%p906_p6), %v491_v19 }
  0x3b   : > { %768 = vst [vmem:[%s943_s12 + $0x30] sm:$0xff] %v755_v22   ;;  %v499_v26 = vld [vmem:[%s943_s12 + $0x10] sm:$0xf] (%p906_p6)  ;;  %494 = vst [vmem:[%s474_s24 + $0xc] sm:$0xf] (%p906_p6), %v493_v23 }
  0x3c   : > { %496 = vst [vmem:[%s474_s24 + $0x18] sm:$0xf] %v495_v24  ;;  %498 = vst [vmem:[%s474_s24 + $0x24] sm:$0xf] %v497_v25  ;;  %v501_v27 = vld [vmem:[%s943_s12 + $0x14] sm:$0xf] }
  0x3d   : > { %500 = vst [vmem:[%s474_s24 + $0x30] sm:$0xf] %v499_v26  ;;  %v503_v28 = vld [vmem:[%s943_s12 + $0x18] sm:$0xf]  ;;  %v505_v29 = vld [vmem:[%s943_s12 + $0x1c] sm:$0xf] }
  0x3e   : > { %502 = vst [vmem:[%s474_s24 + $0x3c] sm:$0xf] %v501_v27  ;;  %504 = vst [vmem:[%s474_s24 + $0x48] sm:$0xf] %v503_v28 }
  0x3f   : > { %506 = vst [vmem:[%s474_s24 + $0x54] sm:$0xf] %v505_v29 }
  0x40   : > { %v507_v30 = vld [vmem:[%s943_s12 + $0x20] sm:$0xf]  ;;  %v509_v31 = vld [vmem:[%s943_s12 + $0x24] sm:$0xf] }
  0x41   : > { %v511_v32 = vld [vmem:[%s943_s12 + $0x28] sm:$0xf]  ;;  %508 = vst [vmem:[%s474_s24 + $0x60] sm:$0xf] %v507_v30  ;;  %510 = vst [vmem:[%s474_s24 + $0x6c] sm:$0xf] %v509_v31 }
  0x42   : > { %512 = vst [vmem:[%s474_s24 + $0x78] sm:$0xf] %v511_v32  ;;  %v513_v33 = vld [vmem:[%s943_s12 + $0x2c] sm:$0xf]  ;;  %v515_v34 = vld [vmem:[%s943_s12 + $0x30] sm:$0xf] }
  0x43   : > { %v517_v35 = vld [vmem:[%s943_s12 + $0x34] sm:$0xf]  ;;  %514 = vst [vmem:[%s474_s24 + $0x84] sm:$0xf] %v513_v33  ;;  %516 = vst [vmem:[%s474_s24 + $0x90] sm:$0xf] %v515_v34 }
  0x44   : > { %518 = vst [vmem:[%s474_s24 + $0x9c] sm:$0xf] %v517_v35 }
  0x45 PF: > { %s13_s16 = sadd.s32 1, %s849_s16   ;;  %s992_s12 = smov %s837_s13 }
  0x46   : > { %p10_p12 = scmp.ge.s32.totalorder %s13_s16, 5   ;;  %s993_s13 = smov %s911_s22 }
  0x47   : > { %s994_s14 = smov %s845_s15  ;;  %s995_s15 = smov %s997_s17 }
  0x48   :  { %12 = sbr.rel (!%p10_p12) target bundleno = 3 (0x3), region = 155 }

// kernel: inception_d_forward.22
= control target key start
LH: loop header
LB: loop body
LE: loop exit
PB: predicated region body
PF: predicated region fallthrough
CT: control target
= control target key end

     0   :  { %s4794_s15 = smov 0   ;;  %s4796_s16 = smov 0   ;;  %s5961_s0 = inlined_call_operand.vmem [shape: bf16[112,1728], index: 0, kind: input, shape index: {}]   ;;  %s5962_s1 = inlined_call_operand.vmem [shape: bf16[1728,384], index: 1, kind: input, shape index: {}]   ;;  %s5963_s2 = inlined_call_operand.vmem [shape: bf16[112,384], index: 2, kind: output, shape index: {0}]   ;;  %s5964_s3 = inlined_call_operand.vmem [shape: f32[1,1,384], index: 3, kind: output, shape index: {1}]   ;;  %s5965_s4 = inlined_call_operand.vmem [shape: f32[1,1,384], index: 4, kind: output, shape index: {2}]  }
   0x1   :  { %s4798_s17 = smov 0   ;;  %s4800_s18 = smov 0  }
   0x2   :  { %s4802_s19 = smov 0  }
   0x3 LB: > { %s30_s20 = sadd.s32 1, %s4762_s18  ;;  %s3773_s21 = sadd.s32 4294967295, %s4766_s19   ;;  %s4766_s19 = sphi %s4802_s19, %s15_s19   ;;  %s4762_s18 = sphi %s4800_s18, %s6012_s18   ;;  %s4758_s17 = sphi %s4798_s17, %s6011_s17   ;;  %s4754_s16 = sphi %s4796_s16, %s6010_s16   ;;  %s4750_s15 = sphi %s4794_s15, %s6009_s15  }
   0x4   : > { %p32_p0 = scmp.ge.s32.totalorder %s30_s20, 3  ;;  %p78_p1 = scmp.ne.s32.totalorder %s4754_s16, %s4750_s15 }
   0x5   : > { %p79_p2 = scmp.eq.s32.totalorder %s4766_s19, 0  ;;  %p110_p4 = scmp.eq.s32.totalorder %s3773_s21, 2 }
   0x6   : > { %s6014_s20 = smov (%p32_p0, %s30_s20), 0  ;;  %s71_s23 = sadd.s32 1, %s4754_s16 }
   0x7   : > { %p80_p3 = por %p79_p2, %p78_p1  ;;  %s67_s22 = ssub.s32 %s4762_s18, %s6014_s20 }
   0x8   : > { %p69_p5 = scmp.eq.s32.totalorder %s67_s22, 0  ;;  %p4829_p6 = por %p110_p4, %p78_p1 }
   0x9   : > { %p3777_p7 = scmp.ge.s32.totalorder %s4766_s19, 3 }
   0xa   : > { %s4834_s25 = scalar_select %p69_p5, %s4754_s16, %s71_s23  }
   0xb   : > { %203 = sbr.rel (%p3777_p7) target bundleno = 164 (0xa4), region = 20 }
  0x10   : > { %206 = sbr.rel (!%p80_p3) target bundleno = 164 (0xa4), region = 24  ;;  %s208_s26 = sand.u32 (%p80_p3), 1, %s4754_s16  }
  0x11   : > { %s3778_s27 = sshll.u32 (%p80_p3), %s4762_s18, 2  ;;  %s4429_s28 = smul.u32 (%p80_p3), 864, %s208_s26 }
  0x12   : > { %s4842_s5 = scalar_lea.vmem (%p80_p3), %s5962_s1, %s3778_s27 }
  0x13   : > { %v232_v0 = vld [vmem:[%s4842_s5] sm:$0xf] (%p80_p3)  ;;  %v234_v1 = vld [vmem:[%s4842_s5 + $0xc] sm:$0xf] (%p80_p3)  ;;  %v236_v2 = vld [vmem:[%s4842_s5 + $0x18] sm:$0xf] (%p80_p3) }
  0x14   : > { %v238_v3 = vld [vmem:[%s4842_s5 + $0x24] sm:$0xf] (%p80_p3)  ;;  %v240_v4 = vld [vmem:[%s4842_s5 + $0x30] sm:$0xf] (%p80_p3)  ;;  %s4849_s6 = scalar_lea.vmem (%p80_p3), [#allocation3], %s4429_s28 }
  0x15   : > { %233 = vst [vmem:[%s4849_s6] sm:$0xf] %v232_v0  ;;  %235 = vst [vmem:[%s4849_s6 + $0x4] sm:$0xf] %v234_v1  ;;  %v242_v5 = vld [vmem:[%s4842_s5 + $0x3c] sm:$0xf] }
  0x16   : > { %237 = vst [vmem:[%s4849_s6 + $0x8] sm:$0xf] %v236_v2  ;;  %239 = vst [vmem:[%s4849_s6 + $0xc] sm:$0xf] %v238_v3  ;;  %v244_v6 = vld [vmem:[%s4842_s5 + $0x48] sm:$0xf] }
  0x17   : > { %241 = vst [vmem:[%s4849_s6 + $0x10] sm:$0xf] %v240_v4  ;;  %v246_v7 = vld [vmem:[%s4842_s5 + $0x54] sm:$0xf]  ;;  %243 = vst [vmem:[%s4849_s6 + $0x14] sm:$0xf] %v242_v5 }
  0x18   : > { %245 = vst [vmem:[%s4849_s6 + $0x18] sm:$0xf] %v244_v6  ;;  %247 = vst [vmem:[%s4849_s6 + $0x1c] sm:$0xf] %v246_v7  ;;  %v248_v8 = vld [vmem:[%s4842_s5 + $0x60] sm:$0xf] }
  0x19   : > { %v250_v9 = vld [vmem:[%s4842_s5 + $0x6c] sm:$0xf]  ;;  %v252_v10 = vld [vmem:[%s4842_s5 + $0x78] sm:$0xf]  ;;  %249 = vst [vmem:[%s4849_s6 + $0x20] sm:$0xf] %v248_v8 }
  0x1a   : > { %251 = vst [vmem:[%s4849_s6 + $0x24] sm:$0xf] %v250_v9  ;;  %253 = vst [vmem:[%s4849_s6 + $0x28] sm:$0xf] %v252_v10  ;;  %v254_v11 = vld [vmem:[%s4842_s5 + $0x84] sm:$0xf] }
  0x1b   : > { %v256_v12 = vld [vmem:[%s4842_s5 + $0x90] sm:$0xf]  ;;  %v258_v13 = vld [vmem:[%s4842_s5 + $0x9c] sm:$0xf]  ;;  %255 = vst [vmem:[%s4849_s6 + $0x2c] sm:$0xf] %v254_v11 }
  0x1c   : > { %257 = vst [vmem:[%s4849_s6 + $0x30] sm:$0xf] %v256_v12  ;;  %259 = vst [vmem:[%s4849_s6 + $0x34] sm:$0xf] %v258_v13  ;;  %v260_v14 = vld [vmem:[%s4842_s5 + $0xa8] sm:$0xf] }
  0x1d   : > { %v262_v15 = vld [vmem:[%s4842_s5 + $0xb4] sm:$0xf]  ;;  %v264_v16 = vld [vmem:[%s4842_s5 + $0xc0] sm:$0xf]  ;;  %261 = vst [vmem:[%s4849_s6 + $0x38] sm:$0xf] %v260_v14 }
  0x1e   : > { %263 = vst [vmem:[%s4849_s6 + $0x3c] sm:$0xf] %v262_v15  ;;  %265 = vst [vmem:[%s4849_s6 + $0x40] sm:$0xf] %v264_v16  ;;  %v266_v17 = vld [vmem:[%s4842_s5 + $0xcc] sm:$0xf] }
  0x1f   : > { %v268_v18 = vld [vmem:[%s4842_s5 + $0xd8] sm:$0xf]  ;;  %v270_v19 = vld [vmem:[%s4842_s5 + $0xe4] sm:$0xf]  ;;  %267 = vst [vmem:[%s4849_s6 + $0x44] sm:$0xf] %v266_v17 }
  0x20   : > { %269 = vst [vmem:[%s4849_s6 + $0x48] sm:$0xf] %v268_v18  ;;  %271 = vst [vmem:[%s4849_s6 + $0x4c] sm:$0xf] %v270_v19  ;;  %v272_v20 = vld [vmem:[%s4842_s5 + $0xf0] sm:$0xf] }
  0x21   : > { %v274_v21 = vld [vmem:[%s4842_s5 + $0xfc] sm:$0xf]  ;;  %v276_v22 = vld [vmem:[%s4842_s5 + $0x108] sm:$0xf]  ;;  %273 = vst [vmem:[%s4849_s6 + $0x50] sm:$0xf] %v272_v20 }
  0x22   : > { %275 = vst [vmem:[%s4849_s6 + $0x54] sm:$0xf] %v274_v21  ;;  %277 = vst [vmem:[%s4849_s6 + $0x58] sm:$0xf] %v276_v22  ;;  %v278_v23 = vld [vmem:[%s4842_s5 + $0x114] sm:$0xf] }
  0x23   : > { %v280_v24 = vld [vmem:[%s4842_s5 + $0x120] sm:$0xf]  ;;  %v282_v25 = vld [vmem:[%s4842_s5 + $0x12c] sm:$0xf]  ;;  %279 = vst [vmem:[%s4849_s6 + $0x5c] sm:$0xf] %v278_v23 }
  0x24   : > { %281 = vst [vmem:[%s4849_s6 + $0x60] sm:$0xf] %v280_v24  ;;  %283 = vst [vmem:[%s4849_s6 + $0x64] sm:$0xf] %v282_v25  ;;  %v284_v26 = vld [vmem:[%s4842_s5 + $0x138] sm:$0xf] }
  0x25   : > { %v286_v27 = vld [vmem:[%s4842_s5 + $0x144] sm:$0xf]  ;;  %v288_v28 = vld [vmem:[%s4842_s5 + $0x150] sm:$0xf]  ;;  %285 = vst [vmem:[%s4849_s6 + $0x68] sm:$0xf] %v284_v26 }
  0x26   : > { %287 = vst [vmem:[%s4849_s6 + $0x6c] sm:$0xf] %v286_v27  ;;  %289 = vst [vmem:[%s4849_s6 + $0x70] sm:$0xf] %v288_v28  ;;  %v290_v29 = vld [vmem:[%s4842_s5 + $0x15c] sm:$0xf] }
  0x27   : > { %v292_v30 = vld [vmem:[%s4842_s5 + $0x168] sm:$0xf]  ;;  %v294_v31 = vld [vmem:[%s4842_s5 + $0x174] sm:$0xf]  ;;  %291 = vst [vmem:[%s4849_s6 + $0x74] sm:$0xf] %v290_v29 }
  0x28   : > { %293 = vst [vmem:[%s4849_s6 + $0x78] sm:$0xf] %v292_v30  ;;  %295 = vst [vmem:[%s4849_s6 + $0x7c] sm:$0xf] %v294_v31  ;;  %v296_v32 = vld [vmem:[%s4842_s5 + $0x180] sm:$0xf] }
  0x29   : > { %v298_v33 = vld [vmem:[%s4842_s5 + $0x18c] sm:$0xf]  ;;  %v300_v34 = vld [vmem:[%s4842_s5 + $0x198] sm:$0xf]  ;;  %297 = vst [vmem:[%s4849_s6 + $0x80] sm:$0xf] %v296_v32 }
  0x2a   : > { %299 = vst [vmem:[%s4849_s6 + $0x84] sm:$0xf] %v298_v33  ;;  %301 = vst [vmem:[%s4849_s6 + $0x88] sm:$0xf] %v300_v34  ;;  %v302_v35 = vld [vmem:[%s4842_s5 + $0x1a4] sm:$0xf] }
  0x2b   : > { %v304_v36 = vld [vmem:[%s4842_s5 + $0x1b0] sm:$0xf]  ;;  %v306_v37 = vld [vmem:[%s4842_s5 + $0x1bc] sm:$0xf]  ;;  %303 = vst [vmem:[%s4849_s6 + $0x8c] sm:$0xf] %v302_v35 }
  0x2c   : > { %305 = vst [vmem:[%s4849_s6 + $0x90] sm:$0xf] %v304_v36  ;;  %307 = vst [vmem:[%s4849_s6 + $0x94] sm:$0xf] %v306_v37  ;;  %v308_v38 = vld [vmem:[%s4842_s5 + $0x1c8] sm:$0xf] }
  0x2d   : > { %v310_v39 = vld [vmem:[%s4842_s5 + $0x1d4] sm:$0xf]  ;;  %v312_v40 = vld [vmem:[%s4842_s5 + $0x1e0] sm:$0xf]  ;;  %309 = vst [vmem:[%s4849_s6 + $0x98] sm:$0xf] %v308_v38 }
  0x2e   : > { %311 = vst [vmem:[%s4849_s6 + $0x9c] sm:$0xf] %v310_v39  ;;  %313 = vst [vmem:[%s4849_s6 + $0xa0] sm:$0xf] %v312_v40  ;;  %v314_v41 = vld [vmem:[%s4842_s5 + $0x1ec] sm:$0xf] }
  0x2f   : > { %v316_v42 = vld [vmem:[%s4842_s5 + $0x1f8] sm:$0xf]  ;;  %v318_v43 = vld [vmem:[%s4842_s5 + $0x204] sm:$0xf]  ;;  %315 = vst [vmem:[%s4849_s6 + $0xa4] sm:$0xf] %v314_v41 }
  0x30   : > { %317 = vst [vmem:[%s4849_s6 + $0xa8] sm:$0xf] %v316_v42  ;;  %319 = vst [vmem:[%s4849_s6 + $0xac] sm:$0xf] %v318_v43  ;;  %v320_v44 = vld [vmem:[%s4842_s5 + $0x210] sm:$0xf] }
  0x31   : > { %v322_v45 = vld [vmem:[%s4842_s5 + $0x21c] sm:$0xf]  ;;  %v324_v46 = vld [vmem:[%s4842_s5 + $0x228] sm:$0xf]  ;;  %321 = vst [vmem:[%s4849_s6 + $0xb0] sm:$0xf] %v320_v44 }
  0x32   : > { %323 = vst [vmem:[%s4849_s6 + $0xb4] sm:$0xf] %v322_v45  ;;  %325 = vst [vmem:[%s4849_s6 + $0xb8] sm:$0xf] %v324_v46  ;;  %v326_v47 = vld [vmem:[%s4842_s5 + $0x234] sm:$0xf] }
  0x33   : > { %v328_v48 = vld [vmem:[%s4842_s5 + $0x240] sm:$0xf]  ;;  %v330_v49 = vld [vmem:[%s4842_s5 + $0x24c] sm:$0xf]  ;;  %327 = vst [vmem:[%s4849_s6 + $0xbc] sm:$0xf] %v326_v47 }
  0x34   : > { %329 = vst [vmem:[%s4849_s6 + $0xc0] sm:$0xf] %v328_v48  ;;  %331 = vst [vmem:[%s4849_s6 + $0xc4] sm:$0xf] %v330_v49  ;;  %v332_v50 = vld [vmem:[%s4842_s5 + $0x258] sm:$0xf] }
  0x35   : > { %v334_v51 = vld [vmem:[%s4842_s5 + $0x264] sm:$0xf]  ;;  %v336_v52 = vld [vmem:[%s4842_s5 + $0x270] sm:$0xf]  ;;  %333 = vst [vmem:[%s4849_s6 + $0xc8] sm:$0xf] %v332_v50 }
  0x36   : > { %335 = vst [vmem:[%s4849_s6 + $0xcc] sm:$0xf] %v334_v51  ;;  %337 = vst [vmem:[%s4849_s6 + $0xd0] sm:$0xf] %v336_v52  ;;  %v338_v53 = vld [vmem:[%s4842_s5 + $0x27c] sm:$0xf] }
  0x37   : > { %v340_v54 = vld [vmem:[%s4842_s5 + $0x288] sm:$0xf]  ;;  %v342_v55 = vld [vmem:[%s4842_s5 + $0x294] sm:$0xf]  ;;  %339 = vst [vmem:[%s4849_s6 + $0xd4] sm:$0xf] %v338_v53 }
  0x38   : > { %341 = vst [vmem:[%s4849_s6 + $0xd8] sm:$0xf] %v340_v54  ;;  %343 = vst [vmem:[%s4849_s6 + $0xdc] sm:$0xf] %v342_v55  ;;  %v344_v56 = vld [vmem:[%s4842_s5 + $0x2a0] sm:$0xf] }
  0x39   : > { %v346_v57 = vld [vmem:[%s4842_s5 + $0x2ac] sm:$0xf]  ;;  %v348_v58 = vld [vmem:[%s4842_s5 + $0x2b8] sm:$0xf]  ;;  %345 = vst [vmem:[%s4849_s6 + $0xe0] sm:$0xf] %v344_v56 }
  0x3a   : > { %347 = vst [vmem:[%s4849_s6 + $0xe4] sm:$0xf] %v346_v57  ;;  %349 = vst [vmem:[%s4849_s6 + $0xe8] sm:$0xf] %v348_v58  ;;  %v350_v59 = vld [vmem:[%s4842_s5 + $0x2c4] sm:$0xf] }
  0x3b   : > { %v352_v60 = vld [vmem:[%s4842_s5 + $0x2d0] sm:$0xf]  ;;  %v354_v61 = vld [vmem:[%s4842_s5 + $0x2dc] sm:$0xf]  ;;  %351 = vst [vmem:[%s4849_s6 + $0xec] sm:$0xf] %v350_v59 }
  0x3c   : > { %353 = vst [vmem:[%s4849_s6 + $0xf0] sm:$0xf] %v352_v60  ;;  %355 = vst [vmem:[%s4849_s6 + $0xf4] sm:$0xf] %v354_v61  ;;  %v356_v62 = vld [vmem:[%s4842_s5 + $0x2e8] sm:$0xf] }
  0x3d   : > { %v358_v63 = vld [vmem:[%s4842_s5 + $0x2f4] sm:$0xf]  ;;  %v360_v0 = vld [vmem:[%s4842_s5 + $0x300] sm:$0xf]  ;;  %357 = vst [vmem:[%s4849_s6 + $0xf8] sm:$0xf] %v356_v62 }
  0x3e   : > { %359 = vst [vmem:[%s4849_s6 + $0xfc] sm:$0xf] %v358_v63  ;;  %361 = vst [vmem:[%s4849_s6 + $0x100] sm:$0xf] %v360_v0  ;;  %v362_v1 = vld [vmem:[%s4842_s5 + $0x30c] sm:$0xf] }
  0x3f   : > { %v364_v2 = vld [vmem:[%s4842_s5 + $0x318] sm:$0xf]  ;;  %v366_v3 = vld [vmem:[%s4842_s5 + $0x324] sm:$0xf]  ;;  %363 = vst [vmem:[%s4849_s6 + $0x104] sm:$0xf] %v362_v1 }
  0x40   : > { %365 = vst [vmem:[%s4849_s6 + $0x108] sm:$0xf] %v364_v2  ;;  %367 = vst [vmem:[%s4849_s6 + $0x10c] sm:$0xf] %v366_v3  ;;  %v368_v4 = vld [vmem:[%s4842_s5 + $0x330] sm:$0xf] }
  0x41   : > { %v370_v5 = vld [vmem:[%s4842_s5 + $0x33c] sm:$0xf]  ;;  %v372_v6 = vld [vmem:[%s4842_s5 + $0x348] sm:$0xf]  ;;  %369 = vst [vmem:[%s4849_s6 + $0x110] sm:$0xf] %v368_v4 }
  0x42   : > { %371 = vst [vmem:[%s4849_s6 + $0x114] sm:$0xf] %v370_v5  ;;  %373 = vst [vmem:[%s4849_s6 + $0x118] sm:$0xf] %v372_v6  ;;  %v374_v7 = vld [vmem:[%s4842_s5 + $0x354] sm:$0xf] }
  0x43   : > { %v376_v8 = vld [vmem:[%s4842_s5 + $0x360] sm:$0xf]  ;;  %v378_v9 = vld [vmem:[%s4842_s5 + $0x36c] sm:$0xf]  ;;  %375 = vst [vmem:[%s4849_s6 + $0x11c] sm:$0xf] %v374_v7 }
  0x44   : > { %377 = vst [vmem:[%s4849_s6 + $0x120] sm:$0xf] %v376_v8  ;;  %379 = vst [vmem:[%s4849_s6 + $0x124] sm:$0xf] %v378_v9  ;;  %v380_v10 = vld [vmem:[%s4842_s5 + $0x378] sm:$0xf] }
  0x45   : > { %v382_v11 = vld [vmem:[%s4842_s5 + $0x384] sm:$0xf]  ;;  %v384_v12 = vld [vmem:[%s4842_s5 + $0x390] sm:$0xf]  ;;  %381 = vst [vmem:[%s4849_s6 + $0x128] sm:$0xf] %v380_v10 }
  0x46   : > { %383 = vst [vmem:[%s4849_s6 + $0x12c] sm:$0xf] %v382_v11  ;;  %385 = vst [vmem:[%s4849_s6 + $0x130] sm:$0xf] %v384_v12  ;;  %v386_v13 = vld [vmem:[%s4842_s5 + $0x39c] sm:$0xf] }
  0x47   : > { %v388_v14 = vld [vmem:[%s4842_s5 + $0x3a8] sm:$0xf]  ;;  %v390_v15 = vld [vmem:[%s4842_s5 + $0x3b4] sm:$0xf]  ;;  %387 = vst [vmem:[%s4849_s6 + $0x134] sm:$0xf] %v386_v13 }
  0x48   : > { %389 = vst [vmem:[%s4849_s6 + $0x138] sm:$0xf] %v388_v14  ;;  %391 = vst [vmem:[%s4849_s6 + $0x13c] sm:$0xf] %v390_v15  ;;  %v392_v16 = vld [vmem:[%s4842_s5 + $0x3c0] sm:$0xf] }
  0x49   : > { %v394_v17 = vld [vmem:[%s4842_s5 + $0x3cc] sm:$0xf]  ;;  %v396_v18 = vld [vmem:[%s4842_s5 + $0x3d8] sm:$0xf]  ;;  %393 = vst [vmem:[%s4849_s6 + $0x140] sm:$0xf] %v392_v16 }
  0x4a   : > { %395 = vst [vmem:[%s4849_s6 + $0x144] sm:$0xf] %v394_v17  ;;  %397 = vst [vmem:[%s4849_s6 + $0x148] sm:$0xf] %v396_v18  ;;  %v398_v19 = vld [vmem:[%s4842_s5 + $0x3e4] sm:$0xf] }
  0x4b   : > { %v400_v20 = vld [vmem:[%s4842_s5 + $0x3f0] sm:$0xf]  ;;  %v402_v21 = vld [vmem:[%s4842_s5 + $0x3fc] sm:$0xf]  ;;  %399 = vst [vmem:[%s4849_s6 + $0x14c] sm:$0xf] %v398_v19 }
  0x4c   : > { %401 = vst [vmem:[%s4849_s6 + $0x150] sm:$0xf] %v400_v20  ;;  %403 = vst [vmem:[%s4849_s6 + $0x154] sm:$0xf] %v402_v21  ;;  %v404_v22 = vld [vmem:[%s4842_s5 + $0x408] sm:$0xf] }
  0x4d   : > { %v406_v23 = vld [vmem:[%s4842_s5 + $0x414] sm:$0xf]  ;;  %v408_v24 = vld [vmem:[%s4842_s5 + $0x420] sm:$0xf]  ;;  %405 = vst [vmem:[%s4849_s6 + $0x158] sm:$0xf] %v404_v22 }
  0x4e   : > { %407 = vst [vmem:[%s4849_s6 + $0x15c] sm:$0xf] %v406_v23  ;;  %409 = vst [vmem:[%s4849_s6 + $0x160] sm:$0xf] %v408_v24  ;;  %v410_v25 = vld [vmem:[%s4842_s5 + $0x42c] sm:$0xf] }
  0x4f   : > { %v412_v26 = vld [vmem:[%s4842_s5 + $0x438] sm:$0xf]  ;;  %v414_v27 = vld [vmem:[%s4842_s5 + $0x444] sm:$0xf]  ;;  %411 = vst [vmem:[%s4849_s6 + $0x164] sm:$0xf] %v410_v25 }
  0x50   : > { %413 = vst [vmem:[%s4849_s6 + $0x168] sm:$0xf] %v412_v26  ;;  %415 = vst [vmem:[%s4849_s6 + $0x16c] sm:$0xf] %v414_v27  ;;  %v416_v28 = vld [vmem:[%s4842_s5 + $0x450] sm:$0xf] }
  0x51   : > { %v418_v29 = vld [vmem:[%s4842_s5 + $0x45c] sm:$0xf]  ;;  %v420_v30 = vld [vmem:[%s4842_s5 + $0x468] sm:$0xf]  ;;  %417 = vst [vmem:[%s4849_s6 + $0x170] sm:$0xf] %v416_v28 }
  0x52   : > { %419 = vst [vmem:[%s4849_s6 + $0x174] sm:$0xf] %v418_v29  ;;  %421 = vst [vmem:[%s4849_s6 + $0x178] sm:$0xf] %v420_v30  ;;  %v422_v31 = vld [vmem:[%s4842_s5 + $0x474] sm:$0xf] }
  0x53   : > { %v424_v32 = vld [vmem:[%s4842_s5 + $0x480] sm:$0xf]  ;;  %v426_v33 = vld [vmem:[%s4842_s5 + $0x48c] sm:$0xf]  ;;  %423 = vst [vmem:[%s4849_s6 + $0x17c] sm:$0xf] %v422_v31 }
  0x54   : > { %425 = vst [vmem:[%s4849_s6 + $0x180] sm:$0xf] %v424_v32  ;;  %427 = vst [vmem:[%s4849_s6 + $0x184] sm:$0xf] %v426_v33  ;;  %v428_v34 = vld [vmem:[%s4842_s5 + $0x498] sm:$0xf] }
  0x55   : > { %v430_v35 = vld [vmem:[%s4842_s5 + $0x4a4] sm:$0xf]  ;;  %v432_v36 = vld [vmem:[%s4842_s5 + $0x4b0] sm:$0xf]  ;;  %429 = vst [vmem:[%s4849_s6 + $0x188] sm:$0xf] %v428_v34 }
  0x56   : > { %431 = vst [vmem:[%s4849_s6 + $0x18c] sm:$0xf] %v430_v35  ;;  %433 = vst [vmem:[%s4849_s6 + $0x190] sm:$0xf] %v432_v36  ;;  %v434_v37 = vld [vmem:[%s4842_s5 + $0x4bc] sm:$0xf] }
  0x57   : > { %v436_v38 = vld [vmem:[%s4842_s5 + $0x4c8] sm:$0xf]  ;;  %v438_v39 = vld [vmem:[%s4842_s5 + $0x4d4] sm:$0xf]  ;;  %435 = vst [vmem:[%s4849_s6 + $0x194] sm:$0xf] %v434_v37 }
  0x58   : > { %437 = vst [vmem:[%s4849_s6 + $0x198] sm:$0xf] %v436_v38  ;;  %439 = vst [vmem:[%s4849_s6 + $0x19c] sm:$0xf] %v438_v39  ;;  %v440_v40 = vld [vmem:[%s4842_s5 + $0x4e0] sm:$0xf] }
  0x59   : > { %v442_v41 = vld [vmem:[%s4842_s5 + $0x4ec] sm:$0xf]  ;;  %v444_v42 = vld [vmem:[%s4842_s5 + $0x4f8] sm:$0xf]  ;;  %441 = vst [vmem:[%s4849_s6 + $0x1a0] sm:$0xf] %v440_v40 }
  0x5a   : > { %443 = vst [vmem:[%s4849_s6 + $0x1a4] sm:$0xf] %v442_v41  ;;  %445 = vst [vmem:[%s4849_s6 + $0x1a8] sm:$0xf] %v444_v42  ;;  %v446_v43 = vld [vmem:[%s4842_s5 + $0x504] sm:$0xf] }
  0x5b   : > { %v448_v44 = vld [vmem:[%s4842_s5 + $0x510] sm:$0xf]  ;;  %v450_v45 = vld [vmem:[%s4842_s5 + $0x51c] sm:$0xf]  ;;  %447 = vst [vmem:[%s4849_s6 + $0x1ac] sm:$0xf] %v446_v43 }
  0x5c   : > { %449 = vst [vmem:[%s4849_s6 + $0x1b0] sm:$0xf] %v448_v44  ;;  %451 = vst [vmem:[%s4849_s6 + $0x1b4] sm:$0xf] %v450_v45  ;;  %v452_v46 = vld [vmem:[%s4842_s5 + $0x528] sm:$0xf] }
  0x5d   : > { %v454_v47 = vld [vmem:[%s4842_s5 + $0x534] sm:$0xf]  ;;  %v456_v48 = vld [vmem:[%s4842_s5 + $0x540] sm:$0xf]  ;;  %453 = vst [vmem:[%s4849_s6 + $0x1b8] sm:$0xf] %v452_v46 }
  0x5e   : > { %455 = vst [vmem:[%s4849_s6 + $0x1bc] sm:$0xf] %v454_v47  ;;  %457 = vst [vmem:[%s4849_s6 + $0x1c0] sm:$0xf] %v456_v48  ;;  %v458_v49 = vld [vmem:[%s4842_s5 + $0x54c] sm:$0xf] }
  0x5f   : > { %v460_v50 = vld [vmem:[%s4842_s5 + $0x558] sm:$0xf]  ;;  %v462_v51 = vld [vmem:[%s4842_s5 + $0x564] sm:$0xf]  ;;  %459 = vst [vmem:[%s4849_s6 + $0x1c4] sm:$0xf] %v458_v49 }
  0x60   : > { %461 = vst [vmem:[%s4849_s6 + $0x1c8] sm:$0xf] %v460_v50  ;;  %463 = vst [vmem:[%s4849_s6 + $0x1cc] sm:$0xf] %v462_v51  ;;  %v464_v52 = vld [vmem:[%s4842_s5 + $0x570] sm:$0xf] }
  0x61   : > { %v466_v53 = vld [vmem:[%s4842_s5 + $0x57c] sm:$0xf]  ;;  %v468_v54 = vld [vmem:[%s4842_s5 + $0x588] sm:$0xf]  ;;  %465 = vst [vmem:[%s4849_s6 + $0x1d0] sm:$0xf] %v464_v52 }
  0x62   : > { %467 = vst [vmem:[%s4849_s6 + $0x1d4] sm:$0xf] %v466_v53  ;;  %469 = vst [vmem:[%s4849_s6 + $0x1d8] sm:$0xf] %v468_v54  ;;  %v470_v55 = vld [vmem:[%s4842_s5 + $0x594] sm:$0xf] }
  0x63   : > { %v472_v56 = vld [vmem:[%s4842_s5 + $0x5a0] sm:$0xf]  ;;  %v474_v57 = vld [vmem:[%s4842_s5 + $0x5ac] sm:$0xf]  ;;  %471 = vst [vmem:[%s4849_s6 + $0x1dc] sm:$0xf] %v470_v55 }
  0x64   : > { %473 = vst [vmem:[%s4849_s6 + $0x1e0] sm:$0xf] %v472_v56  ;;  %475 = vst [vmem:[%s4849_s6 + $0x1e4] sm:$0xf] %v474_v57  ;;  %v476_v58 = vld [vmem:[%s4842_s5 + $0x5b8] sm:$0xf] }
  0x65   : > { %v478_v59 = vld [vmem:[%s4842_s5 + $0x5c4] sm:$0xf]  ;;  %v480_v60 = vld [vmem:[%s4842_s5 + $0x5d0] sm:$0xf]  ;;  %477 = vst [vmem:[%s4849_s6 + $0x1e8] sm:$0xf] %v476_v58 }
  0x66   : > { %479 = vst [vmem:[%s4849_s6 + $0x1ec] sm:$0xf] %v478_v59  ;;  %481 = vst [vmem:[%s4849_s6 + $0x1f0] sm:$0xf] %v480_v60  ;;  %v482_v61 = vld [vmem:[%s4842_s5 + $0x5dc] sm:$0xf] }
  0x67   : > { %v484_v62 = vld [vmem:[%s4842_s5 + $0x5e8] sm:$0xf]  ;;  %v486_v63 = vld [vmem:[%s4842_s5 + $0x5f4] sm:$0xf]  ;;  %483 = vst [vmem:[%s4849_s6 + $0x1f4] sm:$0xf] %v482_v61 }
  0x68   : > { %485 = vst [vmem:[%s4849_s6 + $0x1f8] sm:$0xf] %v484_v62  ;;  %487 = vst [vmem:[%s4849_s6 + $0x1fc] sm:$0xf] %v486_v63  ;;  %v488_v0 = vld [vmem:[%s4842_s5 + $0x600] sm:$0xf] }
  0x69   : > { %v490_v1 = vld [vmem:[%s4842_s5 + $0x60c] sm:$0xf]  ;;  %v492_v2 = vld [vmem:[%s4842_s5 + $0x618] sm:$0xf]  ;;  %489 = vst [vmem:[%s4849_s6 + $0x200] sm:$0xf] %v488_v0 }
  0x6a   : > { %491 = vst [vmem:[%s4849_s6 + $0x204] sm:$0xf] %v490_v1  ;;  %493 = vst [vmem:[%s4849_s6 + $0x208] sm:$0xf] %v492_v2  ;;  %v494_v3 = vld [vmem:[%s4842_s5 + $0x624] sm:$0xf] }
  0x6b   : > { %v496_v4 = vld [vmem:[%s4842_s5 + $0x630] sm:$0xf]  ;;  %v498_v5 = vld [vmem:[%s4842_s5 + $0x63c] sm:$0xf]  ;;  %495 = vst [vmem:[%s4849_s6 + $0x20c] sm:$0xf] %v494_v3 }
  0x6c   : > { %497 = vst [vmem:[%s4849_s6 + $0x210] sm:$0xf] %v496_v4  ;;  %499 = vst [vmem:[%s4849_s6 + $0x214] sm:$0xf] %v498_v5  ;;  %v500_v6 = vld [vmem:[%s4842_s5 + $0x648] sm:$0xf] }
  0x6d   : > { %v502_v7 = vld [vmem:[%s4842_s5 + $0x654] sm:$0xf]  ;;  %v504_v8 = vld [vmem:[%s4842_s5 + $0x660] sm:$0xf]  ;;  %501 = vst [vmem:[%s4849_s6 + $0x218] sm:$0xf] %v500_v6 }
  0x6e   : > { %503 = vst [vmem:[%s4849_s6 + $0x21c] sm:$0xf] %v502_v7  ;;  %505 = vst [vmem:[%s4849_s6 + $0x220] sm:$0xf] %v504_v8  ;;  %v506_v9 = vld [vmem:[%s4842_s5 + $0x66c] sm:$0xf] }
  0x6f   : > { %v508_v10 = vld [vmem:[%s4842_s5 + $0x678] sm:$0xf]  ;;  %v510_v11 = vld [vmem:[%s4842_s5 + $0x684] sm:$0xf]  ;;  %507 = vst [vmem:[%s4849_s6 + $0x224] sm:$0xf] %v506_v9 }
  0x70   : > { %509 = vst [vmem:[%s4849_s6 + $0x228] sm:$0xf] %v508_v10  ;;  %511 = vst [vmem:[%s4849_s6 + $0x22c] sm:$0xf] %v510_v11  ;;  %v512_v12 = vld [vmem:[%s4842_s5 + $0x690] sm:$0xf] }
  0x71   : > { %v514_v13 = vld [vmem:[%s4842_s5 + $0x69c] sm:$0xf]  ;;  %v516_v14 = vld [vmem:[%s4842_s5 + $0x6a8] sm:$0xf]  ;;  %513 = vst [vmem:[%s4849_s6 + $0x230] sm:$0xf] %v512_v12 }
  0x72   : > { %515 = vst [vmem:[%s4849_s6 + $0x234] sm:$0xf] %v514_v13  ;;  %517 = vst [vmem:[%s4849_s6 + $0x238] sm:$0xf] %v516_v14  ;;  %v518_v15 = vld [vmem:[%s4842_s5 + $0x6b4] sm:$0xf] }
  0x73   : > { %v520_v16 = vld [vmem:[%s4842_s5 + $0x6c0] sm:$0xf]  ;;  %v522_v17 = vld [vmem:[%s4842_s5 + $0x6cc] sm:$0xf]  ;;  %519 = vst [vmem:[%s4849_s6 + $0x23c] sm:$0xf] %v518_v15 }
  0x74   : > { %521 = vst [vmem:[%s4849_s6 + $0x240] sm:$0xf] %v520_v16  ;;  %523 = vst [vmem:[%s4849_s6 + $0x244] sm:$0xf] %v522_v17  ;;  %v524_v18 = vld [vmem:[%s4842_s5 + $0x6d8] sm:$0xf] }
  0x75   : > { %v526_v19 = vld [vmem:[%s4842_s5 + $0x6e4] sm:$0xf]  ;;  %v528_v20 = vld [vmem:[%s4842_s5 + $0x6f0] sm:$0xf]  ;;  %525 = vst [vmem:[%s4849_s6 + $0x248] sm:$0xf] %v524_v18 }
  0x76   : > { %527 = vst [vmem:[%s4849_s6 + $0x24c] sm:$0xf] %v526_v19  ;;  %529 = vst [vmem:[%s4849_s6 + $0x250] sm:$0xf] %v528_v20  ;;  %v530_v21 = vld [vmem:[%s4842_s5 + $0x6fc] sm:$0xf] }
  0x77   : > { %v532_v22 = vld [vmem:[%s4842_s5 + $0x708] sm:$0xf]  ;;  %v534_v23 = vld [vmem:[%s4842_s5 + $0x714] sm:$0xf]  ;;  %531 = vst [vmem:[%s4849_s6 + $0x254] sm:$0xf] %v530_v21 }
  0x78   : > { %533 = vst [vmem:[%s4849_s6 + $0x258] sm:$0xf] %v532_v22  ;;  %535 = vst [vmem:[%s4849_s6 + $0x25c] sm:$0xf] %v534_v23  ;;  %v536_v24 = vld [vmem:[%s4842_s5 + $0x720] sm:$0xf] }
  0x79   : > { %v538_v25 = vld [vmem:[%s4842_s5 + $0x72c] sm:$0xf]  ;;  %v540_v26 = vld [vmem:[%s4842_s5 + $0x738] sm:$0xf]  ;;  %537 = vst [vmem:[%s4849_s6 + $0x260] sm:$0xf] %v536_v24 }
  0x7a   : > { %539 = vst [vmem:[%s4849_s6 + $0x264] sm:$0xf] %v538_v25  ;;  %541 = vst [vmem:[%s4849_s6 + $0x268] sm:$0xf] %v540_v26  ;;  %v542_v27 = vld [vmem:[%s4842_s5 + $0x744] sm:$0xf] }
  0x7b   : > { %v544_v28 = vld [vmem:[%s4842_s5 + $0x750] sm:$0xf]  ;;  %v546_v29 = vld [vmem:[%s4842_s5 + $0x75c] sm:$0xf]  ;;  %543 = vst [vmem:[%s4849_s6 + $0x26c] sm:$0xf] %v542_v27 }
  0x7c   : > { %545 = vst [vmem:[%s4849_s6 + $0x270] sm:$0xf] %v544_v28  ;;  %547 = vst [vmem:[%s4849_s6 + $0x274] sm:$0xf] %v546_v29  ;;  %v548_v30 = vld [vmem:[%s4842_s5 + $0x768] sm:$0xf] }
  0x7d   : > { %v550_v31 = vld [vmem:[%s4842_s5 + $0x774] sm:$0xf]  ;;  %v552_v32 = vld [vmem:[%s4842_s5 + $0x780] sm:$0xf]  ;;  %549 = vst [vmem:[%s4849_s6 + $0x278] sm:$0xf] %v548_v30 }
  0x7e   : > { %551 = vst [vmem:[%s4849_s6 + $0x27c] sm:$0xf] %v550_v31  ;;  %553 = vst [vmem:[%s4849_s6 + $0x280] sm:$0xf] %v552_v32  ;;  %v554_v33 = vld [vmem:[%s4842_s5 + $0x78c] sm:$0xf] }
  0x7f   : > { %v556_v34 = vld [vmem:[%s4842_s5 + $0x798] sm:$0xf]  ;;  %v558_v35 = vld [vmem:[%s4842_s5 + $0x7a4] sm:$0xf]  ;;  %555 = vst [vmem:[%s4849_s6 + $0x284] sm:$0xf] %v554_v33 }
  0x80   : > { %557 = vst [vmem:[%s4849_s6 + $0x288] sm:$0xf] %v556_v34  ;;  %559 = vst [vmem:[%s4849_s6 + $0x28c] sm:$0xf] %v558_v35  ;;  %v560_v36 = vld [vmem:[%s4842_s5 + $0x7b0] sm:$0xf] }
  0x81   : > { %v562_v37 = vld [vmem:[%s4842_s5 + $0x7bc] sm:$0xf]  ;;  %v564_v38 = vld [vmem:[%s4842_s5 + $0x7c8] sm:$0xf]  ;;  %561 = vst [vmem:[%s4849_s6 + $0x290] sm:$0xf] %v560_v36 }
  0x82   : > { %563 = vst [vmem:[%s4849_s6 + $0x294] sm:$0xf] %v562_v37  ;;  %565 = vst [vmem:[%s4849_s6 + $0x298] sm:$0xf] %v564_v38  ;;  %v566_v39 = vld [vmem:[%s4842_s5 + $0x7d4] sm:$0xf] }
  0x83   : > { %v568_v40 = vld [vmem:[%s4842_s5 + $0x7e0] sm:$0xf]  ;;  %v570_v41 = vld [vmem:[%s4842_s5 + $0x7ec] sm:$0xf]  ;;  %567 = vst [vmem:[%s4849_s6 + $0x29c] sm:$0xf] %v566_v39 }
  0x84   : > { %569 = vst [vmem:[%s4849_s6 + $0x2a0] sm:$0xf] %v568_v40  ;;  %571 = vst [vmem:[%s4849_s6 + $0x2a4] sm:$0xf] %v570_v41  ;;  %v572_v42 = vld [vmem:[%s4842_s5 + $0x7f8] sm:$0xf] }
  0x85   : > { %v574_v43 = vld [vmem:[%s4842_s5 + $0x804] sm:$0xf]  ;;  %v576_v44 = vld [vmem:[%s4842_s5 + $0x810] sm:$0xf]  ;;  %573 = vst [vmem:[%s4849_s6 + $0x2a8] sm:$0xf] %v572_v42 }
  0x86   : > { %575 = vst [vmem:[%s4849_s6 + $0x2ac] sm:$0xf] %v574_v43  ;;  %577 = vst [vmem:[%s4849_s6 + $0x2b0] sm:$0xf] %v576_v44  ;;  %v578_v45 = vld [vmem:[%s4842_s5 + $0x81c] sm:$0xf] }
  0x87   : > { %v580_v46 = vld [vmem:[%s4842_s5 + $0x828] sm:$0xf]  ;;  %v582_v47 = vld [vmem:[%s4842_s5 + $0x834] sm:$0xf]  ;;  %579 = vst [vmem:[%s4849_s6 + $0x2b4] sm:$0xf] %v578_v45 }
  0x88   : > { %581 = vst [vmem:[%s4849_s6 + $0x2b8] sm:$0xf] %v580_v46  ;;  %583 = vst [vmem:[%s4849_s6 + $0x2bc] sm:$0xf] %v582_v47  ;;  %v584_v48 = vld [vmem:[%s4842_s5 + $0x840] sm:$0xf] }
  0x89   : > { %v586_v49 = vld [vmem:[%s4842_s5 + $0x84c] sm:$0xf]  ;;  %v588_v50 = vld [vmem:[%s4842_s5 + $0x858] sm:$0xf]  ;;  %585 = vst [vmem:[%s4849_s6 + $0x2c0] sm:$0xf] %v584_v48 }
  0x8a   : > { %587 = vst [vmem:[%s4849_s6 + $0x2c4] sm:$0xf] %v586_v49  ;;  %589 = vst [vmem:[%s4849_s6 + $0x2c8] sm:$0xf] %v588_v50  ;;  %v590_v51 = vld [vmem:[%s4842_s5 + $0x864] sm:$0xf] }
  0x8b   : > { %v592_v52 = vld [vmem:[%s4842_s5 + $0x870] sm:$0xf]  ;;  %v594_v53 = vld [vmem:[%s4842_s5 + $0x87c] sm:$0xf]  ;;  %591 = vst [vmem:[%s4849_s6 + $0x2cc] sm:$0xf] %v590_v51 }
  0x8c   : > { %593 = vst [vmem:[%s4849_s6 + $0x2d0] sm:$0xf] %v592_v52  ;;  %595 = vst [vmem:[%s4849_s6 + $0x2d4] sm:$0xf] %v594_v53  ;;  %v596_v54 = vld [vmem:[%s4842_s5 + $0x888] sm:$0xf] }
  0x8d   : > { %v598_v55 = vld [vmem:[%s4842_s5 + $0x894] sm:$0xf]  ;;  %v600_v56 = vld [vmem:[%s4842_s5 + $0x8a0] sm:$0xf]  ;;  %597 = vst [vmem:[%s4849_s6 + $0x2d8] sm:$0xf] %v596_v54 }
  0x8e   : > { %599 = vst [vmem:[%s4849_s6 + $0x2dc] sm:$0xf] %v598_v55  ;;  %601 = vst [vmem:[%s4849_s6 + $0x2e0] sm:$0xf] %v600_v56  ;;  %v602_v57 = vld [vmem:[%s4842_s5 + $0x8ac] sm:$0xf] }
  0x8f   : > { %v604_v58 = vld [vmem:[%s4842_s5 + $0x8b8] sm:$0xf]  ;;  %v606_v59 = vld [vmem:[%s4842_s5 + $0x8c4] sm:$0xf]  ;;  %603 = vst [vmem:[%s4849_s6 + $0x2e4] sm:$0xf] %v602_v57 }
  0x90   : > { %605 = vst [vmem:[%s4849_s6 + $0x2e8] sm:$0xf] %v604_v58  ;;  %607 = vst [vmem:[%s4849_s6 + $0x2ec] sm:$0xf] %v606_v59  ;;  %v608_v60 = vld [vmem:[%s4842_s5 + $0x8d0] sm:$0xf] }
  0x91   : > { %v610_v61 = vld [vmem:[%s4842_s5 + $0x8dc] sm:$0xf]  ;;  %v612_v62 = vld [vmem:[%s4842_s5 + $0x8e8] sm:$0xf]  ;;  %609 = vst [vmem:[%s4849_s6 + $0x2f0] sm:$0xf] %v608_v60 }
  0x92   : > { %611 = vst [vmem:[%s4849_s6 + $0x2f4] sm:$0xf] %v610_v61  ;;  %613 = vst [vmem:[%s4849_s6 + $0x2f8] sm:$0xf] %v612_v62  ;;  %v614_v63 = vld [vmem:[%s4842_s5 + $0x8f4] sm:$0xf] }
  0x93   : > { %v616_v0 = vld [vmem:[%s4842_s5 + $0x900] sm:$0xf]  ;;  %v618_v1 = vld [vmem:[%s4842_s5 + $0x90c] sm:$0xf]  ;;  %615 = vst [vmem:[%s4849_s6 + $0x2fc] sm:$0xf] %v614_v63 }
  0x94   : > { %617 = vst [vmem:[%s4849_s6 + $0x300] sm:$0xf] %v616_v0  ;;  %619 = vst [vmem:[%s4849_s6 + $0x304] sm:$0xf] %v618_v1  ;;  %v620_v2 = vld [vmem:[%s4842_s5 + $0x918] sm:$0xf] }
  0x95   : > { %v622_v3 = vld [vmem:[%s4842_s5 + $0x924] sm:$0xf]  ;;  %v624_v4 = vld [vmem:[%s4842_s5 + $0x930] sm:$0xf]  ;;  %621 = vst [vmem:[%s4849_s6 + $0x308] sm:$0xf] %v620_v2 }
  0x96   : > { %623 = vst [vmem:[%s4849_s6 + $0x30c] sm:$0xf] %v622_v3  ;;  %625 = vst [vmem:[%s4849_s6 + $0x310] sm:$0xf] %v624_v4  ;;  %v626_v5 = vld [vmem:[%s4842_s5 + $0x93c] sm:$0xf] }
  0x97   : > { %v628_v6 = vld [vmem:[%s4842_s5 + $0x948] sm:$0xf]  ;;  %v630_v7 = vld [vmem:[%s4842_s5 + $0x954] sm:$0xf]  ;;  %627 = vst [vmem:[%s4849_s6 + $0x314] sm:$0xf] %v626_v5 }
  0x98   : > { %629 = vst [vmem:[%s4849_s6 + $0x318] sm:$0xf] %v628_v6  ;;  %631 = vst [vmem:[%s4849_s6 + $0x31c] sm:$0xf] %v630_v7  ;;  %v632_v8 = vld [vmem:[%s4842_s5 + $0x960] sm:$0xf] }
  0x99   : > { %v634_v9 = vld [vmem:[%s4842_s5 + $0x96c] sm:$0xf]  ;;  %v636_v10 = vld [vmem:[%s4842_s5 + $0x978] sm:$0xf]  ;;  %633 = vst [vmem:[%s4849_s6 + $0x320] sm:$0xf] %v632_v8 }
  0x9a   : > { %635 = vst [vmem:[%s4849_s6 + $0x324] sm:$0xf] %v634_v9  ;;  %637 = vst [vmem:[%s4849_s6 + $0x328] sm:$0xf] %v636_v10  ;;  %v638_v11 = vld [vmem:[%s4842_s5 + $0x984] sm:$0xf] }
  0x9b   : > { %v640_v12 = vld [vmem:[%s4842_s5 + $0x990] sm:$0xf]  ;;  %v642_v13 = vld [vmem:[%s4842_s5 + $0x99c] sm:$0xf]  ;;  %639 = vst [vmem:[%s4849_s6 + $0x32c] sm:$0xf] %v638_v11 }
  0x9c   : > { %641 = vst [vmem:[%s4849_s6 + $0x330] sm:$0xf] %v640_v12  ;;  %643 = vst [vmem:[%s4849_s6 + $0x334] sm:$0xf] %v642_v13  ;;  %v644_v14 = vld [vmem:[%s4842_s5 + $0x9a8] sm:$0xf] }
  0x9d   : > { %v646_v15 = vld [vmem:[%s4842_s5 + $0x9b4] sm:$0xf]  ;;  %v648_v16 = vld [vmem:[%s4842_s5 + $0x9c0] sm:$0xf]  ;;  %645 = vst [vmem:[%s4849_s6 + $0x338] sm:$0xf] %v644_v14 }
  0x9e   : > { %647 = vst [vmem:[%s4849_s6 + $0x33c] sm:$0xf] %v646_v15  ;;  %649 = vst [vmem:[%s4849_s6 + $0x340] sm:$0xf] %v648_v16  ;;  %v650_v17 = vld [vmem:[%s4842_s5 + $0x9cc] sm:$0xf] }
  0x9f   : > { %v652_v18 = vld [vmem:[%s4842_s5 + $0x9d8] sm:$0xf]  ;;  %v654_v19 = vld [vmem:[%s4842_s5 + $0x9e4] sm:$0xf]  ;;  %651 = vst [vmem:[%s4849_s6 + $0x344] sm:$0xf] %v650_v17 }
  0xa0   : > { %653 = vst [vmem:[%s4849_s6 + $0x348] sm:$0xf] %v652_v18  ;;  %655 = vst [vmem:[%s4849_s6 + $0x34c] sm:$0xf] %v654_v19  ;;  %v656_v20 = vld [vmem:[%s4842_s5 + $0x9f0] sm:$0xf] }
  0xa1   : > { %v658_v21 = vld [vmem:[%s4842_s5 + $0x9fc] sm:$0xf]  ;;  %v660_v22 = vld [vmem:[%s4842_s5 + $0xa08] sm:$0xf]  ;;  %657 = vst [vmem:[%s4849_s6 + $0x350] sm:$0xf] %v656_v20 }
  0xa2   : > { %659 = vst [vmem:[%s4849_s6 + $0x354] sm:$0xf] %v658_v21  ;;  %661 = vst [vmem:[%s4849_s6 + $0x358] sm:$0xf] %v660_v22  ;;  %v662_v23 = vld [vmem:[%s4842_s5 + $0xa14] sm:$0xf] }
  0xa3   : > { %663 = vst [vmem:[%s4849_s6 + $0x35c] sm:$0xf] %v662_v23 }
  0xa4 PF: > { %p3779_p8 = scmp.ge.s32.totalorder %s4766_s19, 1  ;;  %p1118_p9 = scmp.lt.s32.totalorder %s4766_s19, 4 }
  0xa6   : > { %p1119_p10 = pnand %p3779_p8, %p1118_p9 }
  0xa8   : > { %1122 = sbr.rel (%p1119_p10) target bundleno = 624 (0x270), region = 65 }
  0xad   : > { %s1125_s7 = sand.u32 1, %s4750_s15   ;;  %v4491_v24 = vld [vmem:[%s5961_s0 + $0x1c4] ss:$56 sps:$4 sm:$0xff]   ;;  %v4489_v43 = vld [vmem:[%s5961_s0 + $0x1c0] ss:$56 sps:$4 sm:$0xff]   ;;  %vm2679_vm0 = vcmask 523264  }
  0xae   : > { %s4430_s8 = smul.u32 864, %s1125_s7  ;;  %v4494_v25 = vld [vmem:[%s5961_s0 + $0x4] ss:$56 sps:$4 sm:$0xff]   ;;  %2765 = vmatprep.mubr.bf16.mxu1 %v4491_v24  ;;  %v4492_v44 = vld [vmem:[%s5961_s0] ss:$56 sps:$4 sm:$0xff]   ;;  %p1189_p11 = scmp.lt.s32.totalorder %s4758_s17, 2 }
  0xaf   : > { %2733 = vmatprep.mubr.bf16.mxu0 %v4494_v25  ;;  %v4503_v49 = vld [vmem:[%s5961_s0 + $0x74] ss:$56 sps:$4 sm:$0xff]   ;;  %v4506_v55 = vld [vmem:[%s5961_s0 + $0x70] ss:$56 sps:$4 sm:$0xff]   ;;  %v4517_v62 = vld [vmem:[%s5961_s0 + $0xe4] ss:$56 sps:$4 sm:$0xff]  }
  0xb0   : > { %s5289_s13 = scalar_lea.vmem [#allocation3], %s4430_s8  ;;  %v4509_v51 = vld [vmem:[%s5961_s0 + $0x234] ss:$56 sps:$4 sm:$0xff]   ;;  %v4512_v59 = vld [vmem:[%s5961_s0 + $0x230] ss:$56 sps:$4 sm:$0xff]   ;;  %s4431_s9 = smul.u32 56, %s1125_s7 }
  0xb1   : > { %v4473_v26 = vld [vmem:[%s5289_s13 + $0x78] sm:$0xff]   ;;  %v4475_v28 = vld [vmem:[%s5289_s13 + $0x70] sm:$0xff]   ;;  %v4477_v30 = vld [vmem:[%s5289_s13 + $0x68] sm:$0xff]   ;;  %s1190_s7 = scalar_select %p1189_p11, %s4758_s17, 2 }
  0xb2   : > { %v4474_v27 = vld [vmem:[%s5289_s13 + $0x38] sm:$0xff]   ;;  %4413 = vmatprep.subr.bf16.mxu1 %v4473_v26  ;;  %4065 = vmatprep.subr.bf16.mxu0 %v4473_v26  ;;  %v4476_v29 = vld [vmem:[%s5289_s13 + $0x30] sm:$0xff]   ;;  %v4478_v31 = vld [vmem:[%s5289_s13 + $0x28] sm:$0xff]   ;;  %s5866_s15 = scalar_lea.vmem [#allocation4], %s4431_s9  ;;  %s4007_s23 = sshll.u32 (%p4829_p6), %s4758_s17, 2 }
  0xb3   : > { %4421 = vmatpush3.bf16.msra.mxu1 %v4474_v27  ;;  %4066 = vmatpush3.bf16.msra.mxu0 %v4474_v27  ;;  %v4479_v32 = vld [vmem:[%s5289_s13 + $0x60] sm:$0xff]   ;;  %v4481_v34 = vld [vmem:[%s5289_s13 + $0x58] sm:$0xff]   ;;  %v4483_v36 = vld [vmem:[%s5289_s13 + $0x50] sm:$0xff]   ;;  %s1193_s12 = scalar_lea.vmem %s5964_s3, %s1190_s7  ;;  %s1200_s22 = scalar_lea.vmem %s5965_s4, %s1190_s7 }
  0xb4   : > { %4414 = vmatprep.subr.bf16.mxu1 %v4475_v28  ;;  %4067 = vmatprep.subr.bf16.mxu0 %v4475_v28  ;;  %v4480_v33 = vld [vmem:[%s5289_s13 + $0x20] sm:$0xff]   ;;  %v4482_v35 = vld [vmem:[%s5289_s13 + $0x18] sm:$0xff]   ;;  %v4484_v37 = vld [vmem:[%s5289_s13 + $0x10] sm:$0xff]   ;;  %s3518_s28 = scalar_lea.vmem (%p4829_p6), %s5963_s2, %s4007_s23 }
  0xb5   : > { %v4485_v38 = vld [vmem:[%s5289_s13 + $0x48] sm:$0xff]   ;;  %v4487_v40 = vld [vmem:[%s5289_s13 + $0x40] sm:$0xff]   ;;  %v4495_v42 = vld [vmem:[%s5289_s13 + $0xf8] sm:$0xff]  }
  0xb6   : > { %v4486_v39 = vld [vmem:[%s5289_s13 + $0x8] sm:$0xff]   ;;  %v4488_v41 = vld [vmem:[%s5289_s13] sm:$0xff]   ;;  %v4497_v45 = vld [vmem:[%s5289_s13 + $0x178] sm:$0xff]  }
  0xb7   : > { %4422 = vmatpush3.bf16.msra.mxu1 %v4476_v29  ;;  %4068 = vmatpush3.bf16.msra.mxu0 %v4476_v29  ;;  %v4496_v46 = vld [vmem:[%s5289_s13 + $0xb8] sm:$0xff]   ;;  %v4499_v48 = vld [vmem:[%s5289_s13 + $0xf0] sm:$0xff]   ;;  %v4505_v54 = vld [vmem:[%s5289_s13 + $0xe8] sm:$0xff]  }
  0xb8   : > { %4415 = vmatprep.subr.bf16.mxu1 %v4477_v30  ;;  %4069 = vmatprep.subr.bf16.mxu0 %v4477_v30  ;;  %v4498_v47 = vld [vmem:[%s5289_s13 + $0x138] sm:$0xff]   ;;  %v4501_v50 = vld [vmem:[%s5289_s13 + $0x170] sm:$0xff]   ;;  %v4508_v56 = vld [vmem:[%s5289_s13 + $0x168] sm:$0xff]  }
  0xb9   : > { %v4500_v52 = vld [vmem:[%s5289_s13 + $0xb0] sm:$0xff]   ;;  %v4507_v57 = vld [vmem:[%s5289_s13 + $0xa8] sm:$0xff]   ;;  %v4513_v60 = vld [vmem:[%s5289_s13 + $0xe0] sm:$0xff]  }
  0xba   : > { %v4502_v53 = vld [vmem:[%s5289_s13 + $0x130] sm:$0xff]   ;;  %v4511_v58 = vld [vmem:[%s5289_s13 + $0x128] sm:$0xff]   ;;  %v4515_v61 = vld [vmem:[%s5289_s13 + $0x160] sm:$0xff]  }
  0xbb   : > { %4423 = vmatpush3.bf16.msra.mxu1 %v4478_v31  ;;  %4070 = vmatpush3.bf16.msra.mxu0 %v4478_v31  ;;  %v4514_v63 = vld [vmem:[%s5289_s13 + $0xa0] sm:$0xff]   ;;  %v4519_v2 = vld [vmem:[%s5289_s13 + $0xd8] sm:$0xff]   ;;  %v4527_v8 = vld [vmem:[%s5289_s13 + $0xd0] sm:$0xff]  }
  0xbc   : > { %4416 = vmatprep.subr.bf16.mxu1 %v4479_v32  ;;  %4071 = vmatprep.subr.bf16.mxu0 %v4479_v32  ;;  %v4523_v0 = vld [vmem:[%s5961_s0 + $0x2a4] ss:$56 sps:$4 sm:$0xff]   ;;  %v4520_v3 = vld [vmem:[%s5961_s0 + $0xe0] ss:$56 sps:$4 sm:$0xff]   ;;  %v4529_v9 = vld [vmem:[%s5289_s13 + $0x150] sm:$0xff]  }
  0xbd   : > { %v4516_v1 = vld [vmem:[%s5289_s13 + $0x120] sm:$0xff]   ;;  %v4522_v4 = vld [vmem:[%s5289_s13 + $0x158] sm:$0xff]   ;;  %v4528_v10 = vld [vmem:[%s5289_s13 + $0x90] sm:$0xff]  }
  0xbe   : > { %v4521_v5 = vld [vmem:[%s5289_s13 + $0x98] sm:$0xff]   ;;  %v4531_v11 = vld [vmem:[%s5961_s0 + $0x154] ss:$56 sps:$4 sm:$0xff]   ;;  %v4534_v15 = vld [vmem:[%s5961_s0 + $0x150] ss:$56 sps:$4 sm:$0xff]  }
  0xbf   : > { %4424 = vmatpush3.bf16.msra.mxu1 %v4480_v33  ;;  %4072 = vmatpush3.bf16.msra.mxu0 %v4480_v33  ;;  %v4525_v6 = vld [vmem:[%s5289_s13 + $0x118] sm:$0xff]   ;;  %v4530_v12 = vld [vmem:[%s5289_s13 + $0x110] sm:$0xff]   ;;  %v4533_v13 = vld [vmem:[%s5289_s13 + $0xc8] sm:$0xff]  }
  0xc0   : > { %4417 = vmatprep.subr.bf16.mxu1 %v4481_v34  ;;  %4073 = vmatprep.subr.bf16.mxu0 %v4481_v34  ;;  %v4526_v7 = vld [vmem:[%s5961_s0 + $0x2a0] ss:$56 sps:$4 sm:$0xff]   ;;  %v4536_v14 = vld [vmem:[%s5289_s13 + $0x148] sm:$0xff]   ;;  %v4551_v29 = vld [vmem:[%s5961_s0 + $0x7c] ss:$56 sps:$4 sm:$0xff]  }
  0xc1   : > { %v4535_v16 = vld [vmem:[%s5289_s13 + $0x88] sm:$0xff]   ;;  %v4538_v19 = vld [vmem:[%s5289_s13 + $0xc0] sm:$0xff]   ;;  %v4548_v24 = vld [vmem:[%s5289_s13 + $0x1f8] sm:$0xff]  }
  0xc2   : > { %v4544_v17 = vld [vmem:[%s5961_s0 + $0xc] ss:$56 sps:$4 sm:$0xff]   ;;  %v4542_v25 = vld [vmem:[%s5961_s0 + $0x8] ss:$56 sps:$4 sm:$0xff]   ;;  %v4550_v27 = vld [vmem:[%s5289_s13 + $0x278] sm:$0xff]  }
  0xc3   : > { %4425 = vmatpush3.bf16.msra.mxu1 %v4482_v35  ;;  %4074 = vmatpush3.bf16.msra.mxu0 %v4482_v35  ;;  %v4537_v18 = vld [vmem:[%s5289_s13 + $0x108] sm:$0xff]   ;;  %v4540_v20 = vld [vmem:[%s5289_s13 + $0x140] sm:$0xff]   ;;  %v4549_v28 = vld [vmem:[%s5289_s13 + $0x1b8] sm:$0xff]  }
  0xc4   : > { %4418 = vmatprep.subr.bf16.mxu1 %v4483_v36  ;;  %4075 = vmatprep.subr.bf16.mxu0 %v4483_v36  ;;  %v4539_v21 = vld [vmem:[%s5289_s13 + $0x80] sm:$0xff]   ;;  %v4547_v22 = vld [vmem:[%s5961_s0 + $0x14] ss:$56 sps:$4 sm:$0xff]   ;;  %v4545_v26 = vld [vmem:[%s5961_s0 + $0x10] ss:$56 sps:$4 sm:$0xff]  }
  0xc5   : > { %v4541_v23 = vld [vmem:[%s5289_s13 + $0x100] sm:$0xff]   ;;  %v4553_v30 = vld [vmem:[%s5289_s13 + $0x1f0] sm:$0xff]   ;;  %v4554_v31 = vld [vmem:[%s5289_s13 + $0x238] sm:$0xff]  }
  0xc6   : > { %v4556_v32 = vld [vmem:[%s5961_s0 + $0x84] ss:$56 sps:$4 sm:$0xff]   ;;  %v4560_v33 = vld [vmem:[%s5289_s13 + $0x270] sm:$0xff]   ;;  %v4561_v35 = vld [vmem:[%s5289_s13 + $0x1e8] sm:$0xff]  }
  0xc7   : > { %4426 = vmatpush3.bf16.msra.mxu1 %v4484_v37  ;;  %4076 = vmatpush3.bf16.msra.mxu0 %v4484_v37  ;;  %v4558_v34 = vld [vmem:[%s5289_s13 + $0x1b0] sm:$0xff]  }
  0xc8   : > { %4419 = vmatprep.subr.bf16.mxu1 %v4485_v38  ;;  %4077 = vmatprep.subr.bf16.mxu0 %v4485_v38  ;;  %v4555_v36 = vld [vmem:[%s5961_s0 + $0x78] ss:$56 sps:$4 sm:$0xff]  }
  0xc9   : > { %v4562_v37 = vld [vmem:[%s5289_s13 + $0x230] sm:$0xff]   ;;  %v4559_v38 = vld [vmem:[%s5961_s0 + $0x80] ss:$56 sps:$4 sm:$0xff]  }
  0xcb   : > { %4427 = vmatpush3.bf16.msra.mxu1 %v4486_v39  ;;  %4078 = vmatpush3.bf16.msra.mxu0 %v4486_v39  ;;  %v4563_v39 = vld [vmem:[%s5961_s0 + $0xec] ss:$56 sps:$4 sm:$0xff]  }
  0xcc   : > { %4420 = vmatprep.subr.bf16.mxu1 %v4487_v40  ;;  %4079 = vmatprep.subr.bf16.mxu0 %v4487_v40  ;;  %v4565_v40 = vld [vmem:[%s5289_s13 + $0x1a8] sm:$0xff]  }
  0xcf   : > { %4428 = vmatpush3.bf16.msra.mxu1 %v4488_v41  ;;  %4080 = vmatpush3.bf16.msra.mxu0 %v4488_v41  ;;  %v4567_v41 = vld [vmem:[%s5961_s0 + $0xf4] ss:$56 sps:$4 sm:$0xff]  }
  0xd0   : > { %4123 = vmatprep.subr.bf16.mxu1 %v4495_v42  ;;  %4181 = vmatprep.subr.bf16.mxu0 %v4497_v45  ;;  %v4570_v42 = vld [vmem:[%s5289_s13 + $0x268] sm:$0xff]   ;;  %v4573_v45 = vld [vmem:[%s5289_s13 + $0x1a0] sm:$0xff]  }
  0xd2   : > { %2766 = vmatmul.mubr.bf16.vlgmr.msra.gmra.mxu1 %v4489_v43  ;;  %2734 = vmatmul.mubr.bf16.vlgmr.msra.gmra.mxu0 %v4492_v44  ;;  %v4571_v43 = vld [vmem:[%s5289_s13 + $0x1e0] sm:$0xff]   ;;  %v4572_v44 = vld [vmem:[%s5289_s13 + $0x228] sm:$0xff]  }
  0xd3   : > { %4124 = vmatpush3.bf16.msra.mxu1 %v4496_v46  ;;  %4182 = vmatpush3.bf16.msra.mxu0 %v4498_v47  ;;  %v4566_v46 = vld [vmem:[%s5961_s0 + $0xe8] ss:$56 sps:$4 sm:$0xff]  }
  0xd4   : > { %4125 = vmatprep.subr.bf16.mxu1 %v4499_v48  ;;  %4183 = vmatprep.subr.bf16.mxu0 %v4501_v50  ;;  %v4569_v47 = vld [vmem:[%s5961_s0 + $0xf0] ss:$56 sps:$4 sm:$0xff]   ;;  %v4574_v48 = vld [vmem:[%s5961_s0 + $0x15c] ss:$56 sps:$4 sm:$0xff]   ;;  %v4580_v50 = vld [vmem:[%s5289_s13 + $0x260] sm:$0xff]  }
  0xd5   : > { %2741 = vmatprep.mubr.bf16.mxu0 %v4503_v49  ;;  %2773 = vmatprep.mubr.bf16.mxu1 %v4509_v51  ;;  %v4577_v49 = vld [vmem:[%s5961_s0 + $0x164] ss:$56 sps:$4 sm:$0xff]  }
  0xd6   : > { %v4581_v51 = vld [vmem:[%s5289_s13 + $0x1d8] sm:$0xff]  }
  0xd7   : > { %4126 = vmatpush3.bf16.msra.mxu1 %v4500_v52  ;;  %4184 = vmatpush3.bf16.msra.mxu0 %v4502_v53  ;;  %v4582_v52 = vld [vmem:[%s5289_s13 + $0x220] sm:$0xff]   ;;  %v4583_v53 = vld [vmem:[%s5289_s13 + $0x198] sm:$0xff]  }
  0xd8   : > { %4127 = vmatprep.subr.bf16.mxu1 %v4505_v54  ;;  %4185 = vmatprep.subr.bf16.mxu0 %v4508_v56  ;;  %v4576_v54 = vld [vmem:[%s5961_s0 + $0x158] ss:$56 sps:$4 sm:$0xff]   ;;  %v4584_v56 = vld [vmem:[%s5961_s0 + $0x1cc] ss:$56 sps:$4 sm:$0xff]  }
  0xda   : > { %2742 = vmatmul.mubr.bf16.gmra.mxu0 %v4506_v55  ;;  %2774 = vmatmul.mubr.bf16.gmra.mxu1 %v4512_v59  ;;  %v4579_v55 = vld [vmem:[%s5961_s0 + $0x160] ss:$56 sps:$4 sm:$0xff]   ;;  %v4591_v59 = vld [vmem:[%s5289_s13 + $0x1d0] sm:$0xff]  }
  0xdb   : > { %4128 = vmatpush3.bf16.msra.mxu1 %v4507_v57  ;;  %4186 = vmatpush3.bf16.msra.mxu0 %v4511_v58  ;;  %v4587_v57 = vld [vmem:[%s5961_s0 + $0x1d4] ss:$56 sps:$4 sm:$0xff]   ;;  %v4590_v58 = vld [vmem:[%s5289_s13 + $0x258] sm:$0xff]  }
  0xdc   : > { %4129 = vmatprep.subr.bf16.mxu1 %v4513_v60  ;;  %4187 = vmatprep.subr.bf16.mxu0 %v4515_v61  ;;  %v4592_v60 = vld [vmem:[%s5289_s13 + $0x218] sm:$0xff]   ;;  %v4593_v61 = vld [vmem:[%s5289_s13 + $0x190] sm:$0xff]  }
  0xdd   : > { %2749 = vmatprep.mubr.bf16.mxu0 %v4517_v62  ;;  %2781 = vmatprep.mubr.bf16.mxu1 %v4523_v0  ;;  %v4586_v62 = vld [vmem:[%s5961_s0 + $0x1c8] ss:$56 sps:$4 sm:$0xff]   ;;  %v4600_v0 = vld [vmem:[%s5289_s13 + $0x250] sm:$0xff]  }
  0xdf   : > { %4130 = vmatpush3.bf16.msra.mxu1 %v4514_v63  ;;  %4188 = vmatpush3.bf16.msra.mxu0 %v4516_v1  ;;  %v4589_v63 = vld [vmem:[%s5961_s0 + $0x1d0] ss:$56 sps:$4 sm:$0xff]   ;;  %v4594_v1 = vld [vmem:[%s5961_s0 + $0x23c] ss:$56 sps:$4 sm:$0xff]  }
  0xe0   : > { %4131 = vmatprep.subr.bf16.mxu1 %v4519_v2  ;;  %4189 = vmatprep.subr.bf16.mxu0 %v4522_v4  ;;  %v4597_v2 = vld [vmem:[%s5961_s0 + $0x244] ss:$56 sps:$4 sm:$0xff]   ;;  %v4602_v4 = vld [vmem:[%s5289_s13 + $0x210] sm:$0xff]  }
  0xe2   : > { %2750 = vmatmul.mubr.bf16.gmra.mxu0 %v4520_v3  ;;  %2782 = vmatmul.mubr.bf16.gmra.mxu1 %v4526_v7  ;;  %v4601_v3 = vld [vmem:[%s5289_s13 + $0x1c8] sm:$0xff]   ;;  %v4611_v7 = vld [vmem:[%s5289_s13 + $0x1c0] sm:$0xff]  }
  0xe3   : > { %4132 = vmatpush3.bf16.msra.mxu1 %v4521_v5  ;;  %4190 = vmatpush3.bf16.msra.mxu0 %v4525_v6  ;;  %v4603_v5 = vld [vmem:[%s5289_s13 + $0x188] sm:$0xff]  }
  0xe4   : > { %4133 = vmatprep.subr.bf16.mxu1 %v4527_v8  ;;  %4191 = vmatprep.subr.bf16.mxu0 %v4529_v9  ;;  %v4609_v6 = vld [vmem:[%s5289_s13 + $0x248] sm:$0xff]   ;;  %v4596_v8 = vld [vmem:[%s5961_s0 + $0x238] ss:$56 sps:$4 sm:$0xff]  }
  0xe5   : > { %2757 = vmatprep.mubr.bf16.mxu0 %v4531_v11  ;;  %2822 = vmatprep.mubr.bf16.mxu1 %v4544_v17  ;;  %v4599_v9 = vld [vmem:[%s5961_s0 + $0x240] ss:$56 sps:$4 sm:$0xff]   ;;  %v4604_v11 = vld [vmem:[%s5961_s0 + $0x2ac] ss:$56 sps:$4 sm:$0xff]  }
  0xe6   : > { %v4606_v17 = vld [vmem:[%s5961_s0 + $0x2a8] ss:$56 sps:$4 sm:$0xff]  }
  0xe7   : > { %4134 = vmatpush3.bf16.msra.mxu1 %v4528_v10  ;;  %4192 = vmatpush3.bf16.msra.mxu0 %v4530_v12  ;;  %v4612_v10 = vld [vmem:[%s5289_s13 + $0x208] sm:$0xff]   ;;  %v4613_v12 = vld [vmem:[%s5289_s13 + $0x180] sm:$0xff]  }
  0xe8   : > { %4135 = vmatprep.subr.bf16.mxu1 %v4533_v13  ;;  %4193 = vmatprep.subr.bf16.mxu0 %v4536_v14  ;;  %v4614_v13 = vld [vmem:[%s5289_s13 + $0x240] sm:$0xff]   ;;  %v4607_v14 = vld [vmem:[%s5961_s0 + $0x2b4] ss:$56 sps:$4 sm:$0xff]  }
  0xea   : > { %2758 = vmatmul.mubr.bf16.gmra.mxu0 %v4534_v15  ;;  %v4615_v15 = vld [vmem:[%s5289_s13 + $0x200] sm:$0xff]  }
  0xeb   : > { %4136 = vmatpush3.bf16.msra.mxu1 %v4535_v16  ;;  %4194 = vmatpush3.bf16.msra.mxu0 %v4537_v18  ;;  %v4622_v16 = vld [vmem:[%s5289_s13 + $0x2f8] sm:$0xff]   ;;  %v4768_v18 = vmov 0  }
  0xec   : > { %4137 = vmatprep.subr.bf16.mxu1 %v4538_v19  ;;  %4195 = vmatprep.subr.bf16.mxu0 %v4540_v20  ;;  %v4610_v19 = vld [vmem:[%s5961_s0 + $0x2b0] ss:$56 sps:$4 sm:$0xff]   ;;  %v4618_v20 = vld [vmem:[%s5961_s0 + $0x1c] ss:$56 sps:$4 sm:$0xff]  }
  0xed   : > { %2911 = vmatprep.mubr.bf16.mxu0 %v4547_v22  ;;  %v4616_v22 = vld [vmem:[%s5961_s0 + $0x18] ss:$56 sps:$4 sm:$0xff]  }
  0xef   : > { %4138 = vmatpush3.bf16.msra.mxu1 %v4539_v21  ;;  %4196 = vmatpush3.bf16.msra.mxu0 %v4541_v23  ;;  %v4621_v21 = vld [vmem:[%s5961_s0 + $0x24] ss:$56 sps:$4 sm:$0xff]   ;;  %v4619_v23 = vld [vmem:[%s5961_s0 + $0x20] ss:$56 sps:$4 sm:$0xff]  }
  0xf0   : > { %4239 = vmatprep.subr.bf16.mxu1 %v4548_v24  ;;  %4297 = vmatprep.subr.bf16.mxu0 %v4550_v27  ;;  %v4623_v24 = vld [vmem:[%s5289_s13 + $0x2b8] sm:$0xff]  }
  0xf1   : > { %v4627_v27 = vld [vmem:[%s5289_s13 + $0x338] sm:$0xff]  }
  0xf2   : > { %2823 = vmatmul.mubr.bf16.vlgmr.msra.gmra.mxu1 %v4542_v25  ;;  %2912 = vmatmul.mubr.bf16.vlgmr.msra.gmra.mxu0 %v4545_v26  ;;  %v4624_v25 = vld [vmem:[%s5961_s0 + $0x8c] ss:$56 sps:$4 sm:$0xff]   ;;  %v4626_v26 = vld [vmem:[%s5289_s13 + $0x2f0] sm:$0xff]  }
  0xf3   : > { %4240 = vmatpush3.bf16.msra.mxu1 %v4549_v28  ;;  %2830 = vmatprep.mubr.bf16.mxu1 %v4551_v29  ;;  %v4629_v28 = vld [vmem:[%s5961_s0 + $0x94] ss:$56 sps:$4 sm:$0xff]  }
  0xf4   : > { %4241 = vmatprep.subr.bf16.mxu1 %v4553_v30  ;;  %4298 = vmatpush3.bf16.msra.mxu0 %v4554_v31  ;;  %v4631_v29 = vld [vmem:[%s5289_s13 + $0x2b0] sm:$0xff]   ;;  %v4628_v31 = vld [vmem:[%s5961_s0 + $0x88] ss:$56 sps:$4 sm:$0xff]  }
  0xf5   : > { %2919 = vmatprep.mubr.bf16.mxu0 %v4556_v32  ;;  %4299 = vmatprep.subr.bf16.mxu0 %v4560_v33  ;;  %v4633_v30 = vld [vmem:[%s5289_s13 + $0x330] sm:$0xff]   ;;  %v4634_v32 = vld [vmem:[%s5289_s13 + $0x2e8] sm:$0xff]  }
  0xf6   : > { %v4632_v33 = vld [vmem:[%s5961_s0 + $0x90] ss:$56 sps:$4 sm:$0xff]  }
  0xf7   : > { %4242 = vmatpush3.bf16.msra.mxu1 %v4558_v34  ;;  %v4635_v34 = vld [vmem:[%s5961_s0 + $0xfc] ss:$56 sps:$4 sm:$0xff]  }
  0xf8   : > { %4243 = vmatprep.subr.bf16.mxu1 %v4561_v35  ;;  %4300 = vmatpush3.bf16.msra.mxu0 %v4562_v37  ;;  %v4637_v35 = vld [vmem:[%s5289_s13 + $0x2a8] sm:$0xff]  }
  0xf9   : > { %4301 = vmatprep.subr.bf16.mxu0 %v4570_v42  ;;  %v4642_v37 = vld [vmem:[%s5289_s13 + $0x328] sm:$0xff]   ;;  %v4641_v42 = vld [vmem:[%s5961_s0 + $0x100] ss:$56 sps:$4 sm:$0xff]  }
  0xfa   : > { %2831 = vmatmul.mubr.bf16.gmra.mxu1 %v4555_v36  ;;  %2920 = vmatmul.mubr.bf16.gmra.mxu0 %v4559_v38  ;;  %v4639_v36 = vld [vmem:[%s5961_s0 + $0x104] ss:$56 sps:$4 sm:$0xff]  }
  0xfb   : > { %2838 = vmatprep.mubr.bf16.mxu1 %v4563_v39  ;;  %4244 = vmatpush3.bf16.msra.mxu1 %v4565_v40  ;;  %v4643_v38 = vld [vmem:[%s5289_s13 + $0x2e0] sm:$0xff]  }
  0xfc   : > { %2927 = vmatprep.mubr.bf16.mxu0 %v4567_v41  ;;  %4245 = vmatprep.subr.bf16.mxu1 %v4571_v43  ;;  %v4644_v39 = vld [vmem:[%s5289_s13 + $0x320] sm:$0xff]   ;;  %v4638_v41 = vld [vmem:[%s5961_s0 + $0xf8] ss:$56 sps:$4 sm:$0xff]  }
  0xfd   : > { %4302 = vmatpush3.bf16.msra.mxu0 %v4572_v44  ;;  %v4645_v40 = vld [vmem:[%s5289_s13 + $0x2a0] sm:$0xff]   ;;  %v4653_v43 = vld [vmem:[%s5289_s13 + $0x2d8] sm:$0xff]  }
  0xfe   : > { %4303 = vmatprep.subr.bf16.mxu0 %v4580_v50  ;;  %v4646_v44 = vld [vmem:[%s5961_s0 + $0x16c] ss:$56 sps:$4 sm:$0xff]   ;;  %v4648_v50 = vld [vmem:[%s5961_s0 + $0x168] ss:$56 sps:$4 sm:$0xff]  }
  0xff   : > { %4246 = vmatpush3.bf16.msra.mxu1 %v4573_v45  ;;  %v4649_v45 = vld [vmem:[%s5961_s0 + $0x174] ss:$56 sps:$4 sm:$0xff]  }
 0x100   : > { %4247 = vmatprep.subr.bf16.mxu1 %v4581_v51  ;;  %v4651_v51 = vld [vmem:[%s5961_s0 + $0x170] ss:$56 sps:$4 sm:$0xff]  }
 0x101   : > { %4304 = vmatpush3.bf16.msra.mxu0 %v4582_v52  ;;  %v4664_v52 = vld [vmem:[%s5289_s13 + $0x290] sm:$0xff]  }
 0x102   : > { %2839 = vmatmul.mubr.bf16.gmra.mxu1 %v4566_v46  ;;  %2928 = vmatmul.mubr.bf16.gmra.mxu0 %v4569_v47  ;;  %v4652_v46 = vld [vmem:[%s5289_s13 + $0x318] sm:$0xff]  }
 0x103   : > { %2846 = vmatprep.mubr.bf16.mxu1 %v4574_v48  ;;  %2935 = vmatprep.mubr.bf16.mxu0 %v4577_v49  ;;  %v4654_v47 = vld [vmem:[%s5289_s13 + $0x298] sm:$0xff]   ;;  %v4663_v48 = vld [vmem:[%s5289_s13 + $0x2d0] sm:$0xff]  }
 0x104   : > { %4248 = vmatpush3.bf16.msra.mxu1 %v4583_v53  ;;  %4305 = vmatprep.subr.bf16.mxu0 %v4590_v58  ;;  %v4655_v49 = vld [vmem:[%s5289_s13 + $0x310] sm:$0xff]   ;;  %v4665_v58 = vld [vmem:[%s5289_s13 + $0x300] sm:$0xff]  }
 0x105   : > { %4249 = vmatprep.subr.bf16.mxu1 %v4591_v59  ;;  %4306 = vmatpush3.bf16.msra.mxu0 %v4592_v60  ;;  %v4656_v53 = vld [vmem:[%s5961_s0 + $0x1dc] ss:$56 sps:$4 sm:$0xff]   ;;  %v4682_v59 = vld [vmem:[%s5289_s13 + $0x2c0] sm:$0xff]  }
 0x106   : > { %4307 = vmatprep.subr.bf16.mxu0 %v4600_v0  ;;  %v4683_v60 = vld [vmem:[%s5289_s13 + $0x280] sm:$0xff]   ;;  %v4669_v0 = vld [vmem:[%s5961_s0 + $0x254] ss:$56 sps:$4 sm:$0xff]  }
 0x108   : > { %4250 = vmatpush3.bf16.msra.mxu1 %v4593_v61  ;;  %v4658_v61 = vld [vmem:[%s5961_s0 + $0x1d8] ss:$56 sps:$4 sm:$0xff]  }
 0x109   : > { %4251 = vmatprep.subr.bf16.mxu1 %v4601_v3  ;;  %4308 = vmatpush3.bf16.msra.mxu0 %v4602_v4  ;;  %v4668_v3 = vld [vmem:[%s5961_s0 + $0x248] ss:$56 sps:$4 sm:$0xff]  }
 0x10a   : > { %2847 = vmatmul.mubr.bf16.gmra.mxu1 %v4576_v54  ;;  %2936 = vmatmul.mubr.bf16.gmra.mxu0 %v4579_v55  ;;  %v4672_v54 = vld [vmem:[%s5289_s13 + $0x2c8] sm:$0xff]   ;;  %v4659_v55 = vld [vmem:[%s5961_s0 + $0x1e4] ss:$56 sps:$4 sm:$0xff]  }
 0x10b   : > { %2854 = vmatprep.mubr.bf16.mxu1 %v4584_v56  ;;  %2943 = vmatprep.mubr.bf16.mxu0 %v4587_v57  ;;  %v4662_v56 = vld [vmem:[%s5289_s13 + $0x308] sm:$0xff]  }
 0x10c   : > { %4252 = vmatpush3.bf16.msra.mxu1 %v4603_v5  ;;  %4309 = vmatprep.subr.bf16.mxu0 %v4609_v6  ;;  %v4674_v57 = vld [vmem:[%s5289_s13 + $0x288] sm:$0xff]   ;;  %v4676_v5 = vld [vmem:[%s5961_s0 + $0x2bc] ss:$56 sps:$4 sm:$0xff]  }
 0x10d   : > { %4253 = vmatprep.subr.bf16.mxu1 %v4611_v7  ;;  %4310 = vmatpush3.bf16.msra.mxu0 %v4612_v10  ;;  %v4671_v4 = vld [vmem:[%s5961_s0 + $0x250] ss:$56 sps:$4 sm:$0xff]   ;;  %v4679_v6 = vld [vmem:[%s5961_s0 + $0x2c4] ss:$56 sps:$4 sm:$0xff]   ;;  %v4681_v10 = vld [vmem:[%s5961_s0 + $0x2c0] ss:$56 sps:$4 sm:$0xff]  }
 0x10e   : > { %4311 = vmatprep.subr.bf16.mxu0 %v4614_v13  ;;  %v4684_v7 = vld [vmem:[%s5289_s13 + $0x348] sm:$0xff]  }
 0x10f   : > { %v4686_v13 = vld [vmem:[%s5961_s0 + $0x28] ss:$56 sps:$4 sm:$0xff]  }
 0x110   : > { %4254 = vmatpush3.bf16.msra.mxu1 %v4613_v12  ;;  %v4691_v12 = vld [vmem:[%s5961_s0 + $0x34] ss:$56 sps:$4 sm:$0xff]  }
 0x111   : > { %4312 = vmatpush3.bf16.msra.mxu0 %v4615_v15  ;;  %4355 = vmatprep.subr.bf16.mxu1 %v4622_v16  ;;  %v4692_v15 = vld [vmem:[%s5961_s0 + $0x9c] ss:$56 sps:$4 sm:$0xff]  }
 0x112   : > { %2855 = vmatmul.mubr.bf16.gmra.mxu1 %v4586_v62  ;;  %2944 = vmatmul.mubr.bf16.gmra.mxu0 %v4589_v63  ;;  %v4661_v62 = vld [vmem:[%s5961_s0 + $0x1e0] ss:$56 sps:$4 sm:$0xff]   ;;  %v4666_v63 = vld [vmem:[%s5961_s0 + $0x24c] ss:$56 sps:$4 sm:$0xff]  }
 0x113   : > { %2862 = vmatprep.mubr.bf16.mxu1 %v4594_v1  ;;  %2951 = vmatprep.mubr.bf16.mxu0 %v4597_v2  ;;  %v4673_v1 = vld [vmem:[%s5289_s13 + $0x358] sm:$0xff]   ;;  %v4675_v2 = vld [vmem:[%s5289_s13 + $0x350] sm:$0xff]  }
 0x114   : > { %3235 = vmatprep.subr.bf16.mxu0 %v4768_v18  ;;  %v4695_v16 = vld [vmem:[%s5961_s0 + $0xa4] ss:$56 sps:$4 sm:$0xff]  }
 0x11a   : > { %2863 = vmatmul.mubr.bf16.gmra.mxu1 %v4596_v8  ;;  %2952 = vmatmul.mubr.bf16.gmra.mxu0 %v4599_v9  ;;  %v4685_v8 = vld [vmem:[%s5289_s13 + $0x340] sm:$0xff]   ;;  %v4678_v9 = vld [vmem:[%s5961_s0 + $0x2b8] ss:$56 sps:$4 sm:$0xff]  }
 0x11b   : > { %2870 = vmatprep.mubr.bf16.mxu1 %v4604_v11  ;;  %2959 = vmatprep.mubr.bf16.mxu0 %v4607_v14  ;;  %v4688_v11 = vld [vmem:[%s5961_s0 + $0x2c] ss:$56 sps:$4 sm:$0xff]   ;;  %v4689_v14 = vld [vmem:[%s5961_s0 + $0x30] ss:$56 sps:$4 sm:$0xff]  }
 0x122   : > { %2871 = vmatmul.mubr.bf16.gmra.mxu1 %v4606_v17  ;;  %2960 = vmatmul.mubr.bf16.gmra.mxu0 %v4610_v19  ;;  %v4694_v17 = vld [vmem:[%s5961_s0 + $0x98] ss:$56 sps:$4 sm:$0xff]   ;;  %v4698_v19 = vld [vmem:[%s5961_s0 + $0x10c] ss:$56 sps:$4 sm:$0xff]  }
 0x123   : > { %3000 = vmatprep.mubr.bf16.mxu1 %v4618_v20  ;;  %3089 = vmatprep.mubr.bf16.mxu0 %v4621_v21  ;;  %v4701_v20 = vld [vmem:[%s5961_s0 + $0x114] ss:$56 sps:$4 sm:$0xff]   ;;  %v4700_v21 = vld [vmem:[%s5961_s0 + $0x108] ss:$56 sps:$4 sm:$0xff]  }
 0x12a   : > { %3001 = vmatmul.mubr.bf16.vlgmr.msra.gmra.mxu1 %v4616_v22  ;;  %3090 = vmatmul.mubr.bf16.vlgmr.msra.gmra.mxu0 %v4619_v23  ;;  %v4703_v22 = vld [vmem:[%s5961_s0 + $0x110] ss:$56 sps:$4 sm:$0xff]   ;;  %v4704_v23 = vld [vmem:[%s5961_s0 + $0x17c] ss:$56 sps:$4 sm:$0xff]  }
 0x12b   : > { %4356 = vmatpush3.bf16.msra.mxu1 %v4623_v24  ;;  %3008 = vmatprep.mubr.bf16.mxu1 %v4624_v25  ;;  %v4707_v24 = vld [vmem:[%s5961_s0 + $0x184] ss:$56 sps:$4 sm:$0xff]   ;;  %v4706_v25 = vld [vmem:[%s5961_s0 + $0x178] ss:$56 sps:$4 sm:$0xff]  }
 0x12c   : > { %4357 = vmatprep.subr.bf16.mxu1 %v4626_v26  ;;  %3236 = vmatpush1.bf16.msra.mxu0 %v4627_v27  ;;  %v4709_v26 = vld [vmem:[%s5961_s0 + $0x180] ss:$56 sps:$4 sm:$0xff]   ;;  %v4710_v27 = vld [vmem:[%s5961_s0 + $0x1ec] ss:$56 sps:$4 sm:$0xff]  }
 0x12d   : > { %3097 = vmatprep.mubr.bf16.mxu0 %v4629_v28  ;;  %3237 = vmatprep.subr.bf16.mxu0 %v4768_v18  ;;  %v4713_v28 = vld [vmem:[%s5961_s0 + $0x1f4] ss:$56 sps:$4 sm:$0xff]  }
 0x12f   : > { %4358 = vmatpush3.bf16.msra.mxu1 %v4631_v29  ;;  %v4712_v29 = vld [vmem:[%s5961_s0 + $0x1e8] ss:$56 sps:$4 sm:$0xff]  }
 0x130   : > { %3238 = vmatpush1.bf16.msra.mxu0 %v4633_v30  ;;  %4359 = vmatprep.subr.bf16.mxu1 %v4634_v32  ;;  %v4715_v30 = vld [vmem:[%s5961_s0 + $0x1f0] ss:$56 sps:$4 sm:$0xff]   ;;  %v4719_v32 = vld [vmem:[%s5961_s0 + $0x264] ss:$56 sps:$4 sm:$0xff]  }
 0x131   : > { %3239 = vmatprep.subr.bf16.mxu0 %v4768_v18 }
 0x132   : > { %3009 = vmatmul.mubr.bf16.gmra.mxu1 %v4628_v31  ;;  %3098 = vmatmul.mubr.bf16.gmra.mxu0 %v4632_v33  ;;  %v4716_v31 = vld [vmem:[%s5961_s0 + $0x25c] ss:$56 sps:$4 sm:$0xff]   ;;  %v4718_v33 = vld [vmem:[%s5961_s0 + $0x258] ss:$56 sps:$4 sm:$0xff]  }
 0x133   : > { %3016 = vmatprep.mubr.bf16.mxu1 %v4635_v34  ;;  %4360 = vmatpush3.bf16.msra.mxu1 %v4637_v35  ;;  %v4721_v34 = vld [vmem:[%s5961_s0 + $0x260] ss:$56 sps:$4 sm:$0xff]   ;;  %v4722_v35 = vld [vmem:[%s5961_s0 + $0x2cc] ss:$56 sps:$4 sm:$0xff]  }
 0x134   : > { %3105 = vmatprep.mubr.bf16.mxu0 %v4639_v36  ;;  %3240 = vmatpush1.bf16.msra.mxu0 %v4642_v37  ;;  %v4725_v36 = vld [vmem:[%s5961_s0 + $0x2d4] ss:$56 sps:$4 sm:$0xff]   ;;  %v4724_v37 = vld [vmem:[%s5961_s0 + $0x2c8] ss:$56 sps:$4 sm:$0xff]  }
 0x135   : > { %3241 = vmatprep.subr.bf16.mxu0 %v4768_v18  ;;  %4361 = vmatprep.subr.bf16.mxu1 %v4643_v38  ;;  %v4727_v38 = vld [vmem:[%s5961_s0 + $0x2d0] ss:$56 sps:$4 sm:$0xff]  }
 0x137   : > { %4362 = vmatpush3.bf16.msra.mxu1 %v4645_v40 }
 0x138   : > { %3242 = vmatpush1.bf16.msra.mxu0 %v4644_v39  ;;  %4363 = vmatprep.subr.bf16.mxu1 %v4653_v43 }
 0x139   : > { %3243 = vmatprep.subr.bf16.mxu0 %v4768_v18 }
 0x13a   : > { %3017 = vmatmul.mubr.bf16.gmra.mxu1 %v4638_v41  ;;  %3106 = vmatmul.mubr.bf16.gmra.mxu0 %v4641_v42 }
 0x13b   : > { %3024 = vmatprep.mubr.bf16.mxu1 %v4646_v44  ;;  %3113 = vmatprep.mubr.bf16.mxu0 %v4649_v45 }
 0x13c   : > { %3244 = vmatpush1.bf16.msra.mxu0 %v4652_v46  ;;  %4364 = vmatpush3.bf16.msra.mxu1 %v4654_v47 }
 0x13d   : > { %3245 = vmatprep.subr.bf16.mxu0 %v4768_v18  ;;  %4365 = vmatprep.subr.bf16.mxu1 %v4663_v48 }
 0x140   : > { %3246 = vmatpush1.bf16.msra.mxu0 %v4655_v49  ;;  %4366 = vmatpush3.bf16.msra.mxu1 %v4664_v52 }
 0x141   : > { %3247 = vmatprep.subr.bf16.mxu0 %v4768_v18  ;;  %4367 = vmatprep.subr.bf16.mxu1 %v4672_v54 }
 0x142   : > { %3025 = vmatmul.mubr.bf16.gmra.mxu1 %v4648_v50  ;;  %3114 = vmatmul.mubr.bf16.gmra.mxu0 %v4651_v51 }
 0x143   : > { %3032 = vmatprep.mubr.bf16.mxu1 %v4656_v53  ;;  %3121 = vmatprep.mubr.bf16.mxu0 %v4659_v55 }
 0x144   : > { %3248 = vmatpush1.bf16.msra.mxu0 %v4662_v56  ;;  %4368 = vmatpush3.bf16.msra.mxu1 %v4674_v57 }
 0x145   : > { %3249 = vmatprep.subr.bf16.mxu0 %v4768_v18  ;;  %4369 = vmatprep.subr.bf16.mxu1 %v4682_v59 }
 0x148   : > { %3250 = vmatpush1.bf16.msra.mxu0 %v4665_v58  ;;  %4370 = vmatpush3.bf16.msra.mxu1 %v4683_v60 }
 0x149   : > { %3259 = vmatprep.subr.bf16.mxu0 %v4768_v18 }
 0x14a   : > { %3033 = vmatmul.mubr.bf16.gmra.mxu1 %v4658_v61  ;;  %3122 = vmatmul.mubr.bf16.gmra.mxu0 %v4661_v62 }
 0x14b   : > { %3040 = vmatprep.mubr.bf16.mxu1 %v4666_v63  ;;  %3129 = vmatprep.mubr.bf16.mxu0 %v4669_v0 }
 0x14c   : > { %3260 = vmatpush2.bf16.msra.mxu0 %v4673_v1 }
 0x14d   : > { %3261 = vmatprep.subr.bf16.mxu0 %v4768_v18 }
 0x150   : > { %3262 = vmatpush2.bf16.msra.mxu0 %v4675_v2 }
 0x151   : > { %3263 = vmatprep.subr.bf16.mxu0 %v4768_v18 }
 0x152   : > { %3041 = vmatmul.mubr.bf16.gmra.mxu1 %v4668_v3  ;;  %3130 = vmatmul.mubr.bf16.gmra.mxu0 %v4671_v4 }
 0x153   : > { %3048 = vmatprep.mubr.bf16.mxu1 %v4676_v5  ;;  %3137 = vmatprep.mubr.bf16.mxu0 %v4679_v6 }
 0x154   : > { %3264 = vmatpush2.bf16.msra.mxu0 %v4684_v7 }
 0x155   : > { %3265 = vmatprep.subr.bf16.mxu0 %v4768_v18  ;;  %v4697_v18 = vld [vmem:[%s5961_s0 + $0xa0] ss:$56 sps:$4 sm:$0xff]  }
 0x158   : > { %3266 = vmatpush2.bf16.msra.mxu0 %v4685_v8 }
 0x15a   : > { %3049 = vmatmul.mubr.bf16.gmra.mxu1 %v4678_v9  ;;  %3138 = vmatmul.mubr.bf16.gmra.mxu0 %v4681_v10 }
 0x15b   : > { %3178 = vmatprep.mubr.bf16.mxu1 %v4688_v11  ;;  %3986 = vmatprep.mubr.msk.bf16.mxu0 %vm2679_vm0, %v4691_v12 }
 0x162   : > { %3179 = vmatmul.mubr.bf16.vlgmr.msra.gmra.mxu1 %v4686_v13  ;;  %3268 = vmatmul.mubr.bf16.vlgmr.msra.gmra.mxu0 %v4689_v14 }
 0x163   : > { %3186 = vmatprep.mubr.bf16.mxu1 %v4692_v15  ;;  %3987 = vmatprep.mubr.msk.bf16.mxu0 %vm2679_vm0, %v4695_v16 }
 0x16a   : > { %3187 = vmatmul.mubr.bf16.gmra.mxu1 %v4694_v17  ;;  %3276 = vmatmul.mubr.bf16.gmra.mxu0 %v4697_v18 }
 0x16b   : > { %3194 = vmatprep.mubr.bf16.mxu1 %v4698_v19  ;;  %3988 = vmatprep.mubr.msk.bf16.mxu0 %vm2679_vm0, %v4701_v20 }
 0x172   : > { %3195 = vmatmul.mubr.bf16.gmra.mxu1 %v4700_v21  ;;  %3284 = vmatmul.mubr.bf16.gmra.mxu0 %v4703_v22 }
 0x173   : > { %3202 = vmatprep.mubr.bf16.mxu1 %v4704_v23  ;;  %3989 = vmatprep.mubr.msk.bf16.mxu0 %vm2679_vm0, %v4707_v24 }
 0x17a   : > { %3203 = vmatmul.mubr.bf16.gmra.mxu1 %v4706_v25  ;;  %3292 = vmatmul.mubr.bf16.gmra.mxu0 %v4709_v26 }
 0x17b   : > { %3210 = vmatprep.mubr.bf16.mxu1 %v4710_v27  ;;  %3990 = vmatprep.mubr.msk.bf16.mxu0 %vm2679_vm0, %v4713_v28 }
 0x182   : > { %3211 = vmatmul.mubr.bf16.gmra.mxu1 %v4712_v29  ;;  %3300 = vmatmul.mubr.bf16.gmra.mxu0 %v4715_v30 }
 0x183   : > { %3218 = vmatprep.mubr.bf16.mxu1 %v4716_v31  ;;  %3991 = vmatprep.mubr.msk.bf16.mxu0 %vm2679_vm0, %v4719_v32 }
 0x18a   : > { %3219 = vmatmul.mubr.bf16.gmra.mxu1 %v4718_v33  ;;  %3308 = vmatmul.mubr.bf16.gmra.mxu0 %v4721_v34 }
 0x18b   : > { %3226 = vmatprep.mubr.bf16.mxu1 %v4722_v35  ;;  %3992 = vmatprep.mubr.msk.bf16.mxu0 %vm2679_vm0, %v4725_v36 }
 0x192   : > { %v4105_v39 = vpop.f32.mrf.mxu1  ;;  %3227 = vmatmul.mubr.bf16.gmra.mxu1 %v4724_v37  ;;  %v4081_v40 = vpop.f32.mrf.mxu0  ;;  %3316 = vmatmul.mubr.bf16.gmra.mxu0 %v4727_v38 }
 0x194   : > { %v4106_v41 = vpop.f32.mrf.mxu1  ;;  %v4082_v42 = vpop.f32.mrf.mxu0 }
 0x195   : > { %v5706_v43 = vadd.f32 %v4106_v41, %v4105_v39  ;;  %v4083_v44 = vadd.f32 %v4082_v42, %v4081_v40 }
 0x196   : > { %v4108_v45 = vpop.f32.mrf.mxu1  ;;  %v4084_v46 = vpop.f32.mrf.mxu0 }
 0x198   : > { %v4109_v47 = vpop.f32.mrf.mxu1  ;;  %v4085_v48 = vpop.f32.mrf.mxu0 }
 0x199   : > { %v5708_v49 = vadd.f32 %v4109_v47, %v4108_v45  ;;  %v4086_v50 = vadd.f32 %v4085_v48, %v4084_v46 }
 0x19a   : > { %v4087_v51 = vpop.f32.mrf.mxu0  ;;  %v4111_v52 = vpop.f32.mrf.mxu1 }
 0x19c   : > { %v4088_v53 = vpop.f32.mrf.mxu0  ;;  %v4112_v54 = vpop.f32.mrf.mxu1 }
 0x19d   : > { %v4089_v55 = vadd.f32 %v4088_v53, %v4087_v51  ;;  %v5710_v56 = vadd.f32 %v4112_v54, %v4111_v52 }
 0x19e   : > { %v4090_v57 = vpop.f32.mrf.mxu0  ;;  %v4114_v58 = vpop.f32.mrf.mxu1 }
 0x1a0   : > { %v4091_v59 = vpop.f32.mrf.mxu0  ;;  %v4115_v60 = vpop.f32.mrf.mxu1 }
 0x1a1   : > { %v4092_v61 = vadd.f32 %v4091_v59, %v4090_v57  ;;  %v5712_v62 = vadd.f32 %v4115_v60, %v4114_v58 }
 0x1a2   : > { %v4093_v63 = vpop.f32.mrf.mxu0  ;;  %v4117_v0 = vpop.f32.mrf.mxu1 }
 0x1a4   : > { %v4094_v1 = vpop.f32.mrf.mxu0  ;;  %v4118_v2 = vpop.f32.mrf.mxu1 }
 0x1a5   : > { %v4095_v3 = vadd.f32 %v4094_v1, %v4093_v63  ;;  %v5714_v4 = vadd.f32 %v4118_v2, %v4117_v0 }
 0x1a6   : > { %v4096_v5 = vpop.f32.mrf.mxu0  ;;  %v4120_v6 = vpop.f32.mrf.mxu1 }
 0x1a8   : > { %v4097_v7 = vpop.f32.mrf.mxu0  ;;  %v4121_v8 = vpop.f32.mrf.mxu1 }
 0x1a9   : > { %v4098_v9 = vadd.f32 %v4097_v7, %v4096_v5  ;;  %v5716_v10 = vadd.f32 %v4121_v8, %v4120_v6 }
 0x1aa   : > { %v4099_v11 = vpop.f32.mrf.mxu0 }
 0x1ac   : > { %v4100_v12 = vpop.f32.mrf.mxu0 }
 0x1ad   : > { %v4101_v13 = vadd.f32 %v4100_v12, %v4099_v11 }
 0x1ae   : > { %v4102_v14 = vpop.f32.mrf.mxu0 }
 0x1b0   : > { %v4103_v15 = vpop.f32.mrf.mxu0 }
 0x1b1   : > { %v5718_v16 = vadd.f32 %v4103_v15, %v4102_v14 }
 0x1b2   : > { %v4139_v17 = vpop.f32.mrf.mxu1  ;;  %v4197_v18 = vpop.f32.mrf.mxu0 }
 0x1b4   : > { %v4140_v19 = vpop.f32.mrf.mxu1  ;;  %v4198_v20 = vpop.f32.mrf.mxu0 }
 0x1b5   : > { %v4141_v21 = vadd.f32 %v4140_v19, %v4139_v17  ;;  %v4199_v22 = vadd.f32 %v4198_v20, %v4197_v18 }
 0x1b6   : > { %v4142_v23 = vpop.f32.mrf.mxu1  ;;  %v4200_v24 = vpop.f32.mrf.mxu0 }
 0x1b7   : > { %v2825_v25 = vadd.f32 %v4141_v21, %v4083_v44 }
 0x1b8   : > { %v4143_v26 = vpop.f32.mrf.mxu1  ;;  %v4201_v27 = vpop.f32.mrf.mxu0 }
 0x1b9   : > { %v5720_v28 = vadd.f32 %v4199_v22, %v2825_v25  ;;  %v4144_v29 = vadd.f32 %v4143_v26, %v4142_v23  ;;  %v4202_v30 = vadd.f32 %v4201_v27, %v4200_v24 }
 0x1ba   : > { %v4145_v31 = vpop.f32.mrf.mxu1  ;;  %v4203_v32 = vpop.f32.mrf.mxu0 }
 0x1bb   : > { %v2828_v33 = vadd.f32 %v4144_v29, %v4086_v50 }
 0x1bc   : > { %v4146_v34 = vpop.f32.mrf.mxu1  ;;  %v4204_v35 = vpop.f32.mrf.mxu0 }
 0x1bd   : > { %v5722_v36 = vadd.f32 %v4202_v30, %v2828_v33  ;;  %v4147_v37 = vadd.f32 %v4146_v34, %v4145_v31  ;;  %v4205_v38 = vadd.f32 %v4204_v35, %v4203_v32 }
 0x1be   : > { %v4148_v39 = vpop.f32.mrf.mxu1  ;;  %v4206_v40 = vpop.f32.mrf.mxu0 }
 0x1bf   : > { %v2833_v41 = vadd.f32 %v4147_v37, %v4089_v55 }
 0x1c0   : > { %v4149_v42 = vpop.f32.mrf.mxu1  ;;  %v4207_v44 = vpop.f32.mrf.mxu0 }
 0x1c1   : > { %v5724_v45 = vadd.f32 %v4205_v38, %v2833_v41  ;;  %v4150_v46 = vadd.f32 %v4149_v42, %v4148_v39  ;;  %v4208_v47 = vadd.f32 %v4207_v44, %v4206_v40 }
 0x1c2   : > { %v4151_v48 = vpop.f32.mrf.mxu1  ;;  %v4209_v51 = vpop.f32.mrf.mxu0 }
 0x1c3   : > { %v2836_v52 = vadd.f32 %v4150_v46, %v4092_v61 }
 0x1c4   : > { %v4152_v53 = vpop.f32.mrf.mxu1  ;;  %v4210_v50 = vpop.f32.mrf.mxu0 }
 0x1c5   : > { %v5726_v54 = vadd.f32 %v4208_v47, %v2836_v52  ;;  %v4153_v57 = vadd.f32 %v4152_v53, %v4151_v48  ;;  %v4211_v58 = vadd.f32 %v4210_v50, %v4209_v51 }
 0x1c6   : > { %v4154_v59 = vpop.f32.mrf.mxu1  ;;  %v4212_v60 = vpop.f32.mrf.mxu0 }
 0x1c7   : > { %v2841_v63 = vadd.f32 %v4153_v57, %v4095_v3 }
 0x1c8   : > { %v4155_v0 = vpop.f32.mrf.mxu1  ;;  %v4213_v55 = vpop.f32.mrf.mxu0 }
 0x1c9   : > { %v5728_v1 = vadd.f32 %v4211_v58, %v2841_v63  ;;  %v4156_v2 = vadd.f32 %v4155_v0, %v4154_v59  ;;  %v4214_v5 = vadd.f32 %v4213_v55, %v4212_v60 }
 0x1ca   : > { %v4157_v6 = vpop.f32.mrf.mxu1  ;;  %v4215_v7 = vpop.f32.mrf.mxu0 }
 0x1cb   : > { %v2844_v8 = vadd.f32 %v4156_v2, %v4098_v9 }
 0x1cc   : > { %v4158_v11 = vpop.f32.mrf.mxu1  ;;  %v4216_v61 = vpop.f32.mrf.mxu0 }
 0x1cd   : > { %v5730_v12 = vadd.f32 %v4214_v5, %v2844_v8  ;;  %v4159_v14 = vadd.f32 %v4158_v11, %v4157_v6  ;;  %v4217_v15 = vadd.f32 %v4216_v61, %v4215_v7 }
 0x1ce   : > { %v4160_v17 = vpop.f32.mrf.mxu1  ;;  %v4218_v18 = vpop.f32.mrf.mxu0 }
 0x1cf   : > { %v2849_v19 = vadd.f32 %v4159_v14, %v4101_v13 }
 0x1d0   : > { %v4161_v20 = vpop.f32.mrf.mxu1  ;;  %v4219_v3 = vpop.f32.mrf.mxu0 }
 0x1d1   : > { %v5732_v21 = vadd.f32 %v4217_v15, %v2849_v19  ;;  %v4162_v22 = vadd.f32 %v4161_v20, %v4160_v17  ;;  %v4220_v23 = vadd.f32 %v4219_v3, %v4218_v18 }
 0x1d2   : > { %v4163_v24 = vpop.f32.mrf.mxu1  ;;  %v4221_v25 = vpop.f32.mrf.mxu0 }
 0x1d3   : > { %v2852_v26 = vadd.f32 %v4162_v22, %v5718_v16 }
 0x1d4   : > { %v4164_v9 = vpop.f32.mrf.mxu1  ;;  %v4222_v27 = vpop.f32.mrf.mxu0 }
 0x1d5   : > { %v5735_v29 = vadd.f32 %v4220_v23, %v2852_v26  ;;  %v4165_v30 = vadd.f32 %v4164_v9, %v4163_v24  ;;  %v4223_v31 = vadd.f32 %v4222_v27, %v4221_v25 }
 0x1d6   : > { %v4166_v32 = vpop.f32.mrf.mxu1  ;;  %v4224_v33 = vpop.f32.mrf.mxu0 }
 0x1d7   : > { %v2857_v13 = vadd.f32 %v4165_v30, %v5706_v43 }
 0x1d8   : > { %v4167_v34 = vpop.f32.mrf.mxu1  ;;  %v4225_v35 = vpop.f32.mrf.mxu0 }
 0x1d9   : > { %v5738_v37 = vadd.f32 %v4223_v31, %v2857_v13  ;;  %v4168_v38 = vadd.f32 %v4167_v34, %v4166_v32  ;;  %v4226_v39 = vadd.f32 %v4225_v35, %v4224_v33 }
 0x1da   : > { %v4169_v40 = vpop.f32.mrf.mxu1  ;;  %v4227_v41 = vpop.f32.mrf.mxu0 }
 0x1db   : > { %v2860_v16 = vadd.f32 %v4168_v38, %v5708_v49 }
 0x1dc   : > { %v4170_v42 = vpop.f32.mrf.mxu1  ;;  %v4228_v44 = vpop.f32.mrf.mxu0 }
 0x1dd   : > { %v5741_v46 = vadd.f32 %v4226_v39, %v2860_v16  ;;  %v4171_v47 = vadd.f32 %v4170_v42, %v4169_v40  ;;  %v4229_v48 = vadd.f32 %v4228_v44, %v4227_v41 }
 0x1de   : > { %v4172_v51 = vpop.f32.mrf.mxu1  ;;  %v4230_v52 = vpop.f32.mrf.mxu0 }
 0x1df   : > { %v2865_v43 = vadd.f32 %v4171_v47, %v5710_v56 }
 0x1e0   : > { %v4173_v53 = vpop.f32.mrf.mxu1  ;;  %v4231_v50 = vpop.f32.mrf.mxu0 }
 0x1e1   : > { %v5744_v57 = vadd.f32 %v4229_v48, %v2865_v43  ;;  %v4174_v58 = vadd.f32 %v4173_v53, %v4172_v51  ;;  %v4232_v59 = vadd.f32 %v4231_v50, %v4230_v52 }
 0x1e2   : > { %v4175_v60 = vpop.f32.mrf.mxu1  ;;  %v4233_v63 = vpop.f32.mrf.mxu0 }
 0x1e3   : > { %5967 = vst [vmem:[#allocation5_spill] sm:$0xff] %v5744_v57  ;;  %v2868_v49 = vadd.f32 %v4174_v58, %v5712_v62 }
 0x1e4   : > { %v4176_v0 = vpop.f32.mrf.mxu1  ;;  %v4234_v55 = vpop.f32.mrf.mxu0 }
 0x1e5   : > { %v5747_v2 = vadd.f32 %v4232_v59, %v2868_v49  ;;  %v4177_v5 = vadd.f32 %v4176_v0, %v4175_v60  ;;  %v4235_v6 = vadd.f32 %v4234_v55, %v4233_v63 }
 0x1e6   : > { %v4178_v7 = vpop.f32.mrf.mxu1  ;;  %v4236_v8 = vpop.f32.mrf.mxu0 }
 0x1e7   : > { %5968 = vst [vmem:[#allocation6_spill] sm:$0xff] %v5747_v2  ;;  %v2873_v56 = vadd.f32 %v4177_v5, %v5714_v4 }
 0x1e8   : > { %v4179_v11 = vpop.f32.mrf.mxu1  ;;  %v4237_v61 = vpop.f32.mrf.mxu0 }
 0x1e9   : > { %v5750_v14 = vadd.f32 %v4235_v6, %v2873_v56  ;;  %v4180_v15 = vadd.f32 %v4179_v11, %v4178_v7  ;;  %v4238_v17 = vadd.f32 %v4237_v61, %v4236_v8 }
 0x1ea   : > { %v4255_v18 = vpop.f32.mrf.mxu1  ;;  %v4313_v19 = vpop.f32.mrf.mxu0 }
 0x1eb   : > { %5969 = vst [vmem:[#allocation7_spill] sm:$0xff] %v5750_v14  ;;  %v2876_v62 = vadd.f32 %v4180_v15, %v5716_v10 }
 0x1ec   : > { %v4256_v20 = vpop.f32.mrf.mxu1  ;;  %v4314_v3 = vpop.f32.mrf.mxu0 }
 0x1ed   : > { %v5753_v22 = vadd.f32 %v4238_v17, %v2876_v62  ;;  %v4257_v2 = vadd.f32 %v4256_v20, %v4255_v18 }
 0x1ee   : > { %v4258_v23 = vpop.f32.mrf.mxu1  ;;  %v5755_v24 = vpop.f32.mrf.mxu0 }
 0x1ef   : > { %5970 = vst [vmem:[#allocation8_spill] sm:$0xff] %v5753_v22 }
 0x1f0   : > { %v4259_v25 = vpop.f32.mrf.mxu1  ;;  %v5757_v26 = vpop.f32.mrf.mxu0 }
 0x1f2   : > { %v4261_v4 = vpop.f32.mrf.mxu1  ;;  %v5759_v9 = vpop.f32.mrf.mxu0 }
 0x1f4   : > { %v4262_v27 = vpop.f32.mrf.mxu1  ;;  %v5761_v30 = vpop.f32.mrf.mxu0 }
 0x1f5   : > { %v4263_v20 = vadd.f32 %v4262_v27, %v4261_v4 }
 0x1f6   : > { %v4264_v31 = vpop.f32.mrf.mxu1  ;;  %v5763_v32 = vpop.f32.mrf.mxu0 }
 0x1f8   : > { %v4265_v10 = vpop.f32.mrf.mxu1  ;;  %v5765_v33 = vpop.f32.mrf.mxu0 }
 0x1fa   : > { %v5767_v13 = vpop.f32.mrf.mxu1  ;;  %v5769_v34 = vpop.f32.mrf.mxu0 }
 0x1fc   : > { %v5771_v35 = vpop.f32.mrf.mxu1  ;;  %v5773_v38 = vpop.f32.mrf.mxu0 }
 0x1fe   : > { %v5775_v39 = vpop.f32.mrf.mxu1  ;;  %v5777_v40 = vpop.f32.mrf.mxu0 }
 0x200   : > { %v5779_v41 = vpop.f32.mrf.mxu1  ;;  %v5781_v16 = vpop.f32.mrf.mxu0 }
 0x202   : > { %v5783_v42 = vpop.f32.mrf.mxu1  ;;  %v5785_v44 = vpop.f32.mrf.mxu0 }
 0x204   : > { %v5787_v47 = vpop.f32.mrf.mxu1  ;;  %v5789_v48 = vpop.f32.mrf.mxu0 }
 0x206   : > { %v5791_v51 = vpop.f32.mrf.mxu1  ;;  %v5793_v52 = vpop.f32.mrf.mxu0 }
 0x208   : > { %v5795_v43 = vpop.f32.mrf.mxu1  ;;  %v5797_v53 = vpop.f32.mrf.mxu0 }
 0x20a   : > { %v5799_v50 = vpop.f32.mrf.mxu1  ;;  %v5801_v58 = vpop.f32.mrf.mxu0 }
 0x20c   : > { %v5803_v59 = vpop.f32.mrf.mxu1  ;;  %v5805_v60 = vpop.f32.mrf.mxu0 }
 0x20e   : > { %v5807_v63 = vpop.f32.mrf.mxu1  ;;  %v5809_v49 = vpop.f32.mrf.mxu0 }
 0x20f   : > { %5971 = vst [vmem:[#allocation9_spill] sm:$0xff] %v5809_v49 }
 0x210   : > { %v5811_v0 = vpop.f32.mrf.mxu1  ;;  %v5813_v55 = vpop.f32.mrf.mxu0 }
 0x211   : > { %5972 = vst [vmem:[#allocation10_spill] sm:$0xff] %v5813_v55 }
 0x212   : > { %v5815_v5 = vpop.f32.mrf.mxu1  ;;  %v5817_v6 = vpop.f32.mrf.mxu0 }
 0x213   : > { %5973 = vst [vmem:[#allocation11_spill] sm:$0xff] %v5817_v6  ;;  %v4260_v6 = vadd.f32 %v4259_v25, %v4258_v23  ;;  %v4321_v23 = vadd.f32 %v5761_v30, %v5759_v9  ;;  %v4324_v9 = vadd.f32 %v5765_v33, %v5763_v32 }
 0x214   : > { %v5819_v7 = vpop.f32.mrf.mxu1  ;;  %v5821_v8 = vpop.f32.mrf.mxu0 }
 0x215   : > { %5974 = vst [vmem:[#allocation12_spill] sm:$0xff] %v5819_v7  ;;  %5975 = vst [vmem:[#allocation13_spill] sm:$0xff] %v5821_v8  ;;  %v3006_v18 = vadd.f32 %v4260_v6, %v5722_v36  ;;  %v4266_v7 = vadd.f32 %v4265_v10, %v4264_v31 }
 0x216   : > { %v5823_v56 = vpop.f32.mrf.mxu1  ;;  %v5825_v11 = vpop.f32.mrf.mxu0 }
 0x217   : > { %5976 = vst [vmem:[#allocation14_spill] sm:$0xff] %v5823_v56  ;;  %5977 = vst [vmem:[#allocation15_spill] sm:$0xff] %v5825_v11  ;;  %v3014_v6 = vadd.f32 %v4266_v7, %v5726_v54  ;;  %v4327_v54 = vadd.f32 %v5773_v38, %v5769_v34  ;;  %v4272_v7 = vadd.f32 %v5779_v41, %v5775_v39 }
 0x218   : > { %v5827_v61 = vpop.f32.mrf.mxu1  ;;  %v5829_v15 = vpop.f32.mrf.mxu0  ;;  %v4275_v38 = vadd.f32 %v5787_v47, %v5783_v42  ;;  %v4333_v42 = vadd.f32 %v5789_v48, %v5785_v44 }
 0x219   : > { %5978 = vst [vmem:[#allocation16_spill] sm:$0xff] %v5827_v61  ;;  %5979 = vst [vmem:[#allocation17_spill] sm:$0xff] %v5829_v15  ;;  %v3003_v61 = vadd.f32 %v4257_v2, %v5720_v28  ;;  %v4315_v15 = vadd.f32 %v4314_v3, %v4313_v19  ;;  %v3011_v3 = vadd.f32 %v4263_v20, %v5724_v45 }
 0x21a   : > { %v5831_v17 = vpop.f32.mrf.mxu1  ;;  %v5833_v62 = vpop.f32.mrf.mxu0  ;;  %v3022_v34 = vadd.f32 %v4272_v7, %v5730_v12 }
 0x21b   : > { %5980 = vst [vmem:[#allocation18_spill] sm:$0xff] %v5831_v17  ;;  %5981 = vst [vmem:[#allocation19_spill] sm:$0xff] %v5833_v62 }
 0x21c   : > { %v5835_v22 = vpop.f32.mrf.mxu1  ;;  %v5837_v14 = vpop.f32.mrf.mxu0 }
 0x21d   : > { %5982 = vst [vmem:[#allocation20_spill] sm:$0xff] %v5835_v22  ;;  %5983 = vst [vmem:[#allocation21_spill] sm:$0xff] %v5837_v14  ;;  %v3092_v22 = vadd.f32 %v4315_v15, %v3003_v61  ;;  %v3103_v15 = vadd.f32 %v4324_v9, %v3014_v6 }
 0x21e   : > { %v5839_v57 = vpop.f32.mrf.mxu1  ;;  %v5841_v8 = vpop.f32.mrf.mxu0 }
 0x21f   : > { %5984 = vst [vmem:[#allocation22_spill] sm:$0xff] %v5839_v57  ;;  %5985 = vst [vmem:[#allocation23_spill] sm:$0xff] %v5841_v8 }
 0x220   : > { %v5843_v56 = vpop.f32.mrf.mxu1  ;;  %v5845_v11 = vpop.f32.mrf.mxu0 }
 0x221   : > { %5986 = vst [vmem:[#allocation24_spill] sm:$0xff] %v5843_v56  ;;  %5987 = vst [vmem:[#allocation25_spill] sm:$0xff] %v5845_v11  ;;  %v4318_v56 = vadd.f32 %v5757_v26, %v5755_v24  ;;  %v4269_v26 = vadd.f32 %v5771_v35, %v5767_v13 }
 0x222   : > { %v4371_v17 = vpop.f32.mrf.mxu1  ;;  %v3269_v55 = vpop.f32.mrf.mxu0 }
 0x223   : > { %v3095_v19 = vadd.f32 %v4318_v56, %v3006_v18 }
 0x224   : > { %v4372_v62 = vpop.f32.mrf.mxu1  ;;  %v3271_v49 = vpop.f32.mrf.mxu0 }
 0x225   : > { %v4373_v57 = vadd.f32 %v4372_v62, %v4371_v17 }
 0x226   : > { %v4374_v14 = vpop.f32.mrf.mxu1  ;;  %v3272_v8 = vpop.f32.mrf.mxu0 }
 0x227   : > { %v3181_v11 = vadd.f32 %v4373_v57, %v3092_v22  ;;  %v3100_v22 = vadd.f32 %v4321_v23, %v3011_v3 }
 0x228   : > { %v4375_v28 = vpop.f32.mrf.mxu1  ;;  %v3274_v2 = vpop.f32.mrf.mxu0 }
 0x229   : > { %v4376_v25 = vadd.f32 %v4375_v28, %v4374_v14  ;;  %v3270_v49 = vadd.f32 %v3269_v55, %v3181_v11 }
 0x22a   : > { %v4377_v36 = vpop.f32.mrf.mxu1  ;;  %v3277_v4 = vpop.f32.mrf.mxu0 }
 0x22b   : > { %v3184_v27 = vadd.f32 %v4376_v25, %v3095_v19  ;;  %v3459_v14 = vmul.f32 %v3270_v49, %v3270_v49  ;;  %v4330_v25 = vadd.f32 %v5781_v16, %v5777_v40 }
 0x22c   : > { %v4378_v24 = vpop.f32.mrf.mxu1  ;;  %v3279_v57 = vpop.f32.mrf.mxu0 }
 0x22d   : > { %v3273_v31 = vadd.f32 %v3272_v8, %v3184_v27  ;;  %v4379_v45 = vadd.f32 %v4378_v24, %v4377_v36  ;;  %v3019_v8 = vadd.f32 %v4269_v26, %v5728_v1  ;;  %v3111_v12 = vadd.f32 %v4330_v25, %v3022_v34 }
 0x22e   : > { %v4380_v30 = vpop.f32.mrf.mxu1  ;;  %v3280_v10 = vpop.f32.mrf.mxu0  ;;  %v3027_v57 = vadd.f32 %v4275_v38, %v5732_v21  ;;  %v4278_v26 = vadd.f32 %v5795_v43, %v5791_v51  ;;  %v4281_v21 = vadd.f32 %v5803_v59, %v5799_v50  ;;  %v4339_v50 = vadd.f32 %v5805_v60, %v5801_v58  ;;  %v5988_v60 = vld [vmem:[#allocation12_spill] sm:$0xff] }
 0x22f   : > { %v4027_v55 = vpack.c.bf16 %v3273_v31, %v3270_v49  ;;  %v3439_v56 = vadd.f32 %v3273_v31, %v3270_v49  ;;  %v3460_v11 = vmul.f32 %v3273_v31, %v3273_v31  ;;  %v3189_v61 = vadd.f32 %v4379_v45, %v3100_v22 }
 0x230   : > { %v4381_v13 = vpop.f32.mrf.mxu1  ;;  %v3282_v35 = vpop.f32.mrf.mxu0  ;;  %v3108_v1 = vadd.f32 %v4327_v54, %v3019_v8  ;;  %v3030_v48 = vadd.f32 %v4278_v26, %v5735_v29  ;;  %v4284_v29 = vadd.f32 %v5811_v0, %v5807_v63  ;;  %v4287_v63 = vadd.f32 %v5988_v60, %v5815_v5 }
 0x231   : > { %4028 = vst [vmem:[%s5866_s15] sm:$0xff] %v4027_v55   ;;  %v3473_v32 = vadd.f32 %v3460_v11, %v3459_v14  ;;  %v3278_v33 = vadd.f32 %v3277_v4, %v3189_v61  ;;  %v4382_v17 = vadd.f32 %v4381_v13, %v4380_v30  ;;  %v3116_v55 = vadd.f32 %v4333_v42, %v3027_v57  ;;  %v5993_v42 = vld [vmem:[#allocation14_spill] sm:$0xff] }
 0x232   : > { %v4383_v62 = vpop.f32.mrf.mxu1  ;;  %v3285_v18 = vpop.f32.mrf.mxu0  ;;  %v4336_v61 = vadd.f32 %v5797_v53, %v5793_v52 }
 0x233   : > { %v3440_v20 = vadd.f32 %v3439_v56, %v3278_v33  ;;  %v3461_v28 = vmul.f32 %v3278_v33, %v3278_v33  ;;  %v3192_v2 = vadd.f32 %v4382_v17, %v3103_v15 }
 0x234   : > { %v4384_v39 = vpop.f32.mrf.mxu1  ;;  %v3287_v41 = vpop.f32.mrf.mxu0  ;;  %v3119_v17 = vadd.f32 %v4336_v61, %v3030_v48  ;;  %v5997_v48 = vld [vmem:[#allocation18_spill] sm:$0xff] }
 0x235   : > { %v3474_v19 = vadd.f32 %v3473_v32, %v3461_v28  ;;  %v3281_v3 = vadd.f32 %v3280_v10, %v3192_v2  ;;  %v4385_v23 = vadd.f32 %v4384_v39, %v4383_v62  ;;  %v3035_v32 = vadd.f32 %v4281_v21, %v5738_v37 }
 0x236   : > { %v4386_v49 = vpop.f32.mrf.mxu1  ;;  %v3288_v36 = vpop.f32.mrf.mxu0  ;;  %v3038_v37 = vadd.f32 %v4284_v29, %v5741_v46  ;;  %v5991_v46 = vld [vmem:[#allocation11_spill] sm:$0xff] }
 0x237   : > { %v4032_v4 = vpack.c.bf16 %v3281_v3, %v3278_v33  ;;  %v3441_v27 = vadd.f32 %v3440_v20, %v3281_v3  ;;  %v3462_v6 = vmul.f32 %v3281_v3, %v3281_v3  ;;  %v3197_v24 = vadd.f32 %v4385_v23, %v3108_v1  ;;  %v5990_v3 = vld [vmem:[#allocation10_spill] sm:$0xff] }
 0x238   : > { %v4387_v47 = vpop.f32.mrf.mxu1  ;;  %v3290_v22 = vpop.f32.mrf.mxu0  ;;  %v3124_v38 = vadd.f32 %v4339_v50, %v3035_v32 }
 0x239   : > { %4059 = vst [vmem:[%s5866_s15 + $0x8] sm:$0xff] %v4032_v4   ;;  %v3475_v31 = vadd.f32 %v3474_v19, %v3462_v6  ;;  %v3286_v40 = vadd.f32 %v3285_v18, %v3197_v24  ;;  %v4388_v16 = vadd.f32 %v4387_v47, %v4386_v49  ;;  %v5989_v19 = vld [vmem:[#allocation9_spill] sm:$0xff]  ;;  %v5994_v47 = vld [vmem:[#allocation16_spill] sm:$0xff] }
 0x23a   : > { %v4389_v45 = vpop.f32.mrf.mxu1  ;;  %v3293_v9 = vpop.f32.mrf.mxu0  ;;  %v4342_v23 = vadd.f32 %v5990_v3, %v5989_v19  ;;  %v4290_v5 = vadd.f32 %v5994_v47, %v5993_v42 }
 0x23b   : > { %v3442_v14 = vadd.f32 %v3441_v27, %v3286_v40  ;;  %v3463_v30 = vmul.f32 %v3286_v40, %v3286_v40  ;;  %v3200_v10 = vadd.f32 %v4388_v16, %v3111_v12  ;;  %v5992_v12 = vld [vmem:[#allocation13_spill] sm:$0xff] }
 0x23c   : > { %v4390_v56 = vpop.f32.mrf.mxu1  ;;  %v3295_v44 = vpop.f32.mrf.mxu0  ;;  %v3127_v24 = vadd.f32 %v4342_v23, %v3038_v37  ;;  %v4345_v57 = vadd.f32 %v5992_v12, %v5991_v46  ;;  %v6004_v37 = vld [vmem:[#allocation22_spill] sm:$0xff]  ;;  %v6007_v12 = vld [vmem:[#allocation23_spill] sm:$0xff] }
 0x23d   : > { %v3476_v11 = vadd.f32 %v3475_v31, %v3463_v30  ;;  %v3289_v51 = vadd.f32 %v3288_v36, %v3200_v10  ;;  %v4391_v43 = vadd.f32 %v4390_v56, %v4389_v45  ;;  %v5995_v31 = vld [vmem:[#allocation5_spill] sm:$0xff]  ;;  %v5996_v56 = vld [vmem:[#allocation6_spill] sm:$0xff] }
 0x23e   : > { %v4392_v15 = vpop.f32.mrf.mxu1  ;;  %v3296_v54 = vpop.f32.mrf.mxu0  ;;  %v3046_v44 = vadd.f32 %v4290_v5, %v5996_v56 }
 0x23f   : > { %v4037_v7 = vpack.c.bf16 %v3289_v51, %v3286_v40  ;;  %v3443_v13 = vadd.f32 %v3442_v14, %v3289_v51  ;;  %v3464_v35 = vmul.f32 %v3289_v51, %v3289_v51  ;;  %v3205_v8 = vadd.f32 %v4391_v43, %v3116_v55 }
 0x240   : > { %v4393_v59 = vpop.f32.mrf.mxu1  ;;  %v3298_v33 = vpop.f32.mrf.mxu0  ;;  %v3043_v40 = vadd.f32 %v4287_v63, %v5995_v31 }
 0x241   : > { %4060 = vst [vmem:[%s5866_s15 + $0x10] sm:$0xff] %v4037_v7   ;;  %v3477_v62 = vadd.f32 %v3476_v11, %v3464_v35  ;;  %v3294_v52 = vadd.f32 %v3293_v9, %v3205_v8  ;;  %v4394_v53 = vadd.f32 %v4393_v59, %v4392_v15  ;;  %v5998_v11 = vld [vmem:[#allocation20_spill] sm:$0xff]  ;;  %v5999_v35 = vld [vmem:[#allocation15_spill] sm:$0xff]  ;;  %v6000_v8 = vld [vmem:[#allocation17_spill] sm:$0xff] }
 0x242   : > { %v4395_v18 = vpop.f32.mrf.mxu1  ;;  %v3301_v20 = vpop.f32.mrf.mxu0  ;;  %v4293_v51 = vadd.f32 %v5998_v11, %v5997_v48  ;;  %v3132_v15 = vadd.f32 %v4345_v57, %v3043_v40  ;;  %v4348_v32 = vadd.f32 %v6000_v8, %v5999_v35  ;;  %v6008_v57 = vld [vmem:[#allocation25_spill] sm:$0xff] }
 0x243   : > { %v3444_v28 = vadd.f32 %v3443_v13, %v3294_v52  ;;  %v3465_v2 = vmul.f32 %v3294_v52, %v3294_v52  ;;  %v3208_v34 = vadd.f32 %v4394_v53, %v3119_v17  ;;  %v6001_v53 = vld [vmem:[#allocation7_spill] sm:$0xff]  ;;  %v4354_v42 = vadd.f32 %v6008_v57, %v6007_v12 }
 0x244   : > { %v4396_v39 = vpop.f32.mrf.mxu1  ;;  %v3303_v58 = vpop.f32.mrf.mxu0 }
 0x245   : > { %v3478_v0 = vadd.f32 %v3477_v62, %v3465_v2  ;;  %v3297_v41 = vadd.f32 %v3296_v54, %v3208_v34  ;;  %v4397_v1 = vadd.f32 %v4396_v39, %v4395_v18  ;;  %v3051_v18 = vadd.f32 %v4293_v51, %v6001_v53  ;;  %v6005_v39 = vld [vmem:[#allocation24_spill] sm:$0xff] }
 0x246   : > { %v4398_v25 = vpop.f32.mrf.mxu1  ;;  %v3304_v49 = vpop.f32.mrf.mxu0  ;;  %v4296_v58 = vadd.f32 %v6005_v39, %v6004_v37  ;;  %v3539_v53 = vld [vmem:[%s5866_s15 + $0x8] sm:$0xf] (%p4829_p6) }
 0x247   : > { %v4042_v36 = vpack.c.bf16 %v3297_v41, %v3294_v52  ;;  %v3445_v4 = vadd.f32 %v3444_v28, %v3297_v41  ;;  %v3466_v27 = vmul.f32 %v3297_v41, %v3297_v41  ;;  %v3213_v6 = vadd.f32 %v4397_v1, %v3124_v38  ;;  %v6003_v28 = vld [vmem:[#allocation21_spill] sm:$0xff]  ;;  %3540 = vst [vmem:[%s3518_s28 + $0x18] sm:$0xf] (%p4829_p6), %v3539_v53 }
 0x248   : > { %v4399_v22 = vpop.f32.mrf.mxu1  ;;  %v3306_v26 = vpop.f32.mrf.mxu0  ;;  %v3135_v52 = vadd.f32 %v4348_v32, %v3046_v44 }
 0x249   : > { %4061 = vst [vmem:[%s5866_s15 + $0x18] sm:$0xff] %v4042_v36   ;;  %v3479_v16 = vadd.f32 %v3478_v0, %v3466_v27  ;;  %v3302_v45 = vadd.f32 %v3301_v20, %v3213_v6  ;;  %v4400_v9 = vadd.f32 %v4399_v22, %v4398_v25  ;;  %v6002_v20 = vld [vmem:[#allocation19_spill] sm:$0xff] }
 0x24a   : > { %v4401_v14 = vpop.f32.mrf.mxu1  ;;  %v3309_v30 = vpop.f32.mrf.mxu0  ;;  %v4351_v2 = vadd.f32 %v6003_v28, %v6002_v20  ;;  %v3543_v20 = vld [vmem:[%s5866_s15 + $0x10] sm:$0xf] (%p4829_p6)  ;;  %v3545_v28 = vld [vmem:[%s5866_s15 + $0x14] sm:$0xf] (%p4829_p6) }
 0x24b   : > { %v3446_v10 = vadd.f32 %v3445_v4, %v3302_v45  ;;  %v3467_v55 = vmul.f32 %v3302_v45, %v3302_v45  ;;  %v3216_v21 = vadd.f32 %v4400_v9, %v3127_v24  ;;  %v6006_v4 = vld [vmem:[#allocation8_spill] sm:$0xff]  ;;  %3544 = vst [vmem:[%s3518_s28 + $0x30] sm:$0xf] (%p4829_p6), %v3543_v20  ;;  %3546 = vst [vmem:[%s3518_s28 + $0x3c] sm:$0xf] (%p4829_p6), %v3545_v28 }
 0x24c   : > { %v4402_v43 = vpop.f32.mrf.mxu1  ;;  %v3311_v61 = vpop.f32.mrf.mxu0  ;;  %v3140_v25 = vadd.f32 %v4351_v2, %v3051_v18  ;;  %v3054_v27 = vadd.f32 %v4296_v58, %v6006_v4  ;;  %v3541_v18 = vld [vmem:[%s5866_s15 + $0xc] sm:$0xf] (%p4829_p6) }
 0x24d   : > { %v3480_v54 = vadd.f32 %v3479_v16, %v3467_v55  ;;  %v3305_v7 = vadd.f32 %v3304_v49, %v3216_v21  ;;  %v4403_v13 = vadd.f32 %v4402_v43, %v4401_v14  ;;  %3542 = vst [vmem:[%s3518_s28 + $0x24] sm:$0xf] (%p4829_p6), %v3541_v18 }
 0x24e   : > { %v4404_v50 = vpop.f32.mrf.mxu1  ;;  %v3312_v29 = vpop.f32.mrf.mxu0  ;;  %v3143_v9 = vadd.f32 %v4354_v42, %v3054_v27 }
 0x24f   : > { %v4047_v59 = vpack.c.bf16 %v3305_v7, %v3302_v45  ;;  %v3447_v33 = vadd.f32 %v3446_v10, %v3305_v7  ;;  %v3468_v17 = vmul.f32 %v3305_v7, %v3305_v7  ;;  %v3221_v62 = vadd.f32 %v4403_v13, %v3132_v15 }
 0x250   : > { %v4405_v34 = vpop.f32.mrf.mxu1  ;;  %v3314_v38 = vpop.f32.mrf.mxu0  ;;  %v3547_v2 = vld [vmem:[%s5866_s15 + $0x18] sm:$0xf] (%p4829_p6) }
 0x251   : > { %4062 = vst [vmem:[%s5866_s15 + $0x20] sm:$0xff] %v4047_v59   ;;  %v3481_v60 = vadd.f32 %v3480_v54, %v3468_v17  ;;  %v3310_v63 = vadd.f32 %v3309_v30, %v3221_v62  ;;  %v4406_v0 = vadd.f32 %v4405_v34, %v4404_v50  ;;  %v3535_v62 = vld [vmem:[%s5866_s15] sm:$0xf] (%p4829_p6)  ;;  %v3549_v34 = vld [vmem:[%s5866_s15 + $0x1c] sm:$0xf] (%p4829_p6) }
 0x252   : > { %v4407_v41 = vpop.f32.mrf.mxu1  ;;  %v3317_v1 = vpop.f32.mrf.mxu0  ;;  %3536 = vst [vmem:[%s3518_s28] sm:$0xf] (%p4829_p6), %v3535_v62  ;;  %3548 = vst [vmem:[%s3518_s28 + $0x48] sm:$0xf] (%p4829_p6), %v3547_v2 }
 0x253   : > { %v3448_v19 = vadd.f32 %v3447_v33, %v3310_v63  ;;  %v3469_v3 = vmul.f32 %v3310_v63, %v3310_v63  ;;  %v3224_v23 = vadd.f32 %v4406_v0, %v3135_v52  ;;  %v3537_v52 = vld [vmem:[%s5866_s15 + $0x4] sm:$0xf] (%p4829_p6)  ;;  %3550 = vst [vmem:[%s3518_s28 + $0x54] sm:$0xf] (%p4829_p6), %v3549_v34 }
 0x254   : > { %v4408_v49 = vpop.f32.mrf.mxu1  ;;  %v3319_v36 = vpop.f32.mrf.mxu0  ;;  %3538 = vst [vmem:[%s3518_s28 + $0xc] sm:$0xf] (%p4829_p6), %v3537_v52 }
 0x255   : > { %v3482_v6 = vadd.f32 %v3481_v60, %v3469_v3  ;;  %v3313_v24 = vadd.f32 %v3312_v29, %v3224_v23  ;;  %v4409_v46 = vadd.f32 %v4408_v49, %v4407_v41 }
 0x256   : > { %v4410_v47 = vpop.f32.mrf.mxu1  ;;  %v3320_v5 = vpop.f32.mrf.mxu0 }
 0x257   : > { %v4052_v22 = vpack.c.bf16 %v3313_v24, %v3310_v63  ;;  %v3449_v26 = vadd.f32 %v3448_v19, %v3313_v24  ;;  %v3470_v31 = vmul.f32 %v3313_v24, %v3313_v24  ;;  %v3229_v40 = vadd.f32 %v4409_v46, %v3140_v25 }
 0x258   : > { %v4411_v16 = vpop.f32.mrf.mxu1  ;;  %v3322_v45 = vpop.f32.mrf.mxu0  ;;  %v3551_v38 = vld [vmem:[%s5866_s15 + $0x20] sm:$0xf] (%p4829_p6)  ;;  %v3553_v37 = vld [vmem:[%s5866_s15 + $0x24] sm:$0xf] (%p4829_p6) }
 0x259   : > { %4063 = vst [vmem:[%s5866_s15 + $0x28] sm:$0xff] %v4052_v22   ;;  %v3483_v14 = vadd.f32 %v3482_v6, %v3470_v31  ;;  %v3318_v30 = vadd.f32 %v3317_v1, %v3229_v40  ;;  %v4412_v10 = vadd.f32 %v4411_v16, %v4410_v47  ;;  %3552 = vst [vmem:[%s3518_s28 + $0x60] sm:$0xf] (%p4829_p6), %v3551_v38 }
 0x25a   : > { %3554 = vst [vmem:[%s3518_s28 + $0x6c] sm:$0xf] (%p4829_p6), %v3553_v37 }
 0x25b   : > { %v3450_v55 = vadd.f32 %v3449_v26, %v3318_v30  ;;  %v3471_v21 = vmul.f32 %v3318_v30, %v3318_v30  ;;  %v3232_v56 = vadd.f32 %v4412_v10, %v3143_v9 }
 0x25d   : > { %v3484_v44 = vadd.f32 %v3483_v14, %v3471_v21  ;;  %v3321_v48 = vadd.f32 %v3320_v5, %v3232_v56 }
 0x25f   : > { %v4057_v11 = vpack.c.bf16 %v3321_v48, %v3318_v30  ;;  %v3451_v51 = vadd.f32 %v3450_v55, %v3321_v48  ;;  %v3472_v43 = vmul.f32 %v3321_v48, %v3321_v48 }
 0x260   : > { %v3555_v39 = vld [vmem:[%s5866_s15 + $0x28] sm:$0xf] (%p4829_p6)  ;;  %v3557_v58 = vld [vmem:[%s5866_s15 + $0x2c] sm:$0xf] (%p4829_p6) }
 0x261   : > { %4064 = vst [vmem:[%s5866_s15 + $0x30] sm:$0xff] %v4057_v11   ;;  %v3452_v61 = vrot.slane %v3451_v51, 4  ;;  %v3485_v15 = vadd.f32 %v3484_v44, %v3472_v43  ;;  %3556 = vst [vmem:[%s3518_s28 + $0x78] sm:$0xf] (%p4829_p6), %v3555_v39 }
 0x262   : > { %3558 = vst [vmem:[%s3518_s28 + $0x84] sm:$0xf] (%p4829_p6), %v3557_v58 }
 0x263   : > { %v3453_v54 = vadd.f32 %v3452_v61, %v3451_v51  ;;  %v3486_v7 = vrot.slane %v3485_v15, 4 }
 0x265   : > { %v3454_v13 = vrot.slane %v3453_v54, 2  ;;  %v3487_v35 = vadd.f32 %v3486_v7, %v3485_v15 }
 0x267   : > { %v3455_v8 = vadd.f32 %v3454_v13, %v3453_v54  ;;  %v3488_v32 = vrot.slane %v3487_v35, 2 }
 0x268   : > { %v3559_v60 = vld [vmem:[%s5866_s15 + $0x30] sm:$0xf] (%p4829_p6)  ;;  %v3561_v63 = vld [vmem:[%s5866_s15 + $0x34] sm:$0xf] (%p4829_p6) }
 0x269   : > { %v3456_v50 = vrot.slane %v3455_v8, 1  ;;  %v3489_v29 = vadd.f32 %v3488_v32, %v3487_v35  ;;  %3560 = vst [vmem:[%s3518_s28 + $0x90] sm:$0xf] (%p4829_p6), %v3559_v60  ;;  %3562 = vst [vmem:[%s3518_s28 + $0x9c] sm:$0xf] (%p4829_p6), %v3561_v63 }
 0x26b   : > { %v3457_v59 = vadd.f32 %v3456_v50, %v3455_v8  ;;  %v3490_v33 = vrot.slane %v3489_v29, 1  ;;  %3513 = sbr.rel (!%p4829_p6) target bundleno = 624 (0x270), region = 81 }
 0x26d   : > { %3458 = vst [vmem:[%s1193_s12] sm:$0x1] %v3457_v59  ;;  %v3491_v17 = vadd.f32 %v3490_v33, %v3489_v29 }
 0x26f   : > { %3492 = vst [vmem:[%s1200_s22] sm:$0x1] %v3491_v17 }
 0x270 PF: > { %s15_s19 = sadd.s32 1, %s4766_s19   ;;  %s6009_s15 = smov %s4754_s16 }
 0x271   : > { %p12_p12 = scmp.ge.s32.totalorder %s15_s19, 5   ;;  %s6010_s16 = smov %s4834_s25 }
 0x272   : > { %s6011_s17 = smov %s4762_s18  ;;  %s6012_s18 = smov %s6014_s20 }
 0x273   :  { %14 = sbr.rel (!%p12_p12) target bundleno = 3 (0x3), region = 180 }

</bundles_post_ra>
